<compile_context>
chip_gen: v5e
topology: v5e:2x2
jax: 0.10.0
libtpu: 0.0.40
codegen_flags: <defaults>
</compile_context>

<pallas_src>
import jax
import jax.numpy as jnp
import numpy as np
from jax import lax
from jax.experimental import pallas as pl
from jax.experimental.pallas import tpu as pltpu

KH = KW = 3          # conv kernel size (module instantiated with kernel_size=3)
PAD = 1              # spatial padding
EPS = 1e-3           # BatchNorm eps from the module
LANE = 128           # TPU lane width: channel dims padded to this
_LEAD = 16           # leading pad rows in the flattened scratch (bf16 sublane tile)


def _round_up(n, m):
    return (n + m - 1) // m * m


def _pick_row_tile(H, W, cap_rows=256):
    """Largest divisor of H with TH*W <= cap_rows (amortizes per-step overhead)."""
    cap = max(1, min(H, cap_rows // max(W, 1)))
    for d in range(cap, 0, -1):
        if H % d == 0:
            return d
    return 1


def _conv_bn_relu_kernel(x_ref, top_ref, bot_ref, w_ref, scale_ref, bias_ref,
                         o_ref, fbuf, pbuf):
    """One (batch, row-tile, cout-tile) grid step.

    x_ref:     (1, TH, W, CI)          main input tile (bf16, channel-padded)
    top_ref:   (1, 1, W, CI)           row above the tile (clamped; zeroed at h==0)
    bot_ref:   (1, 1, W, CI)           row below the tile (clamped; zeroed at last h)
    w_ref:     (KH*KW*CI, CO)          im2col weight slab for this Cout tile
    scale_ref: (1, CO)                 folded BN scale (f32)
    bias_ref:  (1, CO)                 folded BN bias  (f32)
    o_ref:     (1, TH, W, CO)          output tile (f32, lane-dense CO)
    fbuf:      ((TH+2)*W + LEAD + 1, CI)  VMEM scratch: row-flattened halo tile
    pbuf:      (TH*W, KH*KW*CI)        VMEM scratch: im2col patches (reused across c)
    """
    TH, W, CI = x_ref.shape[1], x_ref.shape[2], x_ref.shape[3]
    CO = o_ref.shape[3]
    M = TH * W

    h = pl.program_id(1)
    nh = pl.num_programs(1)
    first_c = pl.program_id(2) == 0

    zrow = jnp.zeros((W, CI), dtype=fbuf.dtype)

    # ---- assemble the row-flattened halo tile in VMEM (only on the first Cout tile) ----
    # fbuf[_LEAD + (a+1)*W + b, :] = X[a, b, :]  for a in [-1, TH], b in [0, W).
    @pl.when(first_c)
    def _():
        fbuf[pl.ds(_LEAD - 1, 1), :] = jnp.zeros((1, CI), dtype=fbuf.dtype)
        fbuf[pl.ds(_LEAD + (TH + 2) * W, 1), :] = jnp.zeros((1, CI), dtype=fbuf.dtype)
        fbuf[pl.ds(_LEAD + W, M), :] = x_ref[0].reshape(M, CI)

    @pl.when(jnp.logical_and(first_c, h > 0))
    def _():
        fbuf[pl.ds(_LEAD, W), :] = top_ref[0, 0]

    @pl.when(jnp.logical_and(first_c, h == 0))
    def _():
        fbuf[pl.ds(_LEAD, W), :] = zrow

    @pl.when(jnp.logical_and(first_c, h < nh - 1))
    def _():
        fbuf[pl.ds(_LEAD + (TH + 1) * W, W), :] = bot_ref[0, 0]

    @pl.when(jnp.logical_and(first_c, h == nh - 1))
    def _():
        fbuf[pl.ds(_LEAD + (TH + 1) * W, W), :] = zrow

    # ---- build the full im2col patch buffer once; reused for every Cout tile ----
    @pl.when(first_c)
    def _():
        col = lax.broadcasted_iota(jnp.int32, (M, 1), 0) % W
        left_ok = col != 0           # kx=0 reads x-1: invalid at x == 0
        right_ok = col != (W - 1)    # kx=2 reads x+1: invalid at x == W-1
        for ky in range(KH):
            base = (_LEAD - 1) + ky * W
            pbuf[:, pl.ds((ky * KW + 0) * CI, CI)] = jnp.where(
                left_ok, fbuf[pl.ds(base + 0, M), :], 0)
            pbuf[:, pl.ds((ky * KW + 1) * CI, CI)] = fbuf[pl.ds(base + 1, M), :]
            pbuf[:, pl.ds((ky * KW + 2) * CI, CI)] = jnp.where(
                right_ok, fbuf[pl.ds(base + 2, M), :], 0)

    # ---- hot path: one deep-K MXU matmul + folded BatchNorm + ReLU (f32) ----
    acc = jnp.dot(pbuf[...], w_ref[...], preferred_element_type=jnp.float32)
    y = jnp.maximum(acc * scale_ref[0] + bias_ref[0], 0.0)
    o_ref[...] = y.reshape(1, TH, W, CO).astype(o_ref.dtype)


@jax.jit
def basic_conv2d(x_nchw, weight, gamma, beta, running_mean, running_var):
    """Forward pass of BasicConv2d (inference-mode BatchNorm).

    x_nchw:  (N, Cin, H, W)         PyTorch layout
    weight:  (Cout, Cin, KH, KW)    PyTorch Conv2d weight layout
    returns: (N, Cout, H, W)
    """
    N, Cin, H, W = x_nchw.shape
    Cout = weight.shape[0]

    CI = _round_up(Cin, LANE)       # lane-dense input channels
    CO_P = _round_up(Cout, LANE)    # lane-dense output channels
    CO_T = LANE                     # Cout tile per grid step
    TH = _pick_row_tile(H, W)       # rows per grid step (divides H)
    NH = H // TH
    M = TH * W
    K = KH * KW * CI

    # Layout glue for the PyTorch interface (see TODO at top of file).
    x_nhwc = jnp.transpose(x_nchw, (0, 2, 3, 1))
    if CI != Cin:
        x_nhwc = jnp.pad(x_nhwc, ((0, 0), (0, 0), (0, 0), (0, CI - Cin)))
    x_bf = x_nhwc.astype(jnp.bfloat16)

    # Weights -> (KH*KW*CI, CO_P): rows ordered (ky, kx, ci) to match the patch buffer.
    w = jnp.transpose(weight, (2, 3, 1, 0))                        # (KH,KW,Cin,Cout)
    w = jnp.pad(w, ((0, 0), (0, 0), (0, CI - Cin), (0, CO_P - Cout)))
    w = w.reshape(K, CO_P).astype(jnp.bfloat16)

    # Fold BatchNorm (running stats) into per-channel scale / bias (f32).
    scale = (gamma / jnp.sqrt(running_var + EPS)).astype(jnp.float32)
    bias = (beta - running_mean * scale).astype(jnp.float32)
    scale = jnp.pad(scale, (0, CO_P - Cout)).reshape(1, CO_P)
    bias = jnp.pad(bias, (0, CO_P - Cout)).reshape(1, CO_P)

    grid = (N, NH, CO_P // CO_T)

    out_nhwc = pl.pallas_call(
        _conv_bn_relu_kernel,
        out_shape=jax.ShapeDtypeStruct((N, H, W, CO_P), jnp.float32),
        grid_spec=pltpu.PrefetchScalarGridSpec(
            num_scalar_prefetch=0,
            grid=grid,
            in_specs=[
                # main input tile
                pl.BlockSpec((1, TH, W, CI), lambda n, h, c: (n, h, 0, 0)),
                # halo row above (clamped at the top edge; zero-filled in-kernel)
                pl.BlockSpec((1, 1, W, CI),
                             lambda n, h, c: (n, jnp.maximum(h * TH - 1, 0), 0, 0)),
                # halo row below (clamped at the bottom edge; zero-filled in-kernel)
                pl.BlockSpec((1, 1, W, CI),
                             lambda n, h, c: (n, jnp.minimum((h + 1) * TH, H - 1), 0, 0)),
                # im2col weights / folded BN params, tiled along Cout
                pl.BlockSpec((K, CO_T), lambda n, h, c: (0, c)),
                pl.BlockSpec((1, CO_T), lambda n, h, c: (0, c)),
                pl.BlockSpec((1, CO_T), lambda n, h, c: (0, c)),
            ],
            out_specs=pl.BlockSpec((1, TH, W, CO_T),
                                   lambda n, h, c: (n, h, 0, c)),
            scratch_shapes=[
                pltpu.VMEM(((TH + 2) * W + _LEAD + 1, CI), jnp.bfloat16),
                pltpu.VMEM((M, K), jnp.bfloat16),
            ]),
        compiler_params=pltpu.CompilerParams(
            # c carries the im2col scratch across iterations -> "arbitrary";
            # (n, h) stay "parallel" for megacore sharding.
            dimension_semantics=("parallel", "parallel", "arbitrary"),
            vmem_limit_bytes=32 * 1024 * 1024),
    )(x_bf, x_bf, x_bf, w, scale, bias)

    return jnp.transpose(out_nhwc[..., :Cout], (0, 3, 1, 2))       # back to NCHW


def _reference(x_nchw, weight, gamma, beta, running_mean, running_var):
    """Pure-JAX f32 reference (conv + eval BN + relu)."""
    y = lax.conv_general_dilated(
        x_nchw, weight, window_strides=(1, 1),
        padding=((PAD, PAD), (PAD, PAD)),
        dimension_numbers=("NCHW", "OIHW", "NCHW"))
    scale = gamma / jnp.sqrt(running_var + EPS)
    bias = beta - running_mean * scale
    y = y * scale[None, :, None, None] + bias[None, :, None, None]
    return jnp.maximum(y, 0.0)


def _run_case(key, N, Cin, H, W, Cout):
    k_x, k_w, k_g, k_b, k_m, k_v = jax.random.split(key, 6)
    x = jax.random.normal(k_x, (N, Cin, H, W), dtype=jnp.float32)
    weight = 0.1 * jax.random.normal(k_w, (Cout, Cin, KH, KW), dtype=jnp.float32)
    gamma = 1.0 + 0.1 * jax.random.normal(k_g, (Cout,), dtype=jnp.float32)
    beta = 0.1 * jax.random.normal(k_b, (Cout,), dtype=jnp.float32)
    running_mean = 0.1 * jax.random.normal(k_m, (Cout,), dtype=jnp.float32)
    running_var = jnp.abs(1.0 + 0.1 * jax.random.normal(k_v, (Cout,), dtype=jnp.float32))

    out = jax.block_until_ready(
        basic_conv2d(x, weight, gamma, beta, running_mean, running_var))
    ref = jax.block_until_ready(
        _reference(x, weight, gamma, beta, running_mean, running_var))

    # bf16 matmul operands (f32 accumulation) vs an all-f32 reference -> loose tol.
    np.testing.assert_allclose(np.asarray(out), np.asarray(ref), rtol=3e-2, atol=3e-2)


if __name__ == "__main__":
    key = jax.random.PRNGKey(0)
    k0, k1 = jax.random.split(key, 2)

    # Primary small case (matches the module's implied shapes).
    _run_case(k0, N=2, Cin=4, H=16, W=16, Cout=8)
    # Second case exercising the row-halo (NH>1) and multi-Cout-tile (c>0) paths.
    _run_case(k1, N=1, Cin=3, H=32, W=16, Cout=192)

    print("KERNEL_OK")
</pallas_src>

<mosaic_0001>
module attributes {stable_mosaic.version = 11 : i64} {
  func.func @_conv_bn_relu_kernel(%arg0: i32, %arg1: i32, %arg2: i32, %arg3: memref<1x16x16x128xbf16, #tpu.memory_space<vmem>>, %arg4: memref<1x1x16x128xbf16, #tpu.memory_space<vmem>>, %arg5: memref<1x1x16x128xbf16, #tpu.memory_space<vmem>>, %arg6: memref<1152x128xbf16, #tpu.memory_space<vmem>>, %arg7: memref<1x128xf32, #tpu.memory_space<vmem>>, %arg8: memref<1x128xf32, #tpu.memory_space<vmem>>, %arg9: memref<1x16x16x128xf32, #tpu.memory_space<vmem>>, %arg10: memref<305x128xbf16, #tpu.memory_space<vmem>>, %arg11: memref<256x1152xbf16, #tpu.memory_space<vmem>>) attributes {dimension_semantics = [#tpu.dimension_semantics<parallel>, #tpu.dimension_semantics<parallel>, #tpu.dimension_semantics<arbitrary>], iteration_bounds = array<i64: 2, 1, 1>, scalar_prefetch = 0 : i64, scratch_operands = 2 : i64, tpu.core_type = #tpu.core_type<tc>, window_params = [{transform_indices = @transform_0, window_bounds = array<i64: 1, 16, 16, 128>}, {transform_indices = @transform_1, window_bounds = array<i64: 1, 1, 16, 128>}, {transform_indices = @transform_2, window_bounds = array<i64: 1, 1, 16, 128>}, {transform_indices = @transform_3, window_bounds = array<i64: 1152, 128>}, {transform_indices = @transform_4, window_bounds = array<i64: 1, 128>}, {transform_indices = @transform_5, window_bounds = array<i64: 1, 128>}, {transform_indices = @transform_6, window_bounds = array<i64: 1, 16, 16, 128>}]} {
    %c0_i32 = arith.constant 0 : i32
    %0 = arith.cmpi eq, %arg2, %c0_i32 : i32
    %cst = arith.constant 0.000000e+00 : bf16
    %1 = vector.broadcast %cst : bf16 to vector<16x128xbf16>
    %2 = arith.extui %0 : i1 to i32
    %c0_i32_0 = arith.constant 0 : i32
    %3 = arith.cmpi ne, %2, %c0_i32_0 : i32
    scf.if %3 {
      %cst_23 = arith.constant 0.000000e+00 : bf16
      %39 = vector.broadcast %cst_23 : bf16 to vector<1x128xbf16>
      %c15 = arith.constant 15 : index
      %c0_24 = arith.constant 0 : index
      %40 = vector.load %arg10[%c15, %c0_24] : memref<305x128xbf16, #tpu.memory_space<vmem>>, vector<1x128xbf16>
      tpu.vector_store %arg10[%c15, %c0_24], %39 {strides = array<i32>} : memref<305x128xbf16, #tpu.memory_space<vmem>>, vector<1x128xbf16>,
      %cst_25 = arith.constant 0.000000e+00 : bf16
      %41 = vector.broadcast %cst_25 : bf16 to vector<1x128xbf16>
      %c304 = arith.constant 304 : index
      %c0_26 = arith.constant 0 : index
      %42 = vector.load %arg10[%c304, %c0_26] : memref<305x128xbf16, #tpu.memory_space<vmem>>, vector<1x128xbf16>
      tpu.vector_store %arg10[%c304, %c0_26], %41 {strides = array<i32>} : memref<305x128xbf16, #tpu.memory_space<vmem>>, vector<1x128xbf16>,
      %c0_27 = arith.constant 0 : index
      %c0_28 = arith.constant 0 : index
      %c0_29 = arith.constant 0 : index
      %c0_30 = arith.constant 0 : index
      %43 = vector.load %arg3[%c0_27, %c0_28, %c0_29, %c0_30] : memref<1x16x16x128xbf16, #tpu.memory_space<vmem>>, vector<1x16x16x128xbf16>
      %44 = vector.shape_cast %43 : vector<1x16x16x128xbf16> to vector<16x16x128xbf16>
      %45 = vector.shape_cast %44 : vector<16x16x128xbf16> to vector<256x128xbf16>
      %c32 = arith.constant 32 : index
      %c0_31 = arith.constant 0 : index
      %46 = vector.load %arg10[%c32, %c0_31] : memref<305x128xbf16, #tpu.memory_space<vmem>>, vector<256x128xbf16>
      tpu.vector_store %arg10[%c32, %c0_31], %45 {strides = array<i32>} : memref<305x128xbf16, #tpu.memory_space<vmem>>, vector<256x128xbf16>,
    } else {
    }
    %c0_i32_1 = arith.constant 0 : i32
    %4 = arith.cmpi sgt, %arg1, %c0_i32_1 : i32
    %5 = arith.andi %0, %4 : i1
    %6 = arith.extui %5 : i1 to i32
    %c0_i32_2 = arith.constant 0 : i32
    %7 = arith.cmpi ne, %6, %c0_i32_2 : i32
    scf.if %7 {
      %c0_23 = arith.constant 0 : index
      %c0_24 = arith.constant 0 : index
      %c0_25 = arith.constant 0 : index
      %c0_26 = arith.constant 0 : index
      %39 = vector.load %arg4[%c0_23, %c0_24, %c0_25, %c0_26] : memref<1x1x16x128xbf16, #tpu.memory_space<vmem>>, vector<1x1x16x128xbf16>
      %40 = vector.shape_cast %39 : vector<1x1x16x128xbf16> to vector<16x128xbf16>
      %c16 = arith.constant 16 : index
      %c0_27 = arith.constant 0 : index
      %41 = vector.load %arg10[%c16, %c0_27] : memref<305x128xbf16, #tpu.memory_space<vmem>>, vector<16x128xbf16>
      tpu.vector_store %arg10[%c16, %c0_27], %40 {strides = array<i32>} : memref<305x128xbf16, #tpu.memory_space<vmem>>, vector<16x128xbf16>,
    } else {
    }
    %c0_i32_3 = arith.constant 0 : i32
    %8 = arith.cmpi eq, %arg1, %c0_i32_3 : i32
    %9 = arith.andi %0, %8 : i1
    %10 = arith.extui %9 : i1 to i32
    %c0_i32_4 = arith.constant 0 : i32
    %11 = arith.cmpi ne, %10, %c0_i32_4 : i32
    scf.if %11 {
      %c16 = arith.constant 16 : index
      %c0_23 = arith.constant 0 : index
      %39 = vector.load %arg10[%c16, %c0_23] : memref<305x128xbf16, #tpu.memory_space<vmem>>, vector<16x128xbf16>
      tpu.vector_store %arg10[%c16, %c0_23], %1 {strides = array<i32>} : memref<305x128xbf16, #tpu.memory_space<vmem>>, vector<16x128xbf16>,
    } else {
    }
    %c0_i32_5 = arith.constant 0 : i32
    %12 = arith.cmpi slt, %arg1, %c0_i32_5 : i32
    %13 = arith.andi %0, %12 : i1
    %14 = arith.extui %13 : i1 to i32
    %c0_i32_6 = arith.constant 0 : i32
    %15 = arith.cmpi ne, %14, %c0_i32_6 : i32
    scf.if %15 {
      %c0_23 = arith.constant 0 : index
      %c0_24 = arith.constant 0 : index
      %c0_25 = arith.constant 0 : index
      %c0_26 = arith.constant 0 : index
      %39 = vector.load %arg5[%c0_23, %c0_24, %c0_25, %c0_26] : memref<1x1x16x128xbf16, #tpu.memory_space<vmem>>, vector<1x1x16x128xbf16>
      %40 = vector.shape_cast %39 : vector<1x1x16x128xbf16> to vector<16x128xbf16>
      %c288 = arith.constant 288 : index
      %c0_27 = arith.constant 0 : index
      %41 = vector.load %arg10[%c288, %c0_27] : memref<305x128xbf16, #tpu.memory_space<vmem>>, vector<16x128xbf16>
      tpu.vector_store %arg10[%c288, %c0_27], %40 {strides = array<i32>} : memref<305x128xbf16, #tpu.memory_space<vmem>>, vector<16x128xbf16>,
    } else {
    }
    %c0_i32_7 = arith.constant 0 : i32
    %16 = arith.cmpi eq, %arg1, %c0_i32_7 : i32
    %17 = arith.andi %0, %16 : i1
    %18 = arith.extui %17 : i1 to i32
    %c0_i32_8 = arith.constant 0 : i32
    %19 = arith.cmpi ne, %18, %c0_i32_8 : i32
    scf.if %19 {
      %c288 = arith.constant 288 : index
      %c0_23 = arith.constant 0 : index
      %39 = vector.load %arg10[%c288, %c0_23] : memref<305x128xbf16, #tpu.memory_space<vmem>>, vector<16x128xbf16>
      tpu.vector_store %arg10[%c288, %c0_23], %1 {strides = array<i32>} : memref<305x128xbf16, #tpu.memory_space<vmem>>, vector<16x128xbf16>,
    } else {
    }
    %20 = arith.extui %0 : i1 to i32
    %c0_i32_9 = arith.constant 0 : i32
    %21 = arith.cmpi ne, %20, %c0_i32_9 : i32
    scf.if %21 {
      %39 = tpu.iota {dimensions = array<i32: 0>} : vector<256x1xi32>
      %c16_i32 = arith.constant 16 : i32
      %c0_i32_23 = arith.constant 0 : i32
      %40 = arith.cmpi eq, %c16_i32, %c0_i32_23 : i32
      %c1_i32 = arith.constant 1 : i32
      %41 = arith.select %40, %c1_i32, %c16_i32 : i32
      %42 = vector.broadcast %41 : i32 to vector<256x1xi32>
      %43 = arith.remsi %39, %42 : vector<256x1xi32>
      %c0_i32_24 = arith.constant 0 : i32
      %44 = vector.broadcast %c0_i32_24 : i32 to vector<256x1xi32>
      %45 = arith.cmpi ne, %43, %44 : vector<256x1xi32>
      %c0_i32_25 = arith.constant 0 : i32
      %46 = vector.broadcast %c0_i32_25 : i32 to vector<256x1xi32>
      %47 = arith.cmpi slt, %43, %46 : vector<256x1xi32>
      %c0_i32_26 = arith.constant 0 : i32
      %48 = arith.cmpi slt, %41, %c0_i32_26 : i32
      %49 = vector.broadcast %48 : i1 to vector<256x1xi1>
      %50 = vector.broadcast %49 : vector<256x1xi1> to vector<256x1xi1>
      %51 = arith.xori %47, %50 : vector<256x1xi1>
      %52 = arith.andi %51, %45 : vector<256x1xi1>
      %53 = vector.broadcast %41 : i32 to vector<256x1xi32>
      %54 = arith.addi %43, %53 : vector<256x1xi32>
      %55 = arith.select %52, %54, %43 : vector<256x1xi1>, vector<256x1xi32>
      %c0_i32_27 = arith.constant 0 : i32
      %56 = vector.broadcast %c0_i32_27 : i32 to vector<256x1xi32>
      %57 = arith.cmpi ne, %55, %56 : vector<256x1xi32>
      %c15_i32 = arith.constant 15 : i32
      %58 = vector.broadcast %c15_i32 : i32 to vector<256x1xi32>
      %59 = arith.cmpi ne, %55, %58 : vector<256x1xi32>
      %c15 = arith.constant 15 : index
      %c0_28 = arith.constant 0 : index
      %60 = vector.load %arg10[%c15, %c0_28] : memref<305x128xbf16, #tpu.memory_space<vmem>>, vector<256x128xbf16>
      %c0_i32_29 = arith.constant 0 : i32
      %61 = arith.sitofp %c0_i32_29 : i32 to bf16
      %62 = vector.shape_cast %57 : vector<256x1xi1> to vector<256x1xi1>
      %63 = vector.broadcast %62 : vector<256x1xi1> to vector<256x128xi1>
      %64 = vector.broadcast %61 : bf16 to vector<256x128xbf16>
      %65 = arith.select %63, %60, %64 : vector<256x128xi1>, vector<256x128xbf16>
      %c0_30 = arith.constant 0 : index
      %c0_31 = arith.constant 0 : index
      %66 = vector.load %arg11[%c0_30, %c0_31] : memref<256x1152xbf16, #tpu.memory_space<vmem>>, vector<256x128xbf16>
      tpu.vector_store %arg11[%c0_30, %c0_31], %65 {strides = array<i32>} : memref<256x1152xbf16, #tpu.memory_space<vmem>>, vector<256x128xbf16>,
      %c16 = arith.constant 16 : index
      %c0_32 = arith.constant 0 : index
      %67 = vector.load %arg10[%c16, %c0_32] : memref<305x128xbf16, #tpu.memory_space<vmem>>, vector<256x128xbf16>
      %c0_33 = arith.constant 0 : index
      %c128 = arith.constant 128 : index
      %68 = vector.load %arg11[%c0_33, %c128] : memref<256x1152xbf16, #tpu.memory_space<vmem>>, vector<256x128xbf16>
      tpu.vector_store %arg11[%c0_33, %c128], %67 {strides = array<i32>} : memref<256x1152xbf16, #tpu.memory_space<vmem>>, vector<256x128xbf16>,
      %c17 = arith.constant 17 : index
      %c0_34 = arith.constant 0 : index
      %69 = vector.load %arg10[%c17, %c0_34] : memref<305x128xbf16, #tpu.memory_space<vmem>>, vector<256x128xbf16>
      %c0_i32_35 = arith.constant 0 : i32
      %70 = arith.sitofp %c0_i32_35 : i32 to bf16
      %71 = vector.shape_cast %59 : vector<256x1xi1> to vector<256x1xi1>
      %72 = vector.broadcast %71 : vector<256x1xi1> to vector<256x128xi1>
      %73 = vector.broadcast %70 : bf16 to vector<256x128xbf16>
      %74 = arith.select %72, %69, %73 : vector<256x128xi1>, vector<256x128xbf16>
      %c0_36 = arith.constant 0 : index
      %c256 = arith.constant 256 : index
      %75 = vector.load %arg11[%c0_36, %c256] : memref<256x1152xbf16, #tpu.memory_space<vmem>>, vector<256x128xbf16>
      tpu.vector_store %arg11[%c0_36, %c256], %74 {strides = array<i32>} : memref<256x1152xbf16, #tpu.memory_space<vmem>>, vector<256x128xbf16>,
      %c31 = arith.constant 31 : index
      %c0_37 = arith.constant 0 : index
      %76 = vector.load %arg10[%c31, %c0_37] : memref<305x128xbf16, #tpu.memory_space<vmem>>, vector<256x128xbf16>
      %c0_i32_38 = arith.constant 0 : i32
      %77 = arith.sitofp %c0_i32_38 : i32 to bf16
      %78 = vector.shape_cast %57 : vector<256x1xi1> to vector<256x1xi1>
      %79 = vector.broadcast %78 : vector<256x1xi1> to vector<256x128xi1>
      %80 = vector.broadcast %77 : bf16 to vector<256x128xbf16>
      %81 = arith.select %79, %76, %80 : vector<256x128xi1>, vector<256x128xbf16>
      %c0_39 = arith.constant 0 : index
      %c384 = arith.constant 384 : index
      %82 = vector.load %arg11[%c0_39, %c384] : memref<256x1152xbf16, #tpu.memory_space<vmem>>, vector<256x128xbf16>
      tpu.vector_store %arg11[%c0_39, %c384], %81 {strides = array<i32>} : memref<256x1152xbf16, #tpu.memory_space<vmem>>, vector<256x128xbf16>,
      %c32 = arith.constant 32 : index
      %c0_40 = arith.constant 0 : index
      %83 = vector.load %arg10[%c32, %c0_40] : memref<305x128xbf16, #tpu.memory_space<vmem>>, vector<256x128xbf16>
      %c0_41 = arith.constant 0 : index
      %c512 = arith.constant 512 : index
      %84 = vector.load %arg11[%c0_41, %c512] : memref<256x1152xbf16, #tpu.memory_space<vmem>>, vector<256x128xbf16>
      tpu.vector_store %arg11[%c0_41, %c512], %83 {strides = array<i32>} : memref<256x1152xbf16, #tpu.memory_space<vmem>>, vector<256x128xbf16>,
      %c33 = arith.constant 33 : index
      %c0_42 = arith.constant 0 : index
      %85 = vector.load %arg10[%c33, %c0_42] : memref<305x128xbf16, #tpu.memory_space<vmem>>, vector<256x128xbf16>
      %c0_i32_43 = arith.constant 0 : i32
      %86 = arith.sitofp %c0_i32_43 : i32 to bf16
      %87 = vector.shape_cast %59 : vector<256x1xi1> to vector<256x1xi1>
      %88 = vector.broadcast %87 : vector<256x1xi1> to vector<256x128xi1>
      %89 = vector.broadcast %86 : bf16 to vector<256x128xbf16>
      %90 = arith.select %88, %85, %89 : vector<256x128xi1>, vector<256x128xbf16>
      %c0_44 = arith.constant 0 : index
      %c640 = arith.constant 640 : index
      %91 = vector.load %arg11[%c0_44, %c640] : memref<256x1152xbf16, #tpu.memory_space<vmem>>, vector<256x128xbf16>
      tpu.vector_store %arg11[%c0_44, %c640], %90 {strides = array<i32>} : memref<256x1152xbf16, #tpu.memory_space<vmem>>, vector<256x128xbf16>,
      %c47 = arith.constant 47 : index
      %c0_45 = arith.constant 0 : index
      %92 = vector.load %arg10[%c47, %c0_45] : memref<305x128xbf16, #tpu.memory_space<vmem>>, vector<256x128xbf16>
      %c0_i32_46 = arith.constant 0 : i32
      %93 = arith.sitofp %c0_i32_46 : i32 to bf16
      %94 = vector.shape_cast %57 : vector<256x1xi1> to vector<256x1xi1>
      %95 = vector.broadcast %94 : vector<256x1xi1> to vector<256x128xi1>
      %96 = vector.broadcast %93 : bf16 to vector<256x128xbf16>
      %97 = arith.select %95, %92, %96 : vector<256x128xi1>, vector<256x128xbf16>
      %c0_47 = arith.constant 0 : index
      %c768 = arith.constant 768 : index
      %98 = vector.load %arg11[%c0_47, %c768] : memref<256x1152xbf16, #tpu.memory_space<vmem>>, vector<256x128xbf16>
      tpu.vector_store %arg11[%c0_47, %c768], %97 {strides = array<i32>} : memref<256x1152xbf16, #tpu.memory_space<vmem>>, vector<256x128xbf16>,
      %c48 = arith.constant 48 : index
      %c0_48 = arith.constant 0 : index
      %99 = vector.load %arg10[%c48, %c0_48] : memref<305x128xbf16, #tpu.memory_space<vmem>>, vector<256x128xbf16>
      %c0_49 = arith.constant 0 : index
      %c896 = arith.constant 896 : index
      %100 = vector.load %arg11[%c0_49, %c896] : memref<256x1152xbf16, #tpu.memory_space<vmem>>, vector<256x128xbf16>
      tpu.vector_store %arg11[%c0_49, %c896], %99 {strides = array<i32>} : memref<256x1152xbf16, #tpu.memory_space<vmem>>, vector<256x128xbf16>,
      %c49 = arith.constant 49 : index
      %c0_50 = arith.constant 0 : index
      %101 = vector.load %arg10[%c49, %c0_50] : memref<305x128xbf16, #tpu.memory_space<vmem>>, vector<256x128xbf16>
      %c0_i32_51 = arith.constant 0 : i32
      %102 = arith.sitofp %c0_i32_51 : i32 to bf16
      %103 = vector.shape_cast %59 : vector<256x1xi1> to vector<256x1xi1>
      %104 = vector.broadcast %103 : vector<256x1xi1> to vector<256x128xi1>
      %105 = vector.broadcast %102 : bf16 to vector<256x128xbf16>
      %106 = arith.select %104, %101, %105 : vector<256x128xi1>, vector<256x128xbf16>
      %c0_52 = arith.constant 0 : index
      %c1024 = arith.constant 1024 : index
      %107 = vector.load %arg11[%c0_52, %c1024] : memref<256x1152xbf16, #tpu.memory_space<vmem>>, vector<256x128xbf16>
      tpu.vector_store %arg11[%c0_52, %c1024], %106 {strides = array<i32>} : memref<256x1152xbf16, #tpu.memory_space<vmem>>, vector<256x128xbf16>,
    } else {
    }
    %c0 = arith.constant 0 : index
    %c0_10 = arith.constant 0 : index
    %22 = vector.load %arg11[%c0, %c0_10] : memref<256x1152xbf16, #tpu.memory_space<vmem>>, vector<256x1152xbf16>
    %c0_11 = arith.constant 0 : index
    %c0_12 = arith.constant 0 : index
    %23 = vector.load %arg6[%c0_11, %c0_12] : memref<1152x128xbf16, #tpu.memory_space<vmem>>, vector<1152x128xbf16>
    %cst_13 = arith.constant dense<0.000000e+00> : vector<256x128xf32>
    %24 = tpu.matmul %22, %23, %cst_13 {dimension_numbers = #tpu.dot_dimension_numbers<[1], [0], [0], [1], [0, 0, 1, 1], [], []>} : vector<256x1152xbf16>, vector<1152x128xbf16>, vector<256x128xf32> -> vector<256x128xf32>
    %c0_14 = arith.constant 0 : index
    %c0_15 = arith.constant 0 : index
    %25 = vector.load %arg7[%c0_14, %c0_15] : memref<1x128xf32, #tpu.memory_space<vmem>>, vector<1x128xf32>
    %26 = vector.shape_cast %25 : vector<1x128xf32> to vector<128xf32>
    %27 = vector.shape_cast %26 : vector<128xf32> to vector<1x128xf32>
    %28 = vector.broadcast %27 : vector<1x128xf32> to vector<256x128xf32>
    %29 = arith.mulf %24, %28 : vector<256x128xf32>
    %c0_16 = arith.constant 0 : index
    %c0_17 = arith.constant 0 : index
    %30 = vector.load %arg8[%c0_16, %c0_17] : memref<1x128xf32, #tpu.memory_space<vmem>>, vector<1x128xf32>
    %31 = vector.shape_cast %30 : vector<1x128xf32> to vector<128xf32>
    %32 = vector.shape_cast %31 : vector<128xf32> to vector<1x128xf32>
    %33 = vector.broadcast %32 : vector<1x128xf32> to vector<256x128xf32>
    %34 = arith.addf %29, %33 : vector<256x128xf32>
    %cst_18 = arith.constant 0.000000e+00 : f32
    %35 = vector.broadcast %cst_18 : f32 to vector<256x128xf32>
    %36 = arith.maximumf %34, %35 : vector<256x128xf32>
    %37 = vector.shape_cast %36 : vector<256x128xf32> to vector<1x16x16x128xf32>
    %c0_19 = arith.constant 0 : index
    %c0_20 = arith.constant 0 : index
    %c0_21 = arith.constant 0 : index
    %c0_22 = arith.constant 0 : index
    %38 = vector.load %arg9[%c0_19, %c0_20, %c0_21, %c0_22] : memref<1x16x16x128xf32, #tpu.memory_space<vmem>>, vector<1x16x16x128xf32>
    tpu.vector_store %arg9[%c0_19, %c0_20, %c0_21, %c0_22], %37 {strides = array<i32>} : memref<1x16x16x128xf32, #tpu.memory_space<vmem>>, vector<1x16x16x128xf32>,
    return
  }
  func.func @transform_0(%arg0: i32, %arg1: i32, %arg2: i32) -> (i32, i32, i32, i32) {
    %c0_i32 = arith.constant 0 : i32
    %c0_i32_0 = arith.constant 0 : i32
    %c0_i32_1 = arith.constant 0 : i32
    return %arg0, %arg1, %c0_i32, %c0_i32_0 : i32, i32, i32, i32
  }
  func.func @transform_1(%arg0: i32, %arg1: i32, %arg2: i32) -> (i32, i32, i32, i32) {
    %c16_i32 = arith.constant 16 : i32
    %0 = arith.muli %arg1, %c16_i32 : i32
    %c1_i32 = arith.constant 1 : i32
    %1 = arith.subi %0, %c1_i32 : i32
    %c0_i32 = arith.constant 0 : i32
    %2 = arith.maxsi %1, %c0_i32 : i32
    %c0_i32_0 = arith.constant 0 : i32
    %c0_i32_1 = arith.constant 0 : i32
    %c0_i32_2 = arith.constant 0 : i32
    return %arg0, %2, %c0_i32_0, %c0_i32_1 : i32, i32, i32, i32
  }
  func.func @transform_2(%arg0: i32, %arg1: i32, %arg2: i32) -> (i32, i32, i32, i32) {
    %c1_i32 = arith.constant 1 : i32
    %0 = arith.addi %arg1, %c1_i32 : i32
    %c16_i32 = arith.constant 16 : i32
    %1 = arith.muli %0, %c16_i32 : i32
    %c15_i32 = arith.constant 15 : i32
    %2 = arith.minsi %1, %c15_i32 : i32
    %c0_i32 = arith.constant 0 : i32
    %c0_i32_0 = arith.constant 0 : i32
    %c0_i32_1 = arith.constant 0 : i32
    return %arg0, %2, %c0_i32, %c0_i32_0 : i32, i32, i32, i32
  }
  func.func @transform_3(%arg0: i32, %arg1: i32, %arg2: i32) -> (i32, i32) {
    %c0_i32 = arith.constant 0 : i32
    %c0_i32_0 = arith.constant 0 : i32
    return %c0_i32, %arg2 : i32, i32
  }
  func.func @transform_4(%arg0: i32, %arg1: i32, %arg2: i32) -> (i32, i32) {
    %c0_i32 = arith.constant 0 : i32
    %c0_i32_0 = arith.constant 0 : i32
    return %c0_i32, %arg2 : i32, i32
  }
  func.func @transform_5(%arg0: i32, %arg1: i32, %arg2: i32) -> (i32, i32) {
    %c0_i32 = arith.constant 0 : i32
    %c0_i32_0 = arith.constant 0 : i32
    return %c0_i32, %arg2 : i32, i32
  }
  func.func @transform_6(%arg0: i32, %arg1: i32, %arg2: i32) -> (i32, i32, i32, i32) {
    %c0_i32 = arith.constant 0 : i32
    %c0_i32_0 = arith.constant 0 : i32
    return %arg0, %arg1, %c0_i32, %arg2 : i32, i32, i32, i32
  }
}

</mosaic_0001>

<bundles_post_ra>
// kernel: basic_conv2d.1
= control target key start
LH: loop header
LB: loop body
LE: loop exit
PB: predicated region body
PF: predicated region fallthrough
CT: control target
= control target key end

     0   :  { %s9046_s21 = smov 0   ;;  %s9048_s22 = smov 0   ;;  %s12586_s0 = inlined_call_operand.vmem [shape: bf16[2,16,16,128], index: 0, kind: input, shape index: {}, may-alias: {0,1,2}]   ;;  %s12587_s1 = inlined_call_operand.vmem [shape: bf16[2,16,16,128], index: 1, kind: input, shape index: {}, may-alias: {0,1,2}]   ;;  %s12588_s2 = inlined_call_operand.vmem [shape: bf16[2,16,16,128], index: 2, kind: input, shape index: {}, may-alias: {0,1,2}]   ;;  %s12589_s3 = inlined_call_operand.vmem [shape: bf16[1152,128], index: 3, kind: input, shape index: {}]   ;;  %s12590_s4 = inlined_call_operand.vmem [shape: f32[1,128], index: 4, kind: input, shape index: {}]   ;;  %s12591_s5 = inlined_call_operand.vmem [shape: f32[1,128], index: 5, kind: input, shape index: {}]   ;;  %s12592_s6 = inlined_call_operand.vmem [shape: f32[2,16,16,128], index: 6, kind: output, shape index: {}]  }
   0x1   :  { %s9050_s1 = smov 0  }
   0x2 LB: > { %s35_s2 = sadd.s32 1, %s9003_s22  ;;  %p7832_p0 = scmp.ge.s32.totalorder %s9007_s1, 1  ;;  %s9007_s1 = sphi %s9050_s1, %s16_s1   ;;  %s9003_s22 = sphi %s9048_s22, %s13286_s22   ;;  %s8999_s21 = sphi %s9046_s21, %s13285_s21  }
   0x3   : > { %p37_p1 = scmp.ge.s32.totalorder %s35_s2, 2  ;;  %p332_p2 = scmp.lt.s32.totalorder %s9007_s1, 3 }
   0x5   : > { %s13288_s2 = smov (%p37_p1, %s35_s2), 0  ;;  %p333_p3 = pnand %p7832_p0, %p332_p2 }
   0x7   : > { %336 = sbr.rel (%p333_p3) target bundleno = 881 (0x371), region = 44 }
   0xc   : > { %v8866_v0 = vld [vmem:[%s12589_s3 + $0x38] sm:$0xff]  ;;  %p412_p4 = scmp.lt.s32.totalorder %s8999_s21, 1  ;;  %v595_v1 = vlaneseq  ;;  %v8865_v2 = vld [vmem:[%s12589_s3 + $0x30] sm:$0xff]  ;;  %vm9009_vm0 = vmmov 1   ;;  %v12608_v4 = vmov 0   ;;  %v8864_v6 = vld [vmem:[%s12589_s3 + $0x28] sm:$0xff] }
   0xd   : > { %8931 = vmatpush.bf16.msra.mxu1 %v8866_v0  ;;  %8932 = vmatpush.bf16.msra.mxu2 %v8866_v0  ;;  %vm1174_vm1 = vmpackc.low %vm9009_vm0, %vm9009_vm0  ;;  %vm1237_vm2 = vsmask.f32 3328  ;;  %vm1238_vm3 = vsmask.f32 7440  ;;  %577 = vst [vmem:[#allocation2 + $0x8] sm:$0xf] %v12608_v4  ;;  %v9148_v37 = vunpack.c.l.b16 %v12608_v4  ;;  %v9151_v38 = vunpack.c.h.b16 %v12608_v4 }
   0xe   : > { %s13290_s21 = smov (!%p412_p4, %s8999_s21), 1  ;;  %v9072_v3 = vshrl.u32 %v595_v1, 7  ;;  %8933 = vmatpush.bf16.msra.mxu3 %v8866_v0  ;;  %6698 = vmatpush.bf16.msra.mxu0 %v8866_v0  ;;  %v9075_v5 = vsel %vm1174_vm1, 65537, %v12608_v4  ;;  %v8863_v20 = vld [vmem:[%s12589_s3 + $0x20] sm:$0xff]  ;;  %vm9110_vm6 = vmor %vm1237_vm2, %vm1238_vm3  ;;  %578 = vst [vmem:[#allocation2 + $0xc] sm:$0xf] %v12608_v4 }
   0xf   : > { %s8710_s29 = sshll.u32 %s13290_s21, 7  ;;  %v12606_v9 = vshll.u32 %v9075_v5, 16  ;;  %v12607_v10 = vshrl.u32 %v9075_v5, 16  ;;  %590 = vst [vmem:[#allocation2 + $0x90] sm:$0xf] %v12608_v4  ;;  %v8862_v46 = vld [vmem:[%s12589_s3 + $0x18] sm:$0xff] }
  0x10   : > { %v604_v7 = vadd.s32 64, %v9072_v3  ;;  %v606_v8 = vadd.s32 80, %v9072_v3  ;;  %s9088_s8 = scalar_lea.vmem %s12586_s0, %s8710_s29  ;;  %v612_v11 = vadd.s32 128, %v9072_v3  ;;  %v614_v12 = vadd.s32 144, %v9072_v3  ;;  %591 = vst [vmem:[#allocation2 + $0x94] sm:$0xf] %v12608_v4 }
  0x11   : > { %8934 = vmatpush.bf16.msra.mxu1 %v8865_v2  ;;  %8935 = vmatpush.bf16.msra.mxu2 %v8865_v2  ;;  %v504_v13 = vld [vmem:[%s9088_s8 + $0x14] sm:$0xff]   ;;  %v506_v14 = vld [vmem:[%s9088_s8 + $0x1c] sm:$0xf]  ;;  %v9097_v17 = vrot.slane %v12606_v9, 5  ;;  %v1256_v18 = vrot.slane %v12607_v10, 4  ;;  %v9122_v27 = vadd.s32 192, %v9072_v3 }
  0x12   : > { %v688_v15 = vand.u32 15, %v604_v7  ;;  %v702_v16 = vand.u32 15, %v606_v8  ;;  %8936 = vmatpush.bf16.msra.mxu3 %v8865_v2  ;;  %6699 = vmatpush.bf16.msra.mxu0 %v8865_v2  ;;  %536 = vst [vmem:[#allocation2 + $0x24] sm:$0xff] %v504_v13   ;;  %v744_v19 = vand.u32 15, %v612_v11  ;;  %v758_v23 = vand.u32 15, %v614_v12  ;;  %v512_v25 = vld [vmem:[%s9088_s8 + $0x34] sm:$0xff]  }
  0x13   : > { %538 = vst [vmem:[#allocation2 + $0x2c] sm:$0xf] %v506_v14  ;;  %v1257_v24 = vor.u32 %v1256_v18, %v9097_v17  ;;  %v9125_v28 = vadd.s32 208, %v9072_v3  ;;  %v514_v30 = vld [vmem:[%s9088_s8 + $0x3c] sm:$0xf]  ;;  %v520_v40 = vld [vmem:[%s9088_s8 + $0x54] sm:$0xff]  }
  0x14   : > { %vm1020_vm4 = vcmp.ne.s32.totalorder %v688_v15, 0  ;;  %vm9104_vm5 = vcmp.ne.s32.totalorder %v702_v16, 0  ;;  %vm9117_vm8 = vcmp.ne.s32.totalorder %v744_v19, 0  ;;  %vm9133_vm10 = vcmp.ne.s32.totalorder %v758_v23, 0  ;;  %544 = vst [vmem:[#allocation2 + $0x44] sm:$0xff] %v512_v25   ;;  %v8861_v0 = vld [vmem:[%s12589_s3 + $0x10] sm:$0xff] }
  0x15   : > { %vm1181_vm7 = vmpackc.low %vm1020_vm4, %vm1020_vm4  ;;  %8937 = vmatpush.bf16.msra.mxu1 %v8864_v6  ;;  %8938 = vmatpush.bf16.msra.mxu2 %v8864_v6  ;;  %v9140_v33 = vrot.slane %v1257_v24, 4  ;;  %v522_v41 = vld [vmem:[%s9088_s8 + $0x5c] sm:$0xf]  ;;  %vm12593_vm13 = vsmask.f32 256  ;;  %v800_v49 = vand.u32 15, %v9122_v27 }
  0x16   : > { %vm1183_vm9 = vmpackc.low %vm9104_vm5, %vm9104_vm5  ;;  %v1213_v29 = vsel %vm1181_vm7, 65537, %v12608_v4  ;;  %8939 = vmatpush.bf16.msra.mxu3 %v8864_v6  ;;  %6700 = vmatpush.bf16.msra.mxu0 %v8864_v6  ;;  %vm1824_vm14 = vsmask.f32 4368  ;;  %546 = vst [vmem:[#allocation2 + $0x4c] sm:$0xf] %v514_v30  ;;  %v814_v50 = vand.u32 15, %v9125_v28 }
  0x17   : > { %v9138_v32 = vsel %vm1183_vm9, 65537, %v12608_v4  ;;  %v1320_v34 = vshll.u32 %v1213_v29, 16  ;;  %v1324_v35 = vshrl.u32 %v1213_v29, 16  ;;  %vm1189_vm11 = vmpackc.low %vm9117_vm8, %vm9117_vm8  ;;  %552 = vst [vmem:[#allocation2 + $0x64] sm:$0xff] %v520_v40   ;;  %v12795_v8 = vmov 0  ;;  %v8860_v24 = vld [vmem:[%s12589_s3 + $0x8] sm:$0xff] }
  0x18   : > { %v1340_v36 = vshll.u32 %v9138_v32, 16  ;;  %vm1191_vm12 = vmpackc.low %vm9133_vm10, %vm9133_vm10  ;;  %v1221_v39 = vsel %vm1189_vm11, 65537, %v12608_v4  ;;  %554 = vst [vmem:[#allocation2 + $0x6c] sm:$0xf] %v522_v41  ;;  %vm9196_vm4 = vcmp.ne.s32.totalorder %v800_v49, 0  ;;  %v12800_v14 = vmov 0 }
  0x19   : > { %v1322_v42 = vrot.slane %v1320_v34, 5  ;;  %v1326_v43 = vrot.slane %v1324_v35, 4  ;;  %v9160_v44 = vsel %vm1191_vm12, 65537, %v12608_v4  ;;  %v1400_v45 = vshll.u32 %v1221_v39, 16  ;;  %8940 = vmatpush.bf16.msra.mxu1 %v8863_v20  ;;  %8941 = vmatpush.bf16.msra.mxu2 %v8863_v20  ;;  %v1084_v55 = vld [vmem:[#allocation2 + $0x24] sm:$0xf]  ;;  %vm9238_vm11 = vmor %vm12593_vm13, %vm1824_vm14 }
  0x1a   : > { %v9165_v47 = vrot.slane %v1340_v36, 5  ;;  %v1404_v48 = vshrl.u32 %v1221_v39, 16  ;;  %8942 = vmatpush.bf16.msra.mxu3 %v8863_v20  ;;  %6701 = vmatpush.bf16.msra.mxu0 %v8863_v20  ;;  %v1420_v54 = vshll.u32 %v9160_v44, 16  ;;  %v1086_v1 = vld [vmem:[#allocation2 + $0x2c] sm:$0xf]  ;;  %v12803_v27 = vmov 0  ;;  %vm1197_vm14 = vmpackc.low %vm9196_vm4, %vm9196_vm4 }
  0x1b   : > { %v1323_v51 = vsel %vm9110_vm6, %v9140_v33, %v1322_v42  ;;  %v1327_v52 = vor.u32 %v1326_v43, %v1322_v42  ;;  %v1402_v53 = vrot.slane %v1400_v45, 5  ;;  %v1085_v18 = vld [vmem:[#allocation2 + $0x28] sm:$0xf]  ;;  %v1092_v40 = vld [vmem:[#allocation2 + $0x44] sm:$0xf]  ;;  %vm487_vm12 = vcmask 1043459  }
  0x1c   : > { %v1343_v56 = vsel %vm9110_vm6, %v9140_v33, %v9165_v47  ;;  %v1615_v57 = vunpack.c.l.b16 %v1323_v51  ;;  %v1616_v58 = vunpack.c.h.b16 %v1323_v51  ;;  %v1406_v59 = vrot.slane %v1404_v48, 4  ;;  %v500_v43 = vld [vmem:[%s9088_s8 + $0x4] sm:$0xff]   ;;  %v8882_v34 = vld [vmem:[%s12589_s3 + $0xb8] sm:$0xff]  ;;  %s8714_s26 = sshll.u32 %s13290_s21, 8 }
  0x1d   : > { %v1328_v60 = vrot.slane %v1327_v52, 4  ;;  %v1629_v61 = vunpack.c.l.b16 %v1343_v56  ;;  %v1630_v62 = vunpack.c.h.b16 %v1343_v56  ;;  %v1403_v63 = vsel %vm9110_vm6, %v9140_v33, %v1402_v53  ;;  %8943 = vmatpush.bf16.msra.mxu1 %v8862_v46  ;;  %8944 = vmatpush.bf16.msra.mxu2 %v8862_v46  ;;  %v1093_v49 = vld [vmem:[#allocation2 + $0x48] sm:$0xf]  ;;  %532 = vst [vmem:[#allocation2 + $0x14] sm:$0xff] %v500_v43   ;;  %v8859_v51 = vld [vmem:[%s12589_s3] sm:$0xff]  ;;  %s12119_s28 = scalar_lea.vmem %s12592_s6, %s8714_s26 }
  0x1e   : > { %vm1619_vm15 = vcmp.ne.s32.totalorder %v1615_v57, %v9148_v37  ;;  %vm1620_vm0 = vcmp.ne.s32.totalorder %v1616_v58, %v9151_v38  ;;  %v1407_v2 = vor.u32 %v1406_v59, %v1402_v53  ;;  %v9185_v6 = vrot.slane %v1420_v54, 5  ;;  %8945 = vmatpush.bf16.msra.mxu3 %v8862_v46  ;;  %6702 = vmatpush.bf16.msra.mxu0 %v8862_v46 }
  0x1f   : > { %v1333_v7 = vsel %vm9110_vm6, %v1328_v60, %v9097_v17  ;;  %vm9190_vm1 = vmpackc.low %vm1620_vm0, %vm1619_vm15  ;;  %vm1633_vm2 = vcmp.ne.s32.totalorder %v1629_v61, %v9148_v37  ;;  %vm1634_vm3 = vcmp.ne.s32.totalorder %v1630_v62, %v9151_v38  ;;  %v1671_v23 = vunpack.c.l.b16 %v1403_v63  ;;  %v1094_v60 = vld [vmem:[#allocation2 + $0x4c] sm:$0xf] }
  0x20   : > { %v12796_v8 = vsel %vm9190_vm1, 4294967295, %v12795_v8  ;;  %v1622_v12 = vunpack.c.l.b16 %v1333_v7  ;;  %v1623_v13 = vunpack.c.h.b16 %v1333_v7  ;;  %vm9200_vm5 = vmpackc.low %vm1634_vm3, %vm1633_vm2  ;;  %v9206_v15 = vsel %vm9190_vm1, %v1084_v55, 0 }
  0x21   : > { %12797 = vst [vmem:[#allocation4_spill] sm:$0xff] %v12796_v8  ;;  %v12801_v14 = vsel %vm9200_vm5, 4294967295, %v12800_v14  ;;  %v1408_v16 = vrot.slane %v1407_v2, 4  ;;  %v1800_v19 = vsel %vm9200_vm5, %v1086_v1, 0  ;;  %v1895_v20 = vshrl.u32 %v9206_v15, 16  ;;  %8946 = vmatpush.bf16.msra.mxu1 %v8861_v0  ;;  %8947 = vmatpush.bf16.msra.mxu2 %v8861_v0 }
  0x22   : > { %12802 = vst [vmem:[#allocation5_spill] sm:$0xff] %v12801_v14  ;;  %v1423_v21 = vsel %vm9110_vm6, %v9140_v33, %v9185_v6  ;;  %vm1626_vm7 = vcmp.ne.s32.totalorder %v1622_v12, %v9148_v37  ;;  %vm1627_vm8 = vcmp.ne.s32.totalorder %v1623_v13, %v9151_v38  ;;  %v1913_v25 = vshrl.u32 %v1800_v19, 16  ;;  %8948 = vmatpush.bf16.msra.mxu3 %v8861_v0 }
  0x23   : > { %v1916_v26 = vshll.u32 %v1800_v19, 16  ;;  %6703 = vmatpush.bf16.msra.mxu0 %v8861_v0  ;;  %vm9220_vm9 = vmpackc.low %vm1627_vm8, %vm1626_vm7  ;;  %v9224_v29 = vrot.slane %v1895_v20, 7  ;;  %v1413_v30 = vsel %vm9110_vm6, %v1408_v16, %v9097_v17  ;;  %v1672_v31 = vunpack.c.h.b16 %v1403_v63  ;;  %v490_v20 = vld [vmem:[#allocation2 + $0x4] sm:$0x8] }
  0x24   : > { %v12804_v27 = vsel %vm9220_vm9, 4294967295, %v12803_v27  ;;  %vm9230_vm10 = vcmp.ne.s32.totalorder %v1671_v23, %v9148_v37  ;;  %v1799_v35 = vsel %vm9220_vm9, %v1085_v18, 0  ;;  %v9242_v39 = vrot.slane %v1913_v25, 7 }
  0x25   : > { %12805 = vst [vmem:[#allocation6_spill] sm:$0xff] %v12804_v27  ;;  %v1678_v41 = vunpack.c.l.b16 %v1413_v30  ;;  %v1679_v42 = vunpack.c.h.b16 %v1413_v30  ;;  %v1902_v45 = vrot.slane %v9224_v29, 4  ;;  %v1904_v46 = vshrl.u32 %v1799_v35, 16  ;;  %8949 = vmatpush.bf16.msra.mxu1 %v8860_v24  ;;  %8950 = vmatpush.bf16.msra.mxu2 %v8860_v24 }
  0x26   : > { %v1907_v48 = vshll.u32 %v1799_v35, 16  ;;  %vm1676_vm15 = vcmp.ne.s32.totalorder %v1672_v31, %v9151_v38  ;;  %v1918_v52 = vor.u32 %v1916_v26, %v9242_v39  ;;  %v12810_v53 = vmov 0  ;;  %8951 = vmatpush.bf16.msra.mxu3 %v8860_v24 }
  0x27   : > { %vm9256_vm0 = vmpackc.low %vm1676_vm15, %vm9230_vm10  ;;  %vm1682_vm2 = vcmp.ne.s32.totalorder %v1678_v41, %v9148_v37  ;;  %vm1683_vm3 = vcmp.ne.s32.totalorder %v1679_v42, %v9151_v38  ;;  %v1685_v54 = vunpack.c.l.b16 %v1423_v21  ;;  %6704 = vmatpush.bf16.msra.mxu0 %v8860_v24  ;;  %v1906_v55 = vrot.slane %v1904_v46, 7  ;;  %v502_v42 = vld [vmem:[%s9088_s8 + $0xc] sm:$0xf] }
  0x28   : > { %v12811_v53 = vsel %vm9256_vm0, 4294967295, %v12810_v53  ;;  %vm9262_vm7 = vmpackc.low %vm1683_vm3, %vm1682_vm2  ;;  %v12813_v56 = vmov 0  ;;  %v1686_v57 = vunpack.c.h.b16 %v1423_v21  ;;  %v9268_v58 = vsel %vm9256_vm0, %v1092_v40, 0  ;;  %534 = vst [vmem:[#allocation2 + $0x1c] sm:$0xf] %v502_v42 }
  0x29   : > { %12812 = vst [vmem:[#allocation7_spill] sm:$0xff] %v12811_v53  ;;  %v12814_v56 = vsel %vm9262_vm7, 4294967295, %v12813_v56  ;;  %vm9272_vm8 = vcmp.ne.s32.totalorder %v814_v50, 0  ;;  %vm1689_vm10 = vcmp.ne.s32.totalorder %v1685_v54, %v9148_v37  ;;  %v1807_v61 = vsel %vm9262_vm7, %v1093_v49, 0  ;;  %8952 = vmatpush.bf16.msra.mxu1 %v8859_v51  ;;  %8953 = vmatpush.bf16.msra.mxu2 %v8859_v51  ;;  %v507_v49 = vld [vmem:[%s9088_s8 + $0x20] sm:$0xff]  }
  0x2a   : > { %12815 = vst [vmem:[#allocation8_spill] sm:$0xff] %v12814_v56  ;;  %v1967_v62 = vshrl.u32 %v9268_v58, 16  ;;  %vm1199_vm15 = vmpackc.low %vm9272_vm8, %vm9272_vm8  ;;  %v1229_v28 = vsel %vm1197_vm14, 65537, %v12608_v4  ;;  %v1909_v50 = vor.u32 %v1907_v48, %v1906_v55  ;;  %v1911_v63 = vrot.slane %v1906_v55, 4  ;;  %8954 = vmatpush.bf16.msra.mxu3 %v8859_v51 }
  0x2b   : > { %vm1690_vm2 = vcmp.ne.s32.totalorder %v1686_v57, %v9151_v38  ;;  %v1976_v0 = vshrl.u32 %v1807_v61, 16  ;;  %v12818_v1 = vmov 0  ;;  %v1979_v7 = vshll.u32 %v1807_v61, 16  ;;  %6705 = vmatpush.bf16.msra.mxu0 %v8859_v51  ;;  %v1100_v57 = vld [vmem:[#allocation2 + $0x64] sm:$0xf]  ;;  %539 = vst [vmem:[#allocation2 + $0x30] sm:$0xff] %v507_v49  }
  0x2c   : > { %vm9290_vm3 = vmpackc.low %vm1690_vm2, %vm1689_vm10  ;;  %v9294_v2 = vrot.slane %v1967_v62, 7  ;;  %v9297_v12 = vsel %vm1199_vm15, 65537, %v12608_v4  ;;  %v1480_v11 = vshll.u32 %v1229_v28, 16  ;;  %v1910_v13 = vsel %vm9238_vm11, %v1902_v45, %v1909_v50  ;;  %v515_v62 = vld [vmem:[%s9088_s8 + $0x40] sm:$0xff]   ;;  %v1102_v50 = vld [vmem:[#allocation2 + $0x6c] sm:$0xf] }
  0x2d   : > { %v12819_v1 = vsel %vm9290_vm3, 4294967295, %v12818_v1  ;;  %v1919_v16 = vsel %vm9238_vm11, %v1911_v63, %v1918_v52  ;;  %v1808_v18 = vsel %vm9290_vm3, %v1094_v60, 0  ;;  %v1978_v19 = vrot.slane %v1976_v0, 7  ;;  %2158 = vst [vmem:[#allocation3 + $0x120] sm:$0xf] %v1910_v13  ;;  %6876 = vmatpush.bf16.msrb.mxu2 %v8882_v34 }
  0x2e   : > { %12820 = vst [vmem:[#allocation9_spill] sm:$0xff] %v12819_v1  ;;  %v1974_v21 = vrot.slane %v9294_v2, 4  ;;  %v1985_v23 = vshrl.u32 %v1808_v18, 16  ;;  %v1988_v24 = vshll.u32 %v1808_v18, 16  ;;  %v1482_v25 = vrot.slane %v1480_v11, 5 }
  0x2f   : > { %2159 = vst [vmem:[#allocation3 + $0x144] sm:$0xf] %v1919_v16  ;;  %v1981_v26 = vor.u32 %v1979_v7, %v1978_v19  ;;  %v1484_v30 = vshrl.u32 %v1229_v28, 16  ;;  %v1500_v31 = vshll.u32 %v9297_v12, 16  ;;  %v1983_v35 = vrot.slane %v1978_v19, 4  ;;  %v523_v7 = vld [vmem:[%s9088_s8 + $0x60] sm:$0xff]  }
  0x30   : > { %v9310_v40 = vrot.slane %v1985_v23, 7  ;;  %v1483_v41 = vsel %vm9110_vm6, %v9140_v33, %v1482_v25  ;;  %vm488_vm4 = vsmask.f32 7950  ;;  %v598_v55 = vadd.s32 16, %v9072_v3  ;;  %547 = vst [vmem:[#allocation2 + $0x50] sm:$0xff] %v515_v62  }
  0x31   : > { %v1982_v43 = vsel %vm9238_vm11, %v1974_v21, %v1981_v26  ;;  %v1486_v45 = vrot.slane %v1484_v30, 4  ;;  %v9318_v46 = vrot.slane %v1500_v31, 5  ;;  %v1727_v48 = vunpack.c.l.b16 %v1483_v41  ;;  %vm489_vm14 = vmand %vm487_vm12, %vm488_vm4  ;;  %555 = vst [vmem:[#allocation2 + $0x70] sm:$0xff] %v523_v7  }
  0x32   : > { %v1990_v51 = vor.u32 %v1988_v24, %v9310_v40  ;;  %2166 = vst [vmem:[#allocation3 + $0x240] sm:$0xf] %v1982_v43  ;;  %v1728_v52 = vunpack.c.h.b16 %v1483_v41  ;;  %v491_v54 = vsel %vm489_vm14, 0, %v490_v20  ;;  %v632_v61 = vand.u32 15, %v9072_v3  ;;  %v1101_v41 = vld [vmem:[#allocation2 + $0x68] sm:$0xf] }
  0x33   : > { %v1487_v59 = vor.u32 %v1486_v45, %v1482_v25  ;;  %v1503_v60 = vsel %vm9110_vm6, %v9140_v33, %v9318_v46  ;;  %vm1731_vm8 = vcmp.ne.s32.totalorder %v1727_v48, %v9148_v37  ;;  %492 = vst [vmem:[#allocation2 + $0x4] sm:$0x8] %v491_v54  ;;  %v12821_v16 = vmov 0 }
  0x34   : > { %v1991_v28 = vsel %vm9238_vm11, %v1983_v35, %v1990_v51  ;;  %vm1732_vm12 = vcmp.ne.s32.totalorder %v1728_v52, %v9151_v38  ;;  %v1741_v63 = vunpack.c.l.b16 %v1503_v60  ;;  %v1742_v0 = vunpack.c.h.b16 %v1503_v60  ;;  %v7990_v11 = vld [vmem:[#allocation3 + $0x120] sm:$0xf] }
  0x35   : > { %2167 = vst [vmem:[#allocation3 + $0x264] sm:$0xf] %v1991_v28  ;;  %v1488_v13 = vrot.slane %v1487_v59, 4  ;;  %vm9335_vm10 = vmpackc.low %vm1732_vm12, %vm1731_vm8  ;;  %v646_v18 = vand.u32 15, %v598_v55  ;;  %vm9345_vm4 = vcmp.ne.s32.totalorder %v632_v61, 0  ;;  %v12826_v25 = vmov 0 }
  0x36   : > { %v12822_v16 = vsel %vm9335_vm10, 4294967295, %v12821_v16  ;;  %v8755_v19 = vld [vmem:[#allocation3 + $0x140] sm:$0xf0]  ;;  %vm1745_vm15 = vcmp.ne.s32.totalorder %v1741_v63, %v9148_v37  ;;  %vm1746_vm2 = vcmp.ne.s32.totalorder %v1742_v0, %v9151_v38  ;;  %v9343_v20 = vsel %vm9335_vm10, %v1100_v57, 0  ;;  %vm1173_vm12 = vmpackc.low %vm9345_vm4, %vm9345_vm4 }
  0x37   : > { %12823 = vst [vmem:[#allocation10_spill] sm:$0xff] %v12822_v16  ;;  %v7991_v23 = vor.u32 %v8755_v19, %v7990_v11  ;;  %v1493_v24 = vsel %vm9110_vm6, %v1488_v13, %v9097_v17  ;;  %vm9352_vm14 = vmpackc.low %vm1746_vm2, %vm1745_vm15  ;;  %v2039_v26 = vshrl.u32 %v9343_v20, 16  ;;  %vm9357_vm8 = vcmp.ne.s32.totalorder %v646_v18, 0  ;;  %v8874_v13 = vld [vmem:[%s12589_s3 + $0x78] sm:$0xff]  ;;  %v8881_v18 = vld [vmem:[%s12589_s3 + $0xb0] sm:$0xff] }
  0x38   : > { %v12827_v25 = vsel %vm9352_vm14, 4294967295, %v12826_v25  ;;  %v1734_v31 = vunpack.c.l.b16 %v1493_v24  ;;  %v1735_v34 = vunpack.c.h.b16 %v1493_v24  ;;  %v1816_v35 = vsel %vm9352_vm14, %v1102_v50, 0  ;;  %vm1175_vm15 = vmpackc.low %vm9357_vm8, %vm9357_vm8  ;;  %v8890_v50 = vld [vmem:[%s12589_s3 + $0xf8] sm:$0xff]  ;;  %6787 = vmatpush.bf16.msrb.mxu1 %v8874_v13  ;;  %6877 = vmatpush.bf16.msrb.mxu2 %v8881_v18  ;;  %v1103_v9 = vld [vmem:[#allocation2 + $0x70] sm:$0xf] }
  0x39   : > { %12828 = vst [vmem:[#allocation11_spill] sm:$0xff] %v12827_v25  ;;  %6726 = vmatmul.bf16.vlgmr.msra.gmra.mxu1 %v7991_v23  ;;  %v9366_v42 = vrot.slane %v2039_v26, 7  ;;  %v2057_v43 = vshrl.u32 %v1816_v35, 16  ;;  %v1205_v45 = vsel %vm1173_vm12, 65537, %v12608_v4  ;;  %v608_v48 = vadd.s32 96, %v9072_v3  ;;  %6965 = vmatpush.bf16.msrb.mxu3 %v8890_v50  ;;  %v8898_v26 = vld [vmem:[%s12589_s3 + $0x138] sm:$0xff] }
  0x3a   : > { %v8134_v49 = vld [vmem:[#allocation3 + $0x240] sm:$0xf]  ;;  %vm1738_vm2 = vcmp.ne.s32.totalorder %v1734_v31, %v9148_v37  ;;  %vm1739_vm13 = vcmp.ne.s32.totalorder %v1735_v34, %v9151_v38  ;;  %v9376_v51 = vsel %vm1175_vm15, 65537, %v12608_v4  ;;  %v1241_v52 = vshll.u32 %v1205_v45, 16  ;;  %7054 = vmatpush.bf16.msrb.mxu0 %v8898_v26 }
  0x3b   : > { %vm9378_vm4 = vmpackc.low %vm1739_vm13, %vm1738_vm2  ;;  %v12831_v54 = vmov 0  ;;  %v9382_v55 = vrot.slane %v2057_v43, 7  ;;  %v2060_v57 = vshll.u32 %v1816_v35, 16  ;;  %v1244_v59 = vshrl.u32 %v1205_v45, 16  ;;  %v8873_v35 = vld [vmem:[%s12589_s3 + $0x70] sm:$0xff] }
  0x3c   : > { %v12832_v54 = vsel %vm9378_vm4, 4294967295, %v12831_v54  ;;  %v1260_v60 = vshll.u32 %v9376_v51, 16  ;;  %v8791_v61 = vld [vmem:[#allocation3 + $0x260] sm:$0xf0]  ;;  %v1815_v62 = vsel %vm9378_vm4, %v1101_v41, 0  ;;  %v1243_v28 = vrot.slane %v1241_v52, 5  ;;  %6788 = vmatpush.bf16.msrb.mxu1 %v8873_v35 }
  0x3d   : > { %12833 = vst [vmem:[#allocation12_spill] sm:$0xff] %v12832_v54  ;;  %v1344_v63 = vshrl.u32 %v9138_v32, 16  ;;  %v8135_v0 = vor.u32 %v8791_v61, %v8134_v49  ;;  %v2048_v7 = vshrl.u32 %v1815_v62, 16  ;;  %v2051_v11 = vshll.u32 %v1815_v62, 16  ;;  %v8889_v32 = vld [vmem:[%s12589_s3 + $0xf0] sm:$0xff] }
  0x3e   : > { %v1246_v19 = vrot.slane %v1244_v59, 4  ;;  %v9397_v21 = vrot.slane %v1260_v60, 5  ;;  %v1559_v23 = vunpack.c.l.b16 %v1243_v28  ;;  %v1560_v24 = vunpack.c.h.b16 %v1243_v28  ;;  %v499_v49 = vld [vmem:[%s9088_s8] sm:$0xf]  ;;  %v1076_v59 = vld [vmem:[#allocation2 + $0x4] sm:$0x8]  ;;  %6966 = vmatpush.bf16.msrb.mxu3 %v8889_v32 }
  0x3f   : > { %6746 = vmatmul.bf16.vlgmr.msra.gmra.mxu2 %v8135_v0  ;;  %v2046_v30 = vrot.slane %v9366_v42, 4  ;;  %v2050_v31 = vrot.slane %v2048_v7, 7  ;;  %v2062_v34 = vor.u32 %v2060_v57, %v9382_v55  ;;  %v716_v41 = vand.u32 15, %v608_v48  ;;  %531 = vst [vmem:[#allocation2 + $0x10] sm:$0xf] %v499_v49 }
  0x40   : > { %v1247_v43 = vor.u32 %v1246_v19, %v1243_v28  ;;  %v1263_v45 = vsel %vm9110_vm6, %v9140_v33, %v9397_v21  ;;  %vm1563_vm13 = vcmp.ne.s32.totalorder %v1559_v23, %v9148_v37  ;;  %vm1564_vm8 = vcmp.ne.s32.totalorder %v1560_v24, %v9151_v38  ;;  %v1078_v62 = vld [vmem:[#allocation2 + $0xc] sm:$0xf] }
  0x41   : > { %v2053_v52 = vor.u32 %v2051_v11, %v2050_v31  ;;  %v2055_v57 = vrot.slane %v2050_v31, 4  ;;  %vm9417_vm12 = vmpackc.low %vm1564_vm8, %vm1563_vm13  ;;  %v1573_v48 = vunpack.c.l.b16 %v1263_v45  ;;  %v1574_v61 = vunpack.c.h.b16 %v1263_v45 }
  0x42   : > { %v1248_v28 = vrot.slane %v1247_v43, 4  ;;  %vm9421_vm15 = vcmp.ne.s32.totalorder %v716_v41, 0  ;;  %v1790_v18 = vsel %vm9417_vm12, %v1076_v59, 0  ;;  %v1346_v19 = vrot.slane %v1344_v63, 4 }
  0x43   : > { %v2054_v0 = vsel %vm9238_vm11, %v2046_v30, %v2053_v52  ;;  %v2063_v7 = vsel %vm9238_vm11, %v2055_v57, %v2062_v34  ;;  %vm1577_vm2 = vcmp.ne.s32.totalorder %v1573_v48, %v9148_v37  ;;  %vm1578_vm13 = vcmp.ne.s32.totalorder %v1574_v61, %v9151_v38  ;;  %vm1185_vm8 = vmpackc.low %vm9421_vm15, %vm9421_vm15  ;;  %v1077_v30 = vld [vmem:[#allocation2 + $0x8] sm:$0xf] }
  0x44   : > { %2174 = vst [vmem:[#allocation3 + $0x360] sm:$0xf] %v2054_v0  ;;  %v1253_v11 = vsel %vm9110_vm6, %v1248_v28, %v9097_v17  ;;  %vm9437_vm14 = vmpackc.low %vm1578_vm13, %vm1577_vm2  ;;  %v9446_v26 = vsel %vm1185_vm8, 65537, %v12608_v4  ;;  %v1424_v34 = vshrl.u32 %v9160_v44, 16  ;;  %v1827_v35 = vshrl.u32 %v1790_v18, 16 }
  0x45   : > { %2175 = vst [vmem:[#allocation3 + $0x384] sm:$0xf] %v2063_v7  ;;  %v1566_v23 = vunpack.c.l.b16 %v1253_v11  ;;  %v1567_v24 = vunpack.c.h.b16 %v1253_v11  ;;  %v1792_v32 = vsel %vm9437_vm14, %v1078_v62, 0  ;;  %v12840_v63 = vmov 0 }
  0x46   : > { %v1841_v31 = vshrl.u32 %v1792_v32, 16  ;;  %v1844_v43 = vshll.u32 %v1792_v32, 16  ;;  %v1347_v45 = vor.u32 %v1346_v19, %v9165_v47  ;;  %v1360_v49 = vshll.u32 %v9446_v26, 16 }
  0x47   : > { %vm1570_vm15 = vcmp.ne.s32.totalorder %v1566_v23, %v9148_v37  ;;  %vm1571_vm2 = vcmp.ne.s32.totalorder %v1567_v24, %v9151_v38  ;;  %v616_v44 = vadd.s32 160, %v9072_v3  ;;  %v1504_v57 = vshrl.u32 %v9297_v12, 16 }
  0x48   : > { %vm9451_vm13 = vmpackc.low %vm1571_vm2, %vm1570_vm15  ;;  %v9455_v41 = vrot.slane %v1841_v31, 7  ;;  %v1264_v59 = vshrl.u32 %v9376_v51, 16  ;;  %v1348_v28 = vrot.slane %v1347_v45, 4  ;;  %v9464_v50 = vrot.slane %v1360_v49, 5 }
  0x49   : > { %v12841_v63 = vsel %vm9451_vm13, 4294967295, %v12840_v63  ;;  %v1791_v52 = vsel %vm9451_vm13, %v1077_v30, 0  ;;  %v1920_v0 = vrot.slane %v9242_v39, 4  ;;  %v772_v47 = vand.u32 15, %v616_v44 }
  0x4a   : > { %v1832_v48 = vshrl.u32 %v1791_v52, 16  ;;  %v1835_v61 = vshll.u32 %v1791_v52, 16  ;;  %v7841_v11 = vrot.slane %v1827_v35, 11  ;;  %v1846_v19 = vor.u32 %v1844_v43, %v9455_v41  ;;  %v1087_v35 = vld [vmem:[#allocation2 + $0x30] sm:$0xf] }
  0x4b   : > { %v8278_v62 = vld [vmem:[#allocation3 + $0x360] sm:$0xf]  ;;  %v1426_v23 = vrot.slane %v1424_v34, 4  ;;  %v1353_v12 = vsel %vm9110_vm6, %v1348_v28, %v9097_v17  ;;  %v1363_v32 = vsel %vm9110_vm6, %v9140_v33, %v9464_v50  ;;  %vm1032_vm8 = vcmp.ne.s32.totalorder %v772_v47, 0 }
  0x4c   : > { %v8827_v7 = vld [vmem:[#allocation3 + $0x380] sm:$0xf0]  ;;  %v1834_v18 = vrot.slane %v1832_v48, 7  ;;  %v1636_v45 = vunpack.c.l.b16 %v1353_v12  ;;  %v1637_v49 = vunpack.c.h.b16 %v1353_v12  ;;  %vm1193_vm15 = vmpackc.low %vm1032_vm8, %vm1032_vm8  ;;  %v1643_v43 = vunpack.c.l.b16 %v1363_v32 }
  0x4d   : > { %v8279_v24 = vor.u32 %v8827_v7, %v8278_v62  ;;  %v1644_v34 = vunpack.c.h.b16 %v1363_v32  ;;  %v9476_v52 = vsel %vm1193_vm15, 65537, %v12608_v4  ;;  %v1427_v44 = vor.u32 %v1426_v23, %v9185_v6 }
  0x4e   : > { %v1837_v30 = vor.u32 %v1835_v61, %v1834_v18  ;;  %v1839_v31 = vrot.slane %v1834_v18, 4  ;;  %v1088_v61 = vld [vmem:[#allocation2 + $0x34] sm:$0xf]  ;;  %vm1640_vm2 = vcmp.ne.s32.totalorder %v1636_v45, %v9148_v37  ;;  %vm1641_vm8 = vcmp.ne.s32.totalorder %v1637_v49, %v9151_v38  ;;  %v517_v45 = vld [vmem:[%s9088_s8 + $0x48] sm:$0xff]  }
  0x4f   : > { %6766 = vmatmul.bf16.vlgmr.msra.gmra.mxu3 %v8279_v24  ;;  %vm9485_vm4 = vmpackc.low %vm1641_vm8, %vm1640_vm2  ;;  %v12842_v28 = vmov 0  ;;  %vm1647_vm15 = vcmp.ne.s32.totalorder %v1643_v43, %v9148_v37  ;;  %vm1648_vm10 = vcmp.ne.s32.totalorder %v1644_v34, %v9151_v38  ;;  %v1428_v6 = vrot.slane %v1427_v44, 4  ;;  %549 = vst [vmem:[#allocation2 + $0x58] sm:$0xff] %v517_v45  }
  0x50   : > { %v1838_v48 = vsel %vm9238_vm11, %v7841_v11, %v1837_v30  ;;  %v1847_v62 = vsel %vm9238_vm11, %v1839_v31, %v1846_v19  ;;  %v12843_v28 = vsel %vm9485_vm4, 4294967295, %v12842_v28  ;;  %v1440_v47 = vshll.u32 %v9476_v52, 16  ;;  %vm9493_vm3 = vmpackc.low %vm1648_vm10, %vm1647_vm15  ;;  %v509_v31 = vld [vmem:[%s9088_s8 + $0x28] sm:$0xff]  }
  0x51   : > { %2150 = vst [vmem:[#allocation3] sm:$0xf] %v1838_v48  ;;  %v12845_v11 = vmov 0  ;;  %v1801_v18 = vsel %vm9485_vm4, %v1087_v35, 0  ;;  %v624_v19 = vadd.s32 224, %v9072_v3  ;;  %v1506_v23 = vrot.slane %v1504_v57, 4 }
  0x52   : > { %12844 = vst [vmem:[#allocation13_spill] sm:$0xff] %v12843_v28  ;;  %v12846_v11 = vsel %vm9493_vm3, 4294967295, %v12845_v11  ;;  %v1802_v24 = vsel %vm9493_vm3, %v1088_v61, 0  ;;  %v1922_v12 = vshrl.u32 %v1801_v18, 16  ;;  %v1925_v32 = vshll.u32 %v1801_v18, 16 }
  0x53   : > { %2151 = vst [vmem:[#allocation3 + $0x24] sm:$0xf] %v1847_v62  ;;  %v1433_v30 = vsel %vm9110_vm6, %v1428_v6, %v9097_v17  ;;  %v1931_v49 = vshrl.u32 %v1802_v24, 16  ;;  %v1934_v43 = vshll.u32 %v1802_v24, 16  ;;  %v9507_v34 = vrot.slane %v1440_v47, 5  ;;  %v525_v24 = vld [vmem:[%s9088_s8 + $0x68] sm:$0xff]  }
  0x54   : > { %12847 = vst [vmem:[#allocation14_spill] sm:$0xff] %v12846_v11  ;;  %v1692_v35 = vunpack.c.l.b16 %v1433_v30  ;;  %v1924_v44 = vrot.slane %v1922_v12, 7  ;;  %v1693_v57 = vunpack.c.h.b16 %v1433_v30  ;;  %v828_v48 = vand.u32 15, %v624_v19  ;;  %v1095_v18 = vld [vmem:[#allocation2 + $0x50] sm:$0xf] }
  0x55   : > { %541 = vst [vmem:[#allocation2 + $0x38] sm:$0xff] %v509_v31   ;;  %v1507_v62 = vor.u32 %v1506_v23, %v9318_v46  ;;  %v9510_v61 = vrot.slane %v1931_v49, 7  ;;  %v1443_v6 = vsel %vm9110_vm6, %v9140_v33, %v9507_v34  ;;  %v1992_v47 = vrot.slane %v9310_v40, 4  ;;  %v8880_v46 = vld [vmem:[%s12589_s3 + $0xa8] sm:$0xff] }
  0x56   : > { %vm1696_vm10 = vcmp.ne.s32.totalorder %v1692_v35, %v9148_v37  ;;  %v1927_v31 = vor.u32 %v1925_v32, %v1924_v44  ;;  %v1929_v12 = vrot.slane %v1924_v44, 4  ;;  %vm1697_vm2 = vcmp.ne.s32.totalorder %v1693_v57, %v9151_v38  ;;  %557 = vst [vmem:[#allocation2 + $0x78] sm:$0xff] %v525_v24   ;;  %v1096_v57 = vld [vmem:[#allocation2 + $0x54] sm:$0xf]  ;;  %6878 = vmatpush.bf16.msrb.mxu2 %v8880_v46 }
  0x57   : > { %v1699_v19 = vunpack.c.l.b16 %v1443_v6  ;;  %v1936_v30 = vor.u32 %v1934_v43, %v9510_v61  ;;  %vm9524_vm8 = vmpackc.low %vm1697_vm2, %vm1696_vm10  ;;  %v12848_v45 = vmov 0  ;;  %v1700_v49 = vunpack.c.h.b16 %v1443_v6 }
  0x58   : > { %v7846_v23 = vld [vmem:[#allocation3] sm:$0xf]  ;;  %v12849_v45 = vsel %vm9524_vm8, 4294967295, %v12848_v45  ;;  %vm9528_vm15 = vcmp.ne.s32.totalorder %v828_v48, 0  ;;  %v1508_v32 = vrot.slane %v1507_v62, 4  ;;  %v1928_v44 = vsel %vm9238_vm11, %v1920_v0, %v1927_v31 }
  0x59   : > { %12850 = vst [vmem:[#allocation15_spill] sm:$0xff] %v12849_v45  ;;  %vm1703_vm7 = vcmp.ne.s32.totalorder %v1699_v19, %v9148_v37  ;;  %v1809_v43 = vsel %vm9524_vm8, %v1095_v18, 0  ;;  %vm1201_vm10 = vmpackc.low %vm9528_vm15, %vm9528_vm15  ;;  %v600_v48 = vadd.s32 32, %v9072_v3  ;;  %v1937_v39 = vsel %vm9238_vm11, %v1929_v12, %v1936_v30 }
  0x5a   : > { %v8719_v35 = vld [vmem:[#allocation3 + $0x20] sm:$0xf0]  ;;  %2160 = vst [vmem:[#allocation3 + $0x168] sm:$0xf] %v1928_v44  ;;  %vm1704_vm2 = vcmp.ne.s32.totalorder %v1700_v49, %v9151_v38  ;;  %v1994_v0 = vshrl.u32 %v1809_v43, 16  ;;  %v12853_v6 = vmov 0  ;;  %v1513_v31 = vsel %vm9110_vm6, %v1508_v32, %v9097_v17 }
  0x5b   : > { %v7847_v62 = vor.u32 %v8719_v35, %v7846_v23  ;;  %2161 = vst [vmem:[#allocation3 + $0x18c] sm:$0xf] %v1937_v39  ;;  %vm9546_vm0 = vmpackc.low %vm1704_vm2, %vm1703_vm7  ;;  %v1997_v18 = vshll.u32 %v1809_v43, 16  ;;  %v9551_v24 = vsel %vm1201_vm10, 65537, %v12608_v4  ;;  %v660_v19 = vand.u32 15, %v600_v48  ;;  %v8888_v48 = vld [vmem:[%s12589_s3 + $0xe8] sm:$0xff] }
  0x5c   : > { %v12854_v6 = vsel %vm9546_vm0, 4294967295, %v12853_v6  ;;  %v1810_v46 = vsel %vm9546_vm0, %v1096_v57, 0  ;;  %v1996_v23 = vrot.slane %v1994_v0, 7  ;;  %v1520_v30 = vshll.u32 %v9551_v24, 16  ;;  %6967 = vmatpush.bf16.msrb.mxu3 %v8888_v48 }
  0x5d   : > { %12855 = vst [vmem:[#allocation16_spill] sm:$0xff] %v12854_v6  ;;  %6706 = vmatmul.bf16.vlgmr.msra.gmra.mxu0 %v7847_v62  ;;  %v2003_v49 = vshrl.u32 %v1810_v46, 16  ;;  %v2006_v40 = vshll.u32 %v1810_v46, 16  ;;  %v1748_v35 = vunpack.c.l.b16 %v1513_v31  ;;  %v1749_v44 = vunpack.c.h.b16 %v1513_v31  ;;  %v8897_v62 = vld [vmem:[%s12589_s3 + $0x130] sm:$0xff]  ;;  %v8872_v46 = vld [vmem:[%s12589_s3 + $0x68] sm:$0xff] }
  0x5e   : > { %v1999_v43 = vor.u32 %v1997_v18, %v1996_v23  ;;  %v2001_v39 = vrot.slane %v1996_v23, 4  ;;  %v9560_v10 = vrot.slane %v1520_v30, 5  ;;  %vm1016_vm7 = vcmp.ne.s32.totalorder %v660_v19, 0  ;;  %v1104_v18 = vld [vmem:[#allocation2 + $0x74] sm:$0xf]  ;;  %7055 = vmatpush.bf16.msrb.mxu0 %v8897_v62  ;;  %6789 = vmatpush.bf16.msrb.mxu1 %v8872_v46 }
  0x5f   : > { %v9562_v32 = vrot.slane %v2003_v49, 7  ;;  %vm1752_vm15 = vcmp.ne.s32.totalorder %v1748_v35, %v9148_v37  ;;  %vm1753_vm10 = vcmp.ne.s32.totalorder %v1749_v44, %v9151_v38  ;;  %vm1177_vm2 = vmpackc.low %vm1016_vm7, %vm1016_vm7  ;;  %v1266_v57 = vrot.slane %v1264_v59, 4  ;;  %v8887_v44 = vld [vmem:[%s12589_s3 + $0xe0] sm:$0xff] }
  0x60   : > { %v2000_v0 = vsel %vm9238_vm11, %v1992_v47, %v1999_v43  ;;  %v1523_v31 = vsel %vm9110_vm6, %v9140_v33, %v9560_v10  ;;  %vm9580_vm7 = vmpackc.low %vm1753_vm10, %vm1752_vm15  ;;  %v12856_v51 = vmov 0  ;;  %v2064_v59 = vrot.slane %v9382_v55, 4  ;;  %v8879_v47 = vld [vmem:[%s12589_s3 + $0xa0] sm:$0xff]  ;;  %6968 = vmatpush.bf16.msrb.mxu3 %v8887_v44  ;;  %v1079_v44 = vld [vmem:[#allocation2 + $0x10] sm:$0xf] }
  0x61   : > { %v12857_v51 = vsel %vm9580_vm7, 4294967295, %v12856_v51  ;;  %v9586_v19 = vsel %vm1177_vm2, 65537, %v12608_v4  ;;  %v8026_v23 = vld [vmem:[#allocation3 + $0x168] sm:$0xf]  ;;  %v2008_v30 = vor.u32 %v2006_v40, %v9562_v32  ;;  %2168 = vst [vmem:[#allocation3 + $0x288] sm:$0xf] %v2000_v0  ;;  %v1755_v49 = vunpack.c.l.b16 %v1523_v31  ;;  %6879 = vmatpush.bf16.msrb.mxu2 %v8879_v47 }
  0x62   : > { %12858 = vst [vmem:[#allocation17_spill] sm:$0xff] %v12857_v51  ;;  %v1756_v35 = vunpack.c.h.b16 %v1523_v31  ;;  %v1817_v55 = vsel %vm9580_vm7, %v1103_v9, 0  ;;  %v8764_v43 = vld [vmem:[#allocation3 + $0x188] sm:$0xf0]  ;;  %v1267_v7 = vor.u32 %v1266_v57, %v9397_v21  ;;  %v1280_v25 = vshll.u32 %v9586_v19, 16  ;;  %v8871_v21 = vld [vmem:[%s12589_s3 + $0x60] sm:$0xff] }
  0x63   : > { %v2066_v12 = vshrl.u32 %v1817_v55, 16  ;;  %v2069_v4 = vshll.u32 %v1817_v55, 16  ;;  %v8896_v40 = vld [vmem:[%s12589_s3 + $0x128] sm:$0xff]  ;;  %v8027_v9 = vor.u32 %v8764_v43, %v8026_v23  ;;  %v2009_v48 = vsel %vm9238_vm11, %v2001_v39, %v2008_v30  ;;  %6790 = vmatpush.bf16.msrb.mxu1 %v8871_v21  ;;  %v1080_v57 = vld [vmem:[#allocation2 + $0x14] sm:$0xf] }
  0x64   : > { %vm1759_vm15 = vcmp.ne.s32.totalorder %v1755_v49, %v9148_v37  ;;  %vm1760_vm10 = vcmp.ne.s32.totalorder %v1756_v35, %v9151_v38  ;;  %2169 = vst [vmem:[#allocation3 + $0x2ac] sm:$0xf] %v2009_v48  ;;  %v12859_v62 = vmov 0  ;;  %v1268_v31 = vrot.slane %v1267_v7, 4  ;;  %7056 = vmatpush.bf16.msrb.mxu0 %v8896_v40 }
  0x65   : > { %vm9613_vm2 = vmpackc.low %vm1760_vm10, %vm1759_vm15  ;;  %v2068_v0 = vrot.slane %v2066_v12, 7  ;;  %v9617_v46 = vrot.slane %v1280_v25, 5  ;;  %6731 = vmatmul.bf16.gmra.mxu1 %v8027_v9  ;;  %v610_v23 = vadd.s32 112, %v9072_v3  ;;  %v12862_v30 = vshrl.u32 %v9446_v26, 16 }
  0x66   : > { %v12860_v62 = vsel %vm9613_vm2, 4294967295, %v12859_v62  ;;  %v1818_v39 = vsel %vm9613_vm2, %v1104_v18, 0  ;;  %v1273_v25 = vsel %vm9110_vm6, %v1268_v31, %v9097_v17  ;;  %v12881_v54 = vmov 0 }
  0x67   : > { %12861 = vst [vmem:[#allocation18_spill] sm:$0xff] %v12860_v62  ;;  %v1366_v49 = vrot.slane %v12862_v30, 4  ;;  %v2071_v35 = vor.u32 %v2069_v4, %v2068_v0  ;;  %v2073_v55 = vrot.slane %v2068_v0, 4  ;;  %v2075_v43 = vshrl.u32 %v1818_v39, 16 }
  0x68   : > { %v2078_v48 = vshll.u32 %v1818_v39, 16  ;;  %v1283_v7 = vsel %vm9110_vm6, %v9140_v33, %v9617_v46  ;;  %v730_v12 = vand.u32 15, %v610_v23  ;;  %v1580_v40 = vunpack.c.l.b16 %v1273_v25  ;;  %v8170_v21 = vld [vmem:[#allocation3 + $0x288] sm:$0xf] }
  0x69   : > { %v1367_v18 = vor.u32 %v1366_v49, %v9464_v50  ;;  %v2072_v4 = vsel %vm9238_vm11, %v2064_v59, %v2071_v35  ;;  %v9635_v26 = vrot.slane %v2075_v43, 7  ;;  %v1581_v9 = vunpack.c.h.b16 %v1273_v25 }
  0x6a   : > { %2176 = vst [vmem:[#allocation3 + $0x3a8] sm:$0xf] %v2072_v4  ;;  %v1587_v0 = vunpack.c.l.b16 %v1283_v7  ;;  %v1588_v31 = vunpack.c.h.b16 %v1283_v7  ;;  %vm1026_vm15 = vcmp.ne.s32.totalorder %v730_v12, 0  ;;  %vm1584_vm10 = vcmp.ne.s32.totalorder %v1580_v40, %v9148_v37  ;;  %v1089_v4 = vld [vmem:[#allocation2 + $0x38] sm:$0xf] }
  0x6b   : > { %v1368_v39 = vrot.slane %v1367_v18, 4  ;;  %v2080_v30 = vor.u32 %v2078_v48, %v9635_v26  ;;  %vm1585_vm2 = vcmp.ne.s32.totalorder %v1581_v9, %v9151_v38  ;;  %vm1187_vm7 = vmpackc.low %vm1026_vm15, %vm1026_vm15  ;;  %v618_v50 = vadd.s32 176, %v9072_v3  ;;  %v8800_v59 = vld [vmem:[#allocation3 + $0x2a8] sm:$0xf0] }
  0x6c   : > { %vm9641_vm0 = vmpackc.low %vm1585_vm2, %vm1584_vm10  ;;  %v12863_v23 = vmov 0  ;;  %vm1591_vm8 = vcmp.ne.s32.totalorder %v1587_v0, %v9148_v37  ;;  %vm1592_vm3 = vcmp.ne.s32.totalorder %v1588_v31, %v9151_v38  ;;  %v12866_v49 = vmov 0  }
  0x6d   : > { %v12864_v23 = vsel %vm9641_vm0, 4294967295, %v12863_v23  ;;  %v9648_v35 = vsel %vm1187_vm7, 65537, %v12866_v49  ;;  %v1373_v43 = vsel %vm9110_vm6, %v1368_v39, %v9097_v17  ;;  %v8171_v48 = vor.u32 %v8800_v59, %v8170_v21  ;;  %vm9655_vm15 = vmpackc.low %vm1592_vm3, %vm1591_vm8 }
  0x6e   : > { %12865 = vst [vmem:[#allocation19_spill] sm:$0xff] %v12864_v23  ;;  %v2081_v25 = vsel %vm9238_vm11, %v2073_v55, %v2080_v30  ;;  %v12867_v7 = vmov 0  ;;  %v1793_v12 = vsel %vm9641_vm0, %v1079_v44, 0  ;;  %v1380_v18 = vshll.u32 %v9648_v35, 16 }
  0x6f   : > { %v12868_v7 = vsel %vm9655_vm15, 4294967295, %v12867_v7  ;;  %2177 = vst [vmem:[#allocation3 + $0x3cc] sm:$0xf] %v2081_v25  ;;  %v1794_v40 = vsel %vm9655_vm15, %v1080_v57, 0  ;;  %v1850_v9 = vshrl.u32 %v1793_v12, 16  ;;  %v1853_v21 = vshll.u32 %v1793_v12, 16  ;;  %6751 = vmatmul.bf16.gmra.mxu2 %v8171_v48 }
  0x70   : > { %12869 = vst [vmem:[#allocation20_spill] sm:$0xff] %v12868_v7  ;;  %v1859_v0 = vshrl.u32 %v1794_v40, 16  ;;  %v1862_v55 = vshll.u32 %v1794_v40, 16  ;;  %v9665_v31 = vrot.slane %v1380_v18, 5  ;;  %v1650_v39 = vunpack.c.l.b16 %v1373_v43 }
  0x71   : > { %v1852_v30 = vrot.slane %v1850_v9, 7  ;;  %v1651_v59 = vunpack.c.h.b16 %v1373_v43  ;;  %v786_v47 = vand.u32 15, %v618_v50  ;;  %v12870_v44 = vshrl.u32 %v9476_v52, 16  ;;  %v8314_v43 = vld [vmem:[#allocation3 + $0x3a8] sm:$0xf] }
  0x72   : > { %v9669_v25 = vrot.slane %v1859_v0, 7  ;;  %v1383_v57 = vsel %vm9110_vm6, %v9140_v33, %v9665_v31  ;;  %vm1654_vm3 = vcmp.ne.s32.totalorder %v1650_v39, %v9148_v37  ;;  %v1938_v48 = vrot.slane %v9510_v61, 4 }
  0x73   : > { %v1446_v62 = vrot.slane %v12870_v44, 4  ;;  %v1855_v12 = vor.u32 %v1853_v21, %v1852_v30  ;;  %v1857_v18 = vrot.slane %v1852_v30, 4  ;;  %vm1655_vm8 = vcmp.ne.s32.totalorder %v1651_v59, %v9151_v38  ;;  %v1090_v30 = vld [vmem:[#allocation2 + $0x3c] sm:$0xf] }
  0x74   : > { %v1657_v50 = vunpack.c.l.b16 %v1383_v57  ;;  %v1864_v52 = vor.u32 %v1862_v55, %v9669_v25  ;;  %vm9679_vm7 = vmpackc.low %vm1655_vm8, %vm1654_vm3  ;;  %v12871_v40 = vmov 0  ;;  %v1658_v9 = vunpack.c.h.b16 %v1383_v57 }
  0x75   : > { %v12872_v40 = vsel %vm9679_vm7, 4294967295, %v12871_v40  ;;  %vm9683_vm2 = vcmp.ne.s32.totalorder %v786_v47, 0  ;;  %v1447_v39 = vor.u32 %v1446_v62, %v9507_v34  ;;  %v12876_v61 = vrot.slane %v9455_v41, 4 }
  0x76   : > { %12873 = vst [vmem:[#allocation21_spill] sm:$0xff] %v12872_v40  ;;  %vm1661_vm10 = vcmp.ne.s32.totalorder %v1657_v50, %v9148_v37  ;;  %v1803_v55 = vsel %vm9679_vm7, %v1089_v4, 0  ;;  %vm1195_vm3 = vmpackc.low %vm9683_vm2, %vm9683_vm2  ;;  %v626_v47 = vadd.s32 240, %v9072_v3  ;;  %v8836_v59 = vld [vmem:[#allocation3 + $0x3c8] sm:$0xf0]  ;;  %v1865_v41 = vsel %vm9238_vm11, %v1857_v18, %v1864_v52 }
  0x77   : > { %v1856_v21 = vsel %vm9238_vm11, %v12876_v61, %v1855_v12  ;;  %vm1662_vm8 = vcmp.ne.s32.totalorder %v1658_v9, %v9151_v38  ;;  %v1940_v34 = vshrl.u32 %v1803_v55, 16  ;;  %v1943_v62 = vshll.u32 %v1803_v55, 16  ;;  %2153 = vst [vmem:[#allocation3 + $0x6c] sm:$0xf] %v1865_v41  ;;  %v511_v9 = vld [vmem:[%s9088_s8 + $0x30] sm:$0xf] }
  0x78   : > { %2152 = vst [vmem:[#allocation3 + $0x48] sm:$0xf] %v1856_v21  ;;  %v8315_v44 = vor.u32 %v8836_v59, %v8314_v43  ;;  %vm9702_vm7 = vmpackc.low %vm1662_vm8, %vm1661_vm10  ;;  %v12877_v4 = vmov 0  ;;  %v9707_v57 = vsel %vm1195_vm3, 65537, %v12866_v49  ;;  %v1448_v12 = vrot.slane %v1447_v39, 4  ;;  %v527_v39 = vld [vmem:[%s9088_s8 + $0x70] sm:$0xff]  }
  0x79   : > { %v12878_v4 = vsel %vm9702_vm7, 4294967295, %v12877_v4  ;;  %v842_v50 = vand.u32 15, %v626_v47  ;;  %v1804_v18 = vsel %vm9702_vm7, %v1090_v30, 0  ;;  %v1942_v52 = vrot.slane %v1940_v34, 7  ;;  %543 = vst [vmem:[#allocation2 + $0x40] sm:$0xf] %v511_v9 }
  0x7a   : > { %12879 = vst [vmem:[#allocation22_spill] sm:$0xff] %v12878_v4  ;;  %v1460_v43 = vshll.u32 %v9707_v57, 16  ;;  %6771 = vmatmul.bf16.gmra.mxu3 %v8315_v44  ;;  %v1949_v61 = vshrl.u32 %v1804_v18, 16  ;;  %v1952_v21 = vshll.u32 %v1804_v18, 16  ;;  %v1453_v55 = vsel %vm9110_vm6, %v1448_v12, %v9097_v17  ;;  %v8878_v34 = vld [vmem:[%s12589_s3 + $0x98] sm:$0xff] }
  0x7b   : > { %vm1042_vm2 = vcmp.ne.s32.totalorder %v842_v50, 0  ;;  %v1945_v47 = vor.u32 %v1943_v62, %v1942_v52  ;;  %v1947_v59 = vrot.slane %v1942_v52, 4  ;;  %v1706_v30 = vunpack.c.l.b16 %v1453_v55  ;;  %v519_v44 = vld [vmem:[%s9088_s8 + $0x50] sm:$0xf]  ;;  %559 = vst [vmem:[#allocation2 + $0x80] sm:$0xff] %v527_v39   ;;  %6880 = vmatpush.bf16.msrb.mxu2 %v8878_v34 }
  0x7c   : > { %v9718_v41 = vrot.slane %v1460_v43, 5  ;;  %vm1203_vm10 = vmpackc.low %vm1042_vm2, %vm1042_vm2  ;;  %v9724_v18 = vrot.slane %v1949_v61, 7  ;;  %v1707_v0 = vunpack.c.h.b16 %v1453_v55  ;;  %v12880_v50 = vshrl.u32 %v9551_v24, 16  ;;  %551 = vst [vmem:[#allocation2 + $0x60] sm:$0xf] %v519_v44 }
  0x7d   : > { %v9727_v12 = vsel %vm1203_vm10, 65537, %v12866_v49  ;;  %v1946_v52 = vsel %vm9238_vm11, %v1938_v48, %v1945_v47  ;;  %v1097_v43 = vld [vmem:[#allocation2 + $0x58] sm:$0xf]  ;;  %v1098_v9 = vld [vmem:[#allocation2 + $0x5c] sm:$0xf]  ;;  %vm1710_vm3 = vcmp.ne.s32.totalorder %v1706_v30, %v9148_v37  ;;  %v2010_v30 = vrot.slane %v9562_v32, 4 }
  0x7e   : > { %v1526_v62 = vrot.slane %v12880_v50, 4  ;;  %v1463_v61 = vsel %vm9110_vm6, %v9140_v33, %v9718_v41  ;;  %v1540_v55 = vshll.u32 %v9727_v12, 16  ;;  %v1954_v24 = vor.u32 %v1952_v21, %v9724_v18  ;;  %2162 = vst [vmem:[#allocation3 + $0x1b0] sm:$0xf] %v1946_v52  ;;  %v503_v47 = vld [vmem:[%s9088_s8 + $0x10] sm:$0xf] }
  0x7f   : > { %v7882_v39 = vld [vmem:[#allocation3 + $0x48] sm:$0xf]  ;;  %vm1711_vm8 = vcmp.ne.s32.totalorder %v1707_v0, %v9151_v38  ;;  %v1713_v44 = vunpack.c.l.b16 %v1463_v61  ;;  %v1714_v48 = vunpack.c.h.b16 %v1463_v61  ;;  %v8728_v50 = vld [vmem:[#allocation3 + $0x68] sm:$0xf0]  ;;  %535 = vst [vmem:[#allocation2 + $0x20] sm:$0xf] %v503_v47 }
  0x80   : > { %vm9743_vm2 = vmpackc.low %vm1711_vm8, %vm1710_vm3  ;;  %v1527_v34 = vor.u32 %v1526_v62, %v9560_v10  ;;  %v9749_v16 = vrot.slane %v1540_v55, 5  ;;  %v7883_v21 = vor.u32 %v8728_v50, %v7882_v39  ;;  %v1955_v0 = vsel %vm9238_vm11, %v1947_v59, %v1954_v24 }
  0x81   : > { %v12882_v54 = vsel %vm9743_vm2, 4294967295, %v12881_v54  ;;  %vm1717_vm10 = vcmp.ne.s32.totalorder %v1713_v44, %v9148_v37  ;;  %vm1718_vm7 = vcmp.ne.s32.totalorder %v1714_v48, %v9151_v38  ;;  %2163 = vst [vmem:[#allocation3 + $0x1d4] sm:$0xf] %v1955_v0  ;;  %v12884_v52 = vmov 0  ;;  %v1106_v0 = vld [vmem:[#allocation2 + $0x7c] sm:$0xf] }
  0x82   : > { %12883 = vst [vmem:[#allocation23_spill] sm:$0xff] %v12882_v54  ;;  %vm9755_vm3 = vmpackc.low %vm1718_vm7, %vm1717_vm10  ;;  %v1811_v32 = vsel %vm9743_vm2, %v1097_v43, 0  ;;  %v1528_v10 = vrot.slane %v1527_v34, 4  ;;  %v1543_v62 = vsel %vm9110_vm6, %v9140_v33, %v9749_v16  ;;  %v602_v59 = vadd.s32 48, %v9072_v3  ;;  %6711 = vmatmul.bf16.gmra.mxu0 %v7883_v21  ;;  %v1105_v34 = vld [vmem:[#allocation2 + $0x78] sm:$0xf] }
  0x83   : > { %v12885_v52 = vsel %vm9755_vm3, 4294967295, %v12884_v52  ;;  %v1812_v61 = vsel %vm9755_vm3, %v1098_v9, 0  ;;  %v2012_v55 = vshrl.u32 %v1811_v32, 16  ;;  %v2015_v39 = vshll.u32 %v1811_v32, 16 }
  0x84   : > { %12886 = vst [vmem:[#allocation24_spill] sm:$0xff] %v12885_v52  ;;  %v1769_v24 = vunpack.c.l.b16 %v1543_v62  ;;  %v2021_v44 = vshrl.u32 %v1812_v61, 16  ;;  %v2024_v48 = vshll.u32 %v1812_v61, 16  ;;  %v1533_v43 = vsel %vm9110_vm6, %v1528_v10, %v9097_v17 }
  0x85   : > { %v1770_v47 = vunpack.c.h.b16 %v1543_v62  ;;  %v2014_v50 = vrot.slane %v2012_v55, 7  ;;  %v1762_v51 = vunpack.c.l.b16 %v1533_v43  ;;  %v1763_v54 = vunpack.c.h.b16 %v1533_v43  ;;  %v8062_v21 = vld [vmem:[#allocation3 + $0x1b0] sm:$0xf]  ;;  %v8886_v62 = vld [vmem:[%s12589_s3 + $0xd8] sm:$0xff] }
  0x86   : > { %vm1773_vm7 = vcmp.ne.s32.totalorder %v1769_v24, %v9148_v37  ;;  %v9772_v52 = vrot.slane %v2021_v44, 7  ;;  %v674_v9 = vand.u32 15, %v602_v59  ;;  %v12887_v32 = vshrl.u32 %v9586_v19, 16  ;;  %v8895_v59 = vld [vmem:[%s12589_s3 + $0x120] sm:$0xff]  ;;  %v8870_v24 = vld [vmem:[%s12589_s3 + $0x58] sm:$0xff]  ;;  %v8877_v44 = vld [vmem:[%s12589_s3 + $0x90] sm:$0xff]  ;;  %6969 = vmatpush.bf16.msrb.mxu3 %v8886_v62 }
  0x87   : > { %vm1774_vm8 = vcmp.ne.s32.totalorder %v1770_v47, %v9151_v38  ;;  %v2017_v6 = vor.u32 %v2015_v39, %v2014_v50  ;;  %v2019_v45 = vrot.slane %v2014_v50, 4  ;;  %vm1766_vm10 = vcmp.ne.s32.totalorder %v1762_v51, %v9148_v37  ;;  %7057 = vmatpush.bf16.msrb.mxu0 %v8895_v59  ;;  %6791 = vmatpush.bf16.msrb.mxu1 %v8870_v24 }
  0x88   : > { %v1286_v61 = vrot.slane %v12887_v32, 4  ;;  %vm1767_vm3 = vcmp.ne.s32.totalorder %v1763_v54, %v9151_v38  ;;  %vm9779_vm2 = vmpackc.low %vm1774_vm8, %vm1773_vm7  ;;  %v12888_v10 = vmov 0  ;;  %v2026_v19 = vor.u32 %v2024_v48, %v9772_v52  ;;  %v8773_v48 = vld [vmem:[#allocation3 + $0x1d0] sm:$0xf0]  ;;  %6881 = vmatpush.bf16.msrb.mxu2 %v8877_v44 }
  0x89   : > { %v12889_v10 = vsel %vm9779_vm2, 4294967295, %v12888_v10  ;;  %vm9790_vm4 = vmpackc.low %vm1767_vm3, %vm1766_vm10  ;;  %v12890_v55 = vmov 0  ;;  %v1820_v54 = vsel %vm9779_vm2, %v1106_v0, 0  ;;  %vm9796_vm7 = vcmp.ne.s32.totalorder %v674_v9, 0 }
  0x8a   : > { %v12891_v55 = vsel %vm9790_vm4, 4294967295, %v12890_v55  ;;  %v1287_v39 = vor.u32 %v1286_v61, %v9617_v46  ;;  %v2018_v43 = vsel %vm9238_vm11, %v2010_v30, %v2017_v6  ;;  %v1819_v47 = vsel %vm9790_vm4, %v1105_v34, 0  ;;  %vm1179_vm3 = vmpackc.low %vm9796_vm7, %vm9796_vm7  ;;  %v8885_v46 = vld [vmem:[%s12589_s3 + $0xd0] sm:$0xff]  ;;  %v8894_v34 = vld [vmem:[%s12589_s3 + $0x118] sm:$0xff] }
  0x8b   : > { %v2093_v50 = vshrl.u32 %v1820_v54, 16  ;;  %v2096_v0 = vshll.u32 %v1820_v54, 16  ;;  %v8063_v9 = vor.u32 %v8773_v48, %v8062_v21  ;;  %v2027_v32 = vsel %vm9238_vm11, %v2019_v45, %v2026_v19  ;;  %2170 = vst [vmem:[#allocation3 + $0x2d0] sm:$0xf] %v2018_v43  ;;  %v8869_v61 = vld [vmem:[%s12589_s3 + $0x50] sm:$0xff]  ;;  %6970 = vmatpush.bf16.msrb.mxu3 %v8885_v46  ;;  %7058 = vmatpush.bf16.msrb.mxu0 %v8894_v34 }
  0x8c   : > { %v2084_v6 = vshrl.u32 %v1819_v47, 16  ;;  %v2087_v30 = vshll.u32 %v1819_v47, 16  ;;  %2171 = vst [vmem:[#allocation3 + $0x2f4] sm:$0xf] %v2027_v32  ;;  %v1544_v62 = vshrl.u32 %v9727_v12, 16  ;;  %v9834_v45 = vsel %vm1179_vm3, 65537, %v12866_v49  ;;  %6792 = vmatpush.bf16.msrb.mxu1 %v8869_v61 }
  0x8d   : > { %v9826_v21 = vrot.slane %v2093_v50, 7  ;;  %v1288_v59 = vrot.slane %v1287_v39, 4  ;;  %6736 = vmatmul.bf16.gmra.mxu1 %v8063_v9  ;;  %v2082_v19 = vrot.slane %v9635_v26, 4  ;;  %v1300_v24 = vshll.u32 %v9834_v45, 16  ;;  %v1082_v34 = vld [vmem:[#allocation2 + $0x1c] sm:$0xf] }
  0x8e   : > { %v2086_v54 = vrot.slane %v2084_v6, 7  ;;  %v12894_v44 = vshrl.u32 %v9648_v35, 16  ;;  %v1866_v51 = vrot.slane %v9669_v25, 4  ;;  %v1970_v39 = vshll.u32 %v9268_v58, 16 }
  0x8f   : > { %v2098_v43 = vor.u32 %v2096_v0, %v9826_v21  ;;  %v1293_v47 = vsel %vm9110_vm6, %v1288_v59, %v9097_v17  ;;  %v9846_v9 = vrot.slane %v1300_v24, 5  ;;  %v1304_v35 = vshrl.u32 %v9834_v45, 16  ;;  %v8893_v45 = vld [vmem:[%s12589_s3 + $0x110] sm:$0xff] }
  0x90   : > { %v1386_v48 = vrot.slane %v12894_v44, 4  ;;  %v2089_v50 = vor.u32 %v2087_v30, %v2086_v54  ;;  %v2091_v26 = vrot.slane %v2086_v54, 4  ;;  %v1594_v32 = vunpack.c.l.b16 %v1293_v47  ;;  %v1081_v30 = vld [vmem:[#allocation2 + $0x18] sm:$0xf]  ;;  %7059 = vmatpush.bf16.msrb.mxu0 %v8893_v45 }
  0x91   : > { %v1595_v6 = vunpack.c.h.b16 %v1293_v47  ;;  %v12895_v44 = vshrl.u32 %v9707_v57, 16  ;;  %v1303_v61 = vsel %vm9110_vm6, %v9140_v33, %v9846_v9  ;;  %v9868_v47 = vor.u32 %v1970_v39, %v9294_v2 }
  0x92   : > { %v1387_v0 = vor.u32 %v1386_v48, %v9665_v31  ;;  %v2090_v46 = vsel %vm9238_vm11, %v2082_v19, %v2089_v50  ;;  %v2099_v58 = vsel %vm9238_vm11, %v2091_v26, %v2098_v43  ;;  %vm1598_vm8 = vcmp.ne.s32.totalorder %v1594_v32, %v9148_v37  ;;  %v8206_v54 = vld [vmem:[#allocation3 + $0x2d0] sm:$0xf] }
  0x93   : > { %v1466_v59 = vrot.slane %v12895_v44, 4  ;;  %2178 = vst [vmem:[#allocation3 + $0x3f0] sm:$0xf] %v2090_v46  ;;  %vm1599_vm10 = vcmp.ne.s32.totalorder %v1595_v6, %v9151_v38  ;;  %v1601_v31 = vunpack.c.l.b16 %v1303_v61  ;;  %v1602_v57 = vunpack.c.h.b16 %v1303_v61  ;;  %v8809_v19 = vld [vmem:[#allocation3 + $0x2f0] sm:$0xf0] }
  0x94   : > { %v1388_v24 = vrot.slane %v1387_v0, 4  ;;  %2179 = vst [vmem:[#allocation3 + $0x414] sm:$0xf] %v2099_v58  ;;  %vm9862_vm7 = vmpackc.low %vm1599_vm10, %vm1598_vm8  ;;  %v12896_v48 = vmov 0  ;;  %v2042_v26 = vshll.u32 %v9343_v20, 16  ;;  %v8207_v32 = vor.u32 %v8809_v19, %v8206_v54 }
  0x95   : > { %v12897_v48 = vsel %vm9862_vm7, 4294967295, %v12896_v48  ;;  %v1467_v50 = vor.u32 %v1466_v59, %v9718_v41  ;;  %vm1605_vm3 = vcmp.ne.s32.totalorder %v1601_v31, %v9148_v37  ;;  %vm1606_vm2 = vcmp.ne.s32.totalorder %v1602_v57, %v9151_v38  ;;  %v1091_v57 = vld [vmem:[#allocation2 + $0x40] sm:$0xf] }
  0x96   : > { %12898 = vst [vmem:[#allocation25_spill] sm:$0xff] %v12897_v48  ;;  %v1795_v6 = vsel %vm9862_vm7, %v1081_v30, 0  ;;  %vm9876_vm8 = vmpackc.low %vm1606_vm2, %vm1605_vm3  ;;  %v12899_v0 = vmov 0  ;;  %v1393_v2 = vsel %vm9110_vm6, %v1388_v24, %v9097_v17  ;;  %6756 = vmatmul.bf16.gmra.mxu2 %v8207_v32  ;;  %v1783_v61 = vunpack.c.l.b16 %v9140_v33  ;;  %v1099_v24 = vld [vmem:[#allocation2 + $0x60] sm:$0xf] }
  0x97   : > { %v12900_v0 = vsel %vm9876_vm8, 4294967295, %v12899_v0  ;;  %v1868_v44 = vshrl.u32 %v1795_v6, 16  ;;  %v1871_v46 = vshll.u32 %v1795_v6, 16  ;;  %v1468_v41 = vrot.slane %v1467_v50, 4 }
  0x98   : > { %12901 = vst [vmem:[#allocation26_spill] sm:$0xff] %v12900_v0  ;;  %v1796_v39 = vsel %vm9876_vm8, %v1082_v34, 0  ;;  %v1664_v59 = vunpack.c.l.b16 %v1393_v2  ;;  %v1665_v58 = vunpack.c.h.b16 %v1393_v2  ;;  %v12974_v60 = vmov 0 }
  0x99   : > { %v1870_v30 = vrot.slane %v1868_v44, 7  ;;  %v1877_v54 = vshrl.u32 %v1796_v39, 16  ;;  %v1880_v31 = vshll.u32 %v1796_v39, 16  ;;  %v1473_v19 = vsel %vm9110_vm6, %v1468_v41, %v9097_v17  ;;  %v8876_v41 = vld [vmem:[%s12589_s3 + $0x88] sm:$0xff] }
  0x9a   : > { %vm1668_vm2 = vcmp.ne.s32.totalorder %v1664_v59, %v9148_v37  ;;  %vm1669_vm10 = vcmp.ne.s32.totalorder %v1665_v58, %v9151_v38  ;;  %v1720_v50 = vunpack.c.l.b16 %v1473_v19  ;;  %v1721_v32 = vunpack.c.h.b16 %v1473_v19  ;;  %v8350_v34 = vld [vmem:[#allocation3 + $0x3f0] sm:$0xf]  ;;  %6882 = vmatpush.bf16.msrb.mxu2 %v8876_v41 }
  0x9b   : > { %v1873_v6 = vor.u32 %v1871_v46, %v1870_v30  ;;  %v1875_v2 = vrot.slane %v1870_v30, 4  ;;  %v9891_v43 = vrot.slane %v1877_v54, 7  ;;  %vm9893_vm3 = vmpackc.low %vm1669_vm10, %vm1668_vm2  ;;  %v12902_v44 = vmov 0  ;;  %v8845_v59 = vld [vmem:[#allocation3 + $0x410] sm:$0xf0] }
  0x9c   : > { %v12903_v44 = vsel %vm9893_vm3, 4294967295, %v12902_v44  ;;  %v1546_v39 = vrot.slane %v1544_v62, 4  ;;  %v1805_v58 = vsel %vm9893_vm3, %v1091_v57, 0  ;;  %vm1724_vm4 = vcmp.ne.s32.totalorder %v1720_v50, %v9148_v37 }
  0x9d   : > { %12904 = vst [vmem:[#allocation27_spill] sm:$0xff] %v12903_v44  ;;  %vm1725_vm5 = vcmp.ne.s32.totalorder %v1721_v32, %v9151_v38  ;;  %v1784_v46 = vunpack.c.h.b16 %v9140_v33  ;;  %v8351_v30 = vor.u32 %v8845_v59, %v8350_v34  ;;  %v1874_v12 = vsel %vm9238_vm11, %v1866_v51, %v1873_v6  ;;  %v1108_v6 = vld [vmem:[#allocation2 + $0x84] sm:$0xf] }
  0x9e   : > { %v1882_v62 = vor.u32 %v1880_v31, %v9891_v43  ;;  %v1958_v54 = vshrl.u32 %v1805_v58, 16  ;;  %vm9912_vm2 = vmpackc.low %vm1725_vm5, %vm1724_vm4  ;;  %v12905_v19 = vmov 0  ;;  %2154 = vst [vmem:[#allocation3 + $0x90] sm:$0xf] %v1874_v12  ;;  %v1961_v57 = vshll.u32 %v1805_v58, 16 }
  0x9f   : > { %v12906_v19 = vsel %vm9912_vm2, 4294967295, %v12905_v19  ;;  %v1813_v50 = vsel %vm9912_vm2, %v1099_v24, 0  ;;  %v1547_v33 = vor.u32 %v1546_v39, %v9749_v16  ;;  %vm9920_vm10 = vcmp.ne.s32.totalorder %v1783_v61, %v9148_v37  ;;  %6776 = vmatmul.bf16.gmra.mxu3 %v8351_v30  ;;  %v8884_v61 = vld [vmem:[%s12589_s3 + $0xc8] sm:$0xff]  ;;  %v8883_v30 = vld [vmem:[%s12589_s3 + $0xc0] sm:$0xff] }
  0xa0   : > { %12907 = vst [vmem:[#allocation28_spill] sm:$0xff] %v12906_v19  ;;  %v1883_v51 = vsel %vm9238_vm11, %v1875_v2, %v1882_v62  ;;  %v1960_v31 = vrot.slane %v1958_v54, 7  ;;  %v2030_v32 = vshrl.u32 %v1813_v50, 16  ;;  %v2033_v34 = vshll.u32 %v1813_v50, 16  ;;  %6971 = vmatpush.bf16.msrb.mxu3 %v8884_v61  ;;  %v1107_v50 = vld [vmem:[#allocation2 + $0x80] sm:$0xf] }
  0xa1   : > { %2155 = vst [vmem:[#allocation3 + $0xb4] sm:$0xf] %v1883_v51  ;;  %v2028_v41 = vrot.slane %v9772_v52, 4  ;;  %v1548_v59 = vrot.slane %v1547_v33, 4  ;;  %vm1788_vm5 = vcmp.ne.s32.totalorder %v1784_v46, %v9151_v38  ;;  %v1306_v16 = vrot.slane %v1304_v35, 4  ;;  %v8868_v35 = vld [vmem:[%s12589_s3 + $0x48] sm:$0xff] }
  0xa2   : > { %v1963_v24 = vor.u32 %v1961_v57, %v1960_v31  ;;  %v1965_v39 = vrot.slane %v1960_v31, 4  ;;  %v2032_v2 = vrot.slane %v2030_v32, 7  ;;  %v2044_v58 = vor.u32 %v2042_v26, %v9366_v42  ;;  %vm9938_vm4 = vmpackc.low %vm1788_vm5, %vm9920_vm10  ;;  %v8875_v26 = vld [vmem:[%s12589_s3 + $0x80] sm:$0xff]  ;;  %6793 = vmatpush.bf16.msrb.mxu1 %v8868_v35  ;;  %v8892_v33 = vld [vmem:[%s12589_s3 + $0x108] sm:$0xff] }
  0xa3   : > { %v12910_v52 = vmov 0  ;;  %v1553_v46 = vsel %vm9110_vm6, %v1548_v59, %v9097_v17  ;;  %v1822_v20 = vsel %vm9938_vm4, %v1108_v6, 0  ;;  %v1307_v42 = vor.u32 %v1306_v16, %v9846_v9  ;;  %6883 = vmatpush.bf16.msrb.mxu2 %v8875_v26  ;;  %v2182_v32 = vld [vmem:[#allocation2 + $0x8] sm:$0xf]  ;;  %v8891_v16 = vld [vmem:[%s12589_s3 + $0x100] sm:$0xff]  ;;  %7060 = vmatpush.bf16.msrb.mxu0 %v8892_v33 }
  0xa4   : > { %v12911_v52 = vsel %vm9938_vm4, 4294967295, %v12910_v52  ;;  %v12912_v12 = vrot.slane %v9724_v18, 4  ;;  %v1973_v54 = vsel %vm9238_vm11, %v1965_v39, %v9868_v47  ;;  %v2035_v57 = vor.u32 %v2033_v34, %v2032_v2  ;;  %v8867_v18 = vld [vmem:[%s12589_s3 + $0x40] sm:$0xff]  ;;  %6972 = vmatpush.bf16.msrb.mxu3 %v8883_v30  ;;  %2214 = vst [vmem:[#allocation3 + $0x4] sm:$0xf] %v2182_v32 }
  0xa5   : > { %v2037_v9 = vrot.slane %v2032_v2, 4  ;;  %v1776_v25 = vunpack.c.l.b16 %v1553_v46  ;;  %v1777_v51 = vunpack.c.h.b16 %v1553_v46  ;;  %v2111_v31 = vshrl.u32 %v1822_v20, 16  ;;  %v7918_v47 = vld [vmem:[#allocation3 + $0x90] sm:$0xf]  ;;  %2165 = vst [vmem:[#allocation3 + $0x21c] sm:$0xf] %v1973_v54 }
  0xa6   : > { %v1964_v62 = vsel %vm9238_vm11, %v12912_v12, %v1963_v24  ;;  %v2036_v34 = vsel %vm9238_vm11, %v2028_v41, %v2035_v57  ;;  %v1308_v59 = vrot.slane %v1307_v42, 4  ;;  %v2114_v61 = vshll.u32 %v1822_v20, 16  ;;  %v2183_v24 = vld [vmem:[#allocation2 + $0xc] sm:$0xf]  ;;  %6794 = vmatpush.bf16.msrb.mxu1 %v8867_v18 }
  0xa7   : > { %2164 = vst [vmem:[#allocation3 + $0x1f8] sm:$0xf] %v1964_v62  ;;  %v2045_v6 = vsel %vm9238_vm11, %v2037_v9, %v2044_v58  ;;  %vm1780_vm10 = vcmp.ne.s32.totalorder %v1776_v25, %v9148_v37  ;;  %vm1781_vm5 = vcmp.ne.s32.totalorder %v1777_v51, %v9151_v38  ;;  %v597_v39 = vadd.s32 8, %v9072_v3  ;;  %7061 = vmatpush.bf16.msrb.mxu0 %v8891_v16 }
  0xa8   : > { %2172 = vst [vmem:[#allocation3 + $0x318] sm:$0xf] %v2036_v34  ;;  %v8737_v2 = vld [vmem:[#allocation3 + $0xb0] sm:$0xf0]  ;;  %vm9983_vm4 = vmpackc.low %vm1781_vm5, %vm1780_vm10  ;;  %v12913_v41 = vmov 0  ;;  %v2113_v58 = vrot.slane %v2111_v31, 7  ;;  %v1313_v45 = vsel %vm9110_vm6, %v1308_v59, %v9097_v17 }
  0xa9   : > { %2173 = vst [vmem:[#allocation3 + $0x33c] sm:$0xf] %v2045_v6  ;;  %v12914_v41 = vsel %vm9983_vm4, 4294967295, %v12913_v41  ;;  %v12915_v35 = vshrl.u32 %v9075_v5, 16  ;;  %v7919_v20 = vor.u32 %v8737_v2, %v7918_v47  ;;  %v1821_v42 = vsel %vm9983_vm4, %v1107_v50, 0 }
  0xaa   : > { %v1608_v26 = vunpack.c.l.b16 %v1313_v45  ;;  %v2102_v30 = vshrl.u32 %v1821_v42, 16  ;;  %v2105_v12 = vshll.u32 %v1821_v42, 16  ;;  %v1609_v62 = vunpack.c.h.b16 %v1313_v45  ;;  %2215 = vst [vmem:[#allocation3 + $0x28] sm:$0xf] %v2183_v24  ;;  %v1083_v17 = vld [vmem:[#allocation2 + $0x20] sm:$0xf] }
  0xab   : > { %v2410_v46 = vrot.slane %v12915_v35, 7  ;;  %v639_v54 = vand.u32 15, %v597_v39  ;;  %6716 = vmatmul.bf16.gmra.mxu0 %v7919_v20  ;;  %v2100_v57 = vrot.slane %v9826_v21, 4  ;;  %v12916_v9 = vshll.u32 %v9075_v5, 16  ;;  %v2246_v42 = vld [vmem:[#allocation2 + $0x8] sm:$0xf] }
  0xac   : > { %vm1612_vm10 = vcmp.ne.s32.totalorder %v1608_v26, %v9148_v37  ;;  %v2104_v25 = vrot.slane %v2102_v30, 7  ;;  %v2116_v50 = vor.u32 %v2114_v61, %v2113_v58  ;;  %vm1613_vm5 = vcmp.ne.s32.totalorder %v1609_v62, %v9151_v38  ;;  %v8782_v31 = vld [vmem:[#allocation3 + $0x218] sm:$0xf0]  ;;  %v3768_v30 = vld [vmem:[#allocation2 + $0x10] sm:$0xf] }
  0xad   : > { %v9998_v33 = vor.u32 %v2410_v46, %v12916_v9  ;;  %vm10001_vm4 = vcmp.ne.s32.totalorder %v639_v54, 15  ;;  %vm10005_vm2 = vmpackc.low %vm1613_vm5, %vm1612_vm10  ;;  %v12919_v21 = vmov 0  ;;  %v1884_v32 = vrot.slane %v9891_v43, 4  ;;  %3800 = vst [vmem:[#allocation3 + $0x10] sm:$0xf] %v3768_v30 }
  0xae   : > { %v8098_v18 = vld [vmem:[#allocation3 + $0x1f8] sm:$0xf]  ;;  %v12920_v21 = vsel %vm10005_vm2, 4294967295, %v12919_v21  ;;  %v1898_v5 = vshll.u32 %v9206_v15, 16  ;;  %v2107_v16 = vor.u32 %v2105_v12, %v2104_v25  ;;  %v2109_v61 = vrot.slane %v2104_v25, 4  ;;  %vm2344_vm10 = vmpackc.low %vm10001_vm4, %vm10001_vm4 }
  0xaf   : > { %12921 = vst [vmem:[#allocation29_spill] sm:$0xff] %v12920_v21  ;;  %v2694_v47 = vunpack.c.l.b16 %v9998_v33  ;;  %v2695_v34 = vunpack.c.h.b16 %v9998_v33  ;;  %v8099_v6 = vor.u32 %v8782_v31, %v8098_v18  ;;  %v8242_v59 = vld [vmem:[#allocation3 + $0x318] sm:$0xf]  ;;  %v1797_v24 = vsel %vm10005_vm2, %v1083_v17, 0  ;;  %v3347_v25 = vld [vmem:[#allocation2 + $0x10] sm:$0xf] }
  0xb0   : > { %v8818_v39 = vld [vmem:[#allocation3 + $0x338] sm:$0xf0]  ;;  %v1886_v2 = vshrl.u32 %v1797_v24, 16  ;;  %v1889_v43 = vshll.u32 %v1797_v24, 16  ;;  %v2376_v15 = vsel %vm2344_vm10, 65537, %v12866_v49  ;;  %v2108_v35 = vsel %vm9238_vm11, %v2100_v57, %v2107_v16 }
  0xb1   : > { %vm10020_vm5 = vcmp.ne.s32.totalorder %v2694_v47, %v9148_v37  ;;  %6741 = vmatmul.bf16.gmra.mxu1 %v8099_v6  ;;  %v8243_v45 = vor.u32 %v8818_v39, %v8242_v59  ;;  %v2117_v20 = vsel %vm9238_vm11, %v2109_v61, %v2116_v50  ;;  %v2416_v26 = vshrl.u32 %v2376_v15, 16  ;;  %2180 = vst [vmem:[#allocation3 + $0x438] sm:$0xf] %v2108_v35  ;;  %v3769_v17 = vld [vmem:[#allocation2 + $0x14] sm:$0xf]  ;;  %v8914_v31 = vld [vmem:[%s12589_s3 + $0x1b8] sm:$0xff] }
  0xb2   : > { %v1888_v12 = vrot.slane %v1886_v2, 7  ;;  %v1900_v62 = vor.u32 %v1898_v5, %v9224_v29  ;;  %v2419_v54 = vshll.u32 %v2376_v15, 16  ;;  %vm2699_vm4 = vcmp.ne.s32.totalorder %v2695_v34, %v9151_v38  ;;  %2181 = vst [vmem:[#allocation3 + $0x45c] sm:$0xf] %v2117_v20  ;;  %v8922_v6 = vld [vmem:[%s12589_s3 + $0x1f8] sm:$0xff]  ;;  %7232 = vmatpush.bf16.msra.mxu2 %v8914_v31 }
  0xb3   : > { %6761 = vmatmul.bf16.gmra.mxu2 %v8243_v45  ;;  %v10030_v9 = vrot.slane %v2410_v46, 4  ;;  %v2418_v18 = vrot.slane %v2416_v26, 7  ;;  %vm10034_vm10 = vmpackc.low %vm2699_vm4, %vm10020_vm5  ;;  %v12924_v57 = vmov 0  ;;  %3801 = vst [vmem:[#allocation3 + $0x34] sm:$0xf] %v3769_v17  ;;  %v10052_v61 = vsel %vm9451_vm13, %v3347_v25, 0  ;;  %7321 = vmatpush.bf16.msra.mxu3 %v8922_v6 }
  0xb4   : > { %v12925_v57 = vsel %vm10034_vm10, 4294967295, %v12924_v57  ;;  %v1891_v50 = vor.u32 %v1889_v43, %v1888_v12  ;;  %v1893_v51 = vrot.slane %v1888_v12, 4  ;;  %v2925_v29 = vsel %vm10034_vm10, %v2246_v42, 0  ;;  %v8906_v24 = vld [vmem:[%s12589_s3 + $0x178] sm:$0xff]  ;;  %v2247_v2 = vld [vmem:[#allocation2 + $0xc] sm:$0xf] }
  0xb5   : > { %v2421_v46 = vor.u32 %v2419_v54, %v2418_v18  ;;  %v2423_v5 = vrot.slane %v2418_v18, 4  ;;  %v2959_v47 = vshrl.u32 %v2925_v29, 16  ;;  %v2962_v34 = vshll.u32 %v2925_v29, 16  ;;  %v8930_v39 = vld [vmem:[%s12589_s3 + $0x238] sm:$0xff]  ;;  %v2184_v45 = vld [vmem:[#allocation2 + $0x10] sm:$0xf]  ;;  %7143 = vmatpush.bf16.msra.mxu1 %v8906_v24 }
  0xb6   : > { %v1892_v59 = vsel %vm9238_vm11, %v1884_v32, %v1891_v50  ;;  %v1901_v16 = vsel %vm9238_vm11, %v1893_v51, %v1900_v62  ;;  %v2248_v35 = vld [vmem:[#allocation2 + $0x10] sm:$0xf]  ;;  %v3346_v12 = vld [vmem:[#allocation2 + $0xc] sm:$0x8]  ;;  %7410 = vmatpush.bf16.msra.mxu0 %v8930_v39  ;;  %v8715_v54 = vld [vmem:[#allocation3 + $0x4] sm:$0xf] }
  0xb7   : > { %2156 = vst [vmem:[#allocation3 + $0xd8] sm:$0xf] %v1892_v59  ;;  %v2422_v32 = vsel %vm9238_vm11, %v10030_v9, %v2421_v46  ;;  %v2431_v43 = vsel %vm9238_vm11, %v2423_v5, %v9998_v33  ;;  %v2961_v15 = vrot.slane %v2959_v47, 4  ;;  %v2964_v58 = vrot.slane %v2962_v34, 5  ;;  %v7848_v17 = vld [vmem:[#allocation3 + $0x24] sm:$0xf0] }
  0xb8   : > { %2157 = vst [vmem:[#allocation3 + $0xfc] sm:$0xf] %v1901_v16  ;;  %v2701_v20 = vunpack.c.l.b16 %v2422_v32  ;;  %v2702_v42 = vunpack.c.h.b16 %v2422_v32  ;;  %v2708_v26 = vunpack.c.l.b16 %v2431_v43  ;;  %v2709_v30 = vunpack.c.h.b16 %v2431_v43  ;;  %v8386_v62 = vld [vmem:[#allocation3 + $0x438] sm:$0xf] }
  0xb9   : > { %v2965_v18 = vor.u32 %v2964_v58, %v2961_v15  ;;  %v8854_v25 = vld [vmem:[#allocation3 + $0x458] sm:$0xf0]  ;;  %v2185_v50 = vld [vmem:[#allocation2 + $0x14] sm:$0xf]  ;;  %2216 = vst [vmem:[#allocation3 + $0x4c] sm:$0xf] %v2184_v45  ;;  %v7851_v46 = vor.u32 %v8715_v54, %v7848_v17 }
  0xba   : > { %vm2705_vm5 = vcmp.ne.s32.totalorder %v2701_v20, %v9148_v37  ;;  %vm2706_vm4 = vcmp.ne.s32.totalorder %v2702_v42, %v9151_v38  ;;  %vm2712_vm10 = vcmp.ne.s32.totalorder %v2708_v26, %v9148_v37  ;;  %vm2713_vm3 = vcmp.ne.s32.totalorder %v2709_v30, %v9151_v38  ;;  %v3348_v34 = vld [vmem:[#allocation2 + $0x14] sm:$0xf]  ;;  %2217 = vst [vmem:[#allocation3 + $0x70] sm:$0xf] %v2185_v50  ;;  %v3349_v17 = vld [vmem:[#allocation2 + $0x18] sm:$0xf] }
  0xbb   : > { %v8387_v51 = vor.u32 %v8854_v25, %v8386_v62  ;;  %vm10070_vm13 = vmpackc.low %vm2706_vm4, %vm2705_vm5  ;;  %v3379_v31 = vsel %vm9417_vm12, %v3346_v12, 0  ;;  %v3418_v6 = vshrl.u32 %v10052_v61, 16  ;;  %v2966_v16 = vrot.slane %v2965_v18, 4 }
  0xbc   : > { %vm10076_vm9 = vmpackc.low %vm2713_vm3, %vm2712_vm10  ;;  %v2926_v47 = vsel %vm10070_vm13, %v2247_v2, 0  ;;  %v3413_v15 = vshrl.u32 %v3379_v31, 16  ;;  %v3381_v2 = vsel %vm9437_vm14, %v3348_v34, 0  ;;  %v3421_v54 = vshll.u32 %v10052_v61, 16 }
  0xbd   : > { %6781 = vmatmul.bf16.gmra.mxu3 %v8387_v51  ;;  %v2927_v59 = vsel %vm10076_vm9, %v2248_v35, 0  ;;  %v2968_v24 = vshll.u32 %v2926_v47, 16  ;;  %v2972_v39 = vshrl.u32 %v2926_v47, 16  ;;  %v3420_v26 = vrot.slane %v3418_v6, 7  ;;  %v3770_v51 = vld [vmem:[#allocation2 + $0x18] sm:$0xf] }
  0xbe   : > { %v7954_v32 = vld [vmem:[#allocation3 + $0xd8] sm:$0xf]  ;;  %v2978_v43 = vshll.u32 %v2927_v59, 16  ;;  %v7842_v62 = vrot.slane %v3413_v15, 11  ;;  %v3427_v25 = vshrl.u32 %v3381_v2, 16  ;;  %v3430_v50 = vshll.u32 %v3381_v2, 16 }
  0xbf   : > { %v8746_v58 = vld [vmem:[#allocation3 + $0xf8] sm:$0xf0]  ;;  %v2970_v45 = vrot.slane %v2968_v24, 5  ;;  %v2974_v20 = vrot.slane %v2972_v39, 4  ;;  %v3423_v31 = vor.u32 %v3421_v54, %v3420_v26  ;;  %v3350_v47 = vld [vmem:[#allocation2 + $0x1c] sm:$0xf] }
  0xc0   : > { %v7955_v42 = vor.u32 %v8746_v58, %v7954_v32  ;;  %v10089_v12 = vrot.slane %v2978_v43, 5  ;;  %v3425_v34 = vrot.slane %v3420_v26, 4  ;;  %v3429_v6 = vrot.slane %v3427_v25, 7  ;;  %3802 = vst [vmem:[#allocation3 + $0x58] sm:$0xf] %v3770_v51 }
  0xc1   : > { %6795 = vmatmul.bf16.vlgmr.msrb.gmra.mxu1 %v7851_v46  ;;  %v2971_v30 = vsel %vm9110_vm6, %v2966_v16, %v2970_v45  ;;  %v2975_v35 = vor.u32 %v2974_v20, %v2970_v45  ;;  %v3771_v16 = vld [vmem:[#allocation2 + $0x1c] sm:$0xf]  ;;  %v3424_v24 = vsel %vm9238_vm11, %v7842_v62, %v3423_v31  ;;  %v599_v61 = vadd.s32 24, %v9072_v3  ;;  %v7862_v15 = vld [vmem:[#allocation3 + $0x10] sm:$0xf] }
  0xc2   : > { %6721 = vmatmul.bf16.gmra.mxu0 %v7955_v42  ;;  %3314 = vst [vmem:[#allocation3 + $0x8] sm:$0xf] %v2971_v30  ;;  %v2982_v39 = vshrl.u32 %v2927_v59, 16  ;;  %v3382_v32 = vsel %vm9641_vm0, %v3349_v17, 0  ;;  %v3432_v43 = vor.u32 %v3430_v50, %v3429_v6  ;;  %v8721_v58 = vld [vmem:[#allocation3 + $0x30] sm:$0xf0] }
  0xc3   : > { %v2976_v18 = vrot.slane %v2975_v35, 4  ;;  %3736 = vst [vmem:[#allocation3 + $0xc] sm:$0xf] %v3424_v24  ;;  %v3383_v45 = vsel %vm9655_vm15, %v3350_v47, 0  ;;  %v3434_v20 = vrot.slane %v3429_v6, 4  ;;  %v3436_v42 = vshrl.u32 %v3382_v32, 16 }
  0xc4   : > { %v653_v2 = vand.u32 15, %v599_v61  ;;  %v2984_v26 = vrot.slane %v2982_v39, 4  ;;  %v3439_v30 = vshll.u32 %v3382_v32, 16  ;;  %v3445_v35 = vshrl.u32 %v3383_v45, 16  ;;  %3803 = vst [vmem:[#allocation3 + $0x7c] sm:$0xf] %v3771_v16 }
  0xc5   : > { %v2981_v46 = vsel %vm9110_vm6, %v2976_v18, %v10089_v12  ;;  %v3433_v59 = vsel %vm9238_vm11, %v3425_v34, %v3432_v43  ;;  %v8724_v62 = vld [vmem:[#allocation3 + $0x4c] sm:$0xf]  ;;  %v3438_v54 = vrot.slane %v3436_v42, 7  ;;  %v3448_v17 = vshll.u32 %v3383_v45, 16  ;;  %v7884_v25 = vld [vmem:[#allocation3 + $0x6c] sm:$0xf0] }
  0xc6   : > { %3315 = vst [vmem:[#allocation3 + $0x2c] sm:$0xf] %v2981_v46  ;;  %v601_v18 = vadd.s32 40, %v9072_v3  ;;  %vm1047_vm3 = vcmp.ne.s32.totalorder %v653_v2, 15  ;;  %v10105_v50 = vrot.slane %v3445_v35, 7  ;;  %v7863_v16 = vor.u32 %v8721_v58, %v7862_v15 }
  0xc7   : > { %3737 = vst [vmem:[#allocation3 + $0x30] sm:$0xf] %v3433_v59  ;;  %vm2346_vm10 = vmpackc.low %vm1047_vm3, %vm1047_vm3  ;;  %v3441_v31 = vor.u32 %v3439_v30, %v3438_v54  ;;  %v3443_v47 = vrot.slane %v3438_v54, 4  ;;  %v3351_v6 = vld [vmem:[#allocation2 + $0x20] sm:$0xf]  ;;  %v2985_v34 = vor.u32 %v2984_v26, %v10089_v12  ;;  %v7887_v43 = vor.u32 %v8724_v62, %v7884_v25 }
  0xc8   : > { %v667_v46 = vand.u32 15, %v601_v18  ;;  %v2378_v24 = vsel %vm2346_vm10, 65537, %v12866_v49  ;;  %v3450_v61 = vor.u32 %v3448_v17, %v10105_v50  ;;  %v2186_v39 = vld [vmem:[#allocation2 + $0x18] sm:$0xf]  ;;  %v10112_v35 = vld [vmem:[#allocation3 + $0x58] sm:$0xf] }
  0xc9   : > { %v7854_v51 = vld [vmem:[#allocation3 + $0x8] sm:$0xf]  ;;  %v2434_v45 = vshrl.u32 %v2378_v24, 16  ;;  %v2437_v42 = vshll.u32 %v2378_v24, 16  ;;  %v3442_v2 = vsel %vm9238_vm11, %v3434_v20, %v3441_v31  ;;  %v2187_v30 = vld [vmem:[#allocation2 + $0x1c] sm:$0xf] }
  0xca   : > { %v8716_v54 = vld [vmem:[#allocation3 + $0xc] sm:$0xf]  ;;  %v3451_v15 = vsel %vm9238_vm11, %v3443_v47, %v3450_v61  ;;  %3738 = vst [vmem:[#allocation3 + $0x54] sm:$0xf] %v3442_v2  ;;  %vm1049_vm5 = vcmp.ne.s32.totalorder %v667_v46, 15  ;;  %v3384_v12 = vsel %vm9862_vm7, %v3351_v6, 0 }
  0xcb   : > { %v2436_v58 = vrot.slane %v2434_v45, 7  ;;  %3739 = vst [vmem:[#allocation3 + $0x78] sm:$0xf] %v3451_v15  ;;  %v10118_v26 = vld [vmem:[#allocation3 + $0x78] sm:$0xf0]  ;;  %vm2348_vm4 = vmpackc.low %vm1049_vm5, %vm1049_vm5  ;;  %v10120_v20 = vrot.slane %v2985_v34, 4 }
  0xcc   : > { %2218 = vst [vmem:[#allocation3 + $0x94] sm:$0xf] %v2186_v39  ;;  %v2380_v62 = vsel %vm2348_vm4, 65537, %v12866_v49  ;;  %v3452_v17 = vrot.slane %v10105_v50, 4  ;;  %v3454_v18 = vshrl.u32 %v3384_v12, 16  ;;  %v12941_v6 = vmov 0 }
  0xcd   : > { %v8720_v32 = vld [vmem:[#allocation3 + $0x28] sm:$0xf0]  ;;  %v2441_v31 = vrot.slane %v2436_v58, 4  ;;  %2219 = vst [vmem:[#allocation3 + $0xb8] sm:$0xf] %v2187_v30  ;;  %v2452_v47 = vshrl.u32 %v2380_v62, 16 }
  0xce   : > { %v7855_v59 = vor.u32 %v8720_v32, %v7854_v51  ;;  %v7856_v25 = vld [vmem:[#allocation3 + $0x2c] sm:$0xf0]  ;;  %v2439_v51 = vor.u32 %v2437_v42, %v2436_v58  ;;  %v2455_v24 = vshll.u32 %v2380_v62, 16  ;;  %v3352_v34 = vld [vmem:[#allocation2 + $0x24] sm:$0xf]  ;;  %v10126_v61 = vrot.slane %v3454_v18, 7 }
  0xcf   : > { %v7859_v46 = vor.u32 %v8716_v54, %v7856_v25  ;;  %v2449_v39 = vsel %vm9238_vm11, %v2441_v31, %v9998_v33  ;;  %v2454_v32 = vrot.slane %v2452_v47, 7  ;;  %v3772_v45 = vld [vmem:[#allocation2 + $0x20] sm:$0xf]  ;;  %v3773_v42 = vld [vmem:[#allocation2 + $0x24] sm:$0xf]  ;;  %v10136_v62 = vsel %vm9876_vm8, %v3352_v34, 0 }
  0xd0   : > { %6884 = vmatmul.bf16.vlgmr.msrb.gmra.mxu2 %v7855_v59  ;;  %v2440_v50 = vsel %vm9238_vm11, %v10030_v9, %v2439_v51  ;;  %v2722_v30 = vunpack.c.l.b16 %v2449_v39  ;;  %v2723_v59 = vunpack.c.h.b16 %v2449_v39  ;;  %3804 = vst [vmem:[#allocation3 + $0xa0] sm:$0xf] %v3772_v45  ;;  %v2249_v54 = vld [vmem:[#allocation2 + $0x14] sm:$0xf]  ;;  %v2250_v25 = vld [vmem:[#allocation2 + $0x18] sm:$0xf] }
  0xd1   : > { %6800 = vmatmul.bf16.gmra.mxu1 %v7887_v43  ;;  %v3457_v43 = vshll.u32 %v3384_v12, 16  ;;  %6973 = vmatmul.bf16.vlgmr.msrb.gmra.mxu3 %v7859_v46  ;;  %v2716_v2 = vunpack.c.h.b16 %v2440_v50  ;;  %v2457_v15 = vor.u32 %v2455_v24, %v2454_v32  ;;  %v2459_v58 = vrot.slane %v2454_v32, 4  ;;  %3805 = vst [vmem:[#allocation3 + $0xc4] sm:$0xf] %v3773_v42 }
  0xd2   : > { %7062 = vmatmul.bf16.vlgmr.msrb.gmra.mxu0 %v7863_v16  ;;  %v2715_v16 = vunpack.c.l.b16 %v2440_v50  ;;  %vm2726_vm5 = vcmp.ne.s32.totalorder %v2722_v30, %v9148_v37  ;;  %vm2727_vm4 = vcmp.ne.s32.totalorder %v2723_v59, %v9151_v38  ;;  %v12930_v12 = vmov 0  ;;  %v2251_v30 = vld [vmem:[#allocation2 + $0x1c] sm:$0xf]  ;;  %v7892_v24 = vld [vmem:[#allocation3 + $0x74] sm:$0xf0] }
  0xd3   : > { %v3459_v18 = vor.u32 %v3457_v43, %v10126_v61  ;;  %vm2720_vm10 = vcmp.ne.s32.totalorder %v2716_v2, %v9151_v38  ;;  %v10147_v51 = vld [vmem:[#allocation3 + $0x94] sm:$0xf]  ;;  %v2458_v31 = vsel %vm9238_vm11, %v10030_v9, %v2457_v15  ;;  %v2467_v47 = vsel %vm9238_vm11, %v2459_v58, %v9998_v33  ;;  %vm10158_vm8 = vmpackc.low %vm2727_vm4, %vm2726_vm5  ;;  %v2252_v58 = vld [vmem:[#allocation2 + $0x20] sm:$0xf] }
  0xd4   : > { %vm2719_vm3 = vcmp.ne.s32.totalorder %v2715_v16, %v9148_v37  ;;  %v12933_v34 = vmov 0  ;;  %v7920_v39 = vld [vmem:[#allocation3 + $0xb4] sm:$0xf0]  ;;  %v2729_v32 = vunpack.c.l.b16 %v2458_v31  ;;  %v2730_v43 = vunpack.c.h.b16 %v2458_v31  ;;  %v8725_v31 = vld [vmem:[#allocation3 + $0x54] sm:$0xf] }
  0xd5   : > { %vm10143_vm7 = vmpackc.low %vm2720_vm10, %vm2719_vm3  ;;  %v3460_v46 = vsel %vm9238_vm11, %v3452_v17, %v3459_v18  ;;  %v12934_v34 = vsel %vm10158_vm8, 4294967295, %v12933_v34  ;;  %v2736_v45 = vunpack.c.l.b16 %v2467_v47  ;;  %v2929_v42 = vsel %vm10158_vm8, %v2250_v25, 0 }
  0xd6   : > { %v12931_v12 = vsel %vm10143_vm7, 4294967295, %v12930_v12  ;;  %12935 = vst [vmem:[#allocation31_spill] sm:$0xff] %v12934_v34  ;;  %v2928_v50 = vsel %vm10143_vm7, %v2249_v54, 0  ;;  %v7923_v17 = vor.u32 %v10147_v51, %v7920_v39  ;;  %v2998_v59 = vshll.u32 %v2929_v42, 16  ;;  %v3354_v51 = vld [vmem:[#allocation2 + $0x2c] sm:$0xf] }
  0xd7   : > { %12932 = vst [vmem:[#allocation30_spill] sm:$0xff] %v12931_v12  ;;  %v2988_v16 = vshll.u32 %v2928_v50, 16  ;;  %v2992_v2 = vshrl.u32 %v2928_v50, 16  ;;  %v3002_v15 = vshrl.u32 %v2929_v42, 16  ;;  %vm2733_vm3 = vcmp.ne.s32.totalorder %v2729_v32, %v9148_v37  ;;  %v8913_v42 = vld [vmem:[%s12589_s3 + $0x1b0] sm:$0xff] }
  0xd8   : > { %3740 = vst [vmem:[#allocation3 + $0x9c] sm:$0xf] %v3460_v46  ;;  %vm2734_vm10 = vcmp.ne.s32.totalorder %v2730_v43, %v9151_v38  ;;  %v12936_v46 = vmov 0  ;;  %v2737_v25 = vunpack.c.h.b16 %v2467_v47  ;;  %vm10174_vm4 = vcmp.ne.s32.totalorder %v2736_v45, %v9148_v37  ;;  %v8921_v47 = vld [vmem:[%s12589_s3 + $0x1f0] sm:$0xff]  ;;  %7233 = vmatpush.bf16.msra.mxu2 %v8913_v42 }
  0xd9   : > { %v2990_v54 = vrot.slane %v2988_v16, 5  ;;  %v2994_v18 = vrot.slane %v2992_v2, 4  ;;  %vm10169_vm5 = vmpackc.low %vm2734_vm10, %vm2733_vm3  ;;  %v3000_v50 = vrot.slane %v2998_v59, 5  ;;  %v3004_v32 = vrot.slane %v3002_v15, 4  ;;  %v8929_v59 = vld [vmem:[%s12589_s3 + $0x230] sm:$0xff]  ;;  %7322 = vmatpush.bf16.msra.mxu3 %v8921_v47 }
  0xda   : > { %v12937_v46 = vsel %vm10169_vm5, 4294967295, %v12936_v46  ;;  %v2930_v39 = vsel %vm10169_vm5, %v2251_v30, 0  ;;  %v3463_v43 = vshrl.u32 %v10136_v62, 16  ;;  %vm2741_vm3 = vcmp.ne.s32.totalorder %v2737_v25, %v9151_v38  ;;  %v8905_v30 = vld [vmem:[%s12589_s3 + $0x170] sm:$0xff]  ;;  %v3353_v15 = vld [vmem:[#allocation2 + $0x28] sm:$0xf]  ;;  %7411 = vmatpush.bf16.msra.mxu0 %v8929_v59 }
  0xdb   : > { %12938 = vst [vmem:[#allocation32_spill] sm:$0xff] %v12937_v46  ;;  %v2991_v45 = vsel %vm9110_vm6, %v10120_v20, %v2990_v54  ;;  %v2995_v16 = vor.u32 %v2994_v18, %v2990_v54  ;;  %v3008_v2 = vshll.u32 %v2930_v39, 16  ;;  %vm10199_vm10 = vmpackc.low %vm2741_vm3, %vm10174_vm4  ;;  %v3005_v20 = vor.u32 %v3004_v32, %v3000_v50  ;;  %7144 = vmatpush.bf16.msra.mxu1 %v8905_v30  ;;  %v2201_v12 = vld [vmem:[#allocation2 + $0x54] sm:$0xf] }
  0xdc   : > { %3316 = vst [vmem:[#allocation3 + $0x50] sm:$0xf] %v2991_v45  ;;  %v12942_v6 = vsel %vm10199_vm10, 4294967295, %v12941_v6  ;;  %v3012_v54 = vshrl.u32 %v2930_v39, 16  ;;  %v10203_v18 = vrot.slane %v3463_v43, 7  ;;  %v3466_v25 = vshll.u32 %v10136_v62, 16 }
  0xdd   : > { %12943 = vst [vmem:[#allocation33_spill] sm:$0xff] %v12942_v6  ;;  %v2996_v0 = vrot.slane %v2995_v16, 4  ;;  %v7895_v48 = vor.u32 %v8725_v31, %v7892_v24  ;;  %v2931_v46 = vsel %vm10199_vm10, %v2252_v58, 0  ;;  %v3010_v45 = vrot.slane %v3008_v2, 5  ;;  %v2188_v39 = vld [vmem:[#allocation2 + $0x20] sm:$0xf] }
  0xde   : > { %v3006_v7 = vrot.slane %v3005_v20, 4  ;;  %v3014_v23 = vrot.slane %v3012_v54, 4  ;;  %v3018_v34 = vshll.u32 %v2931_v46, 16  ;;  %v3022_v32 = vshrl.u32 %v2931_v46, 16  ;;  %2220 = vst [vmem:[#allocation3 + $0xdc] sm:$0xf] %v2188_v39 }
  0xdf   : > { %v3001_v43 = vsel %vm9110_vm6, %v2996_v0, %v3000_v50  ;;  %v3468_v62 = vor.u32 %v3466_v25, %v10203_v18  ;;  %v603_v24 = vadd.s32 56, %v9072_v3  ;;  %v3386_v58 = vsel %vm10005_vm2, %v3353_v15, 0  ;;  %v2189_v0 = vld [vmem:[#allocation2 + $0x24] sm:$0xf]  ;;  %v3774_v54 = vld [vmem:[#allocation2 + $0x28] sm:$0xf] }
  0xe0   : > { %3317 = vst [vmem:[#allocation3 + $0x74] sm:$0xf] %v3001_v43  ;;  %v12944_v31 = vor.u32 %v10118_v26, %v10112_v35  ;;  %v3011_v46 = vsel %vm9110_vm6, %v3006_v7, %v3010_v45  ;;  %v3015_v42 = vor.u32 %v3014_v23, %v3010_v45  ;;  %v10219_v47 = vrot.slane %v3018_v34, 5  ;;  %v3775_v45 = vld [vmem:[#allocation2 + $0x2c] sm:$0xf] }
  0xe1   : > { %6805 = vmatmul.bf16.gmra.mxu1 %v7923_v17  ;;  %3318 = vst [vmem:[#allocation3 + $0x98] sm:$0xf] %v3011_v46  ;;  %v12945_v17 = vrot.slane %v10126_v61, 4  ;;  %v681_v16 = vand.u32 15, %v603_v24  ;;  %v3387_v2 = vsel %vm9190_vm1, %v3354_v51, 0  ;;  %6978 = vmatmul.bf16.gmra.mxu3 %v7895_v48  ;;  %v3472_v26 = vshrl.u32 %v3386_v58, 16 }
  0xe2   : > { %7067 = vmatmul.bf16.gmra.mxu0 %v12944_v31  ;;  %v3016_v35 = vrot.slane %v3015_v42, 4  ;;  %v3475_v30 = vshll.u32 %v3386_v58, 16  ;;  %2221 = vst [vmem:[#allocation3 + $0x100] sm:$0xf] %v2189_v0  ;;  %v3024_v23 = vrot.slane %v3022_v32, 4  ;;  %v3470_v7 = vrot.slane %v10203_v18, 4 }
  0xe3   : > { %v3469_v50 = vsel %vm9238_vm11, %v12945_v17, %v3468_v62  ;;  %vm1051_vm4 = vcmp.ne.s32.totalorder %v681_v16, 15  ;;  %v3481_v34 = vshrl.u32 %v3387_v2, 16  ;;  %v7890_v59 = vld [vmem:[#allocation3 + $0x50] sm:$0xf]  ;;  %v3474_v15 = vrot.slane %v3472_v26, 7 }
  0xe4   : > { %3741 = vst [vmem:[#allocation3 + $0xc0] sm:$0xf] %v3469_v50  ;;  %v3021_v61 = vsel %vm9110_vm6, %v3016_v35, %v10219_v47  ;;  %vm2350_vm3 = vmpackc.low %vm1051_vm4, %vm1051_vm4  ;;  %v3484_v20 = vshll.u32 %v3387_v2, 16  ;;  %v7934_v51 = vld [vmem:[#allocation3 + $0xa0] sm:$0xf]  ;;  %v3025_v58 = vor.u32 %v3024_v23, %v10219_v47  ;;  %v605_v46 = vadd.s32 72, %v9072_v3 }
  0xe5   : > { %3319 = vst [vmem:[#allocation3 + $0xbc] sm:$0xf] %v3021_v61  ;;  %v2382_v48 = vsel %vm2350_vm3, 65537, %v12866_v49  ;;  %v10232_v25 = vrot.slane %v3481_v34, 7  ;;  %v8739_v32 = vld [vmem:[#allocation3 + $0xc0] sm:$0xf0]  ;;  %v3477_v43 = vor.u32 %v3475_v30, %v3474_v15  ;;  %vm12948_vm1 = vnez %v12804_v27 }
  0xe6   : > { %v2470_v39 = vshrl.u32 %v2382_v48, 16  ;;  %v2473_v18 = vshll.u32 %v2382_v48, 16  ;;  %v3479_v62 = vrot.slane %v3474_v15, 4  ;;  %3806 = vst [vmem:[#allocation3 + $0xe8] sm:$0xf] %v3774_v54  ;;  %v607_v16 = vadd.s32 88, %v9072_v3 }
  0xe7   : > { %v8729_v24 = vld [vmem:[#allocation3 + $0x70] sm:$0xf0]  ;;  %v3486_v31 = vor.u32 %v3484_v20, %v10232_v25  ;;  %v8742_v0 = vld [vmem:[#allocation3 + $0xdc] sm:$0xf]  ;;  %v3478_v50 = vsel %vm9238_vm11, %v3470_v7, %v3477_v43  ;;  %3807 = vst [vmem:[#allocation3 + $0x10c] sm:$0xf] %v3775_v45 }
  0xe8   : > { %v7891_v42 = vor.u32 %v8729_v24, %v7890_v59  ;;  %v2472_v17 = vrot.slane %v2470_v39, 7  ;;  %v8734_v2 = vld [vmem:[#allocation3 + $0x9c] sm:$0xf]  ;;  %3742 = vst [vmem:[#allocation3 + $0xe4] sm:$0xf] %v3478_v50  ;;  %v695_v47 = vand.u32 15, %v605_v46  ;;  %v7935_v59 = vor.u32 %v8739_v32, %v7934_v51 }
  0xe9   : > { %v3487_v26 = vsel %vm9238_vm11, %v3479_v62, %v3486_v31  ;;  %v7956_v30 = vld [vmem:[#allocation3 + $0xfc] sm:$0xf0]  ;;  %v2190_v15 = vld [vmem:[#allocation2 + $0x28] sm:$0xf]  ;;  %v2191_v20 = vld [vmem:[#allocation2 + $0x2c] sm:$0xf] }
  0xea   : > { %6889 = vmatmul.bf16.gmra.mxu2 %v7891_v42  ;;  %v2475_v23 = vor.u32 %v2473_v18, %v2472_v17  ;;  %v2477_v34 = vrot.slane %v2472_v17, 4  ;;  %3743 = vst [vmem:[#allocation3 + $0x108] sm:$0xf] %v3487_v26  ;;  %v7959_v61 = vor.u32 %v8742_v0, %v7956_v30  ;;  %vm10242_vm4 = vcmp.ne.s32.totalorder %v695_v47, 15  ;;  %v10246_v54 = vld [vmem:[#allocation3 + $0x98] sm:$0xf] }
  0xeb   : > { %v7928_v35 = vld [vmem:[#allocation3 + $0xbc] sm:$0xf0]  ;;  %v2253_v48 = vld [vmem:[#allocation2 + $0x24] sm:$0xf]  ;;  %v3026_v18 = vrot.slane %v3025_v58, 4  ;;  %vm2352_vm3 = vmpackc.low %vm10242_vm4, %vm10242_vm4  ;;  %v709_v51 = vand.u32 15, %v607_v16 }
  0xec   : > { %v2476_v45 = vsel %vm9238_vm11, %v10030_v9, %v2475_v23  ;;  %v2485_v39 = vsel %vm9238_vm11, %v2477_v34, %v9998_v33  ;;  %2222 = vst [vmem:[#allocation3 + $0x124] sm:$0xf] %v2190_v15  ;;  %v10257_v32 = vld [vmem:[#allocation3 + $0xb8] sm:$0xf0]  ;;  %v3355_v31 = vld [vmem:[#allocation2 + $0x30] sm:$0xf]  ;;  %v7931_v46 = vor.u32 %v8734_v2, %v7928_v35  ;;  %v10288_v15 = vpop.f32.mrf.mxu1 }
  0xed   : > { %v2743_v43 = vunpack.c.l.b16 %v2476_v45  ;;  %v2744_v62 = vunpack.c.h.b16 %v2476_v45  ;;  %v2750_v24 = vunpack.c.l.b16 %v2485_v39  ;;  %2223 = vst [vmem:[#allocation3 + $0x148] sm:$0xf] %v2191_v20  ;;  %v2254_v42 = vld [vmem:[#allocation2 + $0x28] sm:$0xf]  ;;  %v2751_v0 = vunpack.c.h.b16 %v2485_v39  ;;  %v10259_v17 = vld [vmem:[#allocation3 + $0xe8] sm:$0xf] }
  0xee   : > { %v2384_v58 = vsel %vm2352_vm3, 65537, %v12866_v49  ;;  %v3388_v50 = vsel %vm12948_vm1, %v3355_v31, 0  ;;  %v10267_v16 = vld [vmem:[#allocation3 + $0x108] sm:$0xf0]  ;;  %v3356_v2 = vld [vmem:[#allocation2 + $0x34] sm:$0xf]  ;;  %v7927_v35 = vor.u32 %v10257_v32, %v10246_v54 }
  0xef   : > { %vm2747_vm4 = vcmp.ne.s32.totalorder %v2743_v43, %v9148_v37  ;;  %vm2748_vm2 = vcmp.ne.s32.totalorder %v2744_v62, %v9151_v38  ;;  %vm2754_vm10 = vcmp.ne.s32.totalorder %v2750_v24, %v9148_v37  ;;  %v2488_v26 = vshrl.u32 %v2384_v58, 16  ;;  %v3776_v32 = vld [vmem:[#allocation2 + $0x30] sm:$0xf]  ;;  %2233 = vst [vmem:[#allocation3 + $0x2b0] sm:$0xf] %v2201_v12 }
  0xf0   : > { %vm10271_vm5 = vmpackc.low %vm2748_vm2, %vm2747_vm4  ;;  %v12949_v47 = vmov 0  ;;  %vm2755_vm3 = vcmp.ne.s32.totalorder %v2751_v0, %v9151_v38  ;;  %v2491_v30 = vshll.u32 %v2384_v58, 16  ;;  %vm10276_vm1 = vcmp.ne.s32.totalorder %v709_v51, 15  ;;  %3808 = vst [vmem:[#allocation3 + $0x130] sm:$0xf] %v3776_v32 }
  0xf1   : > { %6810 = vmatmul.bf16.gmra.mxu1 %v7959_v61  ;;  %v12950_v47 = vsel %vm10271_vm5, 4294967295, %v12949_v47  ;;  %vm10280_vm15 = vmpackc.low %vm2755_vm3, %vm2754_vm10  ;;  %v12954_v34 = vmov 0  ;;  %v2932_v61 = vsel %vm10271_vm5, %v2253_v48, 0  ;;  %v2490_v20 = vrot.slane %v2488_v26, 7  ;;  %6983 = vmatmul.bf16.gmra.mxu3 %v7931_v46  ;;  %v7964_v32 = vld [vmem:[#allocation3 + $0x104] sm:$0xf0] }
  0xf2   : > { %7072 = vmatmul.bf16.gmra.mxu0 %v7935_v59  ;;  %12951 = vst [vmem:[#allocation34_spill] sm:$0xff] %v12950_v47  ;;  %v12955_v34 = vsel %vm10280_vm15, 4294967295, %v12954_v34  ;;  %v3490_v7 = vshrl.u32 %v3388_v50, 16  ;;  %v2933_v54 = vsel %vm10280_vm15, %v2254_v42, 0  ;;  %v3028_v45 = vshll.u32 %v2932_v61, 16 }
  0xf3   : > { %12956 = vst [vmem:[#allocation35_spill] sm:$0xff] %v12955_v34  ;;  %v3032_v39 = vshrl.u32 %v2932_v61, 16  ;;  %vm12957_vm2 = vnez %v12801_v14  ;;  %v3038_v43 = vshll.u32 %v2933_v54, 16  ;;  %v3042_v48 = vshrl.u32 %v2933_v54, 16  ;;  %v10296_v62 = vld [vmem:[#allocation3 + $0x124] sm:$0xf] }
  0xf4   : > { %v10294_v51 = vsel %vm12957_vm2, %v3356_v2, 0  ;;  %v2493_v24 = vor.u32 %v2491_v30, %v2490_v20  ;;  %v2495_v31 = vrot.slane %v2490_v20, 4  ;;  %v3030_v0 = vrot.slane %v3028_v45, 5  ;;  %v10298_v26 = vld [vmem:[#allocation3 + $0x144] sm:$0xf0] }
  0xf5   : > { %v3034_v58 = vrot.slane %v3032_v39, 4  ;;  %v10300_v46 = vrot.slane %v3490_v7, 7  ;;  %v3493_v42 = vshll.u32 %v3388_v50, 16  ;;  %v3040_v59 = vrot.slane %v3038_v43, 5  ;;  %v3777_v30 = vld [vmem:[#allocation2 + $0x34] sm:$0xf] }
  0xf6   : > { %v2494_v2 = vsel %vm9238_vm11, %v10030_v9, %v2493_v24  ;;  %v2503_v61 = vsel %vm9238_vm11, %v2495_v31, %v9998_v33  ;;  %v3488_v54 = vrot.slane %v10232_v25, 4  ;;  %v3031_v20 = vsel %vm9110_vm6, %v3026_v18, %v3030_v0  ;;  %3809 = vst [vmem:[#allocation3 + $0x154] sm:$0xf] %v3777_v30  ;;  %v2255_v50 = vld [vmem:[#allocation2 + $0x2c] sm:$0xf] }
  0xf7   : > { %v3035_v45 = vor.u32 %v3034_v58, %v3030_v0  ;;  %v2757_v7 = vunpack.c.l.b16 %v2494_v2  ;;  %v2758_v39 = vunpack.c.h.b16 %v2494_v2  ;;  %3320 = vst [vmem:[#allocation3 + $0xe0] sm:$0xf] %v3031_v20  ;;  %v2764_v43 = vunpack.c.l.b16 %v2503_v61  ;;  %v2256_v31 = vld [vmem:[#allocation2 + $0x30] sm:$0xf]  ;;  %v8743_v18 = vld [vmem:[#allocation3 + $0xe4] sm:$0xf] }
  0xf8   : > { %v2765_v14 = vunpack.c.h.b16 %v2503_v61  ;;  %v3044_v24 = vrot.slane %v3042_v48, 4  ;;  %v3495_v27 = vor.u32 %v3493_v42, %v10300_v46  ;;  %v7995_v25 = vor.u32 %v10296_v62, %v10298_v26 }
  0xf9   : > { %v3036_v8 = vrot.slane %v3035_v45, 4  ;;  %vm2761_vm10 = vcmp.ne.s32.totalorder %v2757_v7, %v9148_v37  ;;  %vm2762_vm4 = vcmp.ne.s32.totalorder %v2758_v39, %v9151_v38  ;;  %v12958_v0 = vmov 0  ;;  %v8920_v7 = vld [vmem:[%s12589_s3 + $0x1e8] sm:$0xff] }
  0xfa   : > { %vm10316_vm3 = vmpackc.low %vm2762_vm4, %vm2761_vm10  ;;  %vm2768_vm2 = vcmp.ne.s32.totalorder %v2764_v43, %v9148_v37  ;;  %vm2769_vm15 = vcmp.ne.s32.totalorder %v2765_v14, %v9151_v38  ;;  %v3045_v48 = vor.u32 %v3044_v24, %v3040_v59  ;;  %v3496_v58 = vsel %vm9238_vm11, %v3488_v54, %v3495_v27  ;;  %6894 = vmatmul.bf16.gmra.mxu2 %v7927_v35  ;;  %v8912_v14 = vld [vmem:[%s12589_s3 + $0x1a8] sm:$0xff]  ;;  %v10339_v54 = vpop.f32.mrf.mxu1 }
  0xfb   : > { %v12959_v0 = vsel %vm10316_vm3, 4294967295, %v12958_v0  ;;  %v3041_v62 = vsel %vm9110_vm6, %v3036_v8, %v3040_v59  ;;  %vm10326_vm5 = vmpackc.low %vm2769_vm15, %vm2768_vm2  ;;  %v12961_v26 = vmov 0  ;;  %v2934_v42 = vsel %vm10316_vm3, %v2255_v50, 0  ;;  %3744 = vst [vmem:[#allocation3 + $0x12c] sm:$0xf] %v3496_v58  ;;  %7234 = vmatpush.bf16.msra.mxu2 %v8912_v14  ;;  %v8904_v43 = vld [vmem:[%s12589_s3 + $0x168] sm:$0xff]  ;;  %7323 = vmatpush.bf16.msra.mxu3 %v8920_v7 }
  0xfc   : > { %12960 = vst [vmem:[#allocation36_spill] sm:$0xff] %v12959_v0  ;;  %v12962_v26 = vsel %vm10326_vm5, 4294967295, %v12961_v26  ;;  %v3499_v2 = vshrl.u32 %v10294_v51, 16  ;;  %v3502_v61 = vshll.u32 %v10294_v51, 16  ;;  %v2935_v8 = vsel %vm10326_vm5, %v2256_v31, 0  ;;  %vm2354_vm15 = vmpackc.low %vm10276_vm1, %vm10276_vm1  ;;  %v8928_v24 = vld [vmem:[%s12589_s3 + $0x228] sm:$0xff]  ;;  %7145 = vmatpush.bf16.msra.mxu1 %v8904_v43 }
  0xfd   : > { %12963 = vst [vmem:[#allocation37_spill] sm:$0xff] %v12962_v26  ;;  %v3046_v27 = vrot.slane %v3045_v48, 4  ;;  %v3048_v35 = vshll.u32 %v2934_v42, 16  ;;  %v3052_v59 = vshrl.u32 %v2934_v42, 16  ;;  %v3058_v30 = vshll.u32 %v2935_v8, 16  ;;  %7412 = vmatpush.bf16.msra.mxu0 %v8928_v24 }
  0xfe   : > { %3321 = vst [vmem:[#allocation3 + $0x104] sm:$0xf] %v3041_v62  ;;  %v3062_v51 = vshrl.u32 %v2935_v8, 16  ;;  %v3497_v20 = vrot.slane %v10300_v46, 4  ;;  %v10345_v45 = vrot.slane %v3499_v2, 7  ;;  %v7967_v48 = vor.u32 %v8743_v18, %v7964_v32 }
  0xff   : > { %v3050_v39 = vrot.slane %v3048_v35, 5  ;;  %v3054_v50 = vrot.slane %v3052_v59, 4  ;;  %v3357_v31 = vld [vmem:[#allocation2 + $0x38] sm:$0xf]  ;;  %v10356_v46 = vrot.slane %v3058_v30, 5  ;;  %v2386_v42 = vsel %vm2354_vm15, 65537, %v12866_v49  ;;  %v10376_v30 = vpop.f32.mrf.mxu0 }
 0x100   : > { %v3504_v58 = vor.u32 %v3502_v61, %v10345_v45  ;;  %v2192_v62 = vld [vmem:[#allocation2 + $0x30] sm:$0xf]  ;;  %v3358_v2 = vld [vmem:[#allocation2 + $0x3c] sm:$0xf]  ;;  %v2193_v18 = vld [vmem:[#allocation2 + $0x34] sm:$0xf]  ;;  %v12964_v59 = vor.u32 %v10267_v16, %v10259_v17  ;;  %vm12965_vm1 = vnez %v12843_v28  ;;  %vm12967_vm2 = vnez %v12846_v11 }
 0x101   : > { %6815 = vmatmul.bf16.gmra.mxu1 %v7995_v25  ;;  %v3051_v14 = vsel %vm9110_vm6, %v3046_v27, %v3050_v39  ;;  %v3055_v8 = vor.u32 %v3054_v50, %v3050_v39  ;;  %2224 = vst [vmem:[#allocation3 + $0x16c] sm:$0xf] %v2192_v62  ;;  %v2506_v32 = vshrl.u32 %v2386_v42, 16  ;;  %v2509_v61 = vshll.u32 %v2386_v42, 16  ;;  %v10367_v35 = vld [vmem:[#allocation3 + $0xe0] sm:$0xf]  ;;  %v10378_v39 = vpop.f32.mrf.mxu2  ;;  %6988 = vmatmul.bf16.gmra.mxu3 %v7967_v48 }
 0x102   : > { %7077 = vmatmul.bf16.gmra.mxu0 %v12964_v59  ;;  %3322 = vst [vmem:[#allocation3 + $0x128] sm:$0xf] %v3051_v14  ;;  %v3505_v23 = vsel %vm9238_vm11, %v3497_v20, %v3504_v58  ;;  %v3064_v25 = vrot.slane %v3062_v51, 4  ;;  %v3390_v27 = vsel %vm12965_vm1, %v3357_v31, 0  ;;  %v3391_v17 = vsel %vm12967_vm2, %v3358_v2, 0  ;;  %v10388_v2 = vpop.f32.mrf.mxu1 }
 0x103   : > { %v3056_v7 = vrot.slane %v3055_v8, 4  ;;  %3745 = vst [vmem:[#allocation3 + $0x150] sm:$0xf] %v3505_v23  ;;  %v2508_v50 = vrot.slane %v2506_v32, 7  ;;  %v3508_v43 = vshrl.u32 %v3390_v27, 16  ;;  %v3506_v58 = vrot.slane %v10345_v45, 4  ;;  %v10390_v32 = vpop.f32.mrf.mxu3 }
 0x104   : > { %12966 = vst [vmem:[#allocation38_spill] sm:$0xff] %v10378_v39  ;;  %v3065_v20 = vor.u32 %v3064_v25, %v10356_v46  ;;  %v3778_v62 = vld [vmem:[#allocation2 + $0x38] sm:$0xf]  ;;  %v3779_v42 = vld [vmem:[#allocation2 + $0x3c] sm:$0xf]  ;;  %v3511_v8 = vshll.u32 %v3390_v27, 16 }
 0x105   : > { %v8747_v16 = vld [vmem:[#allocation3 + $0x100] sm:$0xf0]  ;;  %2225 = vst [vmem:[#allocation3 + $0x190] sm:$0xf] %v2193_v18  ;;  %v3061_v51 = vsel %vm9110_vm6, %v3056_v7, %v10356_v46  ;;  %v2511_v24 = vor.u32 %v2509_v61, %v2508_v50  ;;  %v2513_v31 = vrot.slane %v2508_v50, 4  ;;  %v3510_v48 = vrot.slane %v3508_v43, 7 }
 0x106   : > { %v7963_v14 = vor.u32 %v8747_v16, %v10367_v35  ;;  %3323 = vst [vmem:[#allocation3 + $0x14c] sm:$0xf] %v3061_v51  ;;  %v3517_v18 = vshrl.u32 %v3391_v17, 16  ;;  %v3520_v61 = vshll.u32 %v3391_v17, 16  ;;  %v609_v35 = vadd.s32 104, %v9072_v3 }
 0x107   : > { %12968 = vst [vmem:[#allocation39_spill] sm:$0xff] %v10390_v32  ;;  %v2512_v46 = vsel %vm9238_vm11, %v10030_v9, %v2511_v24  ;;  %v2521_v45 = vsel %vm9238_vm11, %v2513_v31, %v9998_v33  ;;  %v4286_v59 = vld [vmem:[#allocation2 + $0x14] sm:$0x8]  ;;  %v3513_v43 = vor.u32 %v3511_v8, %v3510_v48  ;;  %v3515_v51 = vrot.slane %v3510_v48, 4  ;;  %v8006_v11 = vld [vmem:[#allocation3 + $0x130] sm:$0xf] }
 0x108   : > { %3810 = vst [vmem:[#allocation3 + $0x178] sm:$0xf] %v3778_v62  ;;  %v2257_v23 = vld [vmem:[#allocation2 + $0x34] sm:$0xf]  ;;  %v2771_v25 = vunpack.c.l.b16 %v2512_v46  ;;  %v2772_v7 = vunpack.c.h.b16 %v2512_v46  ;;  %v2778_v27 = vunpack.c.l.b16 %v2521_v45  ;;  %v2779_v50 = vunpack.c.h.b16 %v2521_v45  ;;  %v8760_v16 = vld [vmem:[#allocation3 + $0x16c] sm:$0xf] }
 0x109   : > { %3811 = vst [vmem:[#allocation3 + $0x19c] sm:$0xf] %v3779_v42  ;;  %v10399_v32 = vrot.slane %v3517_v18, 7  ;;  %v723_v24 = vand.u32 15, %v609_v35  ;;  %v8757_v28 = vld [vmem:[#allocation3 + $0x150] sm:$0xf0]  ;;  %v3514_v18 = vsel %vm9238_vm11, %v3506_v58, %v3513_v43  ;;  %v10424_v58 = vpop.f32.mrf.mxu0 }
 0x10a   : > { %v2258_v31 = vld [vmem:[#allocation2 + $0x38] sm:$0xf]  ;;  %vm2775_vm10 = vcmp.ne.s32.totalorder %v2771_v25, %v9148_v37  ;;  %vm2776_vm4 = vcmp.ne.s32.totalorder %v2772_v7, %v9151_v38  ;;  %vm2782_vm15 = vcmp.ne.s32.totalorder %v2778_v27, %v9148_v37  ;;  %vm2783_vm2 = vcmp.ne.s32.totalorder %v2779_v50, %v9151_v38  ;;  %v8752_v62 = vld [vmem:[#allocation3 + $0x12c] sm:$0xf]  ;;  %v8000_v42 = vld [vmem:[#allocation3 + $0x14c] sm:$0xf0]  ;;  %6899 = vmatmul.bf16.gmra.mxu2 %v7963_v14 }
 0x10b   : > { %v4319_v17 = vsel %vm9417_vm12, %v4286_v59, 0  ;;  %vm10407_vm1 = vmpackc.low %vm2776_vm4, %vm2775_vm10  ;;  %v12969_v8 = vmov 0  ;;  %v3522_v46 = vor.u32 %v3520_v61, %v10399_v32  ;;  %vm10414_vm5 = vcmp.ne.s32.totalorder %v723_v24, 15  ;;  %3746 = vst [vmem:[#allocation3 + $0x174] sm:$0xf] %v3514_v18  ;;  %v10426_v61 = vpop.f32.mrf.mxu2  ;;  %v10446_v45 = vpop.f32.mrf.mxu3 }
 0x10c   : > { %v8028_v48 = vld [vmem:[#allocation3 + $0x18c] sm:$0xf0]  ;;  %v12970_v8 = vsel %vm10407_vm1, 4294967295, %v12969_v8  ;;  %vm10418_vm3 = vmpackc.low %vm2783_vm2, %vm2782_vm15  ;;  %v2936_v59 = vsel %vm10407_vm1, %v2257_v23, 0  ;;  %v3066_v25 = vrot.slane %v3065_v20, 4  ;;  %12977 = vst [vmem:[#allocation42_spill] sm:$0xff] %v10426_v61  ;;  %v8007_v20 = vor.u32 %v8757_v28, %v8006_v11 }
 0x10d   : > { %12971 = vst [vmem:[#allocation40_spill] sm:$0xff] %v12970_v8  ;;  %v8031_v35 = vor.u32 %v8760_v16, %v8028_v48  ;;  %v12975_v60 = vsel %vm10418_vm3, 4294967295, %v12974_v60  ;;  %v3359_v7 = vld [vmem:[#allocation2 + $0x40] sm:$0xf]  ;;  %v4288_v27 = vld [vmem:[#allocation2 + $0x1c] sm:$0xf]  ;;  %v3523_v43 = vsel %vm9238_vm11, %v3515_v51, %v3522_v46  ;;  %vm2356_vm12 = vmpackc.low %vm10414_vm5, %vm10414_vm5  ;;  %vm12978_vm2 = vnez %v12872_v40  ;;  %v10441_v46 = vpop.f32.mrf.mxu1 }
 0x10e   : > { %12976 = vst [vmem:[#allocation41_spill] sm:$0xff] %v12975_v60  ;;  %v2937_v50 = vsel %vm10418_vm3, %v2258_v31, 0  ;;  %v3068_v14 = vshll.u32 %v2936_v59, 16  ;;  %v3072_v16 = vshrl.u32 %v2936_v59, 16  ;;  %v2194_v24 = vld [vmem:[#allocation2 + $0x38] sm:$0xf]  ;;  %v8003_v60 = vor.u32 %v8752_v62, %v8000_v42 }
 0x10f   : > { %v3078_v23 = vshll.u32 %v2937_v50, 16  ;;  %v3082_v48 = vshrl.u32 %v2937_v50, 16  ;;  %3747 = vst [vmem:[#allocation3 + $0x198] sm:$0xf] %v3523_v43  ;;  %v3360_v18 = vld [vmem:[#allocation2 + $0x44] sm:$0xf]  ;;  %vm12983_vm5 = vnez %v12878_v4 }
 0x110   : > { %v3070_v8 = vrot.slane %v3068_v14, 5  ;;  %v3074_v26 = vrot.slane %v3072_v16, 4  ;;  %v2195_v0 = vld [vmem:[#allocation2 + $0x3c] sm:$0xf]  ;;  %v3392_v31 = vsel %vm12978_vm2, %v3359_v7, 0  ;;  %v10437_v59 = vshrl.u32 %v4319_v17, 16 }
 0x111   : > { %v10439_v51 = vrot.slane %v3078_v23, 5  ;;  %12980 = vst [vmem:[#allocation44_spill] sm:$0xff] %v10441_v46  ;;  %v2388_v28 = vsel %vm2356_vm12, 65537, %v12866_v49  ;;  %v10444_v11 = vld [vmem:[#allocation3 + $0x128] sm:$0xf]  ;;  %6820 = vmatmul.bf16.gmra.mxu1 %v8031_v35  ;;  %v10452_v62 = vsel %vm9437_vm14, %v4288_v27, 0  ;;  %6993 = vmatmul.bf16.gmra.mxu3 %v8003_v60  ;;  %vm12988_vm2 = vnez %v12841_v63 }
 0x112   : > { %12979 = vst [vmem:[#allocation43_spill] sm:$0xff] %v10437_v59  ;;  %v3071_v50 = vsel %vm9110_vm6, %v3066_v25, %v3070_v8  ;;  %v3075_v14 = vor.u32 %v3074_v26, %v3070_v8  ;;  %v2524_v17 = vshrl.u32 %v2388_v28, 16  ;;  %v2527_v7 = vshll.u32 %v2388_v28, 16  ;;  %7082 = vmatmul.bf16.gmra.mxu0 %v8007_v20  ;;  %v8756_v35 = vld [vmem:[#allocation3 + $0x148] sm:$0xf0] }
 0x113   : > { %2226 = vst [vmem:[#allocation3 + $0x1b4] sm:$0xf] %v2194_v24  ;;  %v10454_v42 = vrot.slane %v3082_v48, 4  ;;  %v3393_v16 = vsel %vm12983_vm5, %v3360_v18, 0  ;;  %v3526_v43 = vshrl.u32 %v3392_v31, 16  ;;  %v3529_v25 = vshll.u32 %v3392_v31, 16 }
 0x114   : > { %12981 = vst [vmem:[#allocation45_spill] sm:$0xff] %v10446_v45  ;;  %v3076_v24 = vrot.slane %v3075_v14, 4  ;;  %v2526_v23 = vrot.slane %v2524_v17, 7  ;;  %v3535_v26 = vshrl.u32 %v3393_v16, 16  ;;  %v3538_v13 = vshll.u32 %v3393_v16, 16  ;;  %v10466_v16 = vpop.f32.mrf.mxu0  ;;  %v10468_v45 = vpop.f32.mrf.mxu2 }
 0x115   : > { %2227 = vst [vmem:[#allocation3 + $0x1d8] sm:$0xf] %v2195_v0  ;;  %v3524_v0 = vrot.slane %v10399_v32, 4  ;;  %v3528_v8 = vrot.slane %v3526_v43, 7  ;;  %v3780_v27 = vld [vmem:[#allocation2 + $0x40] sm:$0xf]  ;;  %v7999_v31 = vor.u32 %v8756_v35, %v10444_v11  ;;  %v3085_v11 = vor.u32 %v10454_v42, %v10439_v51 }
 0x116   : > { %12982 = vst [vmem:[#allocation46_spill] sm:$0xff] %v10452_v62  ;;  %v611_v20 = vadd.s32 120, %v9072_v3  ;;  %v3081_v48 = vsel %vm9110_vm6, %v3076_v24, %v10439_v51  ;;  %v2529_v28 = vor.u32 %v2527_v7, %v2526_v23  ;;  %v2531_v18 = vrot.slane %v2526_v23, 4  ;;  %v3781_v14 = vld [vmem:[#allocation2 + $0x44] sm:$0xf] }
 0x117   : > { %3324 = vst [vmem:[#allocation3 + $0x170] sm:$0xf] %v3071_v50  ;;  %v10463_v50 = vrot.slane %v3535_v26, 7  ;;  %v3531_v60 = vor.u32 %v3529_v25, %v3528_v8  ;;  %v3533_v17 = vrot.slane %v3528_v8, 4  ;;  %v4287_v43 = vld [vmem:[#allocation2 + $0x18] sm:$0xf] }
 0x118   : > { %3325 = vst [vmem:[#allocation3 + $0x194] sm:$0xf] %v3081_v48  ;;  %v737_v32 = vand.u32 15, %v611_v20  ;;  %v2530_v24 = vsel %vm9238_vm11, %v10030_v9, %v2529_v28  ;;  %v2539_v7 = vsel %vm9238_vm11, %v2531_v18, %v9998_v33  ;;  %v2259_v23 = vld [vmem:[#allocation2 + $0x3c] sm:$0xf] }
 0x119   : > { %12984 = vst [vmem:[#allocation47_spill] sm:$0xff] %v10468_v45  ;;  %v3540_v35 = vor.u32 %v3538_v13, %v10463_v50  ;;  %v2260_v25 = vld [vmem:[#allocation2 + $0x40] sm:$0xf]  ;;  %v2785_v26 = vunpack.c.l.b16 %v2530_v24  ;;  %v2786_v8 = vunpack.c.h.b16 %v2530_v24  ;;  %v2792_v20 = vunpack.c.l.b16 %v2539_v7  ;;  %v10480_v28 = vld [vmem:[#allocation3 + $0x178] sm:$0xf]  ;;  %v10496_v24 = vpop.f32.mrf.mxu1 }
 0x11a   : > { %3812 = vst [vmem:[#allocation3 + $0x1c0] sm:$0xf] %v3780_v27  ;;  %v2793_v48 = vunpack.c.h.b16 %v2539_v7  ;;  %v10482_v40 = vld [vmem:[#allocation3 + $0x198] sm:$0xf0]  ;;  %v8769_v18 = vld [vmem:[#allocation3 + $0x1b4] sm:$0xf]  ;;  %v3532_v51 = vsel %vm9238_vm11, %v3524_v0, %v3531_v60  ;;  %6904 = vmatmul.bf16.gmra.mxu2 %v7999_v31 }
 0x11b   : > { %3813 = vst [vmem:[#allocation3 + $0x1e4] sm:$0xf] %v3781_v14  ;;  %v3541_v42 = vsel %vm9238_vm11, %v3533_v17, %v3540_v35  ;;  %vm10488_vm14 = vcmp.ne.s32.totalorder %v737_v32, 15  ;;  %v10492_v27 = vld [vmem:[#allocation3 + $0x174] sm:$0xf]  ;;  %vm2789_vm10 = vcmp.ne.s32.totalorder %v2785_v26, %v9148_v37  ;;  %vm2790_vm4 = vcmp.ne.s32.totalorder %v2786_v8, %v9151_v38  ;;  %v10511_v32 = vpop.f32.mrf.mxu3 }
 0x11c   : > { %v10494_v14 = vld [vmem:[#allocation3 + $0x194] sm:$0xf0]  ;;  %12987 = vst [vmem:[#allocation48_spill] sm:$0xff] %v10496_v24  ;;  %vm2796_vm15 = vcmp.ne.s32.totalorder %v2792_v20, %v9148_v37  ;;  %vm2797_vm12 = vcmp.ne.s32.totalorder %v2793_v48, %v9151_v38  ;;  %vm2358_vm5 = vmpackc.low %vm10488_vm14, %vm10488_vm14  ;;  %v3361_v0 = vld [vmem:[#allocation2 + $0x48] sm:$0xf]  ;;  %v10507_v60 = vsel %vm12988_vm2, %v4287_v43, 0  ;;  %vm12997_vm2 = vnez %v12903_v44 }
 0x11d   : > { %v8064_v7 = vld [vmem:[#allocation3 + $0x1d4] sm:$0xf0]  ;;  %3748 = vst [vmem:[#allocation3 + $0x1bc] sm:$0xf] %v3532_v51  ;;  %vm10513_vm3 = vmpackc.low %vm2790_vm4, %vm2789_vm10  ;;  %v12991_v35 = vmov 0  ;;  %v2390_v26 = vsel %vm2358_vm5, 65537, %v12866_v49  ;;  %vm12998_vm5 = vnez %v12811_v53 }
 0x11e   : > { %12989 = vst [vmem:[#allocation49_spill] sm:$0xff] %v10507_v60  ;;  %v10509_v17 = vld [vmem:[#allocation3 + $0x170] sm:$0xf]  ;;  %v12992_v35 = vsel %vm10513_vm3, 4294967295, %v12991_v35  ;;  %vm10518_vm1 = vmpackc.low %vm2797_vm12, %vm2796_vm15  ;;  %v12994_v20 = vmov 0  ;;  %v2938_v63 = vsel %vm10513_vm3, %v2259_v23, 0  ;;  %v8067_v31 = vor.u32 %v8769_v18, %v8064_v7 }
 0x11f   : > { %12990 = vst [vmem:[#allocation50_spill] sm:$0xff] %v10511_v32  ;;  %v3362_v8 = vld [vmem:[#allocation2 + $0x4c] sm:$0xf]  ;;  %v12995_v20 = vsel %vm10518_vm1, 4294967295, %v12994_v20  ;;  %v3086_v43 = vrot.slane %v3085_v11, 4  ;;  %v8911_v48 = vld [vmem:[%s12589_s3 + $0x1a0] sm:$0xff]  ;;  %v8043_v23 = vor.u32 %v10482_v40, %v10480_v28 }
 0x120   : > { %12993 = vst [vmem:[#allocation51_spill] sm:$0xff] %v12992_v35  ;;  %v8919_v51 = vld [vmem:[%s12589_s3 + $0x1e0] sm:$0xff]  ;;  %v2545_v13 = vshll.u32 %v2390_v26, 16  ;;  %v10530_v4 = vld [vmem:[#allocation3 + $0x190] sm:$0xf0]  ;;  %v2939_v32 = vsel %vm10518_vm1, %v2260_v25, 0  ;;  %7235 = vmatpush.bf16.msra.mxu2 %v8911_v48  ;;  %v8039_v25 = vor.u32 %v10492_v27, %v10494_v14 }
 0x121   : > { %3749 = vst [vmem:[#allocation3 + $0x1e0] sm:$0xf] %v3541_v42  ;;  %v2542_v42 = vshrl.u32 %v2390_v26, 16  ;;  %v3088_v45 = vshll.u32 %v2938_v63, 16  ;;  %v3092_v35 = vshrl.u32 %v2938_v63, 16  ;;  %v8903_v11 = vld [vmem:[%s12589_s3 + $0x160] sm:$0xff]  ;;  %7324 = vmatpush.bf16.msra.mxu3 %v8919_v51  ;;  %6825 = vmatmul.bf16.gmra.mxu1 %v8067_v31 }
 0x122   : > { %12996 = vst [vmem:[#allocation52_spill] sm:$0xff] %v12995_v20  ;;  %v3098_v61 = vshll.u32 %v2939_v32, 16  ;;  %v3102_v21 = vshrl.u32 %v2939_v32, 16  ;;  %v8927_v18 = vld [vmem:[%s12589_s3 + $0x220] sm:$0xff]  ;;  %7146 = vmatpush.bf16.msra.mxu1 %v8903_v11  ;;  %v3394_v34 = vsel %vm12997_vm2, %v3361_v0, 0  ;;  %v3395_v51 = vsel %vm12998_vm5, %v3362_v8, 0  ;;  %7087 = vmatmul.bf16.gmra.mxu0 %v8043_v23 }
 0x123   : > { %v2544_v7 = vrot.slane %v2542_v42, 7  ;;  %v3090_v26 = vrot.slane %v3088_v45, 5  ;;  %v3094_v63 = vrot.slane %v3092_v35, 4  ;;  %v2196_v20 = vld [vmem:[#allocation2 + $0x40] sm:$0xf]  ;;  %7413 = vmatpush.bf16.msra.mxu0 %v8927_v18  ;;  %v10550_v42 = vpop.f32.mrf.mxu0  ;;  %v10552_v45 = vpop.f32.mrf.mxu2  ;;  %v3547_v11 = vshll.u32 %v3394_v34, 16  ;;  %6998 = vmatmul.bf16.gmra.mxu3 %v8039_v25 }
 0x124   : > { %v2197_v28 = vld [vmem:[#allocation2 + $0x44] sm:$0xf]  ;;  %2228 = vst [vmem:[#allocation3 + $0x1fc] sm:$0xf] %v2196_v20  ;;  %v3100_v0 = vrot.slane %v3098_v61, 5  ;;  %v3104_v35 = vrot.slane %v3102_v21, 4  ;;  %v10563_v21 = vpop.f32.mrf.mxu1  ;;  %v10565_v40 = vpop.f32.mrf.mxu3  ;;  %vm13016_vm2 = vnez %v12819_v1 }
 0x125   : > { %v2547_v32 = vor.u32 %v2545_v13, %v2544_v7  ;;  %v2549_v48 = vrot.slane %v2544_v7, 4  ;;  %12999 = vst [vmem:[#allocation53_spill] sm:$0xff] %v10552_v45  ;;  %v3091_v27 = vsel %vm9110_vm6, %v3086_v43, %v3090_v26  ;;  %v3095_v14 = vor.u32 %v3094_v63, %v3090_v26  ;;  %v3782_v61 = vld [vmem:[#allocation2 + $0x48] sm:$0xf]  ;;  %v3783_v26 = vld [vmem:[#allocation2 + $0x4c] sm:$0xf] }
 0x126   : > { %2229 = vst [vmem:[#allocation3 + $0x220] sm:$0xf] %v2197_v28  ;;  %v3544_v13 = vshrl.u32 %v3394_v34, 16  ;;  %v3542_v43 = vrot.slane %v10463_v50, 4  ;;  %v2261_v23 = vld [vmem:[#allocation2 + $0x44] sm:$0xf] }
 0x127   : > { %3326 = vst [vmem:[#allocation3 + $0x1b8] sm:$0xf] %v3091_v27  ;;  %v2548_v20 = vsel %vm9238_vm11, %v10030_v9, %v2547_v32  ;;  %v2557_v8 = vsel %vm9238_vm11, %v2549_v48, %v9998_v33  ;;  %v3096_v31 = vrot.slane %v3095_v14, 4  ;;  %v3105_v32 = vor.u32 %v3104_v35, %v3100_v0  ;;  %v2262_v48 = vld [vmem:[#allocation2 + $0x48] sm:$0xf] }
 0x128   : > { %v2799_v18 = vunpack.c.l.b16 %v2548_v20  ;;  %v2800_v7 = vunpack.c.h.b16 %v2548_v20  ;;  %13000 = vst [vmem:[#allocation54_spill] sm:$0xff] %v10563_v21  ;;  %v2806_v63 = vunpack.c.l.b16 %v2557_v8  ;;  %v2807_v28 = vunpack.c.h.b16 %v2557_v8  ;;  %v3784_v1 = vld [vmem:[#allocation2 + $0x50] sm:$0xf] }
 0x129   : > { %v3546_v27 = vrot.slane %v3544_v13, 7  ;;  %3814 = vst [vmem:[#allocation3 + $0x208] sm:$0xf] %v3782_v61  ;;  %v3101_v34 = vsel %vm9110_vm6, %v3096_v31, %v3100_v0  ;;  %v3553_v50 = vshrl.u32 %v3395_v51, 16  ;;  %v13002_v25 = vmov 0 }
 0x12a   : > { %13001 = vst [vmem:[#allocation55_spill] sm:$0xff] %v10565_v40  ;;  %vm2803_vm14 = vcmp.ne.s32.totalorder %v2799_v18, %v9148_v37  ;;  %vm2804_vm10 = vcmp.ne.s32.totalorder %v2800_v7, %v9151_v38  ;;  %vm2810_vm15 = vcmp.ne.s32.totalorder %v2806_v63, %v9148_v37  ;;  %vm2811_vm12 = vcmp.ne.s32.totalorder %v2807_v28, %v9151_v38  ;;  %v3832_v18 = vld [vmem:[#allocation2 + $0x10] sm:$0xf]  ;;  %v8078_v7 = vld [vmem:[#allocation3 + $0x1c0] sm:$0xf] }
 0x12b   : > { %3815 = vst [vmem:[#allocation3 + $0x22c] sm:$0xf] %v3783_v26  ;;  %vm10571_vm4 = vmpackc.low %vm2804_vm10, %vm2803_vm14  ;;  %v3106_v14 = vrot.slane %v3105_v32, 4  ;;  %v3549_v35 = vor.u32 %v3547_v11, %v3546_v27  ;;  %v13005_v0 = vmov 0  ;;  %v3551_v8 = vrot.slane %v3546_v27, 4 }
 0x12c   : > { %3327 = vst [vmem:[#allocation3 + $0x1dc] sm:$0xf] %v3101_v34  ;;  %v13003_v25 = vsel %vm10571_vm4, 4294967295, %v13002_v25  ;;  %vm10577_vm5 = vmpackc.low %vm2811_vm12, %vm2810_vm15  ;;  %v2940_v20 = vsel %vm10571_vm4, %v2261_v23, 0  ;;  %v10583_v13 = vrot.slane %v3553_v50, 7  ;;  %v3556_v31 = vshll.u32 %v3395_v51, 16 }
 0x12d   : > { %13004 = vst [vmem:[#allocation56_spill] sm:$0xff] %v13003_v25  ;;  %v13006_v0 = vsel %vm10577_vm5, 4294967295, %v13005_v0  ;;  %v8775_v61 = vld [vmem:[#allocation3 + $0x1e0] sm:$0xf0]  ;;  %v2941_v26 = vsel %vm10577_vm5, %v2262_v48, 0  ;;  %v3108_v63 = vshll.u32 %v2940_v20, 16  ;;  %v3550_v11 = vsel %vm9238_vm11, %v3542_v43, %v3549_v35  ;;  %v10599_v35 = vpop.f32.mrf.mxu0 }
 0x12e   : > { %13007 = vst [vmem:[#allocation57_spill] sm:$0xff] %v13006_v0  ;;  %v3112_v28 = vshrl.u32 %v2940_v20, 16  ;;  %v8778_v34 = vld [vmem:[#allocation3 + $0x1fc] sm:$0xf]  ;;  %v3118_v40 = vshll.u32 %v2941_v26, 16  ;;  %v3558_v23 = vor.u32 %v3556_v31, %v10583_v13  ;;  %v613_v53 = vadd.s32 136, %v9072_v3  ;;  %v10601_v31 = vpop.f32.mrf.mxu2 }
 0x12f   : > { %3750 = vst [vmem:[#allocation3 + $0x204] sm:$0xf] %v3550_v11  ;;  %v8100_v27 = vld [vmem:[#allocation3 + $0x21c] sm:$0xf0]  ;;  %v3110_v51 = vrot.slane %v3108_v63, 5  ;;  %v615_v44 = vadd.s32 152, %v9072_v3  ;;  %vm13012_vm14 = vnez %v12925_v57  ;;  %vm13014_vm15 = vnez %v12814_v56 }
 0x130   : > { %v3114_v50 = vrot.slane %v3112_v28, 4  ;;  %v4358_v48 = vshrl.u32 %v10507_v60, 16  ;;  %v13008_v20 = vshrl.u32 %v10452_v62, 16  ;;  %v8770_v32 = vld [vmem:[#allocation3 + $0x1bc] sm:$0xf]  ;;  %13010 = vst [vmem:[#allocation59_spill] sm:$0xff] %v10601_v31  ;;  %v3559_v63 = vsel %vm9238_vm11, %v3551_v8, %v3558_v23 }
 0x131   : > { %v13011_v28 = vor.u32 %v10530_v4, %v10509_v17  ;;  %v8072_v11 = vld [vmem:[#allocation3 + $0x1dc] sm:$0xf0]  ;;  %v3111_v25 = vsel %vm9110_vm6, %v3106_v14, %v3110_v51  ;;  %v10610_v45 = vrot.slane %v3118_v40, 5  ;;  %3751 = vst [vmem:[#allocation3 + $0x228] sm:$0xf] %v3559_v63  ;;  %v751_v43 = vand.u32 15, %v613_v53  ;;  %v10616_v4 = vpop.f32.mrf.mxu1 }
 0x132   : > { %v10596_v0 = vrot.slane %v13008_v20, 7  ;;  %v3115_v20 = vor.u32 %v3114_v50, %v3110_v51  ;;  %v10614_v39 = vsel %vm13012_vm14, %v3832_v18, 0  ;;  %v8079_v31 = vor.u32 %v8775_v61, %v8078_v7  ;;  %3328 = vst [vmem:[#allocation3 + $0x200] sm:$0xf] %v3111_v25  ;;  %v3363_v23 = vld [vmem:[#allocation2 + $0x50] sm:$0xf]  ;;  %v10621_v51 = vpop.f32.mrf.mxu3 }
 0x133   : > { %6909 = vmatmul.bf16.gmra.mxu2 %v13011_v28  ;;  %v8103_v47 = vor.u32 %v8778_v34, %v8100_v27  ;;  %v3122_v8 = vshrl.u32 %v2941_v26, 16  ;;  %13013 = vst [vmem:[#allocation60_spill] sm:$0xff] %v10616_v4  ;;  %vm1061_vm10 = vcmp.ne.s32.totalorder %v751_v43, 15  ;;  %v3364_v28 = vld [vmem:[#allocation2 + $0x54] sm:$0xf]  ;;  %v3396_v40 = vsel %vm13014_vm15, %v3363_v23, 0 }
 0x134   : > { %13009 = vst [vmem:[#allocation58_spill] sm:$0xff] %v10596_v0  ;;  %v3116_v17 = vrot.slane %v3115_v20, 4  ;;  %v765_v14 = vand.u32 15, %v615_v44  ;;  %v2198_v18 = vld [vmem:[#allocation2 + $0x48] sm:$0xf]  ;;  %vm2360_vm12 = vmpackc.low %vm1061_vm10, %vm1061_vm10  ;;  %v3397_v25 = vsel %vm13016_vm2, %v3364_v28, 0  ;;  %v8075_v61 = vor.u32 %v8770_v32, %v8072_v11  ;;  %7092 = vmatmul.bf16.gmra.mxu0 %v8079_v31 }
 0x135   : > { %13015 = vst [vmem:[#allocation61_spill] sm:$0xff] %v10621_v51  ;;  %v2199_v50 = vld [vmem:[#allocation2 + $0x4c] sm:$0xf]  ;;  %v3899_v7 = vshrl.u32 %v10614_v39, 16  ;;  %v2392_v44 = vsel %vm2360_vm12, 65537, %v12866_v49  ;;  %6830 = vmatmul.bf16.gmra.mxu1 %v8103_v47  ;;  %v3562_v20 = vshrl.u32 %v3396_v40, 16 }
 0x136   : > { %v3121_v26 = vsel %vm9110_vm6, %v3116_v17, %v10610_v45  ;;  %2230 = vst [vmem:[#allocation3 + $0x244] sm:$0xf] %v2198_v18  ;;  %v10630_v34 = vld [vmem:[#allocation3 + $0x1b8] sm:$0xf]  ;;  %v10632_v27 = vld [vmem:[#allocation3 + $0x1d8] sm:$0xf0]  ;;  %7003 = vmatmul.bf16.gmra.mxu3 %v8075_v61 }
 0x137   : > { %3329 = vst [vmem:[#allocation3 + $0x224] sm:$0xf] %v3121_v26  ;;  %v2560_v43 = vshrl.u32 %v2392_v44, 16  ;;  %v2563_v63 = vshll.u32 %v2392_v44, 16  ;;  %v3565_v23 = vshll.u32 %v3396_v40, 16  ;;  %v3124_v28 = vrot.slane %v3122_v8, 4 }
 0x138   : > { %2231 = vst [vmem:[#allocation3 + $0x268] sm:$0xf] %v2199_v50  ;;  %v3571_v32 = vshrl.u32 %v3397_v25, 16  ;;  %v3574_v11 = vshll.u32 %v3397_v25, 16  ;;  %vm1063_vm10 = vcmp.ne.s32.totalorder %v765_v14, 15  ;;  %v10634_v17 = vrot.slane %v4358_v48, 7  ;;  %v10643_v14 = vpop.f32.mrf.mxu0  ;;  %v10645_v48 = vpop.f32.mrf.mxu2 }
 0x139   : > { %v2562_v18 = vrot.slane %v2560_v43, 7  ;;  %v3560_v53 = vrot.slane %v10583_v13, 4  ;;  %v3564_v51 = vrot.slane %v3562_v20, 7  ;;  %vm2362_vm12 = vmpackc.low %vm1063_vm10, %vm1063_vm10  ;;  %v10637_v47 = vrot.slane %v3899_v7, 4  ;;  %v4772_v44 = vld [vmem:[#allocation2 + $0x18] sm:$0xf]  ;;  %v10654_v26 = vpop.f32.mrf.mxu1 }
 0x13a   : > { %v10640_v31 = vrot.slane %v3571_v32, 7  ;;  %v3785_v8 = vld [vmem:[#allocation2 + $0x54] sm:$0xf]  ;;  %v2394_v40 = vsel %vm2362_vm12, 65537, %v12866_v49  ;;  %13017 = vst [vmem:[#allocation62_spill] sm:$0xff] %v10645_v48  ;;  %v8071_v20 = vor.u32 %v10632_v27, %v10630_v34  ;;  %v3125_v61 = vor.u32 %v3124_v28, %v10610_v45 }
 0x13b   : > { %v10647_v50 = vld [vmem:[#allocation3 + $0x208] sm:$0xf]  ;;  %v2565_v13 = vor.u32 %v2563_v63, %v2562_v18  ;;  %v2567_v25 = vrot.slane %v2562_v18, 4  ;;  %v3567_v43 = vor.u32 %v3565_v23, %v3564_v51  ;;  %v3569_v7 = vrot.slane %v3564_v51, 4  ;;  %3816 = vst [vmem:[#allocation3 + $0x250] sm:$0xf] %v3784_v1 }
 0x13c   : > { %v10652_v32 = vld [vmem:[#allocation3 + $0x228] sm:$0xf0]  ;;  %13018 = vst [vmem:[#allocation63_spill] sm:$0xff] %v10654_v26  ;;  %v3576_v56 = vor.u32 %v3574_v11, %v10640_v31  ;;  %v2578_v48 = vshrl.u32 %v2394_v40, 16  ;;  %v10657_v6 = vld [vmem:[#allocation3 + $0x204] sm:$0xf] }
 0x13d   : > { %3817 = vst [vmem:[#allocation3 + $0x274] sm:$0xf] %v3785_v8  ;;  %v2263_v63 = vld [vmem:[#allocation2 + $0x4c] sm:$0xf]  ;;  %v2566_v1 = vsel %vm9238_vm11, %v10030_v9, %v2565_v13  ;;  %v2575_v51 = vsel %vm9238_vm11, %v2567_v25, %v9998_v33  ;;  %v3568_v45 = vsel %vm9238_vm11, %v3560_v53, %v3567_v43  ;;  %v2581_v34 = vshll.u32 %v2394_v40, 16  ;;  %v10673_v13 = vpop.f32.mrf.mxu3 }
 0x13e   : > { %v10667_v27 = vld [vmem:[#allocation3 + $0x224] sm:$0xf0]  ;;  %v8787_v23 = vld [vmem:[#allocation3 + $0x244] sm:$0xf]  ;;  %v2813_v28 = vunpack.c.l.b16 %v2566_v1  ;;  %v2814_v11 = vunpack.c.h.b16 %v2566_v1  ;;  %v2820_v18 = vunpack.c.l.b16 %v2575_v51  ;;  %v2821_v8 = vunpack.c.h.b16 %v2575_v51  ;;  %3752 = vst [vmem:[#allocation3 + $0x24c] sm:$0xf] %v3568_v45 }
 0x13f   : > { %v10671_v26 = vsel %vm13012_vm14, %v4772_v44, 0  ;;  %13019 = vst [vmem:[#allocation64_spill] sm:$0xff] %v10673_v13  ;;  %v8115_v25 = vor.u32 %v10652_v32, %v10647_v50  ;;  %v8136_v4 = vld [vmem:[#allocation3 + $0x264] sm:$0xf0]  ;;  %v3577_v53 = vsel %vm9238_vm11, %v3569_v7, %v3576_v56  ;;  %v2580_v40 = vrot.slane %v2578_v48, 7  ;;  %v8910_v51 = vld [vmem:[%s12589_s3 + $0x198] sm:$0xff] }
 0x140   : > { %v3365_v43 = vld [vmem:[#allocation2 + $0x58] sm:$0xf]  ;;  %v2264_v21 = vld [vmem:[#allocation2 + $0x50] sm:$0xf]  ;;  %vm2817_vm10 = vcmp.ne.s32.totalorder %v2813_v28, %v9148_v37  ;;  %vm2818_vm12 = vcmp.ne.s32.totalorder %v2814_v11, %v9151_v38  ;;  %vm2824_vm2 = vcmp.ne.s32.totalorder %v2820_v18, %v9148_v37  ;;  %v3126_v57 = vrot.slane %v3125_v61, 4  ;;  %7236 = vmatpush.bf16.msra.mxu2 %v8910_v51  ;;  %v10728_v44 = vpop.f32.mrf.mxu0 }
 0x141   : > { %3753 = vst [vmem:[#allocation3 + $0x270] sm:$0xf] %v3577_v53  ;;  %vm10684_vm14 = vmpackc.low %vm2818_vm12, %vm2817_vm10  ;;  %v13020_v50 = vmov 0  ;;  %vm2825_vm15 = vcmp.ne.s32.totalorder %v2821_v8, %v9151_v38  ;;  %v2583_v56 = vor.u32 %v2581_v34, %v2580_v40  ;;  %v2585_v48 = vrot.slane %v2580_v40, 4  ;;  %v3366_v7 = vld [vmem:[#allocation2 + $0x5c] sm:$0xf]  ;;  %v10713_v18 = vpop.f32.mrf.mxu1 }
 0x142   : > { %v13021_v50 = vsel %vm10684_vm14, 4294967295, %v13020_v50  ;;  %v8139_v32 = vor.u32 %v8787_v23, %v8136_v4  ;;  %vm10689_vm5 = vmpackc.low %vm2825_vm15, %vm2824_vm2  ;;  %v13023_v1 = vmov 0  ;;  %v2942_v61 = vsel %vm10684_vm14, %v2263_v63, 0  ;;  %v13026_v45 = vld [vmem:[#allocation15_spill] sm:$0xff]  ;;  %v2200_v24 = vld [vmem:[#allocation2 + $0x50] sm:$0xf] }
 0x143   : > { %13022 = vst [vmem:[#allocation65_spill] sm:$0xff] %v13021_v50  ;;  %6914 = vmatmul.bf16.gmra.mxu2 %v8071_v20  ;;  %v13024_v1 = vsel %vm10689_vm5, 4294967295, %v13023_v1  ;;  %vm13027_vm10 = vnez %v13026_v45  ;;  %v10703_v34 = vadd.s32 168, %v9072_v3  ;;  %v2943_v4 = vsel %vm10689_vm5, %v2264_v21, 0  ;;  %v8918_v63 = vld [vmem:[%s12589_s3 + $0x1d8] sm:$0xff] }
 0x144   : > { %13025 = vst [vmem:[#allocation66_spill] sm:$0xff] %v13024_v1  ;;  %v10700_v28 = vsel %vm13027_vm10, %v3365_v43, 0  ;;  %v3128_v20 = vshll.u32 %v2942_v61, 16  ;;  %v3132_v23 = vshrl.u32 %v2942_v61, 16  ;;  %v2584_v11 = vsel %vm9238_vm11, %v10030_v9, %v2583_v56  ;;  %v8902_v40 = vld [vmem:[%s12589_s3 + $0x158] sm:$0xff]  ;;  %7325 = vmatpush.bf16.msra.mxu3 %v8918_v63  ;;  %7097 = vmatmul.bf16.gmra.mxu0 %v8115_v25 }
 0x145   : > { %v3138_v8 = vshll.u32 %v2943_v4, 16  ;;  %v3142_v53 = vshrl.u32 %v2943_v4, 16  ;;  %v8926_v21 = vld [vmem:[%s12589_s3 + $0x218] sm:$0xff]  ;;  %v2593_v43 = vsel %vm9238_vm11, %v2585_v48, %v9998_v33  ;;  %v10730_v4 = vpop.f32.mrf.mxu2  ;;  %v2827_v45 = vunpack.c.l.b16 %v2584_v11  ;;  %7147 = vmatpush.bf16.msra.mxu1 %v8902_v40  ;;  %2232 = vst [vmem:[#allocation3 + $0x28c] sm:$0xf] %v2200_v24 }
 0x146   : > { %v13028_v61 = vld [vmem:[#allocation16_spill] sm:$0xff]  ;;  %13030 = vst [vmem:[#allocation67_spill] sm:$0xff] %v10730_v4  ;;  %v3130_v51 = vrot.slane %v3128_v20, 5  ;;  %v3134_v13 = vrot.slane %v3132_v23, 4  ;;  %v3580_v1 = vshrl.u32 %v10700_v28, 16  ;;  %7414 = vmatpush.bf16.msra.mxu0 %v8926_v21  ;;  %v2828_v48 = vunpack.c.h.b16 %v2584_v11  ;;  %6835 = vmatmul.bf16.gmra.mxu1 %v8139_v32  ;;  %v13044_v4 = vld [vmem:[#allocation23_spill] sm:$0xff] }
 0x147   : > { %vm13029_vm2 = vnez %v13028_v61  ;;  %v3140_v50 = vrot.slane %v3138_v8, 5  ;;  %v2834_v46 = vunpack.c.l.b16 %v2593_v43  ;;  %v2835_v61 = vunpack.c.h.b16 %v2593_v43  ;;  %v2265_v20 = vld [vmem:[#allocation2 + $0x54] sm:$0xf]  ;;  %v2266_v63 = vld [vmem:[#allocation2 + $0x58] sm:$0xf] }
 0x148   : > { %v10726_v56 = vsel %vm13029_vm2, %v3366_v7, 0  ;;  %v3131_v7 = vsel %vm9110_vm6, %v3126_v57, %v3130_v51  ;;  %v3135_v59 = vor.u32 %v3134_v13, %v3130_v51  ;;  %vm2831_vm15 = vcmp.ne.s32.totalorder %v2827_v45, %v9148_v37  ;;  %v8106_v8 = vld [vmem:[#allocation3 + $0x200] sm:$0xf]  ;;  %v8783_v40 = vld [vmem:[#allocation3 + $0x220] sm:$0xf0]  ;;  %v10740_v57 = vpop.f32.mrf.mxu3 }
 0x149   : > { %v3144_v23 = vrot.slane %v3142_v53, 4  ;;  %3330 = vst [vmem:[#allocation3 + $0x248] sm:$0xf] %v3131_v7  ;;  %vm2832_vm12 = vcmp.ne.s32.totalorder %v2828_v48, %v9151_v38  ;;  %vm2838_vm2 = vcmp.ne.s32.totalorder %v2834_v46, %v9148_v37  ;;  %v3578_v11 = vrot.slane %v10640_v31, 4  ;;  %v3786_v53 = vld [vmem:[#allocation2 + $0x58] sm:$0xf] }
 0x14a   : > { %v779_v32 = vand.u32 15, %v10703_v34  ;;  %13031 = vst [vmem:[#allocation68_spill] sm:$0xff] %v10740_v57  ;;  %v3136_v24 = vrot.slane %v3135_v59, 4  ;;  %vm10742_vm10 = vmpackc.low %vm2832_vm12, %vm2831_vm15  ;;  %v13032_v13 = vmov 0  ;;  %vm2839_vm5 = vcmp.ne.s32.totalorder %v2835_v61, %v9151_v38  ;;  %v3787_v43 = vld [vmem:[#allocation2 + $0x5c] sm:$0xf] }
 0x14b   : > { %v13033_v13 = vsel %vm10742_vm10, 4294967295, %v13032_v13  ;;  %v3145_v25 = vor.u32 %v3144_v23, %v3140_v50  ;;  %v3582_v45 = vrot.slane %v3580_v1, 7  ;;  %v13035_v46 = vor.u32 %v10657_v6, %v10667_v27  ;;  %vm10750_vm14 = vmpackc.low %vm2839_vm5, %vm2838_vm2  ;;  %3818 = vst [vmem:[#allocation3 + $0x298] sm:$0xf] %v3786_v53  ;;  %v8788_v23 = vld [vmem:[#allocation3 + $0x24c] sm:$0xf] }
 0x14c   : > { %13034 = vst [vmem:[#allocation69_spill] sm:$0xff] %v13033_v13  ;;  %v13036_v31 = vmov 0  ;;  %v2944_v12 = vsel %vm10742_vm10, %v2265_v20, 0  ;;  %v3583_v59 = vshll.u32 %v10700_v28, 16  ;;  %v3589_v34 = vshrl.u32 %v10726_v56, 16  ;;  %v10767_v28 = vpop.f32.mrf.mxu1 }
 0x14d   : > { %7008 = vmatmul.bf16.gmra.mxu3 %v13035_v46  ;;  %v13037_v31 = vsel %vm10750_vm14, 4294967295, %v13036_v31  ;;  %v3592_v21 = vshll.u32 %v10726_v56, 16  ;;  %v3141_v1 = vsel %vm9110_vm6, %v3136_v24, %v3140_v50  ;;  %v2945_v6 = vsel %vm10750_vm14, %v2266_v63, 0  ;;  %v10770_v46 = vpop.f32.mrf.mxu0  ;;  %3819 = vst [vmem:[#allocation3 + $0x2bc] sm:$0xf] %v3787_v43  ;;  %v10781_v57 = vpop.f32.mrf.mxu2 }
 0x14e   : > { %13038 = vst [vmem:[#allocation70_spill] sm:$0xff] %v13037_v31  ;;  %v3146_v27 = vrot.slane %v3145_v25, 4  ;;  %v3148_v61 = vshll.u32 %v2944_v12, 16  ;;  %v13039_v51 = vshll.u32 %v10614_v39, 16  ;;  %v3152_v7 = vshrl.u32 %v2944_v12, 16 }
 0x14f   : > { %3331 = vst [vmem:[#allocation3 + $0x26c] sm:$0xf] %v3141_v1  ;;  %v3158_v20 = vshll.u32 %v2945_v6, 16  ;;  %v3585_v56 = vor.u32 %v3583_v59, %v3582_v45  ;;  %v3587_v24 = vrot.slane %v3582_v45, 4  ;;  %v10772_v63 = vrot.slane %v3589_v34, 7 }
 0x150   : > { %v10765_v48 = vrot.slane %v13039_v51, 5  ;;  %v3150_v50 = vrot.slane %v3148_v61, 5  ;;  %v3833_v25 = vld [vmem:[#allocation2 + $0x14] sm:$0xf]  ;;  %v8107_v53 = vor.u32 %v8783_v40, %v8106_v8  ;;  %v3154_v39 = vrot.slane %v3152_v7, 4  ;;  %13042 = vst [vmem:[#allocation71_spill] sm:$0xff] %v10781_v57 }
 0x151   : > { %v3586_v1 = vsel %vm9238_vm11, %v3578_v11, %v3585_v56  ;;  %vm10776_vm5 = vcmp.ne.s32.totalorder %v779_v32, 15  ;;  %v3834_v12 = vld [vmem:[#allocation2 + $0x18] sm:$0xf]  ;;  %v4773_v59 = vld [vmem:[#allocation2 + $0x1c] sm:$0xf]  ;;  %v3162_v40 = vshrl.u32 %v2945_v6, 16  ;;  %v3594_v43 = vor.u32 %v3592_v21, %v10772_v63 }
 0x152   : > { %v8150_v45 = vld [vmem:[#allocation3 + $0x250] sm:$0xf]  ;;  %v8793_v34 = vld [vmem:[#allocation3 + $0x270] sm:$0xf0]  ;;  %v8796_v61 = vld [vmem:[#allocation3 + $0x28c] sm:$0xf]  ;;  %v3151_v8 = vsel %vm9110_vm6, %v3146_v27, %v3150_v50  ;;  %v3155_v32 = vor.u32 %v3154_v39, %v3150_v50  ;;  %vm13045_vm15 = vnez %v13044_v4 }
 0x153   : > { %3754 = vst [vmem:[#allocation3 + $0x294] sm:$0xf] %v3586_v1  ;;  %vm2364_vm2 = vmpackc.low %vm10776_vm5, %vm10776_vm5  ;;  %v8172_v11 = vld [vmem:[#allocation3 + $0x2ac] sm:$0xf0]  ;;  %v10789_v7 = vrot.slane %v3158_v20, 5  ;;  %v3595_v31 = vsel %vm9238_vm11, %v3587_v24, %v3594_v43  ;;  %v10796_v21 = vsel %vm10070_vm13, %v3833_v25, 0  ;;  %6919 = vmatmul.bf16.gmra.mxu2 %v8107_v53  ;;  %v10798_v20 = vpop.f32.mrf.mxu3  ;;  %v8151_v53 = vor.u32 %v8793_v34, %v8150_v45 }
 0x154   : > { %3332 = vst [vmem:[#allocation3 + $0x290] sm:$0xf] %v3151_v8  ;;  %v2396_v56 = vsel %vm2364_vm2, 65537, %v12866_v49  ;;  %v3367_v13 = vld [vmem:[#allocation2 + $0x60] sm:$0xf]  ;;  %v3156_v51 = vrot.slane %v3155_v32, 4  ;;  %v8175_v50 = vor.u32 %v8796_v61, %v8172_v11  ;;  %v10810_v32 = vpop.f32.mrf.mxu1 }
 0x155   : > { %v2596_v27 = vshrl.u32 %v2396_v56, 16  ;;  %v2599_v6 = vshll.u32 %v2396_v56, 16  ;;  %v8144_v1 = vld [vmem:[#allocation3 + $0x26c] sm:$0xf0]  ;;  %3755 = vst [vmem:[#allocation3 + $0x2b8] sm:$0xf] %v3595_v31  ;;  %7102 = vmatmul.bf16.gmra.mxu0 %v8151_v53 }
 0x156   : > { %13043 = vst [vmem:[#allocation72_spill] sm:$0xff] %v10798_v20  ;;  %v3164_v8 = vrot.slane %v3162_v40, 4  ;;  %v3368_v57 = vld [vmem:[#allocation2 + $0x64] sm:$0xf]  ;;  %v3400_v24 = vsel %vm13045_vm15, %v3367_v13, 0  ;;  %v10804_v43 = vsel %vm10076_vm9, %v3834_v12, 0  ;;  %v3161_v31 = vsel %vm9110_vm6, %v3156_v51, %v10789_v7  ;;  %v10818_v40 = vpop.f32.mrf.mxu0  ;;  %6840 = vmatmul.bf16.gmra.mxu1 %v8175_v50  ;;  %v6885_v20 = vpop.f32.mrf.mxu2 }
 0x157   : > { %v2598_v39 = vrot.slane %v2596_v27, 7  ;;  %v10808_v25 = vsel %vm10070_vm13, %v4773_v59, 0  ;;  %v6797_v13 = vadd.f32 %v10713_v18, %v10376_v30  ;;  %v10820_v12 = vld [vmem:[#allocation3 + $0x248] sm:$0xf]  ;;  %3333 = vst [vmem:[#allocation3 + $0x2b4] sm:$0xf] %v3161_v31  ;;  %v8147_v45 = vor.u32 %v8788_v23, %v8144_v1 }
 0x158   : > { %v10822_v11 = vld [vmem:[#allocation3 + $0x268] sm:$0xf0]  ;;  %v13046_v34 = vld [vmem:[#allocation24_spill] sm:$0xff]  ;;  %v3598_v27 = vshrl.u32 %v3400_v24, 16  ;;  %v619_v51 = vadd.s32 184, %v9072_v3  ;;  %v3601_v23 = vshll.u32 %v3400_v24, 16 }
 0x159   : > { %v2601_v29 = vor.u32 %v2599_v6, %v2598_v39  ;;  %v2603_v59 = vrot.slane %v2598_v39, 4  ;;  %vm13047_vm13 = vnez %v13046_v34  ;;  %v2202_v61 = vld [vmem:[#allocation2 + $0x58] sm:$0xf]  ;;  %v2203_v4 = vld [vmem:[#allocation2 + $0x5c] sm:$0xf]  ;;  %v3165_v6 = vor.u32 %v3164_v8, %v10789_v7 }
 0x15a   : > { %v3401_v56 = vsel %vm13047_vm13, %v3368_v57, 0  ;;  %2234 = vst [vmem:[#allocation3 + $0x2d4] sm:$0xf] %v2202_v61  ;;  %v2267_v57 = vld [vmem:[#allocation2 + $0x5c] sm:$0xf]  ;;  %v8143_v34 = vor.u32 %v10822_v11, %v10820_v12  ;;  %v3600_v62 = vrot.slane %v3598_v27, 7 }
 0x15b   : > { %v2602_v30 = vsel %vm9238_vm11, %v10030_v9, %v2601_v29  ;;  %v2611_v18 = vsel %vm9238_vm11, %v2603_v59, %v9998_v33  ;;  %2235 = vst [vmem:[#allocation3 + $0x2f8] sm:$0xf] %v2203_v4  ;;  %v2268_v29 = vld [vmem:[#allocation2 + $0x60] sm:$0xf]  ;;  %v3607_v0 = vshrl.u32 %v3401_v56, 16  ;;  %v6886_v59 = vadd.f32 %v6885_v20, %v6797_v13  ;;  %v6974_v27 = vpop.f32.mrf.mxu3 }
 0x15c   : > { %v2841_v1 = vunpack.c.l.b16 %v2602_v30  ;;  %v2842_v39 = vunpack.c.h.b16 %v2602_v30  ;;  %v2848_v31 = vunpack.c.l.b16 %v2611_v18  ;;  %v2849_v50 = vunpack.c.h.b16 %v2611_v18  ;;  %v3788_v8 = vld [vmem:[#allocation2 + $0x60] sm:$0xf]  ;;  %v3789_v24 = vld [vmem:[#allocation2 + $0x64] sm:$0xf]  ;;  %v6803_v20 = vpop.f32.mrf.mxu1 }
 0x15d   : > { %7013 = vmatmul.bf16.gmra.mxu3 %v8147_v45  ;;  %v3596_v7 = vrot.slane %v10772_v63, 4  ;;  %v13048_v53 = vmov 0  ;;  %v3166_v4 = vrot.slane %v3165_v6, 4  ;;  %v3603_v61 = vor.u32 %v3601_v23, %v3600_v62  ;;  %3820 = vst [vmem:[#allocation3 + $0x2e0] sm:$0xf] %v3788_v8 }
 0x15e   : > { %vm2845_vm12 = vcmp.ne.s32.totalorder %v2841_v1, %v9148_v37  ;;  %vm2846_vm5 = vcmp.ne.s32.totalorder %v2842_v39, %v9151_v38  ;;  %vm2852_vm13 = vcmp.ne.s32.totalorder %v2848_v31, %v9148_v37  ;;  %vm2853_vm15 = vcmp.ne.s32.totalorder %v2849_v50, %v9151_v38  ;;  %v10853_v30 = vpop.f32.mrf.mxu0  ;;  %3821 = vst [vmem:[#allocation3 + $0x304] sm:$0xf] %v3789_v24  ;;  %v8186_v31 = vld [vmem:[#allocation3 + $0x298] sm:$0xf]  ;;  %v8802_v50 = vld [vmem:[#allocation3 + $0x2b8] sm:$0xf0] }
 0x15f   : > { %vm10839_vm2 = vmpackc.low %vm2846_vm5, %vm2845_vm12  ;;  %v13051_v13 = vmov 0  ;;  %v10851_v12 = vrot.slane %v3607_v0, 7  ;;  %v3610_v11 = vshll.u32 %v3401_v56, 16  ;;  %v793_v45 = vand.u32 15, %v619_v51  ;;  %v10862_v51 = vld [vmem:[#allocation3 + $0x294] sm:$0xf] }
 0x160   : > { %v13049_v53 = vsel %vm10839_vm2, 4294967295, %v13048_v53  ;;  %vm10845_vm14 = vmpackc.low %vm2853_vm15, %vm2852_vm13  ;;  %v2946_v63 = vsel %vm10839_vm2, %v2267_v57, 0  ;;  %v10856_v18 = vadd.f32 %v6803_v20, %v10550_v42  ;;  %v3605_v1 = vrot.slane %v3600_v62, 4 }
 0x161   : > { %13050 = vst [vmem:[#allocation73_spill] sm:$0xff] %v13049_v53  ;;  %v13052_v13 = vsel %vm10845_vm14, 4294967295, %v13051_v13  ;;  %v2947_v6 = vsel %vm10845_vm14, %v2268_v29, 0  ;;  %v3168_v23 = vshll.u32 %v2946_v63, 16  ;;  %v6975_v39 = vadd.f32 %v6974_v27, %v6886_v59  ;;  %v8805_v62 = vld [vmem:[#allocation3 + $0x2d4] sm:$0xf] }
 0x162   : > { %13053 = vst [vmem:[#allocation74_spill] sm:$0xff] %v13052_v13  ;;  %v3172_v57 = vshrl.u32 %v2946_v63, 16  ;;  %v3178_v0 = vshll.u32 %v2947_v6, 16  ;;  %v3604_v56 = vsel %vm9238_vm11, %v3596_v7, %v3603_v61  ;;  %v3182_v53 = vshrl.u32 %v2947_v6, 16  ;;  %v8208_v24 = vld [vmem:[#allocation3 + $0x2f4] sm:$0xf0]  ;;  %v6887_v7 = vpop.f32.mrf.mxu2 }
 0x163   : > { %v3170_v8 = vrot.slane %v3168_v23, 5  ;;  %v3612_v42 = vor.u32 %v3610_v11, %v10851_v12  ;;  %3756 = vst [vmem:[#allocation3 + $0x2dc] sm:$0xf] %v3604_v56  ;;  %v6799_v29 = vadd.f32 %v10767_v28, %v10424_v58  ;;  %vm10867_vm15 = vcmp.ne.s32.totalorder %v793_v45, 15  ;;  %v8180_v61 = vld [vmem:[#allocation3 + $0x2b4] sm:$0xf0]  ;;  %6924 = vmatmul.bf16.gmra.mxu2 %v8143_v34 }
 0x164   : > { %v3174_v59 = vrot.slane %v3172_v57, 4  ;;  %vm2366_vm13 = vmpackc.low %vm10867_vm15, %vm10867_vm15  ;;  %v3184_v58 = vrot.slane %v3182_v53, 4  ;;  %v3369_v28 = vld [vmem:[#allocation2 + $0x68] sm:$0xf]  ;;  %v3180_v23 = vrot.slane %v3178_v0, 5  ;;  %v8909_v57 = vld [vmem:[%s12589_s3 + $0x190] sm:$0xff]  ;;  %v8187_v56 = vor.u32 %v8802_v50, %v8186_v31 }
 0x165   : > { %v3171_v27 = vsel %vm9110_vm6, %v3166_v4, %v3170_v8  ;;  %v3613_v11 = vsel %vm9238_vm11, %v3605_v1, %v3612_v42  ;;  %v6888_v45 = vadd.f32 %v6887_v7, %v6799_v29  ;;  %v8917_v4 = vld [vmem:[%s12589_s3 + $0x1d0] sm:$0xff]  ;;  %v10886_v1 = vadd.f32 %v10818_v40, %v6975_v39  ;;  %v3370_v53 = vld [vmem:[#allocation2 + $0x6c] sm:$0xf]  ;;  %v6806_v29 = vpop.f32.mrf.mxu1  ;;  %7237 = vmatpush.bf16.msra.mxu2 %v8909_v57 }
 0x166   : > { %v3175_v6 = vor.u32 %v3174_v59, %v3170_v8  ;;  %3334 = vst [vmem:[#allocation3 + $0x2d8] sm:$0xf] %v3171_v27  ;;  %v8211_v42 = vor.u32 %v8805_v62, %v8208_v24  ;;  %v2398_v34 = vsel %vm2366_vm13, 65537, %v12866_v49  ;;  %vm13057_vm12 = vnez %v12906_v19  ;;  %7326 = vmatpush.bf16.msra.mxu3 %v8917_v4  ;;  %v6976_v27 = vpop.f32.mrf.mxu3  ;;  %v10892_v40 = vpop.f32.mrf.mxu0  ;;  %v13058_v50 = vld [vmem:[#allocation10_spill] sm:$0xff]  ;;  %v2205_v4 = vld [vmem:[#allocation2 + $0x64] sm:$0xf]  ;;  %7107 = vmatmul.bf16.gmra.mxu0 %v8187_v56 }
 0x167   : > { %13056 = vst [vmem:[#allocation75_spill] sm:$0xff] %v10886_v1  ;;  %v3402_v0 = vsel %vm13057_vm12, %v3369_v28, 0  ;;  %v8183_v8 = vor.u32 %v10862_v51, %v8180_v61  ;;  %v2614_v20 = vshrl.u32 %v2398_v34, 16  ;;  %v2617_v7 = vshll.u32 %v2398_v34, 16  ;;  %v10900_v51 = vld [vmem:[#allocation3 + $0x290] sm:$0xf] }
 0x168   : > { %3757 = vst [vmem:[#allocation3 + $0x300] sm:$0xf] %v3613_v11  ;;  %v3176_v59 = vrot.slane %v3175_v6, 4  ;;  %v10895_v39 = vadd.f32 %v6806_v29, %v10599_v35  ;;  %v3185_v31 = vor.u32 %v3184_v58, %v3180_v23  ;;  %vm13059_vm5 = vnez %v13058_v50  ;;  %v10902_v61 = vld [vmem:[#allocation3 + $0x2b0] sm:$0xf0]  ;;  %6845 = vmatmul.bf16.gmra.mxu1 %v8211_v42 }
 0x169   : > { %v3403_v62 = vsel %vm13059_vm5, %v3370_v53, 0  ;;  %v621_v24 = vadd.s32 200, %v9072_v3  ;;  %v6977_v11 = vadd.f32 %v6976_v27, %v6888_v45  ;;  %v2616_v6 = vrot.slane %v2614_v20, 7  ;;  %v2204_v35 = vld [vmem:[#allocation2 + $0x60] sm:$0xf]  ;;  %v8901_v58 = vld [vmem:[%s12589_s3 + $0x150] sm:$0xff] }
 0x16a   : > { %v3181_v28 = vsel %vm9110_vm6, %v3176_v59, %v3180_v23  ;;  %v3616_v57 = vshrl.u32 %v3402_v0, 16  ;;  %v8925_v45 = vld [vmem:[%s12589_s3 + $0x210] sm:$0xff]  ;;  %2236 = vst [vmem:[#allocation3 + $0x31c] sm:$0xf] %v2204_v35  ;;  %v8179_v42 = vor.u32 %v10902_v61, %v10900_v51  ;;  %v10917_v56 = vrot.slane %v3185_v31, 4  ;;  %7148 = vmatpush.bf16.msra.mxu1 %v8901_v58 }
 0x16b   : > { %3335 = vst [vmem:[#allocation3 + $0x2fc] sm:$0xf] %v3181_v28  ;;  %v2619_v34 = vor.u32 %v2617_v7, %v2616_v6  ;;  %v2621_v53 = vrot.slane %v2616_v6, 4  ;;  %v10913_v23 = vadd.f32 %v10853_v30, %v6977_v11  ;;  %v3619_v59 = vshll.u32 %v3402_v0, 16  ;;  %v3790_v28 = vld [vmem:[#allocation2 + $0x68] sm:$0xf]  ;;  %7415 = vmatpush.bf16.msra.mxu0 %v8925_v45 }
 0x16c   : > { %v3618_v29 = vrot.slane %v3616_v57, 7  ;;  %2237 = vst [vmem:[#allocation3 + $0x340] sm:$0xf] %v2205_v4  ;;  %v3625_v20 = vshrl.u32 %v3403_v62, 16  ;;  %v3614_v30 = vrot.slane %v10851_v12, 4  ;;  %v3628_v11 = vshll.u32 %v3403_v62, 16 }
 0x16d   : > { %13060 = vst [vmem:[#allocation76_spill] sm:$0xff] %v10913_v23  ;;  %7018 = vmatmul.bf16.gmra.mxu3 %v8183_v8  ;;  %v2620_v27 = vsel %vm9238_vm11, %v10030_v9, %v2619_v34  ;;  %v2629_v7 = vsel %vm9238_vm11, %v2621_v53, %v9998_v33  ;;  %v3791_v6 = vld [vmem:[#allocation2 + $0x6c] sm:$0xf]  ;;  %v6808_v8 = vpop.f32.mrf.mxu1  ;;  %v2269_v57 = vld [vmem:[#allocation2 + $0x64] sm:$0xf]  ;;  %v807_v34 = vand.u32 15, %v621_v24 }
 0x16e   : > { %v2855_v51 = vunpack.c.l.b16 %v2620_v27  ;;  %v2856_v31 = vunpack.c.h.b16 %v2620_v27  ;;  %v2862_v61 = vunpack.c.l.b16 %v2629_v7  ;;  %v3623_v0 = vrot.slane %v3618_v29, 4  ;;  %3822 = vst [vmem:[#allocation3 + $0x328] sm:$0xf] %v3790_v28  ;;  %v10928_v53 = vpop.f32.mrf.mxu3  ;;  %v10930_v12 = vpop.f32.mrf.mxu0  ;;  %v2270_v45 = vld [vmem:[#allocation2 + $0x68] sm:$0xf] }
 0x16f   : > { %v2863_v35 = vunpack.c.h.b16 %v2629_v7  ;;  %v3621_v4 = vor.u32 %v3619_v59, %v3618_v29  ;;  %v10926_v58 = vrot.slane %v3625_v20, 7  ;;  %3823 = vst [vmem:[#allocation3 + $0x34c] sm:$0xf] %v3791_v6  ;;  %v10933_v62 = vadd.f32 %v6808_v8, %v10643_v14  ;;  %v8222_v20 = vld [vmem:[#allocation3 + $0x2e0] sm:$0xf] }
 0x170   : > { %vm2859_vm15 = vcmp.ne.s32.totalorder %v2855_v51, %v9148_v37  ;;  %vm2860_vm13 = vcmp.ne.s32.totalorder %v2856_v31, %v9151_v38  ;;  %vm2866_vm5 = vcmp.ne.s32.totalorder %v2862_v61, %v9148_v37  ;;  %v13061_v29 = vmov 0  ;;  %v8811_v27 = vld [vmem:[#allocation3 + $0x300] sm:$0xf0]  ;;  %v10966_v63 = vld [vmem:[#allocation3 + $0x2d8] sm:$0xf] }
 0x171   : > { %vm10938_vm12 = vmpackc.low %vm2860_vm13, %vm2859_vm15  ;;  %vm2867_vm14 = vcmp.ne.s32.totalorder %v2863_v35, %v9151_v38  ;;  %v3622_v24 = vsel %vm9238_vm11, %v3614_v30, %v3621_v4  ;;  %v3630_v59 = vor.u32 %v3628_v11, %v10926_v58  ;;  %vm10946_vm2 = vcmp.ne.s32.totalorder %v807_v34, 15  ;;  %v8814_v7 = vld [vmem:[#allocation3 + $0x31c] sm:$0xf] }
 0x172   : > { %v13062_v29 = vsel %vm10938_vm12, 4294967295, %v13061_v29  ;;  %vm10950_vm10 = vmpackc.low %vm2867_vm14, %vm2866_vm5  ;;  %v13066_v28 = vmov 0  ;;  %v2948_v51 = vsel %vm10938_vm12, %v2269_v57, 0  ;;  %3758 = vst [vmem:[#allocation3 + $0x324] sm:$0xf] %v3622_v24  ;;  %v623_v31 = vadd.s32 216, %v9072_v3 }
 0x173   : > { %13063 = vst [vmem:[#allocation77_spill] sm:$0xff] %v13062_v29  ;;  %v13067_v28 = vsel %vm10950_vm10, 4294967295, %v13066_v28  ;;  %v8244_v30 = vld [vmem:[#allocation3 + $0x33c] sm:$0xf0]  ;;  %v2949_v11 = vsel %vm10950_vm10, %v2270_v45, 0  ;;  %v3188_v61 = vshll.u32 %v2948_v51, 16  ;;  %v3631_v8 = vsel %vm9238_vm11, %v3623_v0, %v3630_v59  ;;  %vm2368_vm14 = vmpackc.low %vm10946_vm2, %vm10946_vm2  ;;  %6929 = vmatmul.bf16.gmra.mxu2 %v8179_v42 }
 0x174   : > { %13068 = vst [vmem:[#allocation78_spill] sm:$0xff] %v13067_v28  ;;  %v3192_v6 = vshrl.u32 %v2948_v51, 16  ;;  %v6802_v35 = vadd.f32 %v10810_v32, %v10466_v16  ;;  %v8806_v57 = vld [vmem:[#allocation3 + $0x2dc] sm:$0xf]  ;;  %v8247_v4 = vor.u32 %v8814_v7, %v8244_v30  ;;  %v3198_v34 = vshll.u32 %v2949_v11, 16 }
 0x175   : > { %v3202_v24 = vshrl.u32 %v2949_v11, 16  ;;  %3759 = vst [vmem:[#allocation3 + $0x348] sm:$0xf] %v3631_v8  ;;  %v8216_v45 = vld [vmem:[#allocation3 + $0x2fc] sm:$0xf0]  ;;  %v3190_v51 = vrot.slane %v3188_v61, 5  ;;  %v8223_v32 = vor.u32 %v8811_v27, %v8222_v20  ;;  %v6811_v7 = vpop.f32.mrf.mxu1 }
 0x176   : > { %v3194_v50 = vrot.slane %v3192_v6, 4  ;;  %v2400_v0 = vsel %vm2368_vm14, 65537, %v12866_v49  ;;  %v821_v59 = vand.u32 15, %v623_v31  ;;  %v10969_v14 = vld [vmem:[#allocation3 + $0x2f8] sm:$0xf0]  ;;  %v3200_v19 = vrot.slane %v3198_v34, 5  ;;  %v6890_v31 = vpop.f32.mrf.mxu2  ;;  %v10978_v6 = vpop.f32.mrf.mxu3 }
 0x177   : > { %v2632_v28 = vshrl.u32 %v2400_v0, 16  ;;  %v2635_v23 = vshll.u32 %v2400_v0, 16  ;;  %v3204_v16 = vrot.slane %v3202_v24, 4  ;;  %v3191_v42 = vsel %vm9110_vm6, %v10917_v56, %v3190_v51  ;;  %v3371_v11 = vld [vmem:[#allocation2 + $0x70] sm:$0xf]  ;;  %v13071_v24 = vld [vmem:[#allocation12_spill] sm:$0xff]  ;;  %7112 = vmatmul.bf16.gmra.mxu0 %v8223_v32 }
 0x178   : > { %v3195_v30 = vor.u32 %v3194_v50, %v3190_v51  ;;  %v3372_v8 = vld [vmem:[#allocation2 + $0x74] sm:$0xf]  ;;  %vm10974_vm2 = vcmp.ne.s32.totalorder %v821_v59, 15  ;;  %v10981_v34 = vadd.f32 %v6811_v7, %v10728_v44  ;;  %3336 = vst [vmem:[#allocation3 + $0x320] sm:$0xf] %v3191_v42  ;;  %vm13072_vm5 = vnez %v13071_v24  ;;  %v10985_v50 = vpop.f32.mrf.mxu0  ;;  %6850 = vmatmul.bf16.gmra.mxu1 %v8247_v4 }
 0x179   : > { %v2634_v20 = vrot.slane %v2632_v28, 7  ;;  %v3205_v27 = vor.u32 %v3204_v16, %v3200_v19  ;;  %v3404_v0 = vsel %vm13072_vm5, %v3371_v11, 0  ;;  %v6891_v56 = vadd.f32 %v6890_v31, %v6802_v35  ;;  %v13073_v29 = vld [vmem:[#allocation11_spill] sm:$0xff]  ;;  %v2206_v44 = vld [vmem:[#allocation2 + $0x68] sm:$0xf]  ;;  %vm2370_vm13 = vmpackc.low %vm10974_vm2, %vm10974_vm2 }
 0x17a   : > { %v8219_v51 = vor.u32 %v8806_v57, %v8216_v45  ;;  %v3196_v59 = vrot.slane %v3195_v30, 4  ;;  %vm13074_vm15 = vnez %v13073_v29  ;;  %v2207_v7 = vld [vmem:[#allocation2 + $0x6c] sm:$0xf]  ;;  %v3632_v16 = vrot.slane %v10926_v58, 4  ;;  %2238 = vst [vmem:[#allocation3 + $0x364] sm:$0xf] %v2206_v44 }
 0x17b   : > { %v3405_v1 = vsel %vm13074_vm15, %v3372_v8, 0  ;;  %v2637_v42 = vor.u32 %v2635_v23, %v2634_v20  ;;  %v2639_v28 = vrot.slane %v2634_v20, 4  ;;  %v10993_v11 = vadd.f32 %v10928_v53, %v6891_v56  ;;  %2239 = vst [vmem:[#allocation3 + $0x388] sm:$0xf] %v2207_v7  ;;  %v2271_v32 = vld [vmem:[#allocation2 + $0x6c] sm:$0xf] }
 0x17c   : > { %v3201_v35 = vsel %vm9110_vm6, %v3196_v59, %v3200_v19  ;;  %v10997_v57 = vrot.slane %v3205_v27, 4  ;;  %v3634_v45 = vshrl.u32 %v3404_v0, 16  ;;  %v3637_v53 = vshll.u32 %v3404_v0, 16  ;;  %v3792_v19 = vld [vmem:[#allocation2 + $0x70] sm:$0xf] }
 0x17d   : > { %3337 = vst [vmem:[#allocation3 + $0x344] sm:$0xf] %v3201_v35  ;;  %v2638_v23 = vsel %vm9238_vm11, %v10030_v9, %v2637_v42  ;;  %v2647_v58 = vsel %vm9238_vm11, %v2639_v28, %v9998_v33  ;;  %v3643_v4 = vshrl.u32 %v3405_v1, 16  ;;  %7023 = vmatmul.bf16.gmra.mxu3 %v8219_v51  ;;  %v3793_v27 = vld [vmem:[#allocation2 + $0x74] sm:$0xf]  ;;  %v3646_v44 = vshll.u32 %v3405_v1, 16  ;;  %v6813_v51 = vpop.f32.mrf.mxu1 }
 0x17e   : > { %v2869_v30 = vunpack.c.l.b16 %v2638_v23  ;;  %v2870_v8 = vunpack.c.h.b16 %v2638_v23  ;;  %v2876_v31 = vunpack.c.l.b16 %v2647_v58  ;;  %v2877_v20 = vunpack.c.h.b16 %v2647_v58  ;;  %3824 = vst [vmem:[#allocation3 + $0x370] sm:$0xf] %v3792_v19  ;;  %v2272_v7 = vld [vmem:[#allocation2 + $0x70] sm:$0xf]  ;;  %v6892_v1 = vpop.f32.mrf.mxu2  ;;  %v11020_v42 = vpop.f32.mrf.mxu3  ;;  %v11048_v13 = vld [vmem:[#allocation3 + $0x324] sm:$0xf] }
 0x17f   : > { %v3636_v56 = vrot.slane %v3634_v45, 7  ;;  %v11008_v59 = vrot.slane %v3643_v4, 7  ;;  %v2402_v0 = vsel %vm2370_vm13, 65537, %v12866_v49  ;;  %3825 = vst [vmem:[#allocation3 + $0x394] sm:$0xf] %v3793_v27  ;;  %v11023_v28 = vadd.f32 %v6813_v51, %v10770_v46 }
 0x180   : > { %vm2873_vm14 = vcmp.ne.s32.totalorder %v2869_v30, %v9148_v37  ;;  %vm2874_vm15 = vcmp.ne.s32.totalorder %v2870_v8, %v9151_v38  ;;  %vm2880_vm5 = vcmp.ne.s32.totalorder %v2876_v31, %v9148_v37  ;;  %vm2881_vm10 = vcmp.ne.s32.totalorder %v2877_v20, %v9151_v38  ;;  %v11031_v4 = vpop.f32.mrf.mxu0  ;;  %v4774_v31 = vld [vmem:[#allocation2 + $0x20] sm:$0xf]  ;;  %v11039_v20 = vld [vmem:[#allocation3 + $0x328] sm:$0xf]  ;;  %v11086_v5 = vld [vmem:[#allocation3 + $0x320] sm:$0xf] }
 0x181   : > { %vm11025_vm12 = vmpackc.low %vm2874_vm15, %vm2873_vm14  ;;  %v13075_v61 = vmov 0  ;;  %v3639_v35 = vor.u32 %v3637_v53, %v3636_v56  ;;  %v3641_v45 = vrot.slane %v3636_v56, 4  ;;  %v3648_v23 = vor.u32 %v3646_v44, %v11008_v59  ;;  %v11041_v53 = vld [vmem:[#allocation3 + $0x348] sm:$0xf0]  ;;  %v8823_v27 = vld [vmem:[#allocation3 + $0x364] sm:$0xf] }
 0x182   : > { %v13076_v61 = vsel %vm11025_vm12, 4294967295, %v13075_v61  ;;  %v6893_v58 = vadd.f32 %v6892_v1, %v10856_v18  ;;  %vm11033_vm2 = vmpackc.low %vm2881_vm10, %vm2880_vm5  ;;  %v13078_v19 = vmov 0  ;;  %v2950_v46 = vsel %vm11025_vm12, %v2271_v32, 0  ;;  %v8280_v24 = vld [vmem:[#allocation3 + $0x384] sm:$0xf0] }
 0x183   : > { %13077 = vst [vmem:[#allocation79_spill] sm:$0xff] %v13076_v61  ;;  %v13079_v19 = vsel %vm11033_vm2, 4294967295, %v13078_v19  ;;  %v2650_v30 = vshrl.u32 %v2402_v0, 16  ;;  %v2653_v8 = vshll.u32 %v2402_v0, 16  ;;  %v2951_v18 = vsel %vm11033_vm2, %v2272_v7, 0 }
 0x184   : > { %13080 = vst [vmem:[#allocation80_spill] sm:$0xff] %v13079_v19  ;;  %v3208_v56 = vshll.u32 %v2950_v46, 16  ;;  %v3212_v44 = vshrl.u32 %v2950_v46, 16  ;;  %v3640_v51 = vsel %vm9238_vm11, %v3632_v16, %v3639_v35  ;;  %v6982_v1 = vadd.f32 %v10978_v6, %v6893_v58  ;;  %v8252_v35 = vld [vmem:[#allocation3 + $0x344] sm:$0xf0] }
 0x185   : > { %v3218_v32 = vshll.u32 %v2951_v18, 16  ;;  %v3222_v0 = vshrl.u32 %v2951_v18, 16  ;;  %v3649_v29 = vsel %vm9238_vm11, %v3641_v45, %v3648_v23  ;;  %3760 = vst [vmem:[#allocation3 + $0x36c] sm:$0xf] %v3640_v51  ;;  %v11054_v7 = vadd.f32 %v10892_v40, %v10993_v11  ;;  %v8908_v45 = vld [vmem:[%s12589_s3 + $0x188] sm:$0xff]  ;;  %v11078_v18 = vpop.f32.mrf.mxu1 }
 0x186   : > { %v3210_v61 = vrot.slane %v3208_v56, 5  ;;  %v3214_v60 = vrot.slane %v3212_v44, 4  ;;  %3761 = vst [vmem:[#allocation3 + $0x390] sm:$0xf] %v3649_v29  ;;  %v13082_v6 = vor.u32 %v10969_v14, %v10966_v63  ;;  %v8283_v58 = vor.u32 %v8823_v27, %v8280_v24  ;;  %v8916_v29 = vld [vmem:[%s12589_s3 + $0x1c8] sm:$0xff]  ;;  %7238 = vmatpush.bf16.msra.mxu2 %v8908_v45  ;;  %v11084_v44 = vpop.f32.mrf.mxu3 }
 0x187   : > { %13081 = vst [vmem:[#allocation81_spill] sm:$0xff] %v11054_v7  ;;  %v2652_v23 = vrot.slane %v2650_v30, 7  ;;  %v11067_v40 = vadd.f32 %v10930_v12, %v6982_v1  ;;  %v3220_v14 = vrot.slane %v3218_v32, 5  ;;  %v3224_v46 = vrot.slane %v3222_v0, 4  ;;  %7327 = vmatpush.bf16.msra.mxu3 %v8916_v29  ;;  %v3373_v56 = vld [vmem:[#allocation2 + $0x78] sm:$0xf] }
 0x188   : > { %6934 = vmatmul.bf16.gmra.mxu2 %v13082_v6  ;;  %v3211_v11 = vsel %vm9110_vm6, %v10997_v57, %v3210_v61  ;;  %v3215_v63 = vor.u32 %v3214_v60, %v3210_v61  ;;  %v11074_v24 = vsel %vm10076_vm9, %v4774_v31, 0  ;;  %v8259_v27 = vor.u32 %v11041_v53, %v11039_v20  ;;  %v6895_v61 = vpop.f32.mrf.mxu2  ;;  %v3374_v51 = vld [vmem:[#allocation2 + $0x7c] sm:$0xf]  ;;  %v11090_v32 = vpop.f32.mrf.mxu0  ;;  %v2273_v0 = vld [vmem:[#allocation2 + $0x74] sm:$0xf]  ;;  %v13085_v29 = vld [vmem:[#allocation17_spill] sm:$0xff]  ;;  %6855 = vmatmul.bf16.gmra.mxu1 %v8283_v58 }
 0x189   : > { %13083 = vst [vmem:[#allocation82_spill] sm:$0xff] %v11067_v40  ;;  %v2655_v12 = vor.u32 %v2653_v8, %v2652_v23  ;;  %v2657_v30 = vrot.slane %v2652_v23, 4  ;;  %v13084_v57 = vshrl.u32 %v10671_v26, 16  ;;  %v8255_v31 = vor.u32 %v11048_v13, %v8252_v35  ;;  %v11092_v8 = vld [vmem:[#allocation3 + $0x340] sm:$0xf0]  ;;  %v8900_v58 = vld [vmem:[%s12589_s3 + $0x148] sm:$0xff] }
 0x18a   : > { %3338 = vst [vmem:[#allocation3 + $0x368] sm:$0xf] %v3211_v11  ;;  %v3216_v20 = vrot.slane %v3215_v63, 4  ;;  %v3225_v53 = vor.u32 %v3224_v46, %v3220_v14  ;;  %v6896_v1 = vadd.f32 %v6895_v61, %v10895_v39  ;;  %vm13086_vm9 = vnez %v13085_v29  ;;  %v2208_v35 = vld [vmem:[#allocation2 + $0x70] sm:$0xf]  ;;  %7117 = vmatmul.bf16.gmra.mxu0 %v8259_v27  ;;  %7149 = vmatpush.bf16.msra.mxu1 %v8900_v58 }
 0x18b   : > { %v11082_v60 = vrot.slane %v13084_v57, 4  ;;  %v2656_v6 = vsel %vm9238_vm11, %v10030_v9, %v2655_v12  ;;  %v2665_v45 = vsel %vm9238_vm11, %v2657_v30, %v9998_v33  ;;  %v3406_v13 = vsel %vm13086_vm9, %v3373_v56, 0  ;;  %v2209_v23 = vld [vmem:[#allocation2 + $0x74] sm:$0xf]  ;;  %v2274_v11 = vld [vmem:[#allocation2 + $0x78] sm:$0xf] }
 0x18c   : > { %v3221_v39 = vsel %vm9110_vm6, %v3216_v20, %v3220_v14  ;;  %v2883_v63 = vunpack.c.l.b16 %v2656_v6  ;;  %v2884_v46 = vunpack.c.h.b16 %v2656_v6  ;;  %v2890_v57 = vunpack.c.l.b16 %v2665_v45  ;;  %v8924_v14 = vld [vmem:[%s12589_s3 + $0x208] sm:$0xff]  ;;  %2240 = vst [vmem:[#allocation3 + $0x3ac] sm:$0xf] %v2208_v35 }
 0x18d   : > { %v13087_v61 = vshll.u32 %v10796_v21, 16  ;;  %v11109_v16 = vadd.f32 %v11020_v42, %v6896_v1  ;;  %3339 = vst [vmem:[#allocation3 + $0x38c] sm:$0xf] %v3221_v39  ;;  %v2891_v30 = vunpack.c.h.b16 %v2665_v45  ;;  %v13088_v56 = vld [vmem:[#allocation18_spill] sm:$0xff]  ;;  %v3794_v42 = vld [vmem:[#allocation2 + $0x78] sm:$0xf]  ;;  %v8251_v1 = vor.u32 %v11092_v8, %v11086_v5  ;;  %7028 = vmatmul.bf16.gmra.mxu3 %v8255_v31  ;;  %7416 = vmatpush.bf16.msra.mxu0 %v8924_v14 }
 0x18e   : > { %vm13089_vm10 = vnez %v13088_v56  ;;  %vm2887_vm5 = vcmp.ne.s32.totalorder %v2883_v63, %v9148_v37  ;;  %vm2888_vm15 = vcmp.ne.s32.totalorder %v2884_v46, %v9151_v38  ;;  %vm2894_vm13 = vcmp.ne.s32.totalorder %v2890_v57, %v9148_v37  ;;  %2241 = vst [vmem:[#allocation3 + $0x3d0] sm:$0xf] %v2209_v23  ;;  %v3795_v39 = vld [vmem:[#allocation2 + $0x7c] sm:$0xf]  ;;  %v11136_v63 = vpop.f32.mrf.mxu1  ;;  %v11140_v14 = vpop.f32.mrf.mxu3 }
 0x18f   : > { %v11106_v12 = vrot.slane %v13087_v61, 5  ;;  %v3407_v20 = vsel %vm13089_vm10, %v3374_v51, 0  ;;  %v625_v27 = vadd.s32 232, %v9072_v3  ;;  %vm11125_vm14 = vmpackc.low %vm2888_vm15, %vm2887_vm5  ;;  %v13090_v6 = vmov 0  ;;  %3826 = vst [vmem:[#allocation3 + $0x3b8] sm:$0xf] %v3794_v42 }
 0x190   : > { %v13091_v6 = vsel %vm11125_vm14, 4294967295, %v13090_v6  ;;  %vm2895_vm10 = vcmp.ne.s32.totalorder %v2891_v30, %v9151_v38  ;;  %v3226_v51 = vrot.slane %v3225_v53, 4  ;;  %v3652_v45 = vshrl.u32 %v3406_v13, 16  ;;  %v6897_v58 = vpop.f32.mrf.mxu2  ;;  %3827 = vst [vmem:[#allocation3 + $0x3dc] sm:$0xf] %v3795_v39 }
 0x191   : > { %13092 = vst [vmem:[#allocation83_spill] sm:$0xff] %v13091_v6  ;;  %vm11130_vm9 = vmpackc.low %vm2895_vm10, %vm2894_vm13  ;;  %v13093_v35 = vmov 0  ;;  %v2952_v5 = vsel %vm11125_vm14, %v2273_v0, 0  ;;  %v3655_v31 = vshll.u32 %v3406_v13, 16  ;;  %v3661_v8 = vshrl.u32 %v3407_v20, 16 }
 0x192   : > { %v13094_v35 = vsel %vm11130_vm9, 4294967295, %v13093_v35  ;;  %v3664_v23 = vshll.u32 %v3407_v20, 16  ;;  %v2953_v46 = vsel %vm11130_vm9, %v2274_v11, 0  ;;  %v3228_v57 = vshll.u32 %v2952_v5, 16  ;;  %v11146_v20 = vpop.f32.mrf.mxu0  ;;  %v3375_v39 = vld [vmem:[#allocation2 + $0x80] sm:$0xf] }
 0x193   : > { %13095 = vst [vmem:[#allocation84_spill] sm:$0xff] %v13094_v35  ;;  %v3232_v53 = vshrl.u32 %v2952_v5, 16  ;;  %v3654_v61 = vrot.slane %v3652_v45, 7  ;;  %v3238_v30 = vshll.u32 %v2953_v46, 16  ;;  %v3650_v56 = vrot.slane %v11008_v59, 4 }
 0x194   : > { %v11143_v29 = vrot.slane %v3661_v8, 7  ;;  %v835_v0 = vand.u32 15, %v625_v27  ;;  %v6898_v13 = vadd.f32 %v6897_v58, %v10933_v62  ;;  %v3230_v35 = vrot.slane %v3228_v57, 5  ;;  %v8294_v5 = vld [vmem:[#allocation3 + $0x370] sm:$0xf] }
 0x195   : > { %v3234_v11 = vrot.slane %v3232_v53, 4  ;;  %v3657_v6 = vor.u32 %v3655_v31, %v3654_v61  ;;  %v8829_v45 = vld [vmem:[#allocation3 + $0x390] sm:$0xf0]  ;;  %v11148_v42 = vrot.slane %v3238_v30, 5  ;;  %v3659_v19 = vrot.slane %v3654_v61, 4 }
 0x196   : > { %v3666_v40 = vor.u32 %v3664_v23, %v11143_v29  ;;  %v6987_v59 = vadd.f32 %v11084_v44, %v6898_v13  ;;  %v8824_v8 = vld [vmem:[#allocation3 + $0x36c] sm:$0xf]  ;;  %v3231_v27 = vsel %vm9110_vm6, %v3226_v51, %v3230_v35  ;;  %v3376_v58 = vld [vmem:[#allocation2 + $0x84] sm:$0xf]  ;;  %v8316_v57 = vld [vmem:[#allocation3 + $0x3cc] sm:$0xf0]  ;;  %v8295_v23 = vor.u32 %v8829_v45, %v8294_v5  ;;  %v11179_v5 = vpop.f32.mrf.mxu3 }
 0x197   : > { %v8832_v7 = vld [vmem:[#allocation3 + $0x3ac] sm:$0xf]  ;;  %v3235_v62 = vor.u32 %v3234_v11, %v3230_v35  ;;  %v3242_v53 = vshrl.u32 %v2953_v46, 16  ;;  %3340 = vst [vmem:[#allocation3 + $0x3b0] sm:$0xf] %v3231_v27  ;;  %v3658_v31 = vsel %vm9238_vm11, %v3650_v56, %v3657_v6  ;;  %vm1073_vm10 = vcmp.ne.s32.totalorder %v835_v0, 15 }
 0x198   : > { %v3667_v61 = vsel %vm9238_vm11, %v3659_v19, %v3666_v40  ;;  %6939 = vmatmul.bf16.gmra.mxu2 %v8251_v1  ;;  %v8288_v44 = vld [vmem:[#allocation3 + $0x38c] sm:$0xf0]  ;;  %3762 = vst [vmem:[#allocation3 + $0x3b4] sm:$0xf] %v3658_v31  ;;  %vm2372_vm5 = vmpackc.low %vm1073_vm10, %vm1073_vm10  ;;  %vm13096_vm15 = vnez %v12891_v55  ;;  %v11162_v35 = vadd.f32 %v10985_v50, %v11109_v16  ;;  %v8319_v46 = vor.u32 %v8832_v7, %v8316_v57  ;;  %v11170_v1 = vpop.f32.mrf.mxu1  ;;  %v6900_v11 = vpop.f32.mrf.mxu2  ;;  %v2210_v31 = vld [vmem:[#allocation2 + $0x78] sm:$0xf] }
 0x199   : > { %v3236_v30 = vrot.slane %v3235_v62, 4  ;;  %v3408_v51 = vsel %vm13096_vm15, %v3375_v39, 0  ;;  %3763 = vst [vmem:[#allocation3 + $0x3d8] sm:$0xf] %v3667_v61  ;;  %v2404_v56 = vsel %vm2372_vm5, 65537, %v12866_v49  ;;  %vm13097_vm13 = vnez %v12889_v10 }
 0x19a   : > { %v3409_v19 = vsel %vm13097_vm13, %v3376_v58, 0  ;;  %v11168_v40 = vadd.f32 %v11031_v4, %v6987_v59  ;;  %v2668_v0 = vshrl.u32 %v2404_v56, 16  ;;  %v2671_v13 = vshll.u32 %v2404_v56, 16  ;;  %v11183_v62 = vpop.f32.mrf.mxu0  ;;  %6860 = vmatmul.bf16.gmra.mxu1 %v8319_v46  ;;  %7122 = vmatmul.bf16.gmra.mxu0 %v8295_v23  ;;  %2242 = vst [vmem:[#allocation3 + $0x3f4] sm:$0xf] %v2210_v31 }
 0x19b   : > { %v3241_v6 = vsel %vm9110_vm6, %v3236_v30, %v11148_v42  ;;  %v3670_v50 = vshrl.u32 %v3408_v51, 16  ;;  %v13098_v7 = vshrl.u32 %v10796_v21, 16  ;;  %v8291_v45 = vor.u32 %v8824_v8, %v8288_v44  ;;  %v2211_v21 = vld [vmem:[#allocation2 + $0x7c] sm:$0xf] }
 0x19c   : > { %3341 = vst [vmem:[#allocation3 + $0x3d4] sm:$0xf] %v3241_v6  ;;  %v3244_v4 = vrot.slane %v3242_v53, 4  ;;  %v3668_v59 = vrot.slane %v11143_v29, 4  ;;  %v6901_v27 = vadd.f32 %v6900_v11, %v10981_v34  ;;  %v2670_v39 = vrot.slane %v2668_v0, 7 }
 0x19d   : > { %v11177_v16 = vrot.slane %v13098_v7, 4  ;;  %v3672_v58 = vrot.slane %v3670_v50, 7  ;;  %v3673_v57 = vshll.u32 %v3408_v51, 16  ;;  %v3679_v61 = vshrl.u32 %v3409_v19, 16  ;;  %v8286_v29 = vld [vmem:[#allocation3 + $0x368] sm:$0xf]  ;;  %7033 = vmatmul.bf16.gmra.mxu3 %v8291_v45 }
 0x19e   : > { %v3682_v30 = vshll.u32 %v3409_v19, 16  ;;  %v6990_v56 = vadd.f32 %v11140_v14, %v6901_v27  ;;  %v2673_v8 = vor.u32 %v2671_v13, %v2670_v39  ;;  %v2675_v53 = vrot.slane %v2670_v39, 4  ;;  %2243 = vst [vmem:[#allocation3 + $0x418] sm:$0xf] %v2211_v21  ;;  %v8828_v51 = vld [vmem:[#allocation3 + $0x388] sm:$0xf0] }
 0x19f   : > { %v3675_v44 = vor.u32 %v3673_v57, %v3672_v58  ;;  %v3245_v34 = vor.u32 %v3244_v4, %v11148_v42  ;;  %v3677_v6 = vrot.slane %v3672_v58, 4  ;;  %v11187_v0 = vrot.slane %v3679_v61, 7  ;;  %v3796_v19 = vld [vmem:[#allocation2 + $0x80] sm:$0xf]  ;;  %v3797_v13 = vld [vmem:[#allocation2 + $0x84] sm:$0xf] }
 0x1a0   : > { %v2674_v46 = vsel %vm9238_vm11, %v10030_v9, %v2673_v8  ;;  %v2683_v14 = vsel %vm9238_vm11, %v2675_v53, %v9998_v33  ;;  %v11198_v42 = vadd.f32 %v11090_v32, %v6990_v56  ;;  %v13099_v50 = vshll.u32 %v10804_v43, 16  ;;  %v529_v27 = vld [vmem:[%s9088_s8 + $0x78] sm:$0xff]   ;;  %v11209_v58 = vpop.f32.mrf.mxu1  ;;  %3828 = vst [vmem:[#allocation3 + $0x400] sm:$0xf] %v3796_v19  ;;  %v6902_v21 = vpop.f32.mrf.mxu2  ;;  %v2276_v8 = vld [vmem:[#allocation2 + $0x80] sm:$0xf] }
 0x1a1   : > { %v3676_v23 = vsel %vm9238_vm11, %v3668_v59, %v3675_v44  ;;  %v2897_v11 = vunpack.c.l.b16 %v2674_v46  ;;  %v2898_v45 = vunpack.c.h.b16 %v2674_v46  ;;  %v2904_v4 = vunpack.c.l.b16 %v2683_v14  ;;  %v2275_v59 = vld [vmem:[#allocation2 + $0x7c] sm:$0xf]  ;;  %v11213_v56 = vpop.f32.mrf.mxu3  ;;  %3829 = vst [vmem:[#allocation3 + $0x424] sm:$0xf] %v3797_v13  ;;  %v8330_v46 = vld [vmem:[#allocation3 + $0x3b8] sm:$0xf] }
 0x1a2   : > { %v11202_v7 = vrot.slane %v13099_v50, 5  ;;  %3764 = vst [vmem:[#allocation3 + $0x3fc] sm:$0xf] %v3676_v23  ;;  %v13100_v39 = vshll.u32 %v10671_v26, 16  ;;  %v2905_v57 = vunpack.c.h.b16 %v2683_v14  ;;  %v3684_v32 = vor.u32 %v3682_v30, %v11187_v0  ;;  %v11218_v44 = vpop.f32.mrf.mxu0  ;;  %v8838_v30 = vld [vmem:[#allocation3 + $0x3d8] sm:$0xf0] }
 0x1a3   : > { %v627_v31 = vadd.s32 248, %v9072_v3  ;;  %v8287_v61 = vor.u32 %v8828_v51, %v8286_v29  ;;  %vm2901_vm10 = vcmp.ne.s32.totalorder %v2897_v11, %v9148_v37  ;;  %vm2902_vm5 = vcmp.ne.s32.totalorder %v2898_v45, %v9151_v38  ;;  %561 = vst [vmem:[#allocation2 + $0x88] sm:$0xff] %v529_v27   ;;  %v8841_v29 = vld [vmem:[#allocation3 + $0x3f4] sm:$0xf] }
 0x1a4   : > { %v11207_v33 = vrot.slane %v13100_v39, 5  ;;  %v3246_v26 = vrot.slane %v3245_v34, 4  ;;  %v6903_v53 = vadd.f32 %v6902_v21, %v11023_v28  ;;  %vm11220_vm13 = vmpackc.low %vm2902_vm5, %vm2901_vm10  ;;  %v13101_v14 = vmov 0  ;;  %v11271_v27 = vld [vmem:[#allocation3 + $0x3d0] sm:$0xf0] }
 0x1a5   : > { %v13102_v14 = vsel %vm11220_vm13, 4294967295, %v13101_v14  ;;  %vm2908_vm15 = vcmp.ne.s32.totalorder %v2904_v4, %v9148_v37  ;;  %vm2909_vm9 = vcmp.ne.s32.totalorder %v2905_v57, %v9151_v38  ;;  %v3685_v3 = vsel %vm9238_vm11, %v3677_v6, %v3684_v32  ;;  %v8352_v19 = vld [vmem:[#allocation3 + $0x414] sm:$0xf0]  ;;  %v8915_v32 = vld [vmem:[%s12589_s3 + $0x1c0] sm:$0xff] }
 0x1a6   : > { %vm11228_vm14 = vmpackc.low %vm2909_vm9, %vm2908_vm15  ;;  %v13103_v34 = vmov 0  ;;  %v2954_v28 = vsel %vm11220_vm13, %v2275_v59, 0  ;;  %3765 = vst [vmem:[#allocation3 + $0x420] sm:$0xf] %v3685_v3  ;;  %v849_v51 = vand.u32 15, %v627_v31  ;;  %v6992_v23 = vadd.f32 %v11179_v5, %v6903_v53  ;;  %v8907_v5 = vld [vmem:[%s12589_s3 + $0x180] sm:$0xff]  ;;  %7328 = vmatpush.bf16.msra.mxu3 %v8915_v32 }
 0x1a7   : > { %v13104_v34 = vsel %vm11228_vm14, 4294967295, %v13103_v34  ;;  %v2955_v13 = vsel %vm11228_vm14, %v2276_v8, 0  ;;  %v3248_v50 = vshll.u32 %v2954_v28, 16  ;;  %v3252_v11 = vshrl.u32 %v2954_v28, 16  ;;  %v8324_v53 = vld [vmem:[#allocation3 + $0x3d4] sm:$0xf0]  ;;  %7239 = vmatpush.bf16.msra.mxu2 %v8907_v5 }
 0x1a8   : > { %v4848_v6 = vshll.u32 %v10808_v25, 16  ;;  %v4852_v45 = vshrl.u32 %v10808_v25, 16  ;;  %v3258_v4 = vshll.u32 %v2955_v13, 16  ;;  %vm11239_vm9 = vcmp.ne.s32.totalorder %v849_v51, 15  ;;  %6944 = vmatmul.bf16.gmra.mxu2 %v8287_v61  ;;  %v8833_v61 = vld [vmem:[#allocation3 + $0x3b4] sm:$0xf]  ;;  %v11258_v51 = vpop.f32.mrf.mxu1 }
 0x1a9   : > { %v3250_v39 = vrot.slane %v3248_v50, 5  ;;  %v3254_v59 = vrot.slane %v3252_v11, 4  ;;  %v3262_v57 = vshrl.u32 %v2955_v13, 16  ;;  %v11250_v31 = vadd.f32 %v11146_v20, %v6992_v23  ;;  %vm2374_vm15 = vmpackc.low %vm11239_vm9, %vm11239_vm9  ;;  %v11265_v50 = vpop.f32.mrf.mxu3  ;;  %v2213_v5 = vld [vmem:[#allocation2 + $0x84] sm:$0xf] }
 0x1aa   : > { %v6817_v8 = vadd.f32 %v11078_v18, %v10288_v15  ;;  %v8331_v3 = vor.u32 %v8838_v30, %v8330_v46  ;;  %v8355_v28 = vor.u32 %v8841_v29, %v8352_v19  ;;  %v11262_v23 = vrot.slane %v3258_v4, 5  ;;  %v6905_v18 = vpop.f32.mrf.mxu2  ;;  %v11267_v46 = vld [vmem:[#allocation3 + $0x3b0] sm:$0xf]  ;;  %v11269_v11 = vpop.f32.mrf.mxu0  ;;  %2245 = vst [vmem:[#allocation3 + $0x460] sm:$0xf] %v2213_v5 }
 0x1ab   : > { %v3251_v13 = vsel %vm9110_vm6, %v3246_v26, %v3250_v39  ;;  %v3255_v20 = vor.u32 %v3254_v59, %v3250_v39  ;;  %v2406_v15 = vsel %vm2374_vm15, 65537, %v12866_v49  ;;  %v8327_v26 = vor.u32 %v8833_v61, %v8324_v53  ;;  %v3377_v59 = vld [vmem:[#allocation2 + $0x88] sm:$0xf]  ;;  %v2212_v49 = vld [vmem:[#allocation2 + $0x80] sm:$0xf] }
 0x1ac   : > { %3342 = vst [vmem:[#allocation3 + $0x3f8] sm:$0xf] %v3251_v13  ;;  %v2686_v30 = vshrl.u32 %v2406_v15, 16  ;;  %v2689_v29 = vshll.u32 %v2406_v15, 16  ;;  %v6906_v19 = vadd.f32 %v6905_v18, %v6817_v8  ;;  %v11273_v39 = vrot.slane %v3262_v57, 4  ;;  %6865 = vmatmul.bf16.gmra.mxu1 %v8355_v28  ;;  %7127 = vmatmul.bf16.gmra.mxu0 %v8331_v3  ;;  %v8899_v57 = vld [vmem:[%s12589_s3 + $0x140] sm:$0xff] }
 0x1ad   : > { %v3256_v4 = vrot.slane %v3255_v20, 4  ;;  %vm13107_vm10 = vnez %v12914_v41  ;;  %v8923_v61 = vld [vmem:[%s12589_s3 + $0x200] sm:$0xff]  ;;  %2244 = vst [vmem:[#allocation3 + $0x43c] sm:$0xf] %v2212_v49  ;;  %v3686_v53 = vrot.slane %v11187_v0, 4  ;;  %7038 = vmatmul.bf16.gmra.mxu3 %v8327_v26  ;;  %7150 = vmatpush.bf16.msra.mxu1 %v8899_v57  ;;  %vm13108_vm5 = vnez %v12911_v52 }
 0x1ae   : > { %v2688_v32 = vrot.slane %v2686_v30, 7  ;;  %v3410_v21 = vsel %vm13107_vm10, %v3377_v59, 0  ;;  %v6995_v13 = vadd.f32 %v11213_v56, %v6906_v19  ;;  %v6819_v56 = vadd.f32 %v11136_v63, %v10339_v54  ;;  %v3378_v15 = vld [vmem:[#allocation2 + $0x8c] sm:$0xf]  ;;  %v3798_v0 = vld [vmem:[#allocation2 + $0x88] sm:$0xf]  ;;  %7417 = vmatpush.bf16.msra.mxu0 %v8923_v61 }
 0x1af   : > { %v3261_v8 = vsel %vm9110_vm6, %v3256_v4, %v11262_v23  ;;  %v3688_v28 = vshrl.u32 %v3410_v21, 16  ;;  %v3691_v18 = vshll.u32 %v3410_v21, 16  ;;  %v8323_v30 = vor.u32 %v11271_v27, %v11267_v46  ;;  %v3799_v46 = vld [vmem:[#allocation2 + $0x8c] sm:$0xf]  ;;  %3830 = vst [vmem:[#allocation3 + $0x448] sm:$0xf] %v3798_v0 }
 0x1b0   : > { %3343 = vst [vmem:[#allocation3 + $0x41c] sm:$0xf] %v3261_v8  ;;  %v2691_v3 = vor.u32 %v2689_v29, %v2688_v32  ;;  %v2693_v20 = vrot.slane %v2688_v32, 4  ;;  %v3411_v19 = vsel %vm13108_vm5, %v3378_v15, 0  ;;  %v11295_v59 = vadd.f32 %v11183_v62, %v6995_v13  ;;  %v11300_v27 = vpop.f32.mrf.mxu1  ;;  %v2278_v26 = vld [vmem:[#allocation2 + $0x88] sm:$0x1] }
 0x1b1   : > { %v3690_v4 = vrot.slane %v3688_v28, 7  ;;  %v3697_v29 = vshrl.u32 %v3411_v19, 16  ;;  %v3265_v32 = vor.u32 %v11273_v39, %v11262_v23  ;;  %3831 = vst [vmem:[#allocation3 + $0x46c] sm:$0xf] %v3799_v46  ;;  %v6999_v8 = vpop.f32.mrf.mxu3  ;;  %v2277_v57 = vld [vmem:[#allocation2 + $0x84] sm:$0xf] }
 0x1b2   : > { %v2692_v54 = vsel %vm9238_vm11, %v10030_v9, %v2691_v3  ;;  %v2918_v63 = vunpack.c.l.b16 %v2693_v20  ;;  %v2919_v21 = vunpack.c.h.b16 %v2693_v20  ;;  %v6907_v13 = vpop.f32.mrf.mxu2  ;;  %v11306_v3 = vpop.f32.mrf.mxu0  ;;  %v8842_v20 = vld [vmem:[#allocation3 + $0x3fc] sm:$0xf]  ;;  %v8366_v15 = vld [vmem:[#allocation3 + $0x400] sm:$0xf] }
 0x1b3   : > { %v2911_v49 = vunpack.c.l.b16 %v2692_v54  ;;  %v2912_v5 = vunpack.c.h.b16 %v2692_v54  ;;  %v3693_v62 = vor.u32 %v3691_v18, %v3690_v4  ;;  %v3695_v9 = vrot.slane %v3690_v4, 4  ;;  %v8360_v0 = vld [vmem:[#allocation3 + $0x41c] sm:$0xf0]  ;;  %v8847_v54 = vld [vmem:[#allocation3 + $0x420] sm:$0xf0] }
 0x1b4   : > { %vm2922_vm9 = vcmp.ne.s32.totalorder %v2918_v63, %v9148_v37  ;;  %vm2923_vm15 = vcmp.ne.s32.totalorder %v2919_v21, %v9151_v38  ;;  %v3699_v61 = vrot.slane %v3697_v29, 7  ;;  %v6908_v28 = vadd.f32 %v6907_v13, %v6819_v56  ;;  %v8850_v18 = vld [vmem:[#allocation3 + $0x43c] sm:$0xf]  ;;  %v8388_v21 = vld [vmem:[#allocation3 + $0x45c] sm:$0xf0] }
 0x1b5   : > { %vm2915_vm5 = vcmp.ne.s32.totalorder %v2911_v49, %v9148_v37  ;;  %vm2916_vm10 = vcmp.ne.s32.totalorder %v2912_v5, %v9151_v38  ;;  %vm11310_vm14 = vmpackc.low %vm2923_vm15, %vm2922_vm9  ;;  %v3694_v39 = vsel %vm9238_vm11, %v3686_v53, %v3693_v62  ;;  %v3700_v37 = vshll.u32 %v3411_v19, 16 }
 0x1b6   : > { %vm11316_vm13 = vmpackc.low %vm2916_vm10, %vm2915_vm5  ;;  %v2957_v56 = vsel %vm11310_vm14, %v2278_v26, 0  ;;  %3766 = vst [vmem:[#allocation3 + $0x444] sm:$0xf] %v3694_v39  ;;  %v6997_v38 = vadd.f32 %v11265_v50, %v6908_v28  ;;  %v3266_v53 = vrot.slane %v3265_v32, 4  ;;  %v11327_v62 = vrot.slane %v4848_v6, 5 }
 0x1b7   : > { %v2956_v63 = vsel %vm11316_vm13, %v2277_v57, 0  ;;  %v3278_v49 = vshll.u32 %v2957_v56, 16  ;;  %v3702_v5 = vor.u32 %v3700_v37, %v3699_v61  ;;  %v4854_v19 = vrot.slane %v4852_v45, 4 }
 0x1b8   : > { %v3268_v29 = vshll.u32 %v2956_v63, 16  ;;  %v3272_v46 = vshrl.u32 %v2956_v63, 16  ;;  %6949 = vmatmul.bf16.gmra.mxu2 %v8323_v30  ;;  %v8391_v50 = vor.u32 %v8850_v18, %v8388_v21  ;;  %v11332_v26 = vadd.f32 %v11218_v44, %v6997_v38  ;;  %v11340_v25 = vpop.f32.mrf.mxu1  ;;  %v13116_v63 = vld [vmem:[#allocation46_spill] sm:$0xff] }
 0x1b9   : > { %v3703_v32 = vsel %vm9238_vm11, %v3695_v9, %v3702_v5  ;;  %v3905_v61 = vor.u32 %v10765_v48, %v10637_v47  ;;  %v6822_v6 = vadd.f32 %v11170_v1, %v10388_v2  ;;  %v8363_v28 = vor.u32 %v8842_v20, %v8360_v0  ;;  %v7001_v30 = vpop.f32.mrf.mxu3  ;;  %v13113_v1 = vld [vmem:[#allocation49_spill] sm:$0xff] }
 0x1ba   : > { %v3270_v13 = vrot.slane %v3268_v29, 5  ;;  %v3274_v57 = vrot.slane %v3272_v46, 4  ;;  %v8367_v39 = vor.u32 %v8847_v54, %v8366_v15  ;;  %3767 = vst [vmem:[#allocation3 + $0x468] sm:$0xf] %v3703_v32  ;;  %v3915_v44 = vor.u32 %v11177_v16, %v11106_v12  ;;  %v6910_v45 = vpop.f32.mrf.mxu2  ;;  %v11346_v48 = vpop.f32.mrf.mxu0  ;;  %v13115_v54 = vld [vmem:[#allocation58_spill] sm:$0xff] }
 0x1bb   : > { %v3280_v56 = vrot.slane %v3278_v49, 5  ;;  %v3906_v37 = vrot.slane %v3905_v61, 4  ;;  %v6911_v47 = vadd.f32 %v6910_v45, %v6822_v6  ;;  %v13114_v20 = vshll.u32 %v13113_v1, 16  ;;  %v8846_v61 = vld [vmem:[#allocation3 + $0x418] sm:$0xf0] }
 0x1bc   : > { %v3271_v18 = vsel %vm9110_vm6, %v3266_v53, %v3270_v13  ;;  %v3275_v9 = vor.u32 %v3274_v57, %v3270_v13  ;;  %v3916_v2 = vrot.slane %v3915_v44, 4  ;;  %v4365_v38 = vrot.slane %v10634_v17, 4  ;;  %6870 = vmatmul.bf16.gmra.mxu1 %v8391_v50  ;;  %7132 = vmatmul.bf16.gmra.mxu0 %v8367_v39  ;;  %v13119_v50 = vld [vmem:[#allocation43_spill] sm:$0xff]  ;;  %v4709_v44 = vld [vmem:[#allocation2 + $0x1c] sm:$0xf] }
 0x1bd   : > { %3344 = vst [vmem:[#allocation3 + $0x440] sm:$0xf] %v3271_v18  ;;  %v4363_v15 = vor.u32 %v13114_v20, %v10634_v17  ;;  %v3911_v0 = vsel %vm9110_vm6, %v3906_v37, %v11106_v12  ;;  %v13117_v53 = vshll.u32 %v13116_v63, 16  ;;  %v4845_v29 = vor.u32 %v11207_v33, %v11082_v60  ;;  %v8358_v57 = vld [vmem:[#allocation3 + $0x3f8] sm:$0xf]  ;;  %7043 = vmatmul.bf16.gmra.mxu3 %v8363_v28 }
 0x1be   : > { %v3276_v16 = vrot.slane %v3275_v9, 4  ;;  %v13118_v46 = vshll.u32 %v11074_v24, 16  ;;  %v7000_v5 = vadd.f32 %v6999_v8, %v6911_v47  ;;  %v3921_v17 = vsel %vm9110_vm6, %v3916_v2, %v11202_v7  ;;  %4254 = vst [vmem:[#allocation3 + $0x14] sm:$0xf] %v3911_v0  ;;  %v4708_v6 = vld [vmem:[#allocation2 + $0x18] sm:$0xf] }
 0x1bf   : > { %v4372_v21 = vor.u32 %v13117_v53, %v13115_v54  ;;  %v13120_v12 = vrot.slane %v13119_v50, 11  ;;  %4255 = vst [vmem:[#allocation3 + $0x38] sm:$0xf] %v3921_v17  ;;  %v4846_v8 = vrot.slane %v4845_v29, 4  ;;  %v4855_v32 = vor.u32 %v4854_v19, %v11327_v62  ;;  %v13121_v9 = vld [vmem:[#allocation44_spill] sm:$0xff] }
 0x1c0   : > { %v11362_v49 = vrot.slane %v13118_v46, 5  ;;  %v3281_v60 = vsel %vm9110_vm6, %v3276_v16, %v3280_v56  ;;  %v11377_v39 = vadd.f32 %v11269_v11, %v7000_v5  ;;  %v6824_v56 = vadd.f32 %v11209_v58, %v13121_v9  ;;  %v11384_v37 = vpop.f32.mrf.mxu1  ;;  %4740 = vst [vmem:[#allocation3 + $0x1c] sm:$0xf] %v4708_v6  ;;  %v3835_v47 = vld [vmem:[#allocation2 + $0x1c] sm:$0xf] }
 0x1c1   : > { %v4364_v13 = vsel %vm9238_vm11, %v13120_v12, %v4363_v15  ;;  %v4373_v33 = vsel %vm9238_vm11, %v4365_v38, %v4372_v21  ;;  %3345 = vst [vmem:[#allocation3 + $0x464] sm:$0xf] %v3281_v60  ;;  %v4851_v45 = vsel %vm9110_vm6, %v4846_v8, %v11327_v62  ;;  %v4856_v18 = vrot.slane %v4855_v32, 4  ;;  %v7004_v28 = vpop.f32.mrf.mxu3  ;;  %v8402_v58 = vld [vmem:[#allocation3 + $0x448] sm:$0xf]  ;;  %v13123_v12 = vld [vmem:[#allocation48_spill] sm:$0xff] }
 0x1c2   : > { %4676 = vst [vmem:[#allocation3 + $0x18] sm:$0xf] %v4364_v13  ;;  %v6912_v19 = vpop.f32.mrf.mxu2  ;;  %v8359_v1 = vor.u32 %v8846_v61, %v8358_v57  ;;  %v11389_v20 = vpop.f32.mrf.mxu0  ;;  %v3868_v15 = vsel %vm10143_vm7, %v3835_v47, 0  ;;  %v8856_v38 = vld [vmem:[#allocation3 + $0x468] sm:$0xf0]  ;;  %v3922_v0 = vshrl.u32 %v10804_v43, 16  ;;  %v6827_v13 = vadd.f32 %v11258_v51, %v13123_v12 }
 0x1c3   : > { %4677 = vst [vmem:[#allocation3 + $0x3c] sm:$0xf] %v4373_v33  ;;  %v4861_v11 = vsel %vm9110_vm6, %v4856_v18, %v11362_v49  ;;  %v6913_v2 = vadd.f32 %v6912_v19, %v6824_v56  ;;  %v3928_v63 = vshll.u32 %v3868_v15, 16  ;;  %v3932_v29 = vshrl.u32 %v3868_v15, 16  ;;  %v8851_v46 = vld [vmem:[#allocation3 + $0x444] sm:$0xf] }
 0x1c4   : > { %4741 = vst [vmem:[#allocation3 + $0x40] sm:$0xf] %v4709_v44  ;;  %v3836_v5 = vld [vmem:[#allocation2 + $0x20] sm:$0xf]  ;;  %v3924_v17 = vrot.slane %v3922_v0, 4  ;;  %v8403_v18 = vor.u32 %v8856_v38, %v8402_v58  ;;  %v4374_v58 = vrot.slane %v13115_v54, 4 }
 0x1c5   : > { %v8717_v16 = vld [vmem:[#allocation3 + $0x14] sm:$0xf]  ;;  %5194 = vst [vmem:[#allocation3 + $0x20] sm:$0xf] %v4851_v45  ;;  %v7002_v53 = vadd.f32 %v7001_v30, %v6913_v2  ;;  %v3930_v50 = vrot.slane %v3928_v63, 5  ;;  %v11398_v33 = vsel %vm10158_vm8, %v3836_v5, 0 }
 0x1c6   : > { %v7864_v21 = vld [vmem:[#allocation3 + $0x34] sm:$0xf0]  ;;  %5195 = vst [vmem:[#allocation3 + $0x44] sm:$0xf] %v4861_v11  ;;  %v8396_v57 = vld [vmem:[#allocation3 + $0x464] sm:$0xf0]  ;;  %v3925_v61 = vor.u32 %v3924_v17, %v11202_v7 }
 0x1c7   : > { %v3934_v8 = vrot.slane %v3932_v29, 4  ;;  %v4289_v43 = vld [vmem:[#allocation2 + $0x20] sm:$0xf]  ;;  %v11401_v30 = vadd.f32 %v11306_v3, %v7002_v53  ;;  %v7867_v32 = vor.u32 %v8717_v16, %v7864_v21  ;;  %v3938_v6 = vshll.u32 %v11398_v33, 16  ;;  %v4290_v44 = vld [vmem:[#allocation2 + $0x24] sm:$0xf] }
 0x1c8   : > { %6954 = vmatmul.bf16.gmra.mxu2 %v8359_v1  ;;  %v4322_v51 = vsel %vm9641_vm0, %v4289_v43, 0  ;;  %v11407_v9 = vpop.f32.mrf.mxu1  ;;  %v13126_v19 = vld [vmem:[#allocation20_spill] sm:$0xff]  ;;  %v8399_v1 = vor.u32 %v8851_v46, %v8396_v57  ;;  %v3926_v15 = vrot.slane %v3925_v61, 4  ;;  %v4775_v53 = vld [vmem:[#allocation2 + $0x24] sm:$0xf] }
 0x1c9   : > { %v3935_v56 = vor.u32 %v3934_v8, %v3930_v50  ;;  %vm13127_vm10 = vnez %v13126_v19  ;;  %v4376_v47 = vshrl.u32 %v4322_v51, 16  ;;  %v11411_v3 = vpop.f32.mrf.mxu3  ;;  %v11413_v7 = vrot.slane %v3938_v6, 5  ;;  %v4776_v12 = vld [vmem:[#allocation2 + $0x28] sm:$0xf]  ;;  %v8394_v57 = vld [vmem:[#allocation3 + $0x440] sm:$0xf] }
 0x1ca   : > { %v4323_v11 = vsel %vm13127_vm10, %v4290_v44, 0  ;;  %v6915_v2 = vpop.f32.mrf.mxu2  ;;  %v11415_v0 = vpop.f32.mrf.mxu0  ;;  %v3931_v21 = vsel %vm9110_vm6, %v3926_v15, %v3930_v50  ;;  %v4379_v29 = vshll.u32 %v4322_v51, 16  ;;  %v8855_v8 = vld [vmem:[#allocation3 + $0x460] sm:$0xf0]  ;;  %v4711_v50 = vld [vmem:[#allocation2 + $0x24] sm:$0xf] }
 0x1cb   : > { %v6916_v16 = vadd.f32 %v6915_v2, %v6827_v13  ;;  %v3936_v63 = vrot.slane %v3935_v56, 4  ;;  %v4378_v38 = vrot.slane %v4376_v47, 7  ;;  %v4385_v5 = vshrl.u32 %v4323_v11, 16  ;;  %4256 = vst [vmem:[#allocation3 + $0x5c] sm:$0xf] %v3931_v21 }
 0x1cc   : > { %7151 = vmatmul.bf16.vlgmr.msra.gmra.mxu1 %v7867_v32  ;;  %v4388_v17 = vshll.u32 %v4323_v11, 16  ;;  %7137 = vmatmul.bf16.gmra.mxu0 %v8403_v18  ;;  %v4710_v43 = vld [vmem:[#allocation2 + $0x20] sm:$0xf]  ;;  %v4808_v6 = vsel %vm10143_vm7, %v4775_v53, 0  ;;  %v4862_v44 = vshrl.u32 %v11074_v24, 16  ;;  %v13129_v11 = vld [vmem:[#allocation54_spill] sm:$0xff] }
 0x1cd   : > { %v7005_v46 = vadd.f32 %v7004_v28, %v6916_v16  ;;  %v3941_v13 = vsel %vm9110_vm6, %v3936_v63, %v11413_v7  ;;  %v4383_v54 = vrot.slane %v4378_v38, 4  ;;  %v4381_v32 = vor.u32 %v4379_v29, %v4378_v38  ;;  %7048 = vmatmul.bf16.gmra.mxu3 %v8399_v1  ;;  %4742 = vst [vmem:[#allocation3 + $0x64] sm:$0xf] %v4710_v43  ;;  %v3837_v53 = vld [vmem:[#allocation2 + $0x24] sm:$0xf] }
 0x1ce   : > { %4257 = vst [vmem:[#allocation3 + $0x80] sm:$0xf] %v3941_v13  ;;  %v11423_v61 = vrot.slane %v4385_v5, 7  ;;  %v11429_v28 = vsel %vm10158_vm8, %v4776_v12, 0  ;;  %v4868_v45 = vshll.u32 %v4808_v6, 16  ;;  %v4872_v51 = vshrl.u32 %v4808_v6, 16 }
 0x1cf   : > { %v4382_v18 = vsel %vm9238_vm11, %v4374_v58, %v4381_v32  ;;  %4743 = vst [vmem:[#allocation3 + $0x88] sm:$0xf] %v4711_v50  ;;  %v4878_v19 = vshll.u32 %v11429_v28, 16  ;;  %v11437_v62 = vadd.f32 %v11346_v48, %v7005_v46  ;;  %v6829_v60 = vadd.f32 %v11300_v27, %v13129_v11  ;;  %v13130_v5 = vld [vmem:[#allocation32_spill] sm:$0xff] }
 0x1d0   : > { %v4390_v56 = vor.u32 %v4388_v17, %v11423_v61  ;;  %v11441_v47 = vpop.f32.mrf.mxu1  ;;  %4678 = vst [vmem:[#allocation3 + $0x60] sm:$0xf] %v4382_v18  ;;  %v4864_v24 = vrot.slane %v4862_v44, 4  ;;  %v4870_v2 = vrot.slane %v4868_v45, 5  ;;  %v4874_v1 = vrot.slane %v4872_v51, 4  ;;  %v13132_v44 = vld [vmem:[#allocation60_spill] sm:$0xff] }
 0x1d1   : > { %13128 = vst [vmem:[#allocation49_spill] sm:$0xff] %v11437_v62  ;;  %v8395_v16 = vor.u32 %v8855_v8, %v8394_v57  ;;  %v7009_v63 = vpop.f32.mrf.mxu3  ;;  %v11445_v38 = vrot.slane %v4878_v19, 5  ;;  %vm13131_vm0 = vnez %v13130_v5  ;;  %v7878_v12 = vld [vmem:[#allocation3 + $0x20] sm:$0xf]  ;;  %v8723_v46 = vld [vmem:[#allocation3 + $0x40] sm:$0xf0]  ;;  %v6832_v45 = vadd.f32 %v11340_v25, %v13132_v44 }
 0x1d2   : > { %v6917_v15 = vpop.f32.mrf.mxu2  ;;  %v4391_v58 = vsel %vm9238_vm11, %v4383_v54, %v4390_v56  ;;  %v11447_v21 = vpop.f32.mrf.mxu0  ;;  %v4865_v27 = vor.u32 %v4864_v24, %v11362_v49  ;;  %v4875_v29 = vor.u32 %v4874_v1, %v4870_v2  ;;  %v3870_v17 = vsel %vm13131_vm0, %v3837_v53, 0  ;;  %v8726_v43 = vld [vmem:[#allocation3 + $0x5c] sm:$0xf]  ;;  %v3838_v49 = vld [vmem:[#allocation2 + $0x28] sm:$0xf] }
 0x1d3   : > { %v6918_v48 = vadd.f32 %v6917_v15, %v6829_v60  ;;  %4679 = vst [vmem:[#allocation3 + $0x84] sm:$0xf] %v4391_v58  ;;  %v3942_v57 = vshrl.u32 %v11398_v33, 16  ;;  %v3948_v8 = vshll.u32 %v3870_v17, 16  ;;  %v3952_v13 = vshrl.u32 %v3870_v17, 16  ;;  %v13141_v5 = vld [vmem:[#allocation63_spill] sm:$0xff] }
 0x1d4   : > { %v4866_v50 = vrot.slane %v4865_v27, 4  ;;  %v4876_v6 = vrot.slane %v4875_v29, 4  ;;  %v4291_v18 = vld [vmem:[#allocation2 + $0x28] sm:$0xf]  ;;  %v8718_v56 = vld [vmem:[#allocation3 + $0x1c] sm:$0xf]  ;;  %v7879_v53 = vor.u32 %v8723_v46, %v7878_v12 }
 0x1d5   : > { %v7007_v54 = vadd.f32 %v11411_v3, %v6918_v48  ;;  %v7900_v32 = vld [vmem:[#allocation3 + $0x7c] sm:$0xf0]  ;;  %v3944_v51 = vrot.slane %v3942_v57, 4  ;;  %v13133_v3 = vld [vmem:[#allocation33_spill] sm:$0xff]  ;;  %v3950_v60 = vrot.slane %v3948_v8, 5  ;;  %v13137_v29 = vld [vmem:[#allocation26_spill] sm:$0xff] }
 0x1d6   : > { %v4871_v19 = vsel %vm9110_vm6, %v4866_v50, %v4870_v2  ;;  %v4881_v33 = vsel %vm9110_vm6, %v4876_v6, %v11445_v38  ;;  %vm13134_vm7 = vnez %v13133_v3  ;;  %v4292_v24 = vld [vmem:[#allocation2 + $0x2c] sm:$0xf]  ;;  %v7872_v1 = vld [vmem:[#allocation3 + $0x3c] sm:$0xf0]  ;;  %v7903_v25 = vor.u32 %v8726_v43, %v7900_v32  ;;  %v13135_v48 = vld [vmem:[#allocation25_spill] sm:$0xff] }
 0x1d7   : > { %v11463_v11 = vsel %vm13134_vm7, %v3838_v49, 0  ;;  %5196 = vst [vmem:[#allocation3 + $0x68] sm:$0xf] %v4871_v19  ;;  %v3945_v15 = vor.u32 %v3944_v51, %v11413_v7  ;;  %vm13136_vm8 = vnez %v13135_v48  ;;  %vm13138_vm5 = vnez %v13137_v29  ;;  %v4777_v51 = vld [vmem:[#allocation2 + $0x2c] sm:$0xf] }
 0x1d8   : > { %6959 = vmatmul.bf16.gmra.mxu2 %v8395_v16  ;;  %v3954_v16 = vrot.slane %v3952_v13, 4  ;;  %v3958_v58 = vshll.u32 %v11463_v11, 16  ;;  %v11467_v2 = vpop.f32.mrf.mxu1  ;;  %5197 = vst [vmem:[#allocation3 + $0x8c] sm:$0xf] %v4881_v33  ;;  %v4324_v27 = vsel %vm13136_vm8, %v4291_v18, 0  ;;  %v4325_v17 = vsel %vm13138_vm5, %v4292_v24, 0 }
 0x1d9   : > { %v11474_v57 = vadd.f32 %v11389_v20, %v7007_v54  ;;  %v11476_v43 = vpop.f32.mrf.mxu3  ;;  %v4882_v7 = vshrl.u32 %v11429_v28, 16  ;;  %v3946_v13 = vrot.slane %v3945_v15, 4  ;;  %v7875_v6 = vor.u32 %v8718_v56, %v7872_v1  ;;  %v4778_v18 = vld [vmem:[#allocation2 + $0x30] sm:$0xf]  ;;  %v4712_v33 = vld [vmem:[#allocation2 + $0x28] sm:$0xf] }
 0x1da   : > { %v6920_v8 = vpop.f32.mrf.mxu2  ;;  %v3955_v32 = vor.u32 %v3954_v16, %v3950_v60  ;;  %v11479_v12 = vrot.slane %v3958_v58, 5  ;;  %v11481_v50 = vpop.f32.mrf.mxu0  ;;  %v4392_v44 = vrot.slane %v11423_v61, 4  ;;  %v4394_v49 = vshrl.u32 %v4324_v27, 16  ;;  %v7870_v15 = vld [vmem:[#allocation3 + $0x18] sm:$0xf] }
 0x1db   : > { %13139 = vst [vmem:[#allocation58_spill] sm:$0xff] %v11474_v57  ;;  %v6921_v46 = vadd.f32 %v6920_v8, %v6832_v45  ;;  %v3951_v20 = vsel %vm9110_vm6, %v3946_v13, %v3950_v60  ;;  %v4397_v19 = vshll.u32 %v4324_v27, 16  ;;  %v4403_v28 = vshrl.u32 %v4325_v17, 16  ;;  %v4713_v56 = vld [vmem:[#allocation2 + $0x2c] sm:$0xf] }
 0x1dc   : > { %7156 = vmatmul.bf16.gmra.mxu1 %v7903_v25  ;;  %v3956_v54 = vrot.slane %v3955_v32, 4  ;;  %7418 = vmatmul.bf16.vlgmr.msra.gmra.mxu0 %v7879_v53  ;;  %4258 = vst [vmem:[#allocation3 + $0xa4] sm:$0xf] %v3951_v20  ;;  %v4396_v45 = vrot.slane %v4394_v49, 7  ;;  %v4406_v16 = vshll.u32 %v4325_v17, 16  ;;  %v4810_v60 = vsel %vm13131_vm0, %v4777_v51, 0 }
 0x1dd   : > { %v7010_v24 = vadd.f32 %v7009_v63, %v6921_v46  ;;  %v11489_v1 = vrot.slane %v4403_v28, 7  ;;  %4744 = vst [vmem:[#allocation3 + $0xac] sm:$0xf] %v4712_v33  ;;  %v11495_v25 = vsel %vm13134_vm7, %v4778_v18, 0  ;;  %v8722_v63 = vld [vmem:[#allocation3 + $0x38] sm:$0xf0]  ;;  %7329 = vmatmul.bf16.vlgmr.msra.gmra.mxu3 %v7875_v6  ;;  %v6834_v13 = vadd.f32 %v11384_v37, %v13141_v5 }
 0x1de   : > { %v3961_v61 = vsel %vm9110_vm6, %v3956_v54, %v11479_v12  ;;  %v4399_v58 = vor.u32 %v4397_v19, %v4396_v45  ;;  %v4401_v53 = vrot.slane %v4396_v45, 4  ;;  %v4884_v48 = vrot.slane %v4882_v7, 4  ;;  %4745 = vst [vmem:[#allocation3 + $0xd0] sm:$0xf] %v4713_v56  ;;  %v3839_v54 = vld [vmem:[#allocation2 + $0x2c] sm:$0xf] }
 0x1df   : > { %4259 = vst [vmem:[#allocation3 + $0xc8] sm:$0xf] %v3961_v61  ;;  %v11498_v27 = vadd.f32 %v11415_v0, %v7010_v24  ;;  %v4408_v29 = vor.u32 %v4406_v16, %v11489_v1  ;;  %v4888_v17 = vshll.u32 %v4810_v60, 16  ;;  %v4892_v8 = vshrl.u32 %v4810_v60, 16  ;;  %v7914_v24 = vld [vmem:[#allocation3 + $0x68] sm:$0xf] }
 0x1e0   : > { %v11503_v3 = vpop.f32.mrf.mxu1  ;;  %v4400_v32 = vsel %vm9238_vm11, %v4392_v44, %v4399_v58  ;;  %v4885_v46 = vor.u32 %v4884_v48, %v11445_v38  ;;  %v4898_v7 = vshll.u32 %v11495_v25, 16  ;;  %v7871_v0 = vor.u32 %v8722_v63, %v7870_v15  ;;  %v13142_v38 = vld [vmem:[#allocation34_spill] sm:$0xff]  ;;  %v8727_v60 = vld [vmem:[#allocation3 + $0x64] sm:$0xf]  ;;  %v7908_v63 = vld [vmem:[#allocation3 + $0x84] sm:$0xf0] }
 0x1e1   : > { %13140 = vst [vmem:[#allocation46_spill] sm:$0xff] %v11498_v27  ;;  %v7014_v49 = vpop.f32.mrf.mxu3  ;;  %v4409_v51 = vsel %vm9238_vm11, %v4401_v53, %v4408_v29  ;;  %v4890_v18 = vrot.slane %v4888_v17, 5  ;;  %v4894_v20 = vrot.slane %v4892_v8, 4  ;;  %vm13143_vm9 = vnez %v13142_v38  ;;  %v8732_v58 = vld [vmem:[#allocation3 + $0x88] sm:$0xf0]  ;;  %v13144_v5 = vld [vmem:[#allocation38_spill] sm:$0xff] }
 0x1e2   : > { %v6922_v6 = vpop.f32.mrf.mxu2  ;;  %4680 = vst [vmem:[#allocation3 + $0xa8] sm:$0xf] %v4400_v32  ;;  %v11511_v19 = vpop.f32.mrf.mxu0  ;;  %v4886_v28 = vrot.slane %v4885_v46, 4  ;;  %v11513_v44 = vrot.slane %v4898_v7, 5  ;;  %v3872_v33 = vsel %vm13143_vm9, %v3839_v54, 0  ;;  %v3962_v15 = vshrl.u32 %v11463_v11, 16 }
 0x1e3   : > { %v6923_v37 = vadd.f32 %v6922_v6, %v6834_v13  ;;  %4681 = vst [vmem:[#allocation3 + $0xcc] sm:$0xf] %v4409_v51  ;;  %v4895_v45 = vor.u32 %v4894_v20, %v4890_v18  ;;  %v3968_v16 = vshll.u32 %v3872_v33, 16  ;;  %v3972_v56 = vshrl.u32 %v3872_v33, 16  ;;  %v8735_v53 = vld [vmem:[#allocation3 + $0xa4] sm:$0xf] }
 0x1e4   : > { %v4891_v48 = vsel %vm9110_vm6, %v4886_v28, %v4890_v18  ;;  %v4293_v29 = vld [vmem:[#allocation2 + $0x30] sm:$0xf]  ;;  %v6837_v13 = vadd.f32 %v11407_v9, %v13144_v5  ;;  %v3964_v32 = vrot.slane %v3962_v15, 4  ;;  %v4294_v7 = vld [vmem:[#allocation2 + $0x34] sm:$0xf]  ;;  %v4410_v5 = vrot.slane %v11489_v1, 4 }
 0x1e5   : > { %v7012_v61 = vadd.f32 %v11476_v43, %v6923_v37  ;;  %v4896_v8 = vrot.slane %v4895_v45, 4  ;;  %5198 = vst [vmem:[#allocation3 + $0xb0] sm:$0xf] %v4891_v48  ;;  %v3840_v11 = vld [vmem:[#allocation2 + $0x30] sm:$0xf]  ;;  %v3970_v46 = vrot.slane %v3968_v16, 5  ;;  %v7915_v37 = vor.u32 %v8732_v58, %v7914_v24 }
 0x1e6   : > { %v7936_v17 = vld [vmem:[#allocation3 + $0xc4] sm:$0xf0]  ;;  %v13146_v18 = vld [vmem:[#allocation35_spill] sm:$0xff]  ;;  %v3974_v54 = vrot.slane %v3972_v56, 4  ;;  %v7911_v16 = vor.u32 %v8727_v60, %v7908_v63  ;;  %v13150_v48 = vld [vmem:[#allocation4_spill] sm:$0xff] }
 0x1e7   : > { %v11524_v43 = vadd.f32 %v11447_v21, %v7012_v61  ;;  %v7939_v6 = vor.u32 %v8735_v53, %v7936_v17  ;;  %v4901_v51 = vsel %vm9110_vm6, %v4896_v8, %v11513_v44  ;;  %vm13147_vm15 = vnez %v13146_v18  ;;  %v13148_v21 = vld [vmem:[#allocation29_spill] sm:$0xff]  ;;  %v4779_v56 = vld [vmem:[#allocation2 + $0x34] sm:$0xf] }
 0x1e8   : > { %7240 = vmatmul.bf16.vlgmr.msra.gmra.mxu2 %v7871_v0  ;;  %v11531_v20 = vsel %vm13147_vm15, %v3840_v11, 0  ;;  %v11533_v9 = vpop.f32.mrf.mxu1  ;;  %5199 = vst [vmem:[#allocation3 + $0xd4] sm:$0xf] %v4901_v51  ;;  %v3965_v0 = vor.u32 %v3964_v32, %v11479_v12  ;;  %vm13149_vm10 = vnez %v13148_v21  ;;  %v4902_v61 = vshrl.u32 %v11495_v25, 16  ;;  %v7906_v51 = vld [vmem:[#allocation3 + $0x60] sm:$0xf] }
 0x1e9   : > { %13145 = vst [vmem:[#allocation43_spill] sm:$0xff] %v11524_v43  ;;  %v3978_v28 = vshll.u32 %v11531_v20, 16  ;;  %v4326_v33 = vsel %vm13149_vm10, %v4293_v29, 0  ;;  %v11539_v45 = vpop.f32.mrf.mxu3  ;;  %v3975_v53 = vor.u32 %v3974_v54, %v3970_v46  ;;  %vm13151_vm0 = vnez %v13150_v48  ;;  %v4780_v29 = vld [vmem:[#allocation2 + $0x38] sm:$0xf] }
 0x1ea   : > { %v6925_v15 = vpop.f32.mrf.mxu2  ;;  %v4327_v24 = vsel %vm13151_vm0, %v4294_v7, 0  ;;  %v11544_v17 = vpop.f32.mrf.mxu0  ;;  %v3966_v12 = vrot.slane %v3965_v0, 4  ;;  %v4412_v32 = vshrl.u32 %v4326_v33, 16  ;;  %v4415_v60 = vshll.u32 %v4326_v33, 16  ;;  %v8731_v54 = vld [vmem:[#allocation3 + $0x80] sm:$0xf0] }
 0x1eb   : > { %v6926_v58 = vadd.f32 %v6925_v15, %v6837_v13  ;;  %v11546_v8 = vrot.slane %v3978_v28, 5  ;;  %v3976_v11 = vrot.slane %v3975_v53, 4  ;;  %v4421_v63 = vshrl.u32 %v4327_v24, 16  ;;  %v4714_v21 = vld [vmem:[#allocation2 + $0x30] sm:$0xf] }
 0x1ec   : > { %7161 = vmatmul.bf16.gmra.mxu1 %v7939_v6  ;;  %7423 = vmatmul.bf16.gmra.mxu0 %v7915_v37  ;;  %v3971_v13 = vsel %vm9110_vm6, %v3966_v12, %v3970_v46  ;;  %v4424_v7 = vshll.u32 %v4327_v24, 16  ;;  %v4715_v0 = vld [vmem:[#allocation2 + $0x34] sm:$0xf]  ;;  %v4812_v28 = vsel %vm13143_vm9, %v4779_v56, 0  ;;  %v4414_v6 = vrot.slane %v4412_v32, 7 }
 0x1ed   : > { %v7015_v25 = vadd.f32 %v7014_v49, %v6926_v58  ;;  %v3981_v1 = vsel %vm9110_vm6, %v3976_v11, %v11546_v8  ;;  %4260 = vst [vmem:[#allocation3 + $0xec] sm:$0xf] %v3971_v13  ;;  %v11556_v33 = vrot.slane %v4421_v63, 7  ;;  %v11560_v49 = vsel %vm13147_vm15, %v4780_v29, 0  ;;  %7334 = vmatmul.bf16.gmra.mxu3 %v7911_v16  ;;  %v13153_v58 = vld [vmem:[#allocation42_spill] sm:$0xff] }
 0x1ee   : > { %4261 = vst [vmem:[#allocation3 + $0x110] sm:$0xf] %v3981_v1  ;;  %v4904_v46 = vrot.slane %v4902_v61, 4  ;;  %v4908_v37 = vshll.u32 %v4812_v28, 16  ;;  %v4912_v15 = vshrl.u32 %v4812_v28, 16  ;;  %v4918_v38 = vshll.u32 %v11560_v49, 16 }
 0x1ef   : > { %v4417_v53 = vor.u32 %v4415_v60, %v4414_v6  ;;  %v4419_v48 = vrot.slane %v4414_v6, 4  ;;  %v4426_v24 = vor.u32 %v4424_v7, %v11556_v33  ;;  %4746 = vst [vmem:[#allocation3 + $0xf4] sm:$0xf] %v4714_v21  ;;  %v11565_v56 = vadd.f32 %v11481_v50, %v7015_v25  ;;  %v8741_v28 = vld [vmem:[#allocation3 + $0xd0] sm:$0xf0] }
 0x1f0   : > { %v6839_v18 = vadd.f32 %v11441_v47, %v13153_v58  ;;  %v11569_v12 = vpop.f32.mrf.mxu1  ;;  %4747 = vst [vmem:[#allocation3 + $0x118] sm:$0xf] %v4715_v0  ;;  %v4905_v16 = vor.u32 %v4904_v46, %v11513_v44  ;;  %v4910_v61 = vrot.slane %v4908_v37, 5  ;;  %v4914_v29 = vrot.slane %v4912_v15, 4  ;;  %v3841_v47 = vld [vmem:[#allocation2 + $0x34] sm:$0xf] }
 0x1f1   : > { %13152 = vst [vmem:[#allocation44_spill] sm:$0xff] %v11565_v56  ;;  %v7907_v32 = vor.u32 %v8731_v54, %v7906_v51  ;;  %v11572_v60 = vpop.f32.mrf.mxu3  ;;  %v4418_v63 = vsel %vm9238_vm11, %v4410_v5, %v4417_v53  ;;  %v4427_v50 = vsel %vm9238_vm11, %v4419_v48, %v4426_v24  ;;  %v11578_v25 = vrot.slane %v4918_v38, 5  ;;  %v13154_v0 = vld [vmem:[#allocation36_spill] sm:$0xff]  ;;  %v7950_v54 = vld [vmem:[#allocation3 + $0xb0] sm:$0xf]  ;;  %v13156_v24 = vld [vmem:[#allocation47_spill] sm:$0xff] }
 0x1f2   : > { %v6927_v11 = vpop.f32.mrf.mxu2  ;;  %v11580_v7 = vpop.f32.mrf.mxu0  ;;  %4682 = vst [vmem:[#allocation3 + $0xf0] sm:$0xf] %v4418_v63  ;;  %v4906_v44 = vrot.slane %v4905_v16, 4  ;;  %v4915_v21 = vor.u32 %v4914_v29, %v4910_v61  ;;  %vm13155_vm7 = vnez %v13154_v0  ;;  %v3982_v1 = vshrl.u32 %v11531_v20, 16  ;;  %v8736_v37 = vld [vmem:[#allocation3 + $0xac] sm:$0xf] }
 0x1f3   : > { %v6928_v13 = vadd.f32 %v6927_v11, %v6839_v18  ;;  %v3874_v51 = vsel %vm13155_vm7, %v3841_v47, 0  ;;  %4683 = vst [vmem:[#allocation3 + $0x114] sm:$0xf] %v4427_v50  ;;  %v4295_v48 = vld [vmem:[#allocation2 + $0x38] sm:$0xf]  ;;  %v6842_v58 = vadd.f32 %v11467_v2, %v13156_v24 }
 0x1f4   : > { %v3988_v5 = vshll.u32 %v3874_v51, 16  ;;  %v3992_v6 = vshrl.u32 %v3874_v51, 16  ;;  %v8744_v15 = vld [vmem:[#allocation3 + $0xec] sm:$0xf]  ;;  %v4911_v38 = vsel %vm9110_vm6, %v4906_v44, %v4910_v61  ;;  %v4916_v53 = vrot.slane %v4915_v21, 4 }
 0x1f5   : > { %v7017_v46 = vadd.f32 %v11539_v45, %v6928_v13  ;;  %v7972_v18 = vld [vmem:[#allocation3 + $0x10c] sm:$0xf0]  ;;  %5200 = vst [vmem:[#allocation3 + $0xf8] sm:$0xf] %v4911_v38  ;;  %v3984_v16 = vrot.slane %v3982_v1, 4  ;;  %v13157_v61 = vld [vmem:[#allocation37_spill] sm:$0xff]  ;;  %v7951_v21 = vor.u32 %v8741_v28, %v7950_v54 }
 0x1f6   : > { %v7944_v20 = vld [vmem:[#allocation3 + $0xcc] sm:$0xf0]  ;;  %v7975_v29 = vor.u32 %v8744_v15, %v7972_v18  ;;  %v4921_v45 = vsel %vm9110_vm6, %v4916_v53, %v11578_v25  ;;  %v3842_v11 = vld [vmem:[#allocation2 + $0x38] sm:$0xf]  ;;  %v3990_v63 = vrot.slane %v3988_v5, 5  ;;  %v3994_v50 = vrot.slane %v3992_v6, 4 }
 0x1f7   : > { %5201 = vst [vmem:[#allocation3 + $0x11c] sm:$0xf] %v4921_v45  ;;  %vm13158_vm8 = vnez %v13157_v61  ;;  %v3985_v2 = vor.u32 %v3984_v16, %v11546_v8  ;;  %v13159_v13 = vld [vmem:[#allocation6_spill] sm:$0xff]  ;;  %v4296_v6 = vld [vmem:[#allocation2 + $0x3c] sm:$0xf]  ;;  %v7947_v24 = vor.u32 %v8736_v37, %v7944_v20  ;;  %v4922_v18 = vshrl.u32 %v11560_v49, 16 }
 0x1f8   : > { %7245 = vmatmul.bf16.gmra.mxu2 %v7907_v32  ;;  %v11595_v47 = vsel %vm13158_vm8, %v3842_v11, 0  ;;  %vm13160_vm5 = vnez %v13159_v13  ;;  %v11601_v32 = vadd.f32 %v11511_v19, %v7017_v46  ;;  %v11603_v51 = vpop.f32.mrf.mxu1  ;;  %v3995_v1 = vor.u32 %v3994_v50, %v3990_v63  ;;  %v13162_v16 = vld [vmem:[#allocation5_spill] sm:$0xff]  ;;  %v4781_v11 = vld [vmem:[#allocation2 + $0x3c] sm:$0xf]  ;;  %v4729_v56 = vld [vmem:[#allocation2 + $0x6c] sm:$0xf] }
 0x1f9   : > { %v4328_v44 = vsel %vm13160_vm5, %v4295_v48, 0  ;;  %v3998_v5 = vshll.u32 %v11595_v47, 16  ;;  %v7021_v53 = vpop.f32.mrf.mxu3  ;;  %v3986_v8 = vrot.slane %v3985_v2, 4  ;;  %vm13163_vm9 = vnez %v13162_v16  ;;  %v4716_v2 = vld [vmem:[#allocation2 + $0x38] sm:$0xf] }
 0x1fa   : > { %13161 = vst [vmem:[#allocation30_spill] sm:$0xff] %v11601_v32  ;;  %v4430_v15 = vshrl.u32 %v4328_v44, 16  ;;  %v6930_v38 = vpop.f32.mrf.mxu2  ;;  %v4329_v48 = vsel %vm13163_vm9, %v4296_v6, 0  ;;  %v11609_v19 = vpop.f32.mrf.mxu0  ;;  %v3996_v54 = vrot.slane %v3995_v1, 4  ;;  %v4428_v37 = vrot.slane %v11556_v33, 4 }
 0x1fb   : > { %v6931_v45 = vadd.f32 %v6930_v38, %v6842_v58  ;;  %v11611_v28 = vrot.slane %v3998_v5, 5  ;;  %v3991_v50 = vsel %vm9110_vm6, %v3986_v8, %v3990_v63  ;;  %v4433_v20 = vshll.u32 %v4328_v44, 16  ;;  %v4717_v6 = vld [vmem:[#allocation2 + $0x3c] sm:$0xf]  ;;  %v4782_v63 = vld [vmem:[#allocation2 + $0x40] sm:$0xf] }
 0x1fc   : > { %v4432_v46 = vrot.slane %v4430_v15, 7  ;;  %7166 = vmatmul.bf16.gmra.mxu1 %v7975_v29  ;;  %v4439_v49 = vshrl.u32 %v4329_v48, 16  ;;  %7428 = vmatmul.bf16.gmra.mxu0 %v7951_v21  ;;  %4262 = vst [vmem:[#allocation3 + $0x134] sm:$0xf] %v3991_v50  ;;  %v4442_v5 = vshll.u32 %v4329_v48, 16  ;;  %v4814_v33 = vsel %vm13155_vm7, %v4781_v11, 0 }
 0x1fd   : > { %v7020_v13 = vadd.f32 %v11572_v60, %v6931_v45  ;;  %v4001_v58 = vsel %vm9110_vm6, %v3996_v54, %v11611_v28  ;;  %v7942_v44 = vld [vmem:[#allocation3 + $0xa8] sm:$0xf]  ;;  %7339 = vmatmul.bf16.gmra.mxu3 %v7947_v24  ;;  %4748 = vst [vmem:[#allocation3 + $0x13c] sm:$0xf] %v4716_v2  ;;  %v11626_v60 = vsel %vm13158_vm8, %v4782_v63, 0  ;;  %v4924_v21 = vrot.slane %v4922_v18, 4 }
 0x1fe   : > { %v4437_v1 = vrot.slane %v4432_v46, 4  ;;  %4263 = vst [vmem:[#allocation3 + $0x158] sm:$0xf] %v4001_v58  ;;  %v4435_v29 = vor.u32 %v4433_v20, %v4432_v46  ;;  %v11620_v15 = vrot.slane %v4439_v49, 7  ;;  %v8740_v8 = vld [vmem:[#allocation3 + $0xc8] sm:$0xf0] }
 0x1ff   : > { %v11629_v38 = vadd.f32 %v11544_v17, %v7020_v13  ;;  %4749 = vst [vmem:[#allocation3 + $0x160] sm:$0xf] %v4717_v6  ;;  %v4928_v0 = vshll.u32 %v4814_v33, 16  ;;  %v13165_v45 = vld [vmem:[#allocation53_spill] sm:$0xff]  ;;  %v4925_v61 = vor.u32 %v4924_v21, %v11578_v25  ;;  %v4932_v18 = vshrl.u32 %v4814_v33, 16  ;;  %v13166_v63 = vld [vmem:[#allocation40_spill] sm:$0xff] }
 0x200   : > { %v4436_v16 = vsel %vm9238_vm11, %v4428_v37, %v4435_v29  ;;  %v4444_v48 = vor.u32 %v4442_v5, %v11620_v15  ;;  %v6844_v24 = vadd.f32 %v11503_v3, %v13165_v45  ;;  %v11636_v54 = vpop.f32.mrf.mxu1  ;;  %v4938_v17 = vshll.u32 %v11626_v60, 16  ;;  %v3843_v20 = vld [vmem:[#allocation2 + $0x3c] sm:$0xf]  ;;  %v7986_v5 = vld [vmem:[#allocation3 + $0xf8] sm:$0xf] }
 0x201   : > { %13164 = vst [vmem:[#allocation48_spill] sm:$0xff] %v11629_v38  ;;  %v11640_v11 = vpop.f32.mrf.mxu3  ;;  %v4930_v37 = vrot.slane %v4928_v0, 5  ;;  %v7943_v2 = vor.u32 %v8740_v8, %v7942_v44  ;;  %v4926_v3 = vrot.slane %v4925_v61, 4  ;;  %v4934_v58 = vrot.slane %v4932_v18, 4  ;;  %v8745_v0 = vld [vmem:[#allocation3 + $0xf4] sm:$0xf] }
 0x202   : > { %4684 = vst [vmem:[#allocation3 + $0x138] sm:$0xf] %v4436_v16  ;;  %v6932_v46 = vpop.f32.mrf.mxu2  ;;  %v4445_v50 = vsel %vm9238_vm11, %v4437_v1, %v4444_v48  ;;  %v11644_v13 = vpop.f32.mrf.mxu0  ;;  %v4002_v25 = vshrl.u32 %v11595_v47, 16  ;;  %v11647_v29 = vrot.slane %v4938_v17, 5  ;;  %vm13167_vm15 = vnez %v13166_v63  ;;  %v8750_v1 = vld [vmem:[#allocation3 + $0x118] sm:$0xf0] }
 0x203   : > { %v6933_v49 = vadd.f32 %v6932_v46, %v6844_v24  ;;  %4685 = vst [vmem:[#allocation3 + $0x15c] sm:$0xf] %v4445_v50  ;;  %v8753_v6 = vld [vmem:[#allocation3 + $0x134] sm:$0xf]  ;;  %v3876_v33 = vsel %vm13167_vm15, %v3843_v20, 0  ;;  %v4931_v44 = vsel %vm9110_vm6, %v4926_v3, %v4930_v37  ;;  %v4935_v8 = vor.u32 %v4934_v58, %v4930_v37  ;;  %v13168_v61 = vld [vmem:[#allocation59_spill] sm:$0xff] }
 0x204   : > { %v4008_v48 = vshll.u32 %v3876_v33, 16  ;;  %5202 = vst [vmem:[#allocation3 + $0x140] sm:$0xf] %v4931_v44  ;;  %v4004_v45 = vrot.slane %v4002_v25, 4  ;;  %v4297_v24 = vld [vmem:[#allocation2 + $0x40] sm:$0xf]  ;;  %v6847_v47 = vadd.f32 %v11533_v9, %v13168_v61  ;;  %v7987_v44 = vor.u32 %v8750_v1, %v7986_v5 }
 0x205   : > { %v7022_v21 = vadd.f32 %v7021_v53, %v6933_v49  ;;  %v8008_v16 = vld [vmem:[#allocation3 + $0x154] sm:$0xf0]  ;;  %v4936_v17 = vrot.slane %v4935_v8, 4  ;;  %v3844_v46 = vld [vmem:[#allocation2 + $0x40] sm:$0xf]  ;;  %v13170_v49 = vld [vmem:[#allocation41_spill] sm:$0xff] }
 0x206   : > { %v8011_v18 = vor.u32 %v8753_v6, %v8008_v16  ;;  %v4298_v50 = vld [vmem:[#allocation2 + $0x44] sm:$0xf]  ;;  %v7980_v20 = vld [vmem:[#allocation3 + $0x114] sm:$0xf0]  ;;  %vm13171_vm10 = vnez %v13170_v49  ;;  %v4005_v3 = vor.u32 %v4004_v45, %v11611_v28  ;;  %v4010_v58 = vrot.slane %v4008_v48, 5  ;;  %v13174_v16 = vld [vmem:[#allocation62_spill] sm:$0xff] }
 0x207   : > { %v11656_v53 = vadd.f32 %v11580_v7, %v7022_v21  ;;  %v11660_v37 = vsel %vm13171_vm10, %v3844_v46, 0  ;;  %v4012_v25 = vshrl.u32 %v3876_v33, 16  ;;  %v4941_v9 = vsel %vm9110_vm6, %v4936_v17, %v11647_v29  ;;  %v13172_v7 = vld [vmem:[#allocation13_spill] sm:$0xff]  ;;  %v13175_v33 = vld [vmem:[#allocation14_spill] sm:$0xff]  ;;  %4761 = vst [vmem:[#allocation3 + $0x310] sm:$0xf] %v4729_v56 }
 0x208   : > { %7250 = vmatmul.bf16.gmra.mxu2 %v7943_v2  ;;  %v11663_v38 = vpop.f32.mrf.mxu1  ;;  %v4018_v2 = vshll.u32 %v11660_v37, 16  ;;  %vm13173_vm0 = vnez %v13172_v7  ;;  %v6849_v8 = vadd.f32 %v11569_v12, %v13174_v16  ;;  %5203 = vst [vmem:[#allocation3 + $0x164] sm:$0xf] %v4941_v9  ;;  %v4006_v28 = vrot.slane %v4005_v3, 4  ;;  %v4718_v16 = vld [vmem:[#allocation2 + $0x40] sm:$0xf] }
 0x209   : > { %13169 = vst [vmem:[#allocation31_spill] sm:$0xff] %v11656_v53  ;;  %v4330_v6 = vsel %vm13173_vm0, %v4297_v24, 0  ;;  %v11673_v61 = vpop.f32.mrf.mxu3  ;;  %v4014_v5 = vrot.slane %v4012_v25, 4  ;;  %vm13176_vm7 = vnez %v13175_v33  ;;  %v7983_v17 = vor.u32 %v8745_v0, %v7980_v20  ;;  %v4783_v24 = vld [vmem:[#allocation2 + $0x44] sm:$0xf] }
 0x20a   : > { %v4331_v1 = vsel %vm13176_vm7, %v4298_v50, 0  ;;  %v11677_v45 = vpop.f32.mrf.mxu0  ;;  %v4942_v46 = vshrl.u32 %v11626_v60, 16  ;;  %v11680_v7 = vrot.slane %v4018_v2, 5  ;;  %v4784_v53 = vld [vmem:[#allocation2 + $0x48] sm:$0xf]  ;;  %v4011_v12 = vsel %vm9110_vm6, %v4006_v28, %v4010_v58 }
 0x20b   : > { %v6935_v21 = vpop.f32.mrf.mxu2  ;;  %v4015_v9 = vor.u32 %v4014_v5, %v4010_v58  ;;  %v4448_v3 = vshrl.u32 %v4330_v6, 16  ;;  %v4451_v25 = vshll.u32 %v4330_v6, 16  ;;  %v4719_v33 = vld [vmem:[#allocation2 + $0x44] sm:$0xf]  ;;  %v7978_v50 = vld [vmem:[#allocation3 + $0xf0] sm:$0xf] }
 0x20c   : > { %v6936_v48 = vadd.f32 %v6935_v21, %v6847_v47  ;;  %7171 = vmatmul.bf16.gmra.mxu1 %v8011_v18  ;;  %v8749_v21 = vld [vmem:[#allocation3 + $0x110] sm:$0xf0]  ;;  %7433 = vmatmul.bf16.gmra.mxu0 %v7987_v44  ;;  %4264 = vst [vmem:[#allocation3 + $0x17c] sm:$0xf] %v4011_v12  ;;  %v4446_v60 = vrot.slane %v11620_v15, 4  ;;  %v4457_v0 = vshrl.u32 %v4331_v1, 16 }
 0x20d   : > { %v4460_v20 = vshll.u32 %v4331_v1, 16  ;;  %v4016_v2 = vrot.slane %v4015_v9, 4  ;;  %v4450_v18 = vrot.slane %v4448_v3, 7  ;;  %4750 = vst [vmem:[#allocation3 + $0x184] sm:$0xf] %v4718_v16  ;;  %v4816_v58 = vsel %vm13167_vm15, %v4783_v24, 0  ;;  %7344 = vmatmul.bf16.gmra.mxu3 %v7983_v17 }
 0x20e   : > { %v7025_v47 = vadd.f32 %v11640_v11, %v6936_v48  ;;  %v11690_v6 = vsel %vm13171_vm10, %v4784_v53, 0  ;;  %v11692_v11 = vrot.slane %v4457_v0, 7  ;;  %4751 = vst [vmem:[#allocation3 + $0x1a8] sm:$0xf] %v4719_v33  ;;  %v4944_v44 = vrot.slane %v4942_v46, 4 }
 0x20f   : > { %v4948_v28 = vshll.u32 %v4816_v58, 16  ;;  %v4952_v5 = vshrl.u32 %v4816_v58, 16  ;;  %v4021_v15 = vsel %vm9110_vm6, %v4016_v2, %v11680_v7  ;;  %v4453_v1 = vor.u32 %v4451_v25, %v4450_v18  ;;  %v11698_v24 = vld [vmem:[#allocation3 + $0x13c] sm:$0xf]  ;;  %v11706_v33 = vld [vmem:[#allocation3 + $0x15c] sm:$0xf0] }
 0x210   : > { %v4455_v48 = vrot.slane %v4450_v18, 4  ;;  %v4958_v63 = vshll.u32 %v11690_v6, 16  ;;  %v11700_v49 = vpop.f32.mrf.mxu1  ;;  %4265 = vst [vmem:[#allocation3 + $0x1a0] sm:$0xf] %v4021_v15  ;;  %v4462_v53 = vor.u32 %v4460_v20, %v11692_v11  ;;  %v4945_v17 = vor.u32 %v4944_v44, %v11647_v29  ;;  %v3845_v2 = vld [vmem:[#allocation2 + $0x44] sm:$0xf] }
 0x211   : > { %v4950_v46 = vrot.slane %v4948_v28, 5  ;;  %v4954_v12 = vrot.slane %v4952_v5, 4  ;;  %v7979_v3 = vor.u32 %v8749_v21, %v7978_v50  ;;  %v11704_v16 = vpop.f32.mrf.mxu3  ;;  %v4454_v25 = vsel %vm9238_vm11, %v4446_v60, %v4453_v1  ;;  %v8022_v20 = vld [vmem:[#allocation3 + $0x140] sm:$0xf]  ;;  %v8759_v21 = vld [vmem:[#allocation3 + $0x160] sm:$0xf0] }
 0x212   : > { %v11710_v0 = vrot.slane %v4958_v63, 5  ;;  %v11712_v58 = vpop.f32.mrf.mxu0  ;;  %v4463_v29 = vsel %vm9238_vm11, %v4455_v48, %v4462_v53  ;;  %4686 = vst [vmem:[#allocation3 + $0x180] sm:$0xf] %v4454_v25  ;;  %v4946_v44 = vrot.slane %v4945_v17, 4  ;;  %v4022_v28 = vshrl.u32 %v11660_v37, 16  ;;  %v13179_v17 = vld [vmem:[#allocation67_spill] sm:$0xff] }
 0x213   : > { %v6937_v9 = vpop.f32.mrf.mxu2  ;;  %v4955_v50 = vor.u32 %v4954_v12, %v4950_v46  ;;  %4687 = vst [vmem:[#allocation3 + $0x1a4] sm:$0xf] %v4463_v29  ;;  %v3878_v60 = vsel %vm10513_vm3, %v3845_v2, 0  ;;  %v11720_v15 = vadd.f32 %v11609_v19, %v7025_v47  ;;  %v4299_v53 = vld [vmem:[#allocation2 + $0x48] sm:$0xf]  ;;  %v6852_v12 = vadd.f32 %v11603_v51, %v13179_v17 }
 0x214   : > { %v6938_v18 = vadd.f32 %v6937_v9, %v6849_v8  ;;  %v4951_v1 = vsel %vm9110_vm6, %v4946_v44, %v4950_v46  ;;  %v4028_v48 = vshll.u32 %v3878_v60, 16  ;;  %v8019_v37 = vor.u32 %v11698_v24, %v11706_v33  ;;  %v8762_v9 = vld [vmem:[#allocation3 + $0x17c] sm:$0xf]  ;;  %v3846_v47 = vld [vmem:[#allocation2 + $0x48] sm:$0xf] }
 0x215   : > { %13178 = vst [vmem:[#allocation19_spill] sm:$0xff] %v11720_v15  ;;  %v4956_v63 = vrot.slane %v4955_v50, 4  ;;  %v4024_v25 = vrot.slane %v4022_v28, 4  ;;  %v8023_v19 = vor.u32 %v8759_v21, %v8022_v20  ;;  %v4032_v2 = vshrl.u32 %v3878_v60, 16  ;;  %v13181_v33 = vld [vmem:[#allocation21_spill] sm:$0xff] }
 0x216   : > { %v7027_v8 = vadd.f32 %v11673_v61, %v6938_v18  ;;  %5204 = vst [vmem:[#allocation3 + $0x188] sm:$0xf] %v4951_v1  ;;  %v4030_v46 = vrot.slane %v4028_v48, 5  ;;  %v4300_v18 = vld [vmem:[#allocation2 + $0x4c] sm:$0xf]  ;;  %v11734_v51 = vsel %vm10518_vm1, %v3846_v47, 0  ;;  %vm13182_vm8 = vnez %v13181_v33 }
 0x217   : > { %v4961_v61 = vsel %vm9110_vm6, %v4956_v63, %v11710_v0  ;;  %v8044_v29 = vld [vmem:[#allocation3 + $0x19c] sm:$0xf0]  ;;  %v4025_v24 = vor.u32 %v4024_v25, %v11680_v7  ;;  %v4034_v28 = vrot.slane %v4032_v2, 4  ;;  %v4038_v60 = vshll.u32 %v11734_v51, 16  ;;  %v13184_v1 = vld [vmem:[#allocation22_spill] sm:$0xff] }
 0x218   : > { %7255 = vmatmul.bf16.gmra.mxu2 %v7979_v3  ;;  %5205 = vst [vmem:[#allocation3 + $0x1ac] sm:$0xf] %v4961_v61  ;;  %v4332_v3 = vsel %vm13182_vm8, %v4299_v53, 0  ;;  %v11740_v20 = vadd.f32 %v11644_v13, %v7027_v8  ;;  %v11742_v50 = vpop.f32.mrf.mxu1  ;;  %v8047_v21 = vor.u32 %v8762_v9, %v8044_v29  ;;  %vm13185_vm5 = vnez %v13184_v1  ;;  %v4785_v2 = vld [vmem:[#allocation2 + $0x4c] sm:$0xf] }
 0x219   : > { %v4333_v63 = vsel %vm13185_vm5, %v4300_v18, 0  ;;  %v7031_v17 = vpop.f32.mrf.mxu3  ;;  %v4962_v61 = vshrl.u32 %v11690_v6, 16  ;;  %v4026_v7 = vrot.slane %v4025_v24, 4  ;;  %v4464_v25 = vrot.slane %v11692_v11, 4  ;;  %v4786_v29 = vld [vmem:[#allocation2 + $0x50] sm:$0xf] }
 0x21a   : > { %13183 = vst [vmem:[#allocation20_spill] sm:$0xff] %v11740_v20  ;;  %v4466_v53 = vshrl.u32 %v4332_v3, 16  ;;  %v11749_v13 = vpop.f32.mrf.mxu0  ;;  %v4035_v8 = vor.u32 %v4034_v28, %v4030_v46  ;;  %v11751_v33 = vrot.slane %v4038_v60, 5  ;;  %v4469_v9 = vshll.u32 %v4332_v3, 16  ;;  %v4720_v6 = vld [vmem:[#allocation2 + $0x48] sm:$0xf] }
 0x21b   : > { %v6940_v48 = vpop.f32.mrf.mxu2  ;;  %v4031_v18 = vsel %vm9110_vm6, %v4026_v7, %v4030_v46  ;;  %v4475_v20 = vshrl.u32 %v4333_v63, 16  ;;  %v4721_v24 = vld [vmem:[#allocation2 + $0x4c] sm:$0xf]  ;;  %4752 = vst [vmem:[#allocation3 + $0x1cc] sm:$0xf] %v4720_v6  ;;  %v4818_v3 = vsel %vm10513_vm3, %v4785_v2, 0 }
 0x21c   : > { %v6941_v47 = vadd.f32 %v6940_v48, %v6852_v12  ;;  %7176 = vmatmul.bf16.gmra.mxu1 %v8047_v21  ;;  %v4468_v1 = vrot.slane %v4466_v53, 7  ;;  %7438 = vmatmul.bf16.gmra.mxu0 %v8023_v19  ;;  %v4036_v12 = vrot.slane %v4035_v8, 4  ;;  %4266 = vst [vmem:[#allocation3 + $0x1c4] sm:$0xf] %v4031_v18  ;;  %v4478_v48 = vshll.u32 %v4333_v63, 16  ;;  %v13187_v53 = vld [vmem:[#allocation71_spill] sm:$0xff] }
 0x21d   : > { %v11756_v15 = vrot.slane %v4475_v20, 7  ;;  %v8014_v21 = vld [vmem:[#allocation3 + $0x138] sm:$0xf]  ;;  %7349 = vmatmul.bf16.gmra.mxu3 %v8019_v37  ;;  %4753 = vst [vmem:[#allocation3 + $0x1f0] sm:$0xf] %v4721_v24  ;;  %v4964_v19 = vrot.slane %v4962_v61, 4 }
 0x21e   : > { %v7030_v11 = vadd.f32 %v11704_v16, %v6941_v47  ;;  %v4471_v28 = vor.u32 %v4469_v9, %v4468_v1  ;;  %v4473_v60 = vrot.slane %v4468_v1, 4  ;;  %v4041_v46 = vsel %vm9110_vm6, %v4036_v12, %v11751_v33  ;;  %v8758_v20 = vld [vmem:[#allocation3 + $0x158] sm:$0xf0]  ;;  %v3847_v18 = vld [vmem:[#allocation2 + $0x4c] sm:$0xf] }
 0x21f   : > { %v11765_v16 = vsel %vm10518_vm1, %v4786_v29, 0  ;;  %4267 = vst [vmem:[#allocation3 + $0x1e8] sm:$0xf] %v4041_v46  ;;  %v4480_v37 = vor.u32 %v4478_v48, %v11756_v15  ;;  %v4968_v7 = vshll.u32 %v4818_v3, 16  ;;  %v6854_v47 = vadd.f32 %v11636_v54, %v13187_v53  ;;  %v8058_v12 = vld [vmem:[#allocation3 + $0x188] sm:$0xf] }
 0x220   : > { %v11768_v63 = vadd.f32 %v11677_v45, %v7030_v11  ;;  %v4472_v5 = vsel %vm9238_vm11, %v4464_v25, %v4471_v28  ;;  %v11775_v8 = vpop.f32.mrf.mxu1  ;;  %v4965_v44 = vor.u32 %v4964_v19, %v11710_v0  ;;  %v4972_v61 = vshrl.u32 %v4818_v3, 16  ;;  %v8768_v0 = vld [vmem:[#allocation3 + $0x1a8] sm:$0xf0]  ;;  %v4302_v53 = vld [vmem:[#allocation2 + $0x54] sm:$0xf] }
 0x221   : > { %4688 = vst [vmem:[#allocation3 + $0x1c8] sm:$0xf] %v4472_v5  ;;  %v4978_v45 = vshll.u32 %v11765_v16, 16  ;;  %v11779_v2 = vpop.f32.mrf.mxu3  ;;  %v4481_v25 = vsel %vm9238_vm11, %v4473_v60, %v4480_v37  ;;  %v4970_v29 = vrot.slane %v4968_v7, 5  ;;  %v8015_v6 = vor.u32 %v8758_v20, %v8014_v21  ;;  %v4301_v37 = vld [vmem:[#allocation2 + $0x50] sm:$0xf] }
 0x222   : > { %13186 = vst [vmem:[#allocation54_spill] sm:$0xff] %v11768_v63  ;;  %v11783_v24 = vpop.f32.mrf.mxu0  ;;  %v4966_v54 = vrot.slane %v4965_v44, 4  ;;  %v4974_v11 = vrot.slane %v4972_v61, 4  ;;  %v4042_v48 = vshrl.u32 %v11734_v51, 16  ;;  %v3880_v46 = vsel %vm10571_vm4, %v3847_v18, 0 }
 0x223   : > { %v6942_v9 = vpop.f32.mrf.mxu2  ;;  %4689 = vst [vmem:[#allocation3 + $0x1ec] sm:$0xf] %v4481_v25  ;;  %v11786_v28 = vrot.slane %v4978_v45, 5  ;;  %v8771_v60 = vld [vmem:[#allocation3 + $0x1c4] sm:$0xf]  ;;  %v4048_v20 = vshll.u32 %v3880_v46, 16 }
 0x224   : > { %v6943_v1 = vadd.f32 %v6942_v9, %v6854_v47  ;;  %v4971_v5 = vsel %vm9110_vm6, %v4966_v54, %v4970_v29  ;;  %v4975_v21 = vor.u32 %v4974_v11, %v4970_v29  ;;  %v4044_v7 = vrot.slane %v4042_v48, 4  ;;  %v13189_v47 = vld [vmem:[#allocation39_spill] sm:$0xff]  ;;  %v3848_v45 = vld [vmem:[#allocation2 + $0x50] sm:$0xf]  ;;  %v8763_v25 = vld [vmem:[#allocation3 + $0x184] sm:$0xf] }
 0x225   : > { %5206 = vst [vmem:[#allocation3 + $0x1d0] sm:$0xf] %v4971_v5  ;;  %v6857_v44 = vadd.f32 %v11663_v38, %v13189_v47  ;;  %v4050_v9 = vrot.slane %v4048_v20, 5  ;;  %v8052_v18 = vld [vmem:[#allocation3 + $0x1a4] sm:$0xf0]  ;;  %v4052_v48 = vshrl.u32 %v3880_v46, 16  ;;  %v8059_v5 = vor.u32 %v8768_v0, %v8058_v12 }
 0x226   : > { %v7032_v19 = vadd.f32 %v7031_v17, %v6943_v1  ;;  %v8080_v51 = vld [vmem:[#allocation3 + $0x1e4] sm:$0xf0]  ;;  %v4976_v61 = vrot.slane %v4975_v21, 4  ;;  %v4045_v11 = vor.u32 %v4044_v7, %v11751_v33  ;;  %v13196_v0 = vld [vmem:[#allocation7_spill] sm:$0xff] }
 0x227   : > { %v8083_v1 = vor.u32 %v8771_v60, %v8080_v51  ;;  %v13191_v29 = vld [vmem:[#allocation57_spill] sm:$0xff]  ;;  %v4054_v12 = vrot.slane %v4052_v48, 4  ;;  %vm13197_vm9 = vnez %v13196_v0  ;;  %v4788_v63 = vld [vmem:[#allocation2 + $0x58] sm:$0xf]  ;;  %v4723_v0 = vld [vmem:[#allocation2 + $0x54] sm:$0xf] }
 0x228   : > { %7260 = vmatmul.bf16.gmra.mxu2 %v8015_v6  ;;  %v11795_v17 = vadd.f32 %v11712_v58, %v7032_v19  ;;  %vm13192_vm3 = vnez %v13191_v29  ;;  %v4981_v6 = vsel %vm9110_vm6, %v4976_v61, %v11786_v28  ;;  %v13193_v19 = vld [vmem:[#allocation27_spill] sm:$0xff]  ;;  %v13195_v20 = vld [vmem:[#allocation45_spill] sm:$0xff]  ;;  %v4046_v33 = vrot.slane %v4045_v11, 4  ;;  %4755 = vst [vmem:[#allocation3 + $0x238] sm:$0xf] %v4723_v0 }
 0x229   : > { %v11799_v54 = vsel %vm13192_vm3, %v3848_v45, 0  ;;  %v11802_v38 = vpop.f32.mrf.mxu1  ;;  %vm13194_vm1 = vnez %v13193_v19  ;;  %v6859_v47 = vadd.f32 %v11700_v49, %v13195_v20  ;;  %v11812_v51 = vpop.f32.mrf.mxu3  ;;  %5207 = vst [vmem:[#allocation3 + $0x1f4] sm:$0xf] %v4981_v6  ;;  %v4335_v46 = vsel %vm13197_vm9, %v4302_v53, 0  ;;  %v4722_v20 = vld [vmem:[#allocation2 + $0x50] sm:$0xf] }
 0x22a   : > { %13190 = vst [vmem:[#allocation32_spill] sm:$0xff] %v11795_v17  ;;  %v4058_v58 = vshll.u32 %v11799_v54, 16  ;;  %v4334_v21 = vsel %vm13194_vm1, %v4301_v37, 0  ;;  %v11816_v45 = vpop.f32.mrf.mxu0  ;;  %v8055_v61 = vor.u32 %v8763_v25, %v8052_v18  ;;  %v4982_v17 = vshrl.u32 %v11765_v16, 16  ;;  %v4787_v37 = vld [vmem:[#allocation2 + $0x54] sm:$0xf] }
 0x22b   : > { %v6945_v60 = vpop.f32.mrf.mxu2  ;;  %v4051_v49 = vsel %vm9110_vm6, %v4046_v33, %v4050_v9  ;;  %v4055_v6 = vor.u32 %v4054_v12, %v4050_v9  ;;  %v4484_v11 = vshrl.u32 %v4334_v21, 16  ;;  %v4487_v48 = vshll.u32 %v4334_v21, 16  ;;  %4754 = vst [vmem:[#allocation3 + $0x214] sm:$0xf] %v4722_v20  ;;  %v11845_v0 = vld [vmem:[#allocation3 + $0x1ec] sm:$0xf0] }
 0x22c   : > { %v6946_v7 = vadd.f32 %v6945_v60, %v6857_v44  ;;  %v11819_v19 = vrot.slane %v4058_v58, 5  ;;  %7181 = vmatmul.bf16.gmra.mxu1 %v8083_v1  ;;  %v8050_v44 = vld [vmem:[#allocation3 + $0x180] sm:$0xf]  ;;  %v8767_v60 = vld [vmem:[#allocation3 + $0x1a0] sm:$0xf0]  ;;  %7443 = vmatmul.bf16.gmra.mxu0 %v8059_v5  ;;  %v4482_v16 = vrot.slane %v11756_v15, 4 }
 0x22d   : > { %4268 = vst [vmem:[#allocation3 + $0x20c] sm:$0xf] %v4051_v49  ;;  %v4493_v25 = vshrl.u32 %v4335_v46, 16  ;;  %v4496_v18 = vshll.u32 %v4335_v46, 16  ;;  %v4056_v58 = vrot.slane %v4055_v6, 4  ;;  %v4486_v1 = vrot.slane %v4484_v11, 7  ;;  %7354 = vmatmul.bf16.gmra.mxu3 %v8055_v61 }
 0x22e   : > { %v7035_v53 = vadd.f32 %v11779_v2, %v6946_v7  ;;  %v4820_v9 = vsel %vm10571_vm4, %v4787_v37, 0  ;;  %v11829_v21 = vsel %vm13192_vm3, %v4788_v63, 0  ;;  %v4984_v5 = vrot.slane %v4982_v17, 4  ;;  %v11837_v37 = vld [vmem:[#allocation3 + $0x1cc] sm:$0xf] }
 0x22f   : > { %v11831_v2 = vrot.slane %v4493_v25, 7  ;;  %v4988_v33 = vshll.u32 %v4820_v9, 16  ;;  %v4992_v12 = vshrl.u32 %v4820_v9, 16  ;;  %v4061_v15 = vsel %vm9110_vm6, %v4056_v58, %v11819_v19  ;;  %v3849_v58 = vld [vmem:[#allocation2 + $0x54] sm:$0xf] }
 0x230   : > { %v4489_v46 = vor.u32 %v4487_v48, %v4486_v1  ;;  %v4491_v7 = vrot.slane %v4486_v1, 4  ;;  %v4998_v3 = vshll.u32 %v11829_v21, 16  ;;  %4269 = vst [vmem:[#allocation3 + $0x230] sm:$0xf] %v4061_v15  ;;  %v4985_v61 = vor.u32 %v4984_v5, %v11786_v28 }
 0x231   : > { %v11839_v29 = vpop.f32.mrf.mxu1  ;;  %v4498_v63 = vor.u32 %v4496_v18, %v11831_v2  ;;  %v4990_v17 = vrot.slane %v4988_v33, 5  ;;  %v4994_v49 = vrot.slane %v4992_v12, 4  ;;  %v8051_v11 = vor.u32 %v8767_v60, %v8050_v44  ;;  %v11843_v20 = vpop.f32.mrf.mxu3  ;;  %v8094_v18 = vld [vmem:[#allocation3 + $0x1d0] sm:$0xf]  ;;  %v8777_v60 = vld [vmem:[#allocation3 + $0x1f0] sm:$0xf0] }
 0x232   : > { %v4490_v48 = vsel %vm9238_vm11, %v4482_v16, %v4489_v46  ;;  %v11849_v25 = vrot.slane %v4998_v3, 5  ;;  %v11851_v9 = vpop.f32.mrf.mxu0  ;;  %v4986_v5 = vrot.slane %v4985_v61, 4  ;;  %v4062_v33 = vshrl.u32 %v11799_v54, 16  ;;  %v13198_v12 = vld [vmem:[#allocation65_spill] sm:$0xff]  ;;  %v13201_v61 = vld [vmem:[#allocation50_spill] sm:$0xff] }
 0x233   : > { %v6947_v6 = vpop.f32.mrf.mxu2  ;;  %v4499_v28 = vsel %vm9238_vm11, %v4491_v7, %v4498_v63  ;;  %4690 = vst [vmem:[#allocation3 + $0x210] sm:$0xf] %v4490_v48  ;;  %v4995_v44 = vor.u32 %v4994_v49, %v4990_v17  ;;  %vm13199_vm4 = vnez %v13198_v12  ;;  %v11859_v15 = vadd.f32 %v11749_v13, %v7035_v53  ;;  %v4303_v63 = vld [vmem:[#allocation2 + $0x58] sm:$0xf] }
 0x234   : > { %v6948_v1 = vadd.f32 %v6947_v6, %v6859_v47  ;;  %4691 = vst [vmem:[#allocation3 + $0x234] sm:$0xf] %v4499_v28  ;;  %v3882_v16 = vsel %vm13199_vm4, %v3849_v58, 0  ;;  %v4991_v46 = vsel %vm9110_vm6, %v4986_v5, %v4990_v17  ;;  %v6862_v49 = vadd.f32 %v11742_v50, %v13201_v61  ;;  %v8780_v6 = vld [vmem:[#allocation3 + $0x20c] sm:$0xf]  ;;  %v13202_v5 = vld [vmem:[#allocation66_spill] sm:$0xff] }
 0x235   : > { %13200 = vst [vmem:[#allocation60_spill] sm:$0xff] %v11859_v15  ;;  %v4996_v3 = vrot.slane %v4995_v44, 4  ;;  %v4068_v7 = vshll.u32 %v3882_v16, 16  ;;  %v8091_v54 = vor.u32 %v11837_v37, %v11845_v0  ;;  %v4064_v48 = vrot.slane %v4062_v33, 4  ;;  %v3850_v53 = vld [vmem:[#allocation2 + $0x58] sm:$0xf] }
 0x236   : > { %v7037_v47 = vadd.f32 %v11812_v51, %v6948_v1  ;;  %5208 = vst [vmem:[#allocation3 + $0x218] sm:$0xf] %v4991_v46  ;;  %v8095_v13 = vor.u32 %v8777_v60, %v8094_v18  ;;  %v4072_v58 = vshrl.u32 %v3882_v16, 16  ;;  %v4304_v1 = vld [vmem:[#allocation2 + $0x5c] sm:$0xf]  ;;  %vm13203_vm15 = vnez %v13202_v5  ;;  %v13207_v46 = vld [vmem:[#allocation9_spill] sm:$0xff] }
 0x237   : > { %v5001_v51 = vsel %vm9110_vm6, %v4996_v3, %v11849_v25  ;;  %v4070_v17 = vrot.slane %v4068_v7, 5  ;;  %v8116_v28 = vld [vmem:[#allocation3 + $0x22c] sm:$0xf0]  ;;  %v11873_v50 = vsel %vm13203_vm15, %v3850_v53, 0  ;;  %v4065_v37 = vor.u32 %v4064_v48, %v11819_v19  ;;  %v13204_v0 = vld [vmem:[#allocation8_spill] sm:$0xff] }
 0x238   : > { %7265 = vmatmul.bf16.gmra.mxu2 %v8051_v11  ;;  %5209 = vst [vmem:[#allocation3 + $0x23c] sm:$0xf] %v5001_v51  ;;  %vm13205_vm10 = vnez %v13204_v0  ;;  %v11879_v18 = vadd.f32 %v11783_v24, %v7037_v47  ;;  %v8119_v60 = vor.u32 %v8780_v6, %v8116_v28  ;;  %v4074_v33 = vrot.slane %v4072_v58, 4  ;;  %v4789_v58 = vld [vmem:[#allocation2 + $0x5c] sm:$0xf] }
 0x239   : > { %v4336_v11 = vsel %vm13205_vm10, %v4303_v63, 0  ;;  %v11881_v44 = vpop.f32.mrf.mxu1  ;;  %v4078_v16 = vshll.u32 %v11873_v50, 16  ;;  %vm13208_vm0 = vnez %v13207_v46  ;;  %v7041_v61 = vpop.f32.mrf.mxu3  ;;  %v5002_v51 = vshrl.u32 %v11829_v21, 16  ;;  %v4790_v28 = vld [vmem:[#allocation2 + $0x60] sm:$0xf] }
 0x23a   : > { %13206 = vst [vmem:[#allocation33_spill] sm:$0xff] %v11879_v18  ;;  %v4337_v3 = vsel %vm13208_vm0, %v4304_v1, 0  ;;  %v4066_v19 = vrot.slane %v4065_v37, 4  ;;  %v4500_v48 = vrot.slane %v11831_v2, 4  ;;  %v4502_v63 = vshrl.u32 %v4336_v11, 16  ;;  %v11888_v24 = vpop.f32.mrf.mxu0 }
 0x23b   : > { %v6950_v7 = vpop.f32.mrf.mxu2  ;;  %v4075_v47 = vor.u32 %v4074_v33, %v4070_v17  ;;  %v11890_v0 = vrot.slane %v4078_v16, 5  ;;  %v4505_v6 = vshll.u32 %v4336_v11, 16  ;;  %v4511_v18 = vshrl.u32 %v4337_v3, 16  ;;  %v4724_v21 = vld [vmem:[#allocation2 + $0x58] sm:$0xf] }
 0x23c   : > { %v6951_v53 = vadd.f32 %v6950_v7, %v6862_v49  ;;  %7186 = vmatmul.bf16.gmra.mxu1 %v8119_v60  ;;  %v4071_v1 = vsel %vm9110_vm6, %v4066_v19, %v4070_v17  ;;  %v4504_v46 = vrot.slane %v4502_v63, 7  ;;  %v4725_v37 = vld [vmem:[#allocation2 + $0x5c] sm:$0xf]  ;;  %7448 = vmatmul.bf16.gmra.mxu0 %v8095_v13  ;;  %v4514_v7 = vshll.u32 %v4337_v3, 16  ;;  %4756 = vst [vmem:[#allocation3 + $0x25c] sm:$0xf] %v4724_v21 }
 0x23d   : > { %v4076_v49 = vrot.slane %v4075_v47, 4  ;;  %4270 = vst [vmem:[#allocation3 + $0x254] sm:$0xf] %v4071_v1  ;;  %v11895_v15 = vrot.slane %v4511_v18, 7  ;;  %v4822_v11 = vsel %vm13199_vm4, %v4789_v58, 0  ;;  %7359 = vmatmul.bf16.gmra.mxu3 %v8091_v54  ;;  %v5004_v13 = vrot.slane %v5002_v51, 4 }
 0x23e   : > { %v7040_v2 = vadd.f32 %v11843_v20, %v6951_v53  ;;  %v4507_v33 = vor.u32 %v4505_v6, %v4504_v46  ;;  %v4509_v16 = vrot.slane %v4504_v46, 4  ;;  %v8086_v60 = vld [vmem:[#allocation3 + $0x1c8] sm:$0xf]  ;;  %4757 = vst [vmem:[#allocation3 + $0x280] sm:$0xf] %v4725_v37  ;;  %v11904_v20 = vsel %vm13203_vm15, %v4790_v28, 0 }
 0x23f   : > { %v4081_v17 = vsel %vm9110_vm6, %v4076_v49, %v11890_v0  ;;  %v8776_v18 = vld [vmem:[#allocation3 + $0x1e8] sm:$0xf0]  ;;  %v4516_v54 = vor.u32 %v4514_v7, %v11895_v15  ;;  %v5008_v19 = vshll.u32 %v4822_v11, 16  ;;  %v13210_v63 = vld [vmem:[#allocation55_spill] sm:$0xff]  ;;  %v5005_v5 = vor.u32 %v5004_v13, %v11849_v25 }
 0x240   : > { %v11907_v3 = vadd.f32 %v11816_v45, %v7040_v2  ;;  %4271 = vst [vmem:[#allocation3 + $0x278] sm:$0xf] %v4081_v17  ;;  %v4508_v12 = vsel %vm9238_vm11, %v4500_v48, %v4507_v33  ;;  %v6864_v53 = vadd.f32 %v11775_v8, %v13210_v63  ;;  %v5012_v51 = vshrl.u32 %v4822_v11, 16  ;;  %v8130_v11 = vld [vmem:[#allocation3 + $0x218] sm:$0xf] }
 0x241   : > { %v11914_v47 = vpop.f32.mrf.mxu1  ;;  %4692 = vst [vmem:[#allocation3 + $0x258] sm:$0xf] %v4508_v12  ;;  %v5018_v45 = vshll.u32 %v11904_v20, 16  ;;  %v7044_v58 = vpop.f32.mrf.mxu3  ;;  %v4517_v28 = vsel %vm9238_vm11, %v4509_v16, %v4516_v54  ;;  %v5010_v48 = vrot.slane %v5008_v19, 5  ;;  %v8087_v46 = vor.u32 %v8776_v18, %v8086_v60  ;;  %v8786_v17 = vld [vmem:[#allocation3 + $0x238] sm:$0xf0] }
 0x242   : > { %13209 = vst [vmem:[#allocation25_spill] sm:$0xff] %v11907_v3  ;;  %v11920_v21 = vpop.f32.mrf.mxu0  ;;  %v5006_v8 = vrot.slane %v5005_v5, 4  ;;  %v5014_v37 = vrot.slane %v5012_v51, 4  ;;  %v8781_v18 = vld [vmem:[#allocation3 + $0x214] sm:$0xf]  ;;  %v8131_v63 = vor.u32 %v8786_v17, %v8130_v11  ;;  %v4082_v5 = vshrl.u32 %v11873_v50, 16 }
 0x243   : > { %v6952_v6 = vpop.f32.mrf.mxu2  ;;  %4693 = vst [vmem:[#allocation3 + $0x27c] sm:$0xf] %v4517_v28  ;;  %v11924_v33 = vrot.slane %v5018_v45, 5  ;;  %v8124_v12 = vld [vmem:[#allocation3 + $0x234] sm:$0xf0] }
 0x244   : > { %v6953_v1 = vadd.f32 %v6952_v6, %v6864_v53  ;;  %v8789_v49 = vld [vmem:[#allocation3 + $0x254] sm:$0xf]  ;;  %v5011_v25 = vsel %vm9110_vm6, %v5006_v8, %v5010_v48  ;;  %v5015_v7 = vor.u32 %v5014_v37, %v5010_v48  ;;  %v3851_v45 = vld [vmem:[#allocation2 + $0x5c] sm:$0xf]  ;;  %v13215_v50 = vld [vmem:[#allocation15_spill] sm:$0xff] }
 0x245   : > { %5210 = vst [vmem:[#allocation3 + $0x260] sm:$0xf] %v5011_v25  ;;  %vm13216_vm8 = vnez %v13215_v50 }
 0x246   : > { %v7042_v2 = vadd.f32 %v7041_v61, %v6953_v1  ;;  %v5016_v13 = vrot.slane %v5015_v7, 4  ;;  %v13212_v61 = vld [vmem:[#allocation61_spill] sm:$0xff]  ;;  %v13217_v7 = vld [vmem:[#allocation16_spill] sm:$0xff] }
 0x247   : > { %v8152_v16 = vld [vmem:[#allocation3 + $0x274] sm:$0xf0]  ;;  %v6867_v19 = vadd.f32 %v11802_v38, %v13212_v61  ;;  %v8127_v38 = vor.u32 %v8781_v18, %v8124_v12  ;;  %vm13218_vm5 = vnez %v13217_v7  ;;  %v4084_v61 = vrot.slane %v4082_v5, 4  ;;  %v13221_v7 = vld [vmem:[#allocation64_spill] sm:$0xff] }
 0x248   : > { %7270 = vmatmul.bf16.gmra.mxu2 %v8087_v46  ;;  %v11927_v60 = vadd.f32 %v11851_v9, %v7042_v2  ;;  %v8155_v54 = vor.u32 %v8789_v49, %v8152_v16  ;;  %v5021_v51 = vsel %vm9110_vm6, %v5016_v13, %v11924_v33  ;;  %v13213_v9 = vld [vmem:[#allocation69_spill] sm:$0xff]  ;;  %v4305_v2 = vld [vmem:[#allocation2 + $0x60] sm:$0xf]  ;;  %v8122_v16 = vld [vmem:[#allocation3 + $0x210] sm:$0xf] }
 0x249   : > { %v11931_v53 = vpop.f32.mrf.mxu1  ;;  %v7046_v28 = vpop.f32.mrf.mxu3  ;;  %5211 = vst [vmem:[#allocation3 + $0x284] sm:$0xf] %v5021_v51  ;;  %vm13214_vm7 = vnez %v13213_v9  ;;  %v4306_v49 = vld [vmem:[#allocation2 + $0x64] sm:$0xf]  ;;  %v4338_v25 = vsel %vm13216_vm8, %v4305_v2, 0  ;;  %v4085_v2 = vor.u32 %v4084_v61, %v11890_v0 }
 0x24a   : > { %13211 = vst [vmem:[#allocation26_spill] sm:$0xff] %v11927_v60  ;;  %v3884_v48 = vsel %vm13214_vm7, %v3851_v45, 0  ;;  %v11939_v46 = vpop.f32.mrf.mxu0  ;;  %v4339_v11 = vsel %vm13218_vm5, %v4306_v49, 0  ;;  %v3852_v13 = vld [vmem:[#allocation2 + $0x60] sm:$0xf]  ;;  %v13219_v45 = vld [vmem:[#allocation70_spill] sm:$0xff] }
 0x24b   : > { %v6955_v6 = vpop.f32.mrf.mxu2  ;;  %v4088_v8 = vshll.u32 %v3884_v48, 16  ;;  %v4092_v37 = vshrl.u32 %v3884_v48, 16  ;;  %v8785_v51 = vld [vmem:[#allocation3 + $0x230] sm:$0xf0]  ;;  %vm13220_vm3 = vnez %v13219_v45  ;;  %v5022_v48 = vshrl.u32 %v11904_v20, 16 }
 0x24c   : > { %v6956_v1 = vadd.f32 %v6955_v6, %v6867_v19  ;;  %7191 = vmatmul.bf16.gmra.mxu1 %v8155_v54  ;;  %7453 = vmatmul.bf16.gmra.mxu0 %v8131_v63  ;;  %v11947_v18 = vsel %vm13220_vm3, %v3852_v13, 0  ;;  %v4520_v6 = vshrl.u32 %v4338_v25, 16  ;;  %v4529_v54 = vshrl.u32 %v4339_v11, 16  ;;  %v4791_v63 = vld [vmem:[#allocation2 + $0x64] sm:$0xf] }
 0x24d   : > { %v4090_v19 = vrot.slane %v4088_v8, 5  ;;  %v4094_v12 = vrot.slane %v4092_v37, 4  ;;  %7364 = vmatmul.bf16.gmra.mxu3 %v8127_v38  ;;  %v4532_v50 = vshll.u32 %v4339_v11, 16  ;;  %v6869_v13 = vadd.f32 %v11839_v29, %v13221_v7  ;;  %v4792_v20 = vld [vmem:[#allocation2 + $0x68] sm:$0xf] }
 0x24e   : > { %v7045_v17 = vadd.f32 %v7044_v58, %v6956_v1  ;;  %v4098_v58 = vshll.u32 %v11947_v18, 16  ;;  %v4523_v1 = vshll.u32 %v4338_v25, 16  ;;  %v4522_v5 = vrot.slane %v4520_v6, 7  ;;  %v8166_v32 = vld [vmem:[#allocation3 + $0x260] sm:$0xf] }
 0x24f   : > { %v4095_v49 = vor.u32 %v4094_v12, %v4090_v19  ;;  %v11952_v8 = vrot.slane %v4529_v54, 7  ;;  %v4086_v60 = vrot.slane %v4085_v2, 4  ;;  %v8123_v25 = vor.u32 %v8785_v51, %v8122_v16 }
 0x250   : > { %v11958_v38 = vrot.slane %v4098_v58, 5  ;;  %v11961_v0 = vadd.f32 %v11888_v24, %v7045_v17  ;;  %v4518_v6 = vrot.slane %v11895_v15, 4  ;;  %v4824_v11 = vsel %vm13214_vm7, %v4791_v63, 0  ;;  %v8795_v24 = vld [vmem:[#allocation3 + $0x280] sm:$0xf0] }
 0x251   : > { %v11956_v37 = vpop.f32.mrf.mxu1  ;;  %v7049_v3 = vpop.f32.mrf.mxu3  ;;  %v4096_v12 = vrot.slane %v4095_v49, 4  ;;  %v4091_v2 = vsel %vm9110_vm6, %v4086_v60, %v4090_v19  ;;  %v4525_v58 = vor.u32 %v4523_v1, %v4522_v5  ;;  %v4527_v7 = vrot.slane %v4522_v5, 4  ;;  %v4726_v19 = vld [vmem:[#allocation2 + $0x60] sm:$0xf]  ;;  %v4727_v5 = vld [vmem:[#allocation2 + $0x64] sm:$0xf] }
 0x252   : > { %13222 = vst [vmem:[#allocation63_spill] sm:$0xff] %v11961_v0  ;;  %v11966_v29 = vpop.f32.mrf.mxu0  ;;  %v4534_v15 = vor.u32 %v4532_v50, %v11952_v8  ;;  %v11976_v9 = vsel %vm13220_vm3, %v4792_v20, 0  ;;  %v5024_v16 = vrot.slane %v5022_v48, 4  ;;  %v5028_v1 = vshll.u32 %v4824_v11, 16 }
 0x253   : > { %v6957_v61 = vpop.f32.mrf.mxu2  ;;  %v4101_v17 = vsel %vm9110_vm6, %v4096_v12, %v11958_v38  ;;  %4272 = vst [vmem:[#allocation3 + $0x29c] sm:$0xf] %v4091_v2  ;;  %v4526_v60 = vsel %vm9238_vm11, %v4518_v6, %v4525_v58  ;;  %v5032_v63 = vshrl.u32 %v4824_v11, 16  ;;  %v5038_v45 = vshll.u32 %v11976_v9, 16  ;;  %v13224_v6 = vld [vmem:[#allocation68_spill] sm:$0xff] }
 0x254   : > { %v6958_v54 = vadd.f32 %v6957_v61, %v6869_v13  ;;  %4273 = vst [vmem:[#allocation3 + $0x2c0] sm:$0xf] %v4101_v17  ;;  %v4535_v49 = vsel %vm9238_vm11, %v4527_v7, %v4534_v15  ;;  %v5025_v50 = vor.u32 %v5024_v16, %v11924_v33  ;;  %v8790_v13 = vld [vmem:[#allocation3 + $0x25c] sm:$0xf]  ;;  %v8160_v61 = vld [vmem:[#allocation3 + $0x27c] sm:$0xf0]  ;;  %v6872_v11 = vadd.f32 %v11881_v44, %v13224_v6 }
 0x255   : > { %4694 = vst [vmem:[#allocation3 + $0x2a0] sm:$0xf] %v4526_v60  ;;  %v5034_v48 = vrot.slane %v5032_v63, 4  ;;  %v11989_v33 = vrot.slane %v5038_v45, 5  ;;  %v11991_v7 = vld [vmem:[#allocation3 + $0x258] sm:$0xf] }
 0x256   : > { %v7047_v51 = vadd.f32 %v7046_v28, %v6958_v54  ;;  %4695 = vst [vmem:[#allocation3 + $0x2c4] sm:$0xf] %v4535_v49  ;;  %v5030_v28 = vrot.slane %v5028_v1, 5  ;;  %v5026_v12 = vrot.slane %v5025_v50, 4  ;;  %v8167_v54 = vor.u32 %v8795_v24, %v8166_v32  ;;  %v13225_v63 = vld [vmem:[#allocation73_spill] sm:$0xff]  ;;  %v13228_v6 = vld [vmem:[#allocation74_spill] sm:$0xff] }
 0x257   : > { %4758 = vst [vmem:[#allocation3 + $0x2a4] sm:$0xf] %v4726_v19  ;;  %v4102_v32 = vshrl.u32 %v11947_v18, 16  ;;  %v8794_v19 = vld [vmem:[#allocation3 + $0x278] sm:$0xf0]  ;;  %vm13226_vm1 = vnez %v13225_v63  ;;  %vm13229_vm9 = vnez %v13228_v6 }
 0x258   : > { %7275 = vmatmul.bf16.gmra.mxu2 %v8123_v25  ;;  %v11985_v20 = vadd.f32 %v11920_v21, %v7047_v51  ;;  %4759 = vst [vmem:[#allocation3 + $0x2c8] sm:$0xf] %v4727_v5  ;;  %v5035_v2 = vor.u32 %v5034_v48, %v5030_v28  ;;  %v5031_v17 = vsel %vm9110_vm6, %v5026_v12, %v5030_v28  ;;  %v3853_v21 = vld [vmem:[#allocation2 + $0x64] sm:$0xf]  ;;  %v4308_v28 = vld [vmem:[#allocation2 + $0x6c] sm:$0xf] }
 0x259   : > { %v7051_v25 = vpop.f32.mrf.mxu3  ;;  %v8163_v51 = vor.u32 %v8790_v13, %v8160_v61  ;;  %v11997_v60 = vpop.f32.mrf.mxu1  ;;  %5212 = vst [vmem:[#allocation3 + $0x2a8] sm:$0xf] %v5031_v17  ;;  %v3886_v49 = vsel %vm13226_vm1, %v3853_v21, 0  ;;  %v4307_v13 = vld [vmem:[#allocation2 + $0x68] sm:$0xf]  ;;  %v13227_v48 = vld [vmem:[#allocation72_spill] sm:$0xff]  ;;  %v8159_v12 = vor.u32 %v8794_v19, %v11991_v7 }
 0x25a   : > { %13223 = vst [vmem:[#allocation34_spill] sm:$0xff] %v11985_v20  ;;  %v11995_v16 = vpop.f32.mrf.mxu0  ;;  %v8798_v44 = vld [vmem:[#allocation3 + $0x29c] sm:$0xf]  ;;  %v5036_v24 = vrot.slane %v5035_v2, 4  ;;  %v6874_v18 = vadd.f32 %v11914_v47, %v13227_v48  ;;  %v3854_v61 = vld [vmem:[#allocation2 + $0x68] sm:$0xf] }
 0x25b   : > { %v6960_v58 = vpop.f32.mrf.mxu2  ;;  %v8188_v1 = vld [vmem:[#allocation3 + $0x2bc] sm:$0xf0]  ;;  %v4112_v2 = vshrl.u32 %v3886_v49, 16  ;;  %v13230_v17 = vld [vmem:[#allocation23_spill] sm:$0xff]  ;;  %v4793_v19 = vld [vmem:[#allocation2 + $0x6c] sm:$0xf] }
 0x25c   : > { %v6961_v15 = vadd.f32 %v6960_v58, %v6872_v11  ;;  %7458 = vmatmul.bf16.gmra.mxu0 %v8167_v54  ;;  %v8191_v50 = vor.u32 %v8798_v44, %v8188_v1  ;;  %v5041_v45 = vsel %vm9110_vm6, %v5036_v24, %v11989_v33  ;;  %v4104_v11 = vrot.slane %v4102_v32, 4 }
 0x25d   : > { %5213 = vst [vmem:[#allocation3 + $0x2cc] sm:$0xf] %v5041_v45  ;;  %7369 = vmatmul.bf16.gmra.mxu3 %v8163_v51  ;;  %v4108_v54 = vshll.u32 %v3886_v49, 16  ;;  %vm13231_vm4 = vnez %v13230_v17  ;;  %v5042_v44 = vshrl.u32 %v11976_v9, 16  ;;  %v4114_v32 = vrot.slane %v4112_v2, 4 }
 0x25e   : > { %v12002_v5 = vadd.f32 %v7049_v3, %v6961_v15  ;;  %7196 = vmatmul.bf16.gmra.mxu1 %v8191_v50  ;;  %v12012_v3 = vsel %vm13229_vm9, %v3854_v61, 0  ;;  %v4340_v21 = vsel %vm13231_vm4, %v4307_v13, 0  ;;  %v13232_v15 = vld [vmem:[#allocation24_spill] sm:$0xff]  ;;  %v4105_v7 = vor.u32 %v4104_v11, %v11958_v38  ;;  %v4794_v13 = vld [vmem:[#allocation2 + $0x70] sm:$0xf] }
 0x25f   : > { %v4118_v58 = vshll.u32 %v12012_v3, 16  ;;  %vm13233_vm15 = vnez %v13232_v15  ;;  %v4110_v51 = vrot.slane %v4108_v54, 5  ;;  %v4538_v24 = vshrl.u32 %v4340_v21, 16  ;;  %v13234_v15 = vld [vmem:[#allocation75_spill] sm:$0xff] }
 0x260   : > { %v4341_v47 = vsel %vm13233_vm15, %v4308_v28, 0  ;;  %v4536_v45 = vrot.slane %v11952_v8, 4  ;;  %v4541_v48 = vshll.u32 %v4340_v21, 16  ;;  %v8202_v28 = vld [vmem:[#allocation3 + $0x2a8] sm:$0xf]  ;;  %v4106_v38 = vrot.slane %v4105_v7, 4 }
 0x261   : > { %v12021_v50 = vpop.f32.mrf.mxu3  ;;  %v12023_v49 = vrot.slane %v4118_v58, 5  ;;  %v12028_v9 = vpop.f32.mrf.mxu1  ;;  %v4540_v11 = vrot.slane %v4538_v24, 7  ;;  %v4547_v54 = vshrl.u32 %v4341_v47, 16  ;;  %v7153_v20 = vadd.f32 %v11931_v53, %v13234_v15  ;;  %v4728_v58 = vld [vmem:[#allocation2 + $0x68] sm:$0xf] }
 0x262   : > { %v12026_v17 = vpop.f32.mrf.mxu0  ;;  %v4115_v0 = vor.u32 %v4114_v32, %v4110_v51  ;;  %v4550_v2 = vshll.u32 %v4341_v47, 16  ;;  %v4826_v8 = vsel %vm13226_vm1, %v4793_v19, 0  ;;  %v4111_v27 = vsel %vm9110_vm6, %v4106_v38, %v4110_v51  ;;  %4760 = vst [vmem:[#allocation3 + $0x2ec] sm:$0xf] %v4728_v58  ;;  %v12072_v15 = vld [vmem:[#allocation3 + $0x2a0] sm:$0xf] }
 0x263   : > { %v6962_v1 = vpop.f32.mrf.mxu2  ;;  %v4543_v7 = vor.u32 %v4541_v48, %v4540_v11  ;;  %v4545_v24 = vrot.slane %v4540_v11, 4  ;;  %4274 = vst [vmem:[#allocation3 + $0x2e4] sm:$0xf] %v4111_v27  ;;  %v12036_v53 = vrot.slane %v4547_v54, 7  ;;  %v12040_v47 = vsel %vm13229_vm9, %v4794_v13, 0  ;;  %v13235_v11 = vld [vmem:[#allocation77_spill] sm:$0xff] }
 0x264   : > { %v6963_v61 = vadd.f32 %v6962_v1, %v6874_v18  ;;  %v8799_v18 = vld [vmem:[#allocation3 + $0x2a4] sm:$0xf]  ;;  %v8196_v1 = vld [vmem:[#allocation3 + $0x2c4] sm:$0xf0]  ;;  %v8804_v43 = vld [vmem:[#allocation3 + $0x2c8] sm:$0xf0]  ;;  %v12051_v6 = vadd.f32 %v11939_v46, %v12002_v5  ;;  %vm13236_vm10 = vnez %v13235_v11  ;;  %vm13260_vm4 = vnez %v13102_v14 }
 0x265   : > { %v8203_v57 = vor.u32 %v8804_v43, %v8202_v28  ;;  %v4116_v62 = vrot.slane %v4115_v0, 4  ;;  %v5044_v63 = vrot.slane %v5042_v44, 4  ;;  %v5048_v19 = vshll.u32 %v4826_v8, 16  ;;  %v3855_v28 = vld [vmem:[#allocation2 + $0x6c] sm:$0xf] }
 0x266   : > { %v7052_v21 = vadd.f32 %v7051_v25, %v6963_v61  ;;  %v4544_v25 = vsel %vm9238_vm11, %v4536_v45, %v4543_v7  ;;  %v5052_v51 = vshrl.u32 %v4826_v8, 16  ;;  %v4552_v27 = vor.u32 %v4550_v2, %v12036_v53 }
 0x267   : > { %v4121_v43 = vsel %vm9110_vm6, %v4116_v62, %v12023_v49  ;;  %4696 = vst [vmem:[#allocation3 + $0x2e8] sm:$0xf] %v4544_v25  ;;  %v5058_v0 = vshll.u32 %v12040_v47, 16  ;;  %v5050_v56 = vrot.slane %v5048_v19, 5  ;;  %v8199_v62 = vor.u32 %v8799_v18, %v8196_v1  ;;  %v12078_v18 = vld [vmem:[#allocation3 + $0x2c0] sm:$0xf0] }
 0x268   : > { %7280 = vmatmul.bf16.gmra.mxu2 %v8159_v12  ;;  %4275 = vst [vmem:[#allocation3 + $0x308] sm:$0xf] %v4121_v43  ;;  %v5045_v12 = vor.u32 %v5044_v63, %v11989_v33  ;;  %v5054_v44 = vrot.slane %v5052_v51, 4  ;;  %v12055_v32 = vadd.f32 %v11966_v29, %v7052_v21  ;;  %v4553_v13 = vsel %vm9238_vm11, %v4545_v24, %v4552_v27  ;;  %v12066_v33 = vld [vmem:[%s12590_s4] ss:$0 sm:$0xff] }
 0x269   : > { %v12057_v48 = vpop.f32.mrf.mxu3  ;;  %v12061_v61 = vrot.slane %v5058_v0, 5  ;;  %4697 = vst [vmem:[#allocation3 + $0x30c] sm:$0xf] %v4553_v13  ;;  %v3888_v54 = vsel %vm13236_vm10, %v3855_v28, 0  ;;  %v12074_v2 = vpop.f32.mrf.mxu1  ;;  %v4122_v58 = vshrl.u32 %v12012_v3, 16  ;;  %v8195_v0 = vor.u32 %v12078_v18, %v12072_v15 }
 0x26a   : > { %v12068_v5 = vpop.f32.mrf.mxu0  ;;  %v5046_v29 = vrot.slane %v5045_v12, 4  ;;  %v5055_v38 = vor.u32 %v5054_v44, %v5050_v56  ;;  %v4132_v8 = vshrl.u32 %v3888_v54, 16  ;;  %v8807_v1 = vld [vmem:[#allocation3 + $0x2e4] sm:$0xf]  ;;  %v4309_v63 = vld [vmem:[#allocation2 + $0x70] sm:$0xf]  ;;  %vm13261_vm15 = vnez %v13104_v34 }
 0x26b   : > { %v7241_v45 = vpop.f32.mrf.mxu2  ;;  %v4124_v25 = vrot.slane %v4122_v58, 4  ;;  %v12086_v3 = vld [vmem:[%s12591_s5] ss:$0 sm:$0xff]  ;;  %v3856_v43 = vld [vmem:[#allocation2 + $0x70] sm:$0xf]  ;;  %v5062_v15 = vshrl.u32 %v12040_v47, 16 }
 0x26c   : > { %v7242_v46 = vadd.f32 %v7241_v45, %v7153_v20  ;;  %v4128_v20 = vshll.u32 %v3888_v54, 16  ;;  %7463 = vmatmul.bf16.gmra.mxu0 %v8203_v57  ;;  %v5051_v7 = vsel %vm9110_vm6, %v5046_v29, %v5050_v56  ;;  %v5056_v24 = vrot.slane %v5055_v38, 4  ;;  %v4310_v28 = vld [vmem:[#allocation2 + $0x74] sm:$0xf] }
 0x26d   : > { %5214 = vst [vmem:[#allocation3 + $0x2f0] sm:$0xf] %v5051_v7  ;;  %7374 = vmatmul.bf16.gmra.mxu3 %v8199_v62  ;;  %v4125_v44 = vor.u32 %v4124_v25, %v12023_v49  ;;  %v4134_v45 = vrot.slane %v4132_v8, 4  ;;  %v4795_v25 = vld [vmem:[#allocation2 + $0x74] sm:$0xf] }
 0x26e   : > { %v7331_v21 = vadd.f32 %v12021_v50, %v7242_v46  ;;  %v13237_v50 = vld [vmem:[#allocation76_spill] sm:$0xff]  ;;  %v5061_v57 = vsel %vm9110_vm6, %v5056_v24, %v12061_v61  ;;  %v4130_v27 = vrot.slane %v4128_v20, 5  ;;  %v4554_v24 = vrot.slane %v12036_v53, 4 }
 0x26f   : > { %v7155_v51 = vadd.f32 %v11956_v37, %v13237_v50  ;;  %v8224_v12 = vld [vmem:[#allocation3 + $0x304] sm:$0xf0]  ;;  %5215 = vst [vmem:[#allocation3 + $0x314] sm:$0xf] %v5061_v57  ;;  %v13240_v46 = vld [vmem:[#allocation28_spill] sm:$0xff]  ;;  %v4126_v58 = vrot.slane %v4125_v44, 4 }
 0x270   : > { %v7420_v19 = vadd.f32 %v11995_v16, %v7331_v21  ;;  %v13238_v16 = vld [vmem:[#allocation78_spill] sm:$0xff]  ;;  %v8227_v62 = vor.u32 %v8807_v1, %v8224_v12  ;;  %vm13241_vm7 = vnez %v13240_v46  ;;  %v4135_v20 = vor.u32 %v4134_v45, %v4130_v27  ;;  %v8808_v44 = vld [vmem:[#allocation3 + $0x2ec] sm:$0xf] }
 0x271   : > { %vm13239_vm0 = vnez %v13238_v16  ;;  %v4342_v29 = vsel %vm13241_vm7, %v4309_v63, 0  ;;  %v12105_v54 = vpop.f32.mrf.mxu3  ;;  %v13242_v21 = vld [vmem:[#allocation10_spill] sm:$0xff]  ;;  %v4796_v63 = vld [vmem:[#allocation2 + $0x78] sm:$0xf]  ;;  %v12121_v47 = vpop.f32.mrf.mxu1  ;;  %vm13264_vm7 = vnez %v12914_v41 }
 0x272   : > { %v12097_v56 = vsel %vm13239_vm0, %v3856_v43, 0  ;;  %v7503_v37 = vmul.f32 %v12066_v33, %v7420_v19  ;;  %vm13243_vm8 = vnez %v13242_v21  ;;  %v12111_v1 = vpop.f32.mrf.mxu0  ;;  %7201 = vmatmul.bf16.gmra.mxu1 %v8227_v62  ;;  %v4131_v19 = vsel %vm9110_vm6, %v4126_v58, %v4130_v27  ;;  %v4730_v43 = vld [vmem:[#allocation2 + $0x70] sm:$0xf]  ;;  %v8232_v45 = vld [vmem:[#allocation3 + $0x30c] sm:$0xf0] }
 0x273   : > { %v4138_v13 = vshll.u32 %v12097_v56, 16  ;;  %v7243_v38 = vpop.f32.mrf.mxu2  ;;  %v4343_v49 = vsel %vm13243_vm8, %v4310_v28, 0  ;;  %v4136_v50 = vrot.slane %v4135_v20, 4  ;;  %v4559_v57 = vshll.u32 %v4342_v29, 16  ;;  %4276 = vst [vmem:[#allocation3 + $0x32c] sm:$0xf] %v4131_v19 }
 0x274   : > { %v7539_v8 = vadd.f32 %v12086_v3, %v7503_v37  ;;  %v7244_v18 = vadd.f32 %v7243_v38, %v7155_v51  ;;  %v4556_v51 = vshrl.u32 %v4342_v29, 16  ;;  %v8238_v37 = vld [vmem:[#allocation3 + $0x2f0] sm:$0xf]  ;;  %v4565_v62 = vshrl.u32 %v4343_v49, 16  ;;  %v4731_v58 = vld [vmem:[#allocation2 + $0x74] sm:$0xf] }
 0x275   : > { %v12113_v7 = vrot.slane %v4138_v13, 5  ;;  %v13244_v13 = vld [vmem:[#allocation81_spill] sm:$0xff]  ;;  %v4568_v38 = vshll.u32 %v4343_v49, 16  ;;  %4762 = vst [vmem:[#allocation3 + $0x334] sm:$0xf] %v4730_v43  ;;  %v4828_v21 = vsel %vm13236_vm10, %v4795_v25, 0  ;;  %v8235_v11 = vor.u32 %v8808_v44, %v8232_v45 }
 0x276   : > { %v7571_v12 = vmax.f32 %v7539_v8, 0.0  ;;  %v7333_v53 = vadd.f32 %v12057_v48, %v7244_v18  ;;  %v7158_v28 = vadd.f32 %v11997_v60, %v13244_v13  ;;  %v4558_v46 = vrot.slane %v4556_v51, 7  ;;  %v8813_v48 = vld [vmem:[#allocation3 + $0x310] sm:$0xf0]  ;;  %4763 = vst [vmem:[#allocation3 + $0x358] sm:$0xf] %v4731_v58 }
 0x277   : > { %v4141_v27 = vsel %vm9110_vm6, %v4136_v50, %v12113_v7  ;;  %v12133_v20 = vrot.slane %v4565_v62, 7  ;;  %v12139_v60 = vsel %vm13239_vm0, %v4796_v63, 0  ;;  %v8239_v8 = vor.u32 %v8813_v48, %v8238_v37  ;;  %v3857_v13 = vld [vmem:[#allocation2 + $0x74] sm:$0xf] }
 0x278   : > { %7603 = vst [vmem:[%s12119_s28] sm:$0xff] %v7571_v12  ;;  %v7422_v29 = vadd.f32 %v12026_v17, %v7333_v53  ;;  %7285 = vmatmul.bf16.gmra.mxu2 %v8195_v0  ;;  %v4561_v18 = vor.u32 %v4559_v57, %v4558_v46  ;;  %v4563_v49 = vrot.slane %v4558_v46, 4  ;;  %v5064_v19 = vrot.slane %v5062_v15, 4  ;;  %v12160_v46 = vld [vmem:[#allocation3 + $0x308] sm:$0xf0] }
 0x279   : > { %4277 = vst [vmem:[#allocation3 + $0x350] sm:$0xf] %v4141_v27  ;;  %v4570_v17 = vor.u32 %v4568_v38, %v12133_v20  ;;  %v5068_v0 = vshll.u32 %v4828_v21, 16  ;;  %v5072_v51 = vshrl.u32 %v4828_v21, 16  ;;  %v12143_v12 = vpop.f32.mrf.mxu3  ;;  %v5078_v63 = vshll.u32 %v12139_v60, 16  ;;  %v12156_v44 = vpop.f32.mrf.mxu1 }
 0x27a   : > { %v7504_v50 = vmul.f32 %v12066_v33, %v7422_v29  ;;  %v4562_v16 = vsel %vm9238_vm11, %v4554_v24, %v4561_v18  ;;  %v5065_v25 = vor.u32 %v5064_v19, %v12061_v61  ;;  %v12150_v53 = vpop.f32.mrf.mxu0  ;;  %v12154_v27 = vld [vmem:[#allocation3 + $0x2e8] sm:$0xf]  ;;  %v4142_v61 = vshrl.u32 %v12097_v56, 16  ;;  %v8816_v38 = vld [vmem:[#allocation3 + $0x32c] sm:$0xf]  ;;  %v13245_v29 = vld [vmem:[#allocation82_spill] sm:$0xff] }
 0x27b   : > { %v7246_v43 = vpop.f32.mrf.mxu2  ;;  %v4571_v37 = vsel %vm9238_vm11, %v4563_v49, %v4570_v17  ;;  %4698 = vst [vmem:[#allocation3 + $0x330] sm:$0xf] %v4562_v16  ;;  %v5070_v62 = vrot.slane %v5068_v0, 5  ;;  %v5074_v58 = vrot.slane %v5072_v51, 4  ;;  %v7160_v48 = vadd.f32 %v12028_v9, %v13245_v29  ;;  %v3858_v49 = vld [vmem:[#allocation2 + $0x78] sm:$0xf] }
 0x27c   : > { %v7540_v15 = vadd.f32 %v12086_v3, %v7504_v50  ;;  %v7247_v57 = vadd.f32 %v7246_v43, %v7158_v28  ;;  %4699 = vst [vmem:[#allocation3 + $0x354] sm:$0xf] %v4571_v37  ;;  %v5066_v24 = vrot.slane %v5065_v25, 4  ;;  %7468 = vmatmul.bf16.gmra.mxu0 %v8239_v8  ;;  %v12166_v18 = vrot.slane %v5078_v63, 5  ;;  %v4311_v50 = vld [vmem:[#allocation2 + $0x78] sm:$0xf] }
 0x27d   : > { %v3890_v19 = vsel %vm11025_vm12, %v3857_v13, 0  ;;  %7379 = vmatmul.bf16.gmra.mxu3 %v8235_v11  ;;  %v5075_v17 = vor.u32 %v5074_v58, %v5070_v62  ;;  %v12174_v51 = vsel %vm11033_vm2, %v3858_v49, 0  ;;  %v4144_v9 = vrot.slane %v4142_v61, 4  ;;  %v12185_v61 = vld [vmem:[#allocation3 + $0x354] sm:$0xf0] }
 0x27e   : > { %v7572_v45 = vmax.f32 %v7540_v15, 0.0  ;;  %v7336_v28 = vadd.f32 %v12105_v54, %v7247_v57  ;;  %v5071_v21 = vsel %vm9110_vm6, %v5066_v24, %v5070_v62  ;;  %v8231_v43 = vor.u32 %v12160_v46, %v12154_v27  ;;  %v12179_v57 = vld [vmem:[#allocation3 + $0x334] sm:$0xf]  ;;  %v4312_v62 = vld [vmem:[#allocation2 + $0x7c] sm:$0xf] }
 0x27f   : > { %5216 = vst [vmem:[#allocation3 + $0x338] sm:$0xf] %v5071_v21  ;;  %v4148_v25 = vshll.u32 %v3890_v19, 16  ;;  %v4152_v63 = vshrl.u32 %v3890_v19, 16  ;;  %v5082_v11 = vshrl.u32 %v12139_v60, 16  ;;  %v4145_v37 = vor.u32 %v4144_v9, %v12113_v7  ;;  %v13248_v46 = vld [vmem:[#allocation12_spill] sm:$0xff] }
 0x280   : > { %7604 = vst [vmem:[%s12119_s28 + $0x8] sm:$0xff] %v7572_v45  ;;  %v7425_v54 = vadd.f32 %v12068_v5, %v7336_v28  ;;  %v8260_v8 = vld [vmem:[#allocation3 + $0x34c] sm:$0xf0]  ;;  %v5076_v5 = vrot.slane %v5075_v17, 4  ;;  %v4158_v28 = vshll.u32 %v12174_v51, 16  ;;  %vm13249_vm5 = vnez %v13248_v46 }
 0x281   : > { %v8263_v16 = vor.u32 %v8816_v38, %v8260_v8  ;;  %v12183_v24 = vpop.f32.mrf.mxu3  ;;  %v4150_v27 = vrot.slane %v4148_v25, 5  ;;  %v4154_v45 = vrot.slane %v4152_v63, 4  ;;  %v4344_v38 = vsel %vm13249_vm5, %v4311_v50, 0  ;;  %v4797_v49 = vld [vmem:[#allocation2 + $0x7c] sm:$0xf]  ;;  %v12198_v8 = vpop.f32.mrf.mxu1 }
 0x282   : > { %v7505_v15 = vmul.f32 %v12066_v33, %v7425_v54  ;;  %v12191_v21 = vpop.f32.mrf.mxu0  ;;  %v5081_v7 = vsel %vm9110_vm6, %v5076_v5, %v12166_v18  ;;  %v4146_v60 = vrot.slane %v4145_v37, 4  ;;  %v4798_v19 = vld [vmem:[#allocation2 + $0x80] sm:$0xf]  ;;  %v7163_v54 = vadd.f32 %v12074_v2, %v11162_v35  ;;  %v4733_v2 = vld [vmem:[#allocation2 + $0x7c] sm:$0xf] }
 0x283   : > { %v7248_v13 = vpop.f32.mrf.mxu2  ;;  %7206 = vmatmul.bf16.gmra.mxu1 %v8263_v16  ;;  %5217 = vst [vmem:[#allocation3 + $0x35c] sm:$0xf] %v5081_v7  ;;  %v4155_v50 = vor.u32 %v4154_v45, %v4150_v27  ;;  %v12200_v17 = vrot.slane %v4158_v28, 5  ;;  %v4732_v16 = vld [vmem:[#allocation2 + $0x78] sm:$0xf]  ;;  %v4572_v37 = vrot.slane %v12133_v20, 4  ;;  %vm13262_vm10 = vnez %v12891_v55 }
 0x284   : > { %v7541_v58 = vadd.f32 %v12086_v3, %v7505_v15  ;;  %v7249_v29 = vadd.f32 %v7248_v13, %v7160_v48  ;;  %v13250_v48 = vld [vmem:[#allocation11_spill] sm:$0xff]  ;;  %v8271_v15 = vor.u32 %v12179_v57, %v12185_v61  ;;  %v4151_v35 = vsel %vm9110_vm6, %v4146_v60, %v4150_v27  ;;  %4764 = vst [vmem:[#allocation3 + $0x37c] sm:$0xf] %v4732_v16 }
 0x285   : > { %vm13251_vm3 = vnez %v13250_v48  ;;  %v4156_v5 = vrot.slane %v4155_v50, 4  ;;  %4278 = vst [vmem:[#allocation3 + $0x374] sm:$0xf] %v4151_v35  ;;  %v4574_v13 = vshrl.u32 %v4344_v38, 16  ;;  %v4577_v45 = vshll.u32 %v4344_v38, 16 }
 0x286   : > { %v4345_v9 = vsel %vm13251_vm3, %v4312_v62, 0  ;;  %v7573_v25 = vmax.f32 %v7541_v58, 0.0  ;;  %v7338_v63 = vadd.f32 %v12143_v12, %v7249_v29  ;;  %v8274_v28 = vld [vmem:[#allocation3 + $0x338] sm:$0xf]  ;;  %v4830_v57 = vsel %vm11025_vm12, %v4797_v49, 0 }
 0x287   : > { %v4583_v12 = vshrl.u32 %v4345_v9, 16  ;;  %v4586_v46 = vshll.u32 %v4345_v9, 16  ;;  %v4161_v61 = vsel %vm9110_vm6, %v4156_v5, %v12200_v17  ;;  %v4576_v27 = vrot.slane %v4574_v13, 7  ;;  %4765 = vst [vmem:[#allocation3 + $0x3a0] sm:$0xf] %v4733_v2 }
 0x288   : > { %7605 = vst [vmem:[%s12119_s28 + $0x10] sm:$0xff] %v7573_v25  ;;  %v7427_v62 = vadd.f32 %v12111_v1, %v7338_v63  ;;  %7290 = vmatmul.bf16.gmra.mxu2 %v8231_v43  ;;  %v12219_v20 = vsel %vm11033_vm2, %v4798_v19, 0  ;;  %v5084_v38 = vrot.slane %v5082_v11, 4  ;;  %v5088_v58 = vshll.u32 %v4830_v57, 16  ;;  %v12231_v9 = vld [vmem:[#allocation3 + $0x330] sm:$0xf] }
 0x289   : > { %4279 = vst [vmem:[#allocation3 + $0x398] sm:$0xf] %v4161_v61  ;;  %v12222_v43 = vrot.slane %v4583_v12, 7  ;;  %v5092_v29 = vshrl.u32 %v4830_v57, 16  ;;  %v12224_v7 = vpop.f32.mrf.mxu3  ;;  %v4579_v60 = vor.u32 %v4577_v45, %v4576_v27  ;;  %v4581_v49 = vrot.slane %v4576_v27, 4  ;;  %v12236_v5 = vpop.f32.mrf.mxu1 }
 0x28a   : > { %v7506_v1 = vmul.f32 %v12066_v33, %v7427_v62  ;;  %v5085_v50 = vor.u32 %v5084_v38, %v12166_v18  ;;  %v5098_v48 = vshll.u32 %v12219_v20, 16  ;;  %v12229_v11 = vpop.f32.mrf.mxu0  ;;  %v8822_v16 = vld [vmem:[#allocation3 + $0x358] sm:$0xf0]  ;;  %v5090_v63 = vrot.slane %v5088_v58, 5  ;;  %v12234_v35 = vld [vmem:[#allocation3 + $0x350] sm:$0xf0] }
 0x28b   : > { %v7251_v56 = vpop.f32.mrf.mxu2  ;;  %v4588_v25 = vor.u32 %v4586_v46, %v12222_v43  ;;  %v8275_v2 = vor.u32 %v8822_v16, %v8274_v28  ;;  %v4162_v18 = vshrl.u32 %v12174_v51, 16  ;;  %v4580_v13 = vsel %vm9238_vm11, %v4572_v37, %v4579_v60  ;;  %v3859_v45 = vld [vmem:[#allocation2 + $0x7c] sm:$0xf]  ;;  %v4313_v57 = vld [vmem:[#allocation2 + $0x80] sm:$0xf]  ;;  %v13252_v58 = vld [vmem:[#allocation83_spill] sm:$0xff] }
 0x28c   : > { %v7542_v0 = vadd.f32 %v12086_v3, %v7506_v1  ;;  %v7252_v19 = vadd.f32 %v7251_v56, %v7163_v54  ;;  %v5086_v54 = vrot.slane %v5085_v50, 4  ;;  %4700 = vst [vmem:[#allocation3 + $0x378] sm:$0xf] %v4580_v13  ;;  %v7165_v28 = vadd.f32 %v12121_v47, %v11168_v40  ;;  %v8825_v61 = vld [vmem:[#allocation3 + $0x374] sm:$0xf] }
 0x28d   : > { %v4589_v46 = vsel %vm9238_vm11, %v4581_v49, %v4588_v25  ;;  %7473 = vmatmul.bf16.gmra.mxu0 %v8275_v2  ;;  %v5094_v37 = vrot.slane %v5092_v29, 4  ;;  %7384 = vmatmul.bf16.gmra.mxu3 %v8271_v15  ;;  %v12254_v38 = vrot.slane %v5098_v48, 5  ;;  %v3860_v1 = vld [vmem:[#allocation2 + $0x80] sm:$0xf]  ;;  %vm13253_vm12 = vnez %v13252_v58  ;;  %v4314_v48 = vld [vmem:[#allocation2 + $0x84] sm:$0xf] }
 0x28e   : > { %v7574_v62 = vmax.f32 %v7542_v0, 0.0  ;;  %v7341_v12 = vadd.f32 %v12183_v24, %v7252_v19  ;;  %4701 = vst [vmem:[#allocation3 + $0x39c] sm:$0xf] %v4589_v46  ;;  %v5091_v51 = vsel %vm9110_vm6, %v5086_v54, %v5090_v63  ;;  %v12252_v24 = vadd.f32 %v12156_v44, %v11198_v42  ;;  %v13254_v29 = vld [vmem:[#allocation84_spill] sm:$0xff]  ;;  %v12274_v54 = vld [vmem:[#allocation3 + $0x37c] sm:$0xf] }
 0x28f   : > { %v3892_v40 = vsel %vm13253_vm12, %v3859_v45, 0  ;;  %v8267_v47 = vor.u32 %v12234_v35, %v12231_v9  ;;  %v5095_v60 = vor.u32 %v5094_v37, %v5090_v63  ;;  %5218 = vst [vmem:[#allocation3 + $0x380] sm:$0xf] %v5091_v51  ;;  %vm13255_vm2 = vnez %v13254_v29  ;;  %v13256_v63 = vld [vmem:[#allocation17_spill] sm:$0xff]  ;;  %v12276_v45 = vld [vmem:[#allocation3 + $0x39c] sm:$0xf0] }
 0x290   : > { %7606 = vst [vmem:[%s12119_s28 + $0x18] sm:$0xff] %v7574_v62  ;;  %v7430_v27 = vadd.f32 %v12150_v53, %v7341_v12  ;;  %v8296_v56 = vld [vmem:[#allocation3 + $0x394] sm:$0xf0]  ;;  %v12262_v53 = vsel %vm13255_vm2, %v3860_v1, 0  ;;  %v4164_v49 = vrot.slane %v4162_v18, 4  ;;  %v4168_v15 = vshll.u32 %v3892_v40, 16 }
 0x291   : > { %v8299_v44 = vor.u32 %v8825_v61, %v8296_v56  ;;  %v4172_v50 = vshrl.u32 %v3892_v40, 16  ;;  %v12265_v19 = vpop.f32.mrf.mxu3  ;;  %v5096_v16 = vrot.slane %v5095_v60, 4  ;;  %v4178_v25 = vshll.u32 %v12262_v53, 16  ;;  %v4799_v37 = vld [vmem:[#allocation2 + $0x84] sm:$0xf] }
 0x292   : > { %v7507_v42 = vmul.f32 %v12066_v33, %v7430_v27  ;;  %v4165_v9 = vor.u32 %v4164_v49, %v12200_v17  ;;  %vm13257_vm1 = vnez %v13256_v63  ;;  %v12272_v13 = vpop.f32.mrf.mxu0  ;;  %v4170_v62 = vrot.slane %v4168_v15, 5  ;;  %v4800_v60 = vld [vmem:[#allocation2 + $0x88] sm:$0xf]  ;;  %v4734_v15 = vld [vmem:[#allocation2 + $0x80] sm:$0xf] }
 0x293   : > { %v7253_v0 = vpop.f32.mrf.mxu2  ;;  %v4346_v35 = vsel %vm13257_vm1, %v4313_v57, 0  ;;  %7211 = vmatmul.bf16.gmra.mxu1 %v8299_v44  ;;  %v4174_v12 = vrot.slane %v4172_v50, 4  ;;  %v5101_v17 = vsel %vm9110_vm6, %v5096_v16, %v12254_v38  ;;  %v5102_v46 = vshrl.u32 %v12219_v20, 16  ;;  %v12282_v57 = vpop.f32.mrf.mxu1  ;;  %v4735_v16 = vld [vmem:[#allocation2 + $0x84] sm:$0xf] }
 0x294   : > { %v7543_v2 = vadd.f32 %v12086_v3, %v7507_v42  ;;  %v7254_v18 = vadd.f32 %v7253_v0, %v7165_v28  ;;  %v4166_v61 = vrot.slane %v4165_v9, 4  ;;  %v13258_v28 = vld [vmem:[#allocation18_spill] sm:$0xff]  ;;  %5219 = vst [vmem:[#allocation3 + $0x3a4] sm:$0xf] %v5101_v17  ;;  %v12287_v56 = vrot.slane %v4178_v25, 5 }
 0x295   : > { %vm13259_vm9 = vnez %v13258_v28  ;;  %v4175_v40 = vor.u32 %v4174_v12, %v4170_v62  ;;  %v8307_v49 = vor.u32 %v12274_v54, %v12276_v45  ;;  %v4590_v42 = vrot.slane %v12222_v43, 4  ;;  %4766 = vst [vmem:[#allocation3 + $0x3c4] sm:$0xf] %v4734_v15 }
 0x296   : > { %v4347_v51 = vsel %vm13259_vm9, %v4314_v48, 0  ;;  %v7575_v27 = vmax.f32 %v7543_v2, 0.0  ;;  %v7343_v1 = vadd.f32 %v12224_v7, %v7254_v18  ;;  %v4171_v20 = vsel %vm9110_vm6, %v4166_v61, %v4170_v62  ;;  %v8310_v18 = vld [vmem:[#allocation3 + $0x380] sm:$0xf]  ;;  %4767 = vst [vmem:[#allocation3 + $0x3e8] sm:$0xf] %v4735_v16 }
 0x297   : > { %v4592_v44 = vshrl.u32 %v4346_v35, 16  ;;  %v4176_v7 = vrot.slane %v4175_v40, 4  ;;  %v4595_v48 = vshll.u32 %v4346_v35, 16  ;;  %v4601_v0 = vshrl.u32 %v4347_v51, 16  ;;  %4280 = vst [vmem:[#allocation3 + $0x3bc] sm:$0xf] %v4171_v20 }
 0x298   : > { %7607 = vst [vmem:[%s12119_s28 + $0x20] sm:$0xff] %v7575_v27  ;;  %v7432_v50 = vadd.f32 %v12191_v21, %v7343_v1  ;;  %7295 = vmatmul.bf16.gmra.mxu2 %v8267_v47  ;;  %v4604_v25 = vshll.u32 %v4347_v51, 16  ;;  %v4832_v63 = vsel %vm13253_vm12, %v4799_v37, 0  ;;  %v12300_v2 = vsel %vm13255_vm2, %v4800_v60, 0  ;;  %v3861_v20 = vld [vmem:[#allocation2 + $0x84] sm:$0xf] }
 0x299   : > { %v4594_v9 = vrot.slane %v4592_v44, 7  ;;  %v4181_v21 = vsel %vm9110_vm6, %v4176_v7, %v12287_v56  ;;  %v12306_v47 = vrot.slane %v4601_v0, 7  ;;  %v5104_v35 = vrot.slane %v5102_v46, 4  ;;  %v12308_v45 = vpop.f32.mrf.mxu3  ;;  %v8302_v7 = vld [vmem:[#allocation3 + $0x378] sm:$0xf] }
 0x29a   : > { %v7508_v43 = vmul.f32 %v12066_v33, %v7432_v50  ;;  %4281 = vst [vmem:[#allocation3 + $0x3e0] sm:$0xf] %v4181_v21  ;;  %v5108_v29 = vshll.u32 %v4832_v63, 16  ;;  %v5112_v12 = vshrl.u32 %v4832_v63, 16  ;;  %v12312_v28 = vpop.f32.mrf.mxu0  ;;  %v4182_v50 = vshrl.u32 %v12262_v53, 16 }
 0x29b   : > { %v7256_v54 = vpop.f32.mrf.mxu2  ;;  %v4597_v58 = vor.u32 %v4595_v48, %v4594_v9  ;;  %v4599_v62 = vrot.slane %v4594_v9, 4  ;;  %v4606_v51 = vor.u32 %v4604_v25, %v12306_v47  ;;  %v5105_v37 = vor.u32 %v5104_v35, %v12254_v38  ;;  %v8831_v46 = vld [vmem:[#allocation3 + $0x3a0] sm:$0xf0]  ;;  %v12316_v27 = vpop.f32.mrf.mxu1  ;;  %v8830_v48 = vld [vmem:[#allocation3 + $0x398] sm:$0xf0] }
 0x29c   : > { %v7544_v17 = vadd.f32 %v12086_v3, %v7508_v43  ;;  %v7257_v61 = vadd.f32 %v7256_v54, %v12252_v24  ;;  %v5110_v40 = vrot.slane %v5108_v29, 5  ;;  %v5114_v60 = vrot.slane %v5112_v12, 4  ;;  %v3862_v9 = vld [vmem:[#allocation2 + $0x88] sm:$0xf] }
 0x29d   : > { %v4598_v1 = vsel %vm9238_vm11, %v4590_v42, %v4597_v58  ;;  %v8311_v15 = vor.u32 %v8831_v46, %v8310_v18  ;;  %v4607_v38 = vsel %vm9238_vm11, %v4599_v62, %v4606_v51  ;;  %v5106_v0 = vrot.slane %v5105_v37, 4  ;;  %7389 = vmatmul.bf16.gmra.mxu3 %v8307_v49  ;;  %v4315_v43 = vld [vmem:[#allocation2 + $0x88] sm:$0xf] }
 0x29e   : > { %v7576_v44 = vmax.f32 %v7544_v17, 0.0  ;;  %v7346_v24 = vadd.f32 %v12265_v19, %v7257_v61  ;;  %4702 = vst [vmem:[#allocation3 + $0x3c0] sm:$0xf] %v4598_v1  ;;  %v5115_v16 = vor.u32 %v5114_v60, %v5110_v40  ;;  %v5118_v42 = vshll.u32 %v12300_v2, 16  ;;  %v8834_v19 = vld [vmem:[#allocation3 + $0x3bc] sm:$0xf] }
 0x29f   : > { %7478 = vmatmul.bf16.gmra.mxu0 %v8311_v15  ;;  %v3894_v53 = vsel %vm13260_vm4, %v3861_v20, 0  ;;  %v12331_v63 = vsel %vm13261_vm15, %v3862_v9, 0  ;;  %4703 = vst [vmem:[#allocation3 + $0x3e4] sm:$0xf] %v4607_v38  ;;  %v5111_v18 = vsel %vm9110_vm6, %v5106_v0, %v5110_v40  ;;  %v7170_v54 = vadd.f32 %v12198_v8, %v11250_v31  ;;  %v4316_v1 = vld [vmem:[#allocation2 + $0x8c] sm:$0xf] }
 0x2a0   : > { %7608 = vst [vmem:[%s12119_s28 + $0x28] sm:$0xff] %v7576_v44  ;;  %v7435_v25 = vadd.f32 %v12229_v11, %v7346_v24  ;;  %v5116_v21 = vrot.slane %v5115_v16, 4  ;;  %v12335_v35 = vrot.slane %v5118_v42, 5  ;;  %v5122_v11 = vshrl.u32 %v12300_v2, 16  ;;  %v12350_v20 = vld [vmem:[#allocation3 + $0x3c4] sm:$0xf] }
 0x2a1   : > { %v8332_v58 = vld [vmem:[#allocation3 + $0x3dc] sm:$0xf0]  ;;  %5220 = vst [vmem:[#allocation3 + $0x3c8] sm:$0xf] %v5111_v18  ;;  %v4184_v62 = vrot.slane %v4182_v50, 4  ;;  %v4188_v29 = vshll.u32 %v3894_v53, 16  ;;  %v12341_v17 = vpop.f32.mrf.mxu3  ;;  %v8303_v31 = vor.u32 %v8830_v48, %v8302_v7  ;;  %vm13263_vm0 = vnez %v12889_v10 }
 0x2a2   : > { %v7509_v49 = vmul.f32 %v12066_v33, %v7435_v25  ;;  %v8335_v61 = vor.u32 %v8834_v19, %v8332_v58  ;;  %v5121_v51 = vsel %vm9110_vm6, %v5116_v21, %v12335_v35  ;;  %v4192_v37 = vshrl.u32 %v3894_v53, 16  ;;  %v12348_v8 = vpop.f32.mrf.mxu0  ;;  %v12352_v44 = vld [vmem:[#allocation3 + $0x3e4] sm:$0xf0]  ;;  %v4801_v48 = vld [vmem:[#allocation2 + $0x8c] sm:$0xf] }
 0x2a3   : > { %v7258_v12 = vpop.f32.mrf.mxu2  ;;  %v4198_v46 = vshll.u32 %v12331_v63, 16  ;;  %5221 = vst [vmem:[#allocation3 + $0x3ec] sm:$0xf] %v5121_v51  ;;  %v4185_v24 = vor.u32 %v4184_v62, %v12287_v56  ;;  %v12355_v15 = vpop.f32.mrf.mxu1  ;;  %v4190_v50 = vrot.slane %v4188_v29, 5  ;;  %v4348_v7 = vsel %vm13262_vm10, %v4315_v43, 0 }
 0x2a4   : > { %v7545_v40 = vadd.f32 %v12086_v3, %v7509_v49  ;;  %v7259_v60 = vadd.f32 %v7258_v12, %v7170_v54  ;;  %7216 = vmatmul.bf16.gmra.mxu1 %v8335_v61  ;;  %v4194_v38 = vrot.slane %v4192_v37, 4  ;;  %v4736_v25 = vld [vmem:[#allocation2 + $0x88] sm:$0xf]  ;;  %v4737_v19 = vld [vmem:[#allocation2 + $0x8c] sm:$0xf]  ;;  %v4349_v56 = vsel %vm13263_vm0, %v4316_v1, 0 }
 0x2a5   : > { %v12357_v0 = vrot.slane %v4198_v46, 5  ;;  %v4186_v9 = vrot.slane %v4185_v24, 4  ;;  %v4608_v18 = vrot.slane %v12306_v47, 4  ;;  %v4610_v21 = vshrl.u32 %v4348_v7, 16  ;;  %4768 = vst [vmem:[#allocation3 + $0x40c] sm:$0xf] %v4736_v25 }
 0x2a6   : > { %v7577_v16 = vmax.f32 %v7545_v40, 0.0  ;;  %v7348_v42 = vadd.f32 %v12308_v45, %v7259_v60  ;;  %v4195_v53 = vor.u32 %v4194_v38, %v4190_v50  ;;  %v4613_v43 = vshll.u32 %v4348_v7, 16  ;;  %v4802_v54 = vld [vmem:[#allocation2 + $0x90] sm:$0xf]  ;;  %4769 = vst [vmem:[#allocation3 + $0x430] sm:$0xf] %v4737_v19 }
 0x2a7   : > { %v4191_v55 = vsel %vm9110_vm6, %v4186_v9, %v4190_v50  ;;  %v4619_v45 = vshrl.u32 %v4349_v56, 16  ;;  %v7173_v58 = vadd.f32 %v12236_v5, %v11295_v59  ;;  %v8343_v10 = vor.u32 %v12350_v20, %v12352_v44  ;;  %v12391_v50 = vld [vmem:[#allocation3 + $0x3c0] sm:$0xf]  ;;  %v12393_v38 = vld [vmem:[#allocation3 + $0x3e0] sm:$0xf0] }
 0x2a8   : > { %7609 = vst [vmem:[%s12119_s28 + $0x30] sm:$0xff] %v7577_v16  ;;  %v7437_v49 = vadd.f32 %v12272_v13, %v7348_v42  ;;  %7300 = vmatmul.bf16.gmra.mxu2 %v8303_v31  ;;  %v8346_v62 = vld [vmem:[#allocation3 + $0x3c8] sm:$0xf]  ;;  %v4196_v47 = vrot.slane %v4195_v53, 4  ;;  %v4612_v29 = vrot.slane %v4610_v21, 7  ;;  %v4622_v61 = vshll.u32 %v4349_v56, 16 }
 0x2a9   : > { %4282 = vst [vmem:[#allocation3 + $0x404] sm:$0xf] %v4191_v55  ;;  %v12374_v13 = vrot.slane %v4619_v45, 7  ;;  %v4834_v51 = vsel %vm13260_vm4, %v4801_v48, 0  ;;  %v12378_v46 = vpop.f32.mrf.mxu3  ;;  %v12385_v60 = vsel %vm13261_vm15, %v4802_v54, 0  ;;  %v5124_v48 = vrot.slane %v5122_v11, 4 }
 0x2aa   : > { %v7510_v12 = vmul.f32 %v12066_v33, %v7437_v49  ;;  %v8840_v59 = vld [vmem:[#allocation3 + $0x3e8] sm:$0xf0]  ;;  %v4201_v5 = vsel %vm9110_vm6, %v4196_v47, %v12357_v0  ;;  %v4615_v1 = vor.u32 %v4613_v43, %v4612_v29  ;;  %v4617_v40 = vrot.slane %v4612_v29, 4  ;;  %v12388_v44 = vpop.f32.mrf.mxu0  ;;  %v3863_v53 = vld [vmem:[#allocation2 + $0x8c] sm:$0xf] }
 0x2ab   : > { %v7261_v37 = vpop.f32.mrf.mxu2  ;;  %v8347_v14 = vor.u32 %v8840_v59, %v8346_v62  ;;  %4283 = vst [vmem:[#allocation3 + $0x428] sm:$0xf] %v4201_v5  ;;  %v4624_v24 = vor.u32 %v4622_v61, %v12374_v13  ;;  %v12395_v7 = vpop.f32.mrf.mxu1  ;;  %v5128_v16 = vshll.u32 %v4834_v51, 16  ;;  %v4202_v25 = vshrl.u32 %v12331_v63, 16  ;;  %v3864_v63 = vld [vmem:[#allocation2 + $0x90] sm:$0x1] }
 0x2ac   : > { %v7546_v31 = vadd.f32 %v12086_v3, %v7510_v12  ;;  %v7262_v20 = vadd.f32 %v7261_v37, %v7173_v58  ;;  %v4616_v34 = vsel %vm9238_vm11, %v4608_v18, %v4615_v1  ;;  %v5125_v56 = vor.u32 %v5124_v48, %v12335_v35  ;;  %v12427_v1 = vld [vmem:[#allocation3 + $0x40c] sm:$0xf] }
 0x2ad   : > { %v4625_v19 = vsel %vm9238_vm11, %v4617_v40, %v4624_v24  ;;  %4704 = vst [vmem:[#allocation3 + $0x408] sm:$0xf] %v4616_v34  ;;  %v5130_v21 = vrot.slane %v5128_v16, 5  ;;  %v5132_v49 = vshrl.u32 %v4834_v51, 16  ;;  %v5138_v18 = vshll.u32 %v12385_v60, 16  ;;  %7394 = vmatmul.bf16.gmra.mxu3 %v8343_v10 }
 0x2ae   : > { %v7578_v42 = vmax.f32 %v7546_v31, 0.0  ;;  %v7351_v9 = vadd.f32 %v12341_v17, %v7262_v20  ;;  %4705 = vst [vmem:[#allocation3 + $0x42c] sm:$0xf] %v4625_v19  ;;  %v7175_v11 = vadd.f32 %v12282_v57, %v11332_v26  ;;  %v8339_v17 = vor.u32 %v12393_v38, %v12391_v50  ;;  %v4317_v31 = vld [vmem:[#allocation2 + $0x90] sm:$0xf] }
 0x2af   : > { %7483 = vmatmul.bf16.gmra.mxu0 %v8347_v14  ;;  %v5126_v43 = vrot.slane %v5125_v56, 4  ;;  %v5134_v45 = vrot.slane %v5132_v49, 4  ;;  %v3896_v35 = vsel %vm11316_vm13, %v3863_v53, 0  ;;  %v12416_v58 = vrot.slane %v5138_v18, 5  ;;  %v4318_v34 = vld [vmem:[#allocation2 + $0x94] sm:$0xf] }
 0x2b0   : > { %7610 = vst [vmem:[%s12119_s28 + $0x38] sm:$0xff] %v7578_v42  ;;  %v7440_v2 = vadd.f32 %v12312_v28, %v7351_v9  ;;  %v8843_v55 = vld [vmem:[#allocation3 + $0x404] sm:$0xf]  ;;  %v3897_v28 = vsel %vm11310_vm14, %v3864_v63, 0  ;;  %v4204_v26 = vrot.slane %v4202_v25, 4  ;;  %v4208_v12 = vshll.u32 %v3896_v35, 16 }
 0x2b1   : > { %v12420_v10 = vpop.f32.mrf.mxu3  ;;  %v5131_v47 = vsel %vm9110_vm6, %v5126_v43, %v5130_v21  ;;  %v5135_v29 = vor.u32 %v5134_v45, %v5130_v21  ;;  %v4212_v61 = vshrl.u32 %v3896_v35, 16  ;;  %v4218_v38 = vshll.u32 %v3897_v28, 16  ;;  %v8376_v9 = vld [vmem:[#allocation3 + $0x42c] sm:$0xf0]  ;;  %v4738_v19 = vld [vmem:[#allocation2 + $0x90] sm:$0xf] }
 0x2b2   : > { %v7511_v54 = vmul.f32 %v12066_v33, %v7440_v2  ;;  %v8368_v62 = vld [vmem:[#allocation3 + $0x424] sm:$0xf0]  ;;  %v12425_v59 = vpop.f32.mrf.mxu0  ;;  %5222 = vst [vmem:[#allocation3 + $0x410] sm:$0xf] %v5131_v47  ;;  %v4205_v40 = vor.u32 %v4204_v26, %v12357_v0  ;;  %v4210_v24 = vrot.slane %v4208_v12, 5  ;;  %v7178_v42 = vadd.f32 %v12316_v27, %v11377_v39 }
 0x2b3   : > { %v7263_v57 = vpop.f32.mrf.mxu2  ;;  %v8371_v5 = vor.u32 %v8843_v55, %v8368_v62  ;;  %v5136_v20 = vrot.slane %v5135_v29, 4  ;;  %v12430_v14 = vpop.f32.mrf.mxu1  ;;  %v4214_v50 = vrot.slane %v4212_v61, 4  ;;  %v5142_v53 = vshrl.u32 %v12385_v60, 16  ;;  %4770 = vst [vmem:[#allocation3 + $0x454] sm:$0xf] %v4738_v19 }
 0x2b4   : > { %v7547_v51 = vadd.f32 %v12086_v3, %v7511_v54  ;;  %v7264_v37 = vadd.f32 %v7263_v57, %v7175_v11  ;;  %v4206_v25 = vrot.slane %v4205_v40, 4  ;;  %v4220_v21 = vrot.slane %v4218_v38, 5  ;;  %v496_v49 = vld [vmem:[#allocation2 + $0x98] sm:$0x1]  ;;  %v4803_v18 = vld [vmem:[#allocation2 + $0x94] sm:$0xf] }
 0x2b5   : > { %7221 = vmatmul.bf16.gmra.mxu1 %v8371_v5  ;;  %v5141_v0 = vsel %vm9110_vm6, %v5136_v20, %v12416_v58  ;;  %v4215_v56 = vor.u32 %v4214_v50, %v4210_v24  ;;  %v4350_v27 = vsel %vm13264_vm7, %v4317_v31, 0  ;;  %vm13265_vm8 = vnez %v12911_v52  ;;  %v4739_v11 = vld [vmem:[#allocation2 + $0x94] sm:$0xf]  ;;  %v8374_v31 = vld [vmem:[#allocation3 + $0x408] sm:$0xf] }
 0x2b6   : > { %v7579_v48 = vmax.f32 %v7547_v51, 0.0  ;;  %v7353_v16 = vadd.f32 %v12378_v46, %v7264_v37  ;;  %v4211_v39 = vsel %vm9110_vm6, %v4206_v25, %v4210_v24  ;;  %v4351_v2 = vsel %vm13265_vm8, %v4318_v34, 0  ;;  %5223 = vst [vmem:[#allocation3 + $0x434] sm:$0xf] %v5141_v0 }
 0x2b7   : > { %v8379_v60 = vor.u32 %v12427_v1, %v8376_v9  ;;  %v4216_v63 = vrot.slane %v4215_v56, 4  ;;  %v4628_v55 = vshrl.u32 %v4350_v27, 16  ;;  %v4631_v43 = vshll.u32 %v4350_v27, 16  ;;  %4284 = vst [vmem:[#allocation3 + $0x44c] sm:$0xf] %v4211_v39 }
 0x2b8   : > { %7611 = vst [vmem:[%s12119_s28 + $0x40] sm:$0xff] %v7579_v48  ;;  %v7442_v46 = vadd.f32 %v12348_v8, %v7353_v16  ;;  %7305 = vmatmul.bf16.gmra.mxu2 %v8339_v17  ;;  %v4637_v8 = vshrl.u32 %v4351_v2, 16  ;;  %v4640_v17 = vshll.u32 %v4351_v2, 16  ;;  %vm493_vm5 = vcmask 1040384   ;;  %v8848_v48 = vld [vmem:[#allocation3 + $0x428] sm:$0xf0] }
 0x2b9   : > { %v7357_v54 = vpop.f32.mrf.mxu3  ;;  %v4221_v41 = vsel %vm9110_vm6, %v4216_v63, %v4220_v21  ;;  %v4626_v52 = vrot.slane %v12374_v13, 4  ;;  %v4630_v28 = vrot.slane %v4628_v55, 7  ;;  %4771 = vst [vmem:[#allocation3 + $0x478] sm:$0xf] %v4739_v11  ;;  %vm13266_vm3 = vsmask.f32 256 }
 0x2ba   : > { %v7512_v45 = vmul.f32 %v12066_v33, %v7442_v46  ;;  %vm495_vm12 = vmand %vm493_vm5, %vm13266_vm3  ;;  %v4836_v26 = vsel %vm11316_vm13, %v4803_v18, 0  ;;  %v12456_v62 = vpop.f32.mrf.mxu0  ;;  %4285 = vst [vmem:[#allocation3 + $0x470] sm:$0xf] %v4221_v41  ;;  %v4639_v47 = vrot.slane %v4637_v8, 7  ;;  %v5144_v51 = vrot.slane %v5142_v53, 4  ;;  %v13267_v41 = vld [vmem:[#allocation49_spill] sm:$0xff] }
 0x2bb   : > { %v7266_v35 = vpop.f32.mrf.mxu2  ;;  %v497_v29 = vsel %vm495_vm12, 0, %v496_v49  ;;  %v12458_v12 = vpop.f32.mrf.mxu1  ;;  %v4633_v61 = vor.u32 %v4631_v43, %v4630_v28  ;;  %v4635_v13 = vrot.slane %v4630_v28, 4  ;;  %v5148_v37 = vshll.u32 %v4836_v26, 16  ;;  %v8382_v1 = vld [vmem:[#allocation3 + $0x410] sm:$0xf] }
 0x2bc   : > { %v7548_v33 = vadd.f32 %v12086_v3, %v7512_v45  ;;  %v7267_v57 = vadd.f32 %v7266_v35, %v7178_v42  ;;  %498 = vst [vmem:[#allocation2 + $0x98] sm:$0x1] %v497_v29  ;;  %v4642_v40 = vor.u32 %v4640_v17, %v4639_v47  ;;  %v5145_v24 = vor.u32 %v5144_v51, %v12416_v58  ;;  %v12471_v58 = vld [vmem:[%s12590_s4] ss:$0 sm:$0xff]  ;;  %v8853_v8 = vld [vmem:[#allocation3 + $0x454] sm:$0xf] }
 0x2bd   : > { %v4634_v20 = vsel %vm9238_vm11, %v4626_v52, %v4633_v61  ;;  %v5150_v50 = vrot.slane %v5148_v37, 5  ;;  %v5152_v38 = vshrl.u32 %v4836_v26, 16  ;;  %7399 = vmatmul.bf16.gmra.mxu3 %v8379_v60  ;;  %v8849_v16 = vld [vmem:[#allocation3 + $0x430] sm:$0xf0]  ;;  %v8375_v39 = vor.u32 %v8848_v48, %v8374_v31 }
 0x2be   : > { %v7580_v5 = vmax.f32 %v7548_v33, 0.0  ;;  %v7356_v4 = vadd.f32 %v12420_v10, %v7267_v57  ;;  %v4643_v42 = vsel %vm9238_vm11, %v4635_v13, %v4642_v40  ;;  %v8383_v10 = vor.u32 %v8849_v16, %v8382_v1  ;;  %v8852_v9 = vld [vmem:[#allocation3 + $0x44c] sm:$0xf]  ;;  %4706 = vst [vmem:[#allocation3 + $0x450] sm:$0xf] %v4634_v20 }
 0x2bf   : > { %v5146_v25 = vrot.slane %v5145_v24, 4  ;;  %v5154_v19 = vrot.slane %v5152_v38, 4  ;;  %4707 = vst [vmem:[#allocation3 + $0x474] sm:$0xf] %v4643_v42  ;;  %v7183_v23 = vadd.f32 %v12395_v7, %v13267_v41 }
 0x2c0   : > { %7612 = vst [vmem:[%s12119_s28 + $0x48] sm:$0xff] %v7580_v5  ;;  %v7445_v34 = vadd.f32 %v12388_v44, %v7356_v4  ;;  %v7180_v44 = vadd.f32 %v12355_v15, %v11401_v30  ;;  %7488 = vmatmul.bf16.gmra.mxu0 %v8383_v10  ;;  %v8412_v17 = vld [vmem:[#allocation3 + $0x474] sm:$0xf0]  ;;  %v13268_v4 = vld [vmem:[#allocation58_spill] sm:$0xff] }
 0x2c1   : > { %v7360_v36 = vpop.f32.mrf.mxu3  ;;  %v8404_v56 = vld [vmem:[#allocation3 + $0x46c] sm:$0xf0]  ;;  %v5151_v21 = vsel %vm9110_vm6, %v5146_v25, %v5150_v50  ;;  %v5155_v49 = vor.u32 %v5154_v19, %v5150_v50  ;;  %v8415_v47 = vor.u32 %v8853_v8, %v8412_v17  ;;  %v7185_v1 = vadd.f32 %v12430_v14, %v13268_v4  ;;  %v13271_v8 = vld [vmem:[#allocation44_spill] sm:$0xff] }
 0x2c2   : > { %v7513_v0 = vmul.f32 %v12471_v58, %v7445_v34  ;;  %v7451_v27 = vpop.f32.mrf.mxu0  ;;  %v8407_v2 = vor.u32 %v8852_v9, %v8404_v56  ;;  %5224 = vst [vmem:[#allocation3 + $0x458] sm:$0xf] %v5151_v21  ;;  %v13269_v14 = vld [vmem:[#allocation46_spill] sm:$0xff] }
 0x2c3   : > { %v7268_v53 = vpop.f32.mrf.mxu2  ;;  %v4804_v11 = vld [vmem:[#allocation2 + $0x98] sm:$0x1]  ;;  %v7189_v15 = vpop.f32.mrf.mxu1  ;;  %v5156_v55 = vrot.slane %v5155_v49, 4  ;;  %v7188_v25 = vadd.f32 %v12458_v12, %v13269_v14 }
 0x2c4   : > { %v7549_v18 = vadd.f32 %v12086_v3, %v7513_v0  ;;  %v7269_v46 = vadd.f32 %v7268_v53, %v7180_v44  ;;  %v4837_v30 = vsel %vm11310_vm14, %v4804_v11, 0 }
 0x2c5   : > { %7226 = vmatmul.bf16.gmra.mxu1 %v8407_v2  ;;  %v5158_v43 = vshll.u32 %v4837_v30, 16  ;;  %v8410_v51 = vld [vmem:[#allocation3 + $0x450] sm:$0xf] }
 0x2c6   : > { %v7581_v60 = vmax.f32 %v7549_v18, 0.0  ;;  %v7358_v63 = vadd.f32 %v7357_v54, %v7269_v46  ;;  %v8857_v37 = vld [vmem:[#allocation3 + $0x470] sm:$0xf0] }
 0x2c7   : > { %v5160_v3 = vrot.slane %v5158_v43, 5  ;;  %v8411_v34 = vor.u32 %v8857_v37, %v8410_v51 }
 0x2c8   : > { %7613 = vst [vmem:[%s12119_s28 + $0x50] sm:$0xff] %v7581_v60  ;;  %v7447_v45 = vadd.f32 %v12425_v59, %v7358_v63  ;;  %7310 = vmatmul.bf16.gmra.mxu2 %v8375_v39  ;;  %v12491_v59 = vld [vmem:[%s12591_s5] ss:$0 sm:$0xff]  ;;  %v13270_v39 = vld [vmem:[#allocation43_spill] sm:$0xff] }
 0x2c9   : > { %v5161_v52 = vsel %vm9110_vm6, %v5156_v55, %v5160_v3  ;;  %v7362_v28 = vpop.f32.mrf.mxu3  ;;  %v8418_v7 = vld [vmem:[#allocation3 + $0x458] sm:$0xf] }
 0x2ca   : > { %v7514_v35 = vmul.f32 %v12471_v58, %v7447_v45  ;;  %5225 = vst [vmem:[#allocation3 + $0x47c] sm:$0xf] %v5161_v52  ;;  %v7454_v57 = vpop.f32.mrf.mxu0 }
 0x2cb   : > { %v7271_v54 = vpop.f32.mrf.mxu2  ;;  %v7192_v29 = vpop.f32.mrf.mxu1 }
 0x2cc   : > { %v7550_v26 = vadd.f32 %v12491_v59, %v7514_v35  ;;  %v7272_v33 = vadd.f32 %v7271_v54, %v7183_v23  ;;  %v7193_v17 = vadd.f32 %v7192_v29, %v13271_v8 }
 0x2cd   : > { %7404 = vmatmul.bf16.gmra.mxu3 %v8415_v47  ;;  %v13272_v47 = vld [vmem:[#allocation30_spill] sm:$0xff] }
 0x2ce   : > { %v7582_v61 = vmax.f32 %v7550_v26, 0.0  ;;  %v7361_v13 = vadd.f32 %v7360_v36, %v7272_v33 }
 0x2d0   : > { %7614 = vst [vmem:[%s12119_s28 + $0x58] sm:$0xff] %v7582_v61  ;;  %v7450_v22 = vadd.f32 %v12456_v62, %v7361_v13 }
 0x2d1   : > { %v8858_v40 = vld [vmem:[#allocation3 + $0x478] sm:$0xf0]  ;;  %v7365_v24 = vpop.f32.mrf.mxu3 }
 0x2d2   : > { %v7515_v5 = vmul.f32 %v12471_v58, %v7450_v22  ;;  %v8419_v20 = vor.u32 %v8858_v40, %v8418_v7  ;;  %v7456_v48 = vpop.f32.mrf.mxu0  ;;  %v13273_v40 = vld [vmem:[#allocation48_spill] sm:$0xff] }
 0x2d3   : > { %v7273_v31 = vpop.f32.mrf.mxu2  ;;  %v7194_v62 = vpop.f32.mrf.mxu1 }
 0x2d4   : > { %v7551_v50 = vadd.f32 %v12491_v59, %v7515_v5  ;;  %v7274_v38 = vadd.f32 %v7273_v31, %v7185_v1  ;;  %7493 = vmatmul.bf16.gmra.mxu0 %v8419_v20  ;;  %v7195_v61 = vadd.f32 %v7194_v62, %v13272_v47 }
 0x2d6   : > { %v7583_v16 = vmax.f32 %v7551_v50, 0.0  ;;  %v7363_v42 = vadd.f32 %v7362_v28, %v7274_v38 }
 0x2d8   : > { %7615 = vst [vmem:[%s12119_s28 + $0x60] sm:$0xff] %v7583_v16  ;;  %v7452_v10 = vadd.f32 %v7451_v27, %v7363_v42  ;;  %7315 = vmatmul.bf16.gmra.mxu2 %v8411_v34  ;;  %v7190_v27 = vadd.f32 %v7189_v15, %v13270_v39 }
 0x2d9   : > { %v7367_v0 = vpop.f32.mrf.mxu3 }
 0x2da   : > { %v7516_v9 = vmul.f32 %v12471_v58, %v7452_v10  ;;  %v7459_v36 = vpop.f32.mrf.mxu0 }
 0x2db   : > { %v7276_v19 = vpop.f32.mrf.mxu2  ;;  %v7197_v56 = vpop.f32.mrf.mxu1 }
 0x2dc   : > { %v7552_v44 = vadd.f32 %v12491_v59, %v7516_v9  ;;  %v7277_v53 = vadd.f32 %v7276_v19, %v7188_v25  ;;  %v7198_v31 = vadd.f32 %v7197_v56, %v13273_v40  ;;  %v13274_v9 = vld [vmem:[#allocation31_spill] sm:$0xff] }
 0x2de   : > { %v7584_v21 = vmax.f32 %v7552_v44, 0.0  ;;  %v7366_v49 = vadd.f32 %v7365_v24, %v7277_v53 }
 0x2e0   : > { %7616 = vst [vmem:[%s12119_s28 + $0x68] sm:$0xff] %v7584_v21  ;;  %v7455_v18 = vadd.f32 %v7454_v57, %v7366_v49 }
 0x2e1   : > { %v7370_v11 = vpop.f32.mrf.mxu3 }
 0x2e2   : > { %v7517_v46 = vmul.f32 %v12471_v58, %v7455_v18  ;;  %v7461_v60 = vpop.f32.mrf.mxu0 }
 0x2e3   : > { %v7278_v2 = vpop.f32.mrf.mxu2  ;;  %v7199_v43 = vpop.f32.mrf.mxu1 }
 0x2e4   : > { %v7553_v12 = vadd.f32 %v12491_v59, %v7517_v46  ;;  %v7279_v30 = vadd.f32 %v7278_v2, %v7190_v27  ;;  %v7200_v14 = vadd.f32 %v7199_v43, %v13274_v9  ;;  %v13275_v46 = vld [vmem:[#allocation19_spill] sm:$0xff] }
 0x2e6   : > { %v7585_v63 = vmax.f32 %v7553_v12, 0.0  ;;  %v7368_v55 = vadd.f32 %v7367_v0, %v7279_v30 }
 0x2e8   : > { %7617 = vst [vmem:[%s12119_s28 + $0x70] sm:$0xff] %v7585_v63  ;;  %v7457_v45 = vadd.f32 %v7456_v48, %v7368_v55 }
 0x2e9   : > { %v7372_v41 = vpop.f32.mrf.mxu3 }
 0x2ea   : > { %v7518_v3 = vmul.f32 %v12471_v58, %v7457_v45  ;;  %v7464_v52 = vpop.f32.mrf.mxu0 }
 0x2eb   : > { %v7281_v35 = vpop.f32.mrf.mxu2 }
 0x2ec   : > { %v7554_v15 = vadd.f32 %v12491_v59, %v7518_v3  ;;  %v7282_v23 = vadd.f32 %v7281_v35, %v7193_v17  ;;  %v13276_v3 = vld [vmem:[#allocation20_spill] sm:$0xff] }
 0x2ee   : > { %v7586_v54 = vmax.f32 %v7554_v15, 0.0  ;;  %v7371_v28 = vadd.f32 %v7370_v11, %v7282_v23 }
 0x2ef   : > { %v7202_v33 = vpop.f32.mrf.mxu1 }
 0x2f0   : > { %7618 = vst [vmem:[%s12119_s28 + $0x78] sm:$0xff] %v7586_v54  ;;  %v7460_v26 = vadd.f32 %v7459_v36, %v7371_v28  ;;  %v7203_v39 = vadd.f32 %v7202_v33, %v13275_v46 }
 0x2f1   : > { %v7375_v22 = vpop.f32.mrf.mxu3 }
 0x2f2   : > { %v7519_v57 = vmul.f32 %v12471_v58, %v7460_v26  ;;  %v7466_v51 = vpop.f32.mrf.mxu0 }
 0x2f3   : > { %v7283_v13 = vpop.f32.mrf.mxu2 }
 0x2f4   : > { %v7555_v29 = vadd.f32 %v12491_v59, %v7519_v57  ;;  %v7284_v7 = vadd.f32 %v7283_v13, %v7195_v61  ;;  %v13277_v57 = vld [vmem:[#allocation54_spill] sm:$0xff] }
 0x2f6   : > { %v7587_v37 = vmax.f32 %v7555_v29, 0.0  ;;  %v7373_v5 = vadd.f32 %v7372_v41, %v7284_v7 }
 0x2f7   : > { %v7204_v20 = vpop.f32.mrf.mxu1 }
 0x2f8   : > { %7619 = vst [vmem:[%s12119_s28 + $0x80] sm:$0xff] %v7587_v37  ;;  %v7462_v4 = vadd.f32 %v7461_v60, %v7373_v5  ;;  %v7205_v8 = vadd.f32 %v7204_v20, %v13276_v3 }
 0x2f9   : > { %v7377_v50 = vpop.f32.mrf.mxu3 }
 0x2fa   : > { %v7520_v1 = vmul.f32 %v12471_v58, %v7462_v4  ;;  %v7469_v48 = vpop.f32.mrf.mxu0 }
 0x2fb   : > { %v7286_v24 = vpop.f32.mrf.mxu2 }
 0x2fc   : > { %v7556_v38 = vadd.f32 %v12491_v59, %v7520_v1  ;;  %v7287_v34 = vadd.f32 %v7286_v24, %v7198_v31  ;;  %v13278_v1 = vld [vmem:[#allocation32_spill] sm:$0xff] }
 0x2fe   : > { %v7588_v62 = vmax.f32 %v7556_v38, 0.0  ;;  %v7376_v16 = vadd.f32 %v7375_v22, %v7287_v34 }
 0x300   : > { %7620 = vst [vmem:[%s12119_s28 + $0x88] sm:$0xff] %v7588_v62  ;;  %v7465_v42 = vadd.f32 %v7464_v52, %v7376_v16  ;;  %v7207_v36 = vpop.f32.mrf.mxu1 }
 0x301   : > { %v7380_v19 = vpop.f32.mrf.mxu3  ;;  %v7208_v47 = vadd.f32 %v7207_v36, %v13277_v57 }
 0x302   : > { %v7521_v10 = vmul.f32 %v12471_v58, %v7465_v42  ;;  %v7471_v53 = vpop.f32.mrf.mxu0  ;;  %v13279_v42 = vld [vmem:[#allocation60_spill] sm:$0xff] }
 0x303   : > { %v7288_v25 = vpop.f32.mrf.mxu2 }
 0x304   : > { %v7557_v0 = vadd.f32 %v12491_v59, %v7521_v10  ;;  %v7289_v44 = vadd.f32 %v7288_v25, %v7200_v14 }
 0x306   : > { %v7589_v56 = vmax.f32 %v7557_v0, 0.0  ;;  %v7378_v21 = vadd.f32 %v7377_v50, %v7289_v44 }
 0x308   : > { %7621 = vst [vmem:[%s12119_s28 + $0x90] sm:$0xff] %v7589_v56  ;;  %v7467_v49 = vadd.f32 %v7466_v51, %v7378_v21  ;;  %v7209_v55 = vpop.f32.mrf.mxu1 }
 0x309   : > { %v7382_v2 = vpop.f32.mrf.mxu3  ;;  %v7210_v40 = vadd.f32 %v7209_v55, %v13278_v1 }
 0x30a   : > { %v7522_v18 = vmul.f32 %v12471_v58, %v7467_v49  ;;  %v7474_v30 = vpop.f32.mrf.mxu0  ;;  %v13280_v49 = vld [vmem:[#allocation33_spill] sm:$0xff] }
 0x30b   : > { %v7291_v27 = vpop.f32.mrf.mxu2 }
 0x30c   : > { %v7558_v11 = vadd.f32 %v12491_v59, %v7522_v18  ;;  %v7292_v12 = vadd.f32 %v7291_v27, %v7203_v39 }
 0x30e   : > { %v7590_v60 = vmax.f32 %v7558_v11, 0.0  ;;  %v7381_v63 = vadd.f32 %v7380_v19, %v7292_v12 }
 0x310   : > { %7622 = vst [vmem:[%s12119_s28 + $0x98] sm:$0xff] %v7590_v60  ;;  %v7470_v43 = vadd.f32 %v7469_v48, %v7381_v63  ;;  %v7212_v26 = vpop.f32.mrf.mxu1 }
 0x311   : > { %v7385_v35 = vpop.f32.mrf.mxu3  ;;  %v7213_v10 = vadd.f32 %v7212_v26, %v13279_v42  ;;  %v13282_v26 = vld [vmem:[#allocation26_spill] sm:$0xff] }
 0x312   : > { %v7523_v45 = vmul.f32 %v12471_v58, %v7470_v43  ;;  %v7476_v54 = vpop.f32.mrf.mxu0  ;;  %v13281_v43 = vld [vmem:[#allocation25_spill] sm:$0xff] }
 0x313   : > { %v7293_v17 = vpop.f32.mrf.mxu2 }
 0x314   : > { %v7559_v41 = vadd.f32 %v12491_v59, %v7523_v45  ;;  %v7294_v15 = vadd.f32 %v7293_v17, %v7205_v8 }
 0x316   : > { %v7591_v23 = vmax.f32 %v7559_v41, 0.0  ;;  %v7383_v52 = vadd.f32 %v7382_v2, %v7294_v15 }
 0x318   : > { %7623 = vst [vmem:[%s12119_s28 + $0xa0] sm:$0xff] %v7591_v23  ;;  %v7472_v28 = vadd.f32 %v7471_v53, %v7383_v52  ;;  %v7214_v31 = vpop.f32.mrf.mxu1 }
 0x319   : > { %v7387_v13 = vpop.f32.mrf.mxu3  ;;  %v7215_v18 = vadd.f32 %v7214_v31, %v13280_v49 }
 0x31a   : > { %v7524_v33 = vmul.f32 %v12471_v58, %v7472_v28 }
 0x31b   : > { %v7296_v61 = vpop.f32.mrf.mxu2 }
 0x31c   : > { %v7560_v22 = vadd.f32 %v12491_v59, %v7524_v33  ;;  %v7297_v29 = vadd.f32 %v7296_v61, %v7208_v47  ;;  %v7479_v5 = vpop.f32.mrf.mxu0 }
 0x31e   : > { %v7592_v7 = vmax.f32 %v7560_v22, 0.0  ;;  %v7386_v51 = vadd.f32 %v7385_v35, %v7297_v29 }
 0x320   : > { %7624 = vst [vmem:[%s12119_s28 + $0xa8] sm:$0xff] %v7592_v7  ;;  %v7475_v37 = vadd.f32 %v7474_v30, %v7386_v51 }
 0x321   : > { %v7390_v24 = vpop.f32.mrf.mxu3  ;;  %v7217_v44 = vpop.f32.mrf.mxu1 }
 0x322   : > { %v7525_v4 = vmul.f32 %v12471_v58, %v7475_v37  ;;  %v7218_v45 = vadd.f32 %v7217_v44, %v13281_v43 }
 0x323   : > { %v7298_v20 = vpop.f32.mrf.mxu2 }
 0x324   : > { %v7561_v50 = vadd.f32 %v12491_v59, %v7525_v4  ;;  %v7299_v38 = vadd.f32 %v7298_v20, %v7210_v40  ;;  %v7481_v9 = vpop.f32.mrf.mxu0 }
 0x326   : > { %v7593_v34 = vmax.f32 %v7561_v50, 0.0  ;;  %v7388_v48 = vadd.f32 %v7387_v13, %v7299_v38 }
 0x328   : > { %7625 = vst [vmem:[%s12119_s28 + $0xb0] sm:$0xff] %v7593_v34  ;;  %v7477_v62 = vadd.f32 %v7476_v54, %v7388_v48 }
 0x329   : > { %v7392_v25 = vpop.f32.mrf.mxu3  ;;  %v7219_v60 = vpop.f32.mrf.mxu1 }
 0x32a   : > { %v7526_v16 = vmul.f32 %v12471_v58, %v7477_v62  ;;  %v7220_v33 = vadd.f32 %v7219_v60, %v13282_v26  ;;  %v13284_v62 = vld [vmem:[#allocation34_spill] sm:$0xff] }
 0x32b   : > { %v7301_v14 = vpop.f32.mrf.mxu2 }
 0x32c   : > { %v7562_v19 = vadd.f32 %v12491_v59, %v7526_v16  ;;  %v7302_v0 = vadd.f32 %v7301_v14, %v7213_v10  ;;  %v7484_v11 = vpop.f32.mrf.mxu0 }
 0x32e   : > { %v7594_v53 = vmax.f32 %v7562_v19, 0.0  ;;  %v7391_v36 = vadd.f32 %v7390_v24, %v7302_v0 }
 0x330   : > { %7626 = vst [vmem:[%s12119_s28 + $0xb8] sm:$0xff] %v7594_v53  ;;  %v7480_v56 = vadd.f32 %v7479_v5, %v7391_v36  ;;  %v13283_v5 = vld [vmem:[#allocation63_spill] sm:$0xff] }
 0x331   : > { %v7395_v39 = vpop.f32.mrf.mxu3 }
 0x332   : > { %v7527_v21 = vmul.f32 %v12471_v58, %v7480_v56  ;;  %v7222_v54 = vpop.f32.mrf.mxu1 }
 0x333   : > { %v7303_v46 = vpop.f32.mrf.mxu2  ;;  %v7223_v4 = vadd.f32 %v7222_v54, %v13283_v5 }
 0x334   : > { %v7563_v27 = vadd.f32 %v12491_v59, %v7527_v21  ;;  %v7304_v2 = vadd.f32 %v7303_v46, %v7215_v18  ;;  %v7486_v23 = vpop.f32.mrf.mxu0 }
 0x336   : > { %v7595_v12 = vmax.f32 %v7563_v27, 0.0  ;;  %v7393_v30 = vadd.f32 %v7392_v25, %v7304_v2 }
 0x338   : > { %7627 = vst [vmem:[%s12119_s28 + $0xc0] sm:$0xff] %v7595_v12  ;;  %v7482_v63 = vadd.f32 %v7481_v9, %v7393_v30 }
 0x339   : > { %v7397_v35 = vpop.f32.mrf.mxu3 }
 0x33a   : > { %v7528_v55 = vmul.f32 %v12471_v58, %v7482_v63  ;;  %v7224_v40 = vpop.f32.mrf.mxu1 }
 0x33b   : > { %v7306_v3 = vpop.f32.mrf.mxu2  ;;  %v7225_v16 = vadd.f32 %v7224_v40, %v13284_v62 }
 0x33c   : > { %v7564_v8 = vadd.f32 %v12491_v59, %v7528_v55  ;;  %v7307_v17 = vadd.f32 %v7306_v3, %v7218_v45 }
 0x33d   : > { %v7489_v51 = vpop.f32.mrf.mxu0 }
 0x33e   : > { %v7596_v41 = vmax.f32 %v7564_v8, 0.0  ;;  %v7396_v15 = vadd.f32 %v7395_v39, %v7307_v17 }
 0x340   : > { %7628 = vst [vmem:[%s12119_s28 + $0xc8] sm:$0xff] %v7596_v41  ;;  %v7485_v52 = vadd.f32 %v7484_v11, %v7396_v15 }
 0x341   : > { %v7400_v29 = vpop.f32.mrf.mxu3 }
 0x342   : > { %v7529_v28 = vmul.f32 %v12471_v58, %v7485_v52  ;;  %v7227_v25 = vpop.f32.mrf.mxu1 }
 0x343   : > { %v7308_v57 = vpop.f32.mrf.mxu2  ;;  %v7228_v36 = vadd.f32 %v7227_v25, %v12051_v6 }
 0x344   : > { %v7565_v47 = vadd.f32 %v12491_v59, %v7529_v28  ;;  %v7309_v61 = vadd.f32 %v7308_v57, %v7220_v33 }
 0x345   : > { %v7491_v42 = vpop.f32.mrf.mxu0 }
 0x346   : > { %v7597_v13 = vmax.f32 %v7565_v47, 0.0  ;;  %v7398_v22 = vadd.f32 %v7397_v35, %v7309_v61 }
 0x348   : > { %7629 = vst [vmem:[%s12119_s28 + $0xd0] sm:$0xff] %v7597_v13  ;;  %v7487_v7 = vadd.f32 %v7486_v23, %v7398_v22 }
 0x349   : > { %v7402_v34 = vpop.f32.mrf.mxu3 }
 0x34a   : > { %v7530_v37 = vmul.f32 %v12471_v58, %v7487_v7  ;;  %v7229_v2 = vpop.f32.mrf.mxu1 }
 0x34b   : > { %v7311_v1 = vpop.f32.mrf.mxu2  ;;  %v7230_v30 = vadd.f32 %v7229_v2, %v12055_v32 }
 0x34c   : > { %v7566_v31 = vadd.f32 %v12491_v59, %v7530_v37  ;;  %v7312_v20 = vadd.f32 %v7311_v1, %v7223_v4 }
 0x34e   : > { %v7598_v24 = vmax.f32 %v7566_v31, 0.0  ;;  %v7401_v50 = vadd.f32 %v7400_v29, %v7312_v20 }
 0x350   : > { %7630 = vst [vmem:[%s12119_s28 + $0xd8] sm:$0xff] %v7598_v24  ;;  %v7490_v38 = vadd.f32 %v7489_v51, %v7401_v50 }
 0x351   : > { %v7405_v21 = vpop.f32.mrf.mxu3  ;;  %v7494_v46 = vpop.f32.mrf.mxu0 }
 0x352   : > { %v7531_v48 = vmul.f32 %v12471_v58, %v7490_v38 }
 0x353   : > { %v7313_v10 = vpop.f32.mrf.mxu2 }
 0x354   : > { %v7567_v9 = vadd.f32 %v12491_v59, %v7531_v48  ;;  %v7314_v14 = vadd.f32 %v7313_v10, %v7225_v16 }
 0x356   : > { %v7599_v19 = vmax.f32 %v7567_v9, 0.0  ;;  %v7403_v0 = vadd.f32 %v7402_v34, %v7314_v14 }
 0x358   : > { %7631 = vst [vmem:[%s12119_s28 + $0xe0] sm:$0xff] %v7599_v19  ;;  %v7492_v44 = vadd.f32 %v7491_v42, %v7403_v0 }
 0x359   : > { %v7407_v55 = vpop.f32.mrf.mxu3  ;;  %v7496_v3 = vpop.f32.mrf.mxu0 }
 0x35a   : > { %v7532_v53 = vmul.f32 %v12471_v58, %v7492_v44 }
 0x35b   : > { %v7316_v56 = vpop.f32.mrf.mxu2 }
 0x35c   : > { %v7568_v49 = vadd.f32 %v12491_v59, %v7532_v53  ;;  %v7317_v18 = vadd.f32 %v7316_v56, %v7228_v36 }
 0x35e   : > { %v7600_v39 = vmax.f32 %v7568_v49, 0.0  ;;  %v7406_v27 = vadd.f32 %v7405_v21, %v7317_v18 }
 0x360   : > { %7632 = vst [vmem:[%s12119_s28 + $0xe8] sm:$0xff] %v7600_v39  ;;  %v7495_v11 = vadd.f32 %v7494_v46, %v7406_v27 }
 0x362   : > { %v7533_v12 = vmul.f32 %v12471_v58, %v7495_v11 }
 0x363   : > { %v7318_v60 = vpop.f32.mrf.mxu2 }
 0x364   : > { %v7569_v6 = vadd.f32 %v12491_v59, %v7533_v12  ;;  %v7319_v63 = vadd.f32 %v7318_v60, %v7230_v30 }
 0x366   : > { %v7601_v43 = vmax.f32 %v7569_v6, 0.0  ;;  %v7408_v45 = vadd.f32 %v7407_v55, %v7319_v63 }
 0x368   : > { %7633 = vst [vmem:[%s12119_s28 + $0xf0] sm:$0xff] %v7601_v43  ;;  %v7497_v8 = vadd.f32 %v7496_v3, %v7408_v45 }
 0x36a   : > { %v7534_v17 = vmul.f32 %v12471_v58, %v7497_v8 }
 0x36c   : > { %v7570_v35 = vadd.f32 %v12491_v59, %v7534_v17 }
 0x36e   : > { %v7602_v41 = vmax.f32 %v7570_v35, 0.0 }
 0x370   : > { %7634 = vst [vmem:[%s12119_s28 + $0xf8] sm:$0xff] %v7602_v41 }
 0x371 PF: > { %s16_s1 = sadd.s32 1, %s9007_s1   ;;  %s13285_s21 = smov %s9003_s22 }
 0x372   : > { %p13_p5 = scmp.ge.s32.totalorder %s16_s1, 4   ;;  %s13286_s22 = smov %s13288_s2 }
 0x374   :  { %15 = sbr.rel (!%p13_p5) target bundleno = 2 (0x2), region = 113 }

</bundles_post_ra>
